<compile_context>
chip_gen: v7x
topology: tpu7x:2x2x1
jax: 0.10.0
libtpu: 0.0.40
codegen_flags: <defaults>
</compile_context>

<pallas_src>
import functools

import jax
import jax.numpy as jnp
from jax import lax
from jax.experimental import pallas as pl
from jax.experimental.pallas import tpu as pltpu

LANE = 128
HIDDEN = 64   # temporal feature channels (stand-in for the 256 of the original net)
DEC_C = 32    # logical decoder channels (carried zero-padded to LANE inside kernels)

VMEM = pl.BlockSpec(memory_space=pltpu.MemorySpace.VMEM)


def _round_up(n, m):
    return (n + m - 1) // m * m


# -----------------------------------------------------------------------------
# Pallas kernels
# -----------------------------------------------------------------------------
def _matmul_bias_kernel(x_ref, w_ref, b_ref, o_ref, *, relu):
    acc = jnp.dot(x_ref[...], w_ref[...], preferred_element_type=jnp.float32)
    acc = acc + b_ref[...]
    if relu:
        acc = jnp.maximum(acc, 0.0)
    o_ref[...] = acc


def _matmul_add_relu_kernel(x_ref, w_ref, b_ref, res_ref, o_ref):
    # relu(x @ w + b + residual)   (fused 1x1 skip conv + add + relu)
    acc = jnp.dot(x_ref[...], w_ref[...], preferred_element_type=jnp.float32)
    o_ref[...] = jnp.maximum(acc + b_ref[...] + res_ref[...], 0.0)


def _convlstm_step_kernel(cols_ref, w_ref, b_ref, state_in_ref, state_out_ref):
    # One fused ConvLSTM timestep: gate matmul + bias + nonlinearities + h/c update.
    # state layout: [:, :H] = h, [:, H:] = c   (lane-dense 128-wide slab)
    H = HIDDEN
    gates = jnp.dot(cols_ref[...], w_ref[...], preferred_element_type=jnp.float32)
    gates = gates + b_ref[...]
    i = jax.nn.sigmoid(gates[:, 0:H])
    f = jax.nn.sigmoid(gates[:, H:2 * H])
    g = jnp.tanh(gates[:, 2 * H:3 * H])
    o = jax.nn.sigmoid(gates[:, 3 * H:4 * H])
    c_prev = state_in_ref[:, H:2 * H]
    c_new = f * c_prev + i * g
    h_new = o * jnp.tanh(c_new)
    state_out_ref[...] = jnp.concatenate([h_new, c_new], axis=-1)


# -----------------------------------------------------------------------------
# Kernel wrappers
# -----------------------------------------------------------------------------
def _pick_block_m(M, cap=512):
    if M <= cap:
        return M
    bm = cap
    while bm >= 8:
        if M % bm == 0:
            return bm
        bm -= 8
    return M  # fallback: whole M as one block


def matmul_bias(x, w, b, *, relu=False):
    """x:(M,K) f32, w:(K,N), b:(N,) -> (M,N) f32.

    N is zero-padded to a multiple of 128 so kernel stores are lane-dense; matmul
    inputs are cast to bf16 with f32 accumulation; M is tiled with a parallel grid.
    """
    M, K = x.shape
    _, N = w.shape
    Np = _round_up(N, LANE)
    if Np != N:
        w = jnp.pad(w, ((0, 0), (0, Np - N)))
        b = jnp.pad(b, ((0, Np - N),))
    xb = x.astype(jnp.bfloat16)
    wb = w.astype(jnp.bfloat16)
    b2 = b.reshape(1, Np).astype(jnp.float32)

    bm = _pick_block_m(M)
    out = pl.pallas_call(
        functools.partial(_matmul_bias_kernel, relu=relu),
        out_shape=jax.ShapeDtypeStruct((M, Np), jnp.float32),
        grid=(M // bm,),
        in_specs=[
            pl.BlockSpec((bm, K), lambda i: (i, 0)),
            pl.BlockSpec((K, Np), lambda i: (0, 0)),
            pl.BlockSpec((1, Np), lambda i: (0, 0)),
        ],
        out_specs=pl.BlockSpec((bm, Np), lambda i: (i, 0)),
        compiler_params=pltpu.CompilerParams(
            dimension_semantics=("parallel",)),
    )(xb, wb, b2)
    return out[:, :N] if Np != N else out


def convlstm_step(cols, w_bf16, b2, state):
    """cols:(M, 9*2H) , w:(9*2H, 4H) bf16, b2:(1,4H), state:(M, 2H) f32 -> new state."""
    M = cols.shape[0]
    return pl.pallas_call(
        _convlstm_step_kernel,
        out_shape=jax.ShapeDtypeStruct((M, 2 * HIDDEN), jnp.float32),
        in_specs=[VMEM, VMEM, VMEM, VMEM],
        out_specs=VMEM,
    )(cols.astype(jnp.bfloat16), w_bf16, b2, state)


def skip_fuse(x_lo, f_skip, w_pad, b_pad):
    """relu(upsample2x(x_lo) + conv1x1(f_skip)) with the 1x1 conv + add + relu fused.

    x_lo: (B, h, w, 128) zero-padded decoder slab; f_skip: (B, 2h, 2w, Cs);
    w_pad: (Cs, 128) zero-padded; b_pad: (128,).  Output: (B, 2h, 2w, 128).
    """
    B, h, w, Cp = x_lo.shape
    x_up = jnp.repeat(jnp.repeat(x_lo, 2, axis=1), 2, axis=2)       # glue (small)
    M = B * 2 * h * 2 * w
    cols = f_skip.reshape(M, f_skip.shape[-1]).astype(jnp.bfloat16)
    out = pl.pallas_call(
        _matmul_add_relu_kernel,
        out_shape=jax.ShapeDtypeStruct((M, Cp), jnp.float32),
        in_specs=[VMEM, VMEM, VMEM, VMEM],
        out_specs=VMEM,
    )(cols, w_pad.astype(jnp.bfloat16), b_pad.reshape(1, Cp), x_up.reshape(M, Cp))
    return out.reshape(B, 2 * h, 2 * w, Cp)


# -----------------------------------------------------------------------------
# Convolution = im2col (glue) + Pallas matmul
# -----------------------------------------------------------------------------
def _im2col(x, kh, kw, stride, pad):
    if pad:
        x = jnp.pad(x, ((0, 0), (pad, pad), (pad, pad), (0, 0)))
    B, H, W, C = x.shape
    oh = (H - kh) // stride + 1
    ow = (W - kw) // stride + 1
    cols = []
    for i in range(kh):
        for j in range(kw):
            cols.append(x[:, i:i + stride * oh:stride, j:j + stride * ow:stride, :])
    cols = jnp.concatenate(cols, axis=-1)                 # (B, oh, ow, kh*kw*C)
    return cols.reshape(B * oh * ow, kh * kw * C), (B, oh, ow)


def conv2d(x, w, b, *, stride=1, pad=0, relu=False):
    """x: NHWC, w: (kh, kw, Cin, Cout), b: (Cout,)."""
    kh, kw, cin, cout = w.shape
    cols, (B, oh, ow) = _im2col(x, kh, kw, stride, pad)
    out = matmul_bias(cols, w.reshape(kh * kw * cin, cout), b, relu=relu)
    return out.reshape(B, oh, ow, out.shape[-1])


# -----------------------------------------------------------------------------
# Sub-modules
# -----------------------------------------------------------------------------
def mobile_encoder(frames, p):
    """frames: (B*T, H, W, C) — all T frames go through each conv in a single call."""
    f1 = conv2d(frames, p["enc1_w"], p["enc1_b"], stride=2, pad=1, relu=True)
    f2 = conv2d(f1, p["enc2_w"], p["enc2_b"], stride=2, pad=1, relu=True)
    f3 = conv2d(f2, p["enc3_w"], p["enc3_b"], stride=2, pad=1, relu=True)
    return [f1, f2, f3]


def time_processer(tem, p):
    """ConvLSTM over time; returns the final hidden state (== lstm(tem)[:, -1])."""
    B, T, h, w, _ = tem.shape
    M = B * h * w
    w_bf16 = p["lstm_w"].reshape(3 * 3 * 2 * HIDDEN, 4 * HIDDEN).astype(jnp.bfloat16)
    b2 = p["lstm_b"].reshape(1, 4 * HIDDEN).astype(jnp.float32)
    state0 = jnp.zeros((M, 2 * HIDDEN), jnp.float32)      # h || c

    def step(state, xt):
        hprev = state[:, :HIDDEN].reshape(B, h, w, HIDDEN)
        xh = jnp.concatenate([xt, hprev], axis=-1)        # (B, h, w, 2*HIDDEN)
        cols, _ = _im2col(xh, 3, 3, 1, 1)                 # (M, 9*2*HIDDEN)
        state_new = convlstm_step(cols, w_bf16, b2, state)
        return state_new, None

    xs = jnp.transpose(tem, (1, 0, 2, 3, 4))              # (T, B, h, w, HIDDEN)
    state, _ = lax.scan(step, state0, xs)
    return state[:, :HIDDEN].reshape(B, h, w, HIDDEN)


def refine_decoder(feats, p):
    f1, f2, f3 = feats
    B, h3, w3, _ = f3.shape

    # Stage 3: 1x1 conv on the temporal feature; keep output as a 128-lane slab
    # (zero padding in the extra lanes stays zero through the whole decoder).
    w_d3 = jnp.pad(p["dec3_w"].reshape(HIDDEN, DEC_C), ((0, 0), (0, LANE - DEC_C)))
    b_d3 = jnp.pad(p["dec3_b"], ((0, LANE - DEC_C),))
    x = matmul_bias(f3.reshape(B * h3 * w3, HIDDEN), w_d3, b_d3, relu=True)
    x = x.reshape(B, h3, w3, LANE)

    # Stage 2: fused upsample-residual + 1x1(f2) + add + relu.
    w_d2 = jnp.pad(p["dec2_w"].reshape(DEC_C, DEC_C), ((0, 0), (0, LANE - DEC_C)))
    b_d2 = jnp.pad(p["dec2_b"], ((0, LANE - DEC_C),))
    x = skip_fuse(x, f2, w_d2, b_d2)

    # Stage 1: fused upsample-residual + 1x1(f1) + add + relu.
    w_d1 = jnp.pad(p["dec1_w"].reshape(16, DEC_C), ((0, 0), (0, LANE - DEC_C)))
    b_d1 = jnp.pad(p["dec1_b"], ((0, LANE - DEC_C),))
    x = skip_fuse(x, f1, w_d1, b_d1)

    # Head 3x3 conv: pad Cin of the weight to match the 128-lane padded slab
    # (extra input channels are zero so the result is unchanged).
    w_head = jnp.pad(p["head_w"], ((0, 0), (0, 0), (0, LANE - DEC_C), (0, 0)))
    return conv2d(x, w_head, p["head_b"], stride=1, pad=1, relu=False)


# -----------------------------------------------------------------------------
# TemporalNet.forward
# -----------------------------------------------------------------------------
def temporal_net_forward(x, params):
    # x: (B, T, C, H, W)  (PyTorch NCHW per frame)
    B, T, C, H, W = x.shape
    frames = jnp.transpose(x, (0, 1, 3, 4, 2)).reshape(B * T, H, W, C)  # NHWC, T in batch
    f1, f2, f3 = mobile_encoder(frames, params)

    h3, w3 = f3.shape[1], f3.shape[2]
    tem = f3.reshape(B, T, h3, w3, HIDDEN)                # (B, T, h, w, HIDDEN)
    temporal_output = time_processer(tem, params)         # lstm(tem)[:, -1]

    # Decoder consumes f1/f2 of the LAST frame (matches PyTorch: `tensor` from the
    # final loop iteration) and the temporal output in place of f3.
    f1_last = f1.reshape(B, T, *f1.shape[1:])[:, -1]
    f2_last = f2.reshape(B, T, *f2.shape[1:])[:, -1]
    out_segm = refine_decoder([f1_last, f2_last, temporal_output], params)  # NHWC
    return jnp.transpose(out_segm, (0, 3, 1, 2))          # back to NCHW


# -----------------------------------------------------------------------------
# Deterministic parameter init (conv weights ~ N(0, 0.01), biases zero,
# mirroring TemporalNet._initialize_weights)
# -----------------------------------------------------------------------------
def init_params(key, num_classes, cin=3):
    def conv_w(k, kh, kw, ci, co):
        return 0.01 * jax.random.normal(k, (kh, kw, ci, co), jnp.float32)

    keys = jax.random.split(key, 8)
    p = {}
    p["enc1_w"] = conv_w(keys[0], 3, 3, cin, 16);            p["enc1_b"] = jnp.zeros((16,), jnp.float32)
    p["enc2_w"] = conv_w(keys[1], 3, 3, 16, 32);             p["enc2_b"] = jnp.zeros((32,), jnp.float32)
    p["enc3_w"] = conv_w(keys[2], 3, 3, 32, HIDDEN);         p["enc3_b"] = jnp.zeros((HIDDEN,), jnp.float32)
    p["lstm_w"] = conv_w(keys[3], 3, 3, 2 * HIDDEN, 4 * HIDDEN)
    p["lstm_b"] = jnp.zeros((4 * HIDDEN,), jnp.float32)
    p["dec3_w"] = conv_w(keys[4], 1, 1, HIDDEN, DEC_C);      p["dec3_b"] = jnp.zeros((DEC_C,), jnp.float32)
    p["dec2_w"] = conv_w(keys[5], 1, 1, 32, DEC_C);          p["dec2_b"] = jnp.zeros((DEC_C,), jnp.float32)
    p["dec1_w"] = conv_w(keys[6], 1, 1, 16, DEC_C);          p["dec1_b"] = jnp.zeros((DEC_C,), jnp.float32)
    p["head_w"] = conv_w(keys[7], 3, 3, DEC_C, num_classes); p["head_b"] = jnp.zeros((num_classes,), jnp.float32)
    return p


if __name__ == "__main__":
    key = jax.random.PRNGKey(0)
    kx, kp = jax.random.split(key)

    B, T, C, H, W = 2, 4, 3, 32, 32
    num_classes = 5

    x = jax.random.normal(kx, (B, T, C, H, W), jnp.float32)
    params = init_params(kp, num_classes)

    fwd = jax.jit(temporal_net_forward)
    out = fwd(x, params)
    out = jax.block_until_ready(out)

    assert out.shape == (B, num_classes, H // 2, W // 2), out.shape
    assert jnp.all(jnp.isfinite(out))
    print("KERNEL_OK")
</pallas_src>

<mosaic_0001>
module attributes {stable_mosaic.version = 11 : i64} {
  func.func @_matmul_bias_kernel(%arg0: i32, %arg1: memref<512x27xbf16, #tpu.memory_space<vmem>>, %arg2: memref<27x128xbf16, #tpu.memory_space<vmem>>, %arg3: memref<1x128xf32, #tpu.memory_space<vmem>>, %arg4: memref<512x128xf32, #tpu.memory_space<vmem>>) attributes {dimension_semantics = [#tpu.dimension_semantics<parallel>], iteration_bounds = array<i64: 4>, scalar_prefetch = 0 : i64, scratch_operands = 0 : i64, tpu.core_type = #tpu.core_type<tc>, window_params = [{transform_indices = @transform_0, window_bounds = array<i64: 512, 27>}, {pipeline_mode = #tpu.pipeline_mode<synchronous>, transform_indices = @transform_1, window_bounds = array<i64: 27, 128>}, {pipeline_mode = #tpu.pipeline_mode<synchronous>, transform_indices = @transform_2, window_bounds = array<i64: 1, 128>}, {transform_indices = @transform_3, window_bounds = array<i64: 512, 128>}]} {
    %c0 = arith.constant 0 : index
    %c0_0 = arith.constant 0 : index
    %0 = vector.load %arg1[%c0, %c0_0] : memref<512x27xbf16, #tpu.memory_space<vmem>>, vector<512x27xbf16>
    %c0_1 = arith.constant 0 : index
    %c0_2 = arith.constant 0 : index
    %1 = vector.load %arg2[%c0_1, %c0_2] : memref<27x128xbf16, #tpu.memory_space<vmem>>, vector<27x128xbf16>
    %cst = arith.constant dense<0.000000e+00> : vector<512x128xf32>
    %2 = tpu.matmul %0, %1, %cst {dimension_numbers = #tpu.dot_dimension_numbers<[1], [0], [0], [1], [0, 0, 1, 1], [], []>} : vector<512x27xbf16>, vector<27x128xbf16>, vector<512x128xf32> -> vector<512x128xf32>
    %c0_3 = arith.constant 0 : index
    %c0_4 = arith.constant 0 : index
    %3 = vector.load %arg3[%c0_3, %c0_4] : memref<1x128xf32, #tpu.memory_space<vmem>>, vector<1x128xf32>
    %4 = vector.broadcast %3 : vector<1x128xf32> to vector<512x128xf32>
    %5 = arith.addf %2, %4 : vector<512x128xf32>
    %cst_5 = arith.constant 0.000000e+00 : f32
    %6 = vector.broadcast %cst_5 : f32 to vector<512x128xf32>
    %7 = arith.maximumf %5, %6 : vector<512x128xf32>
    %c0_6 = arith.constant 0 : index
    %c0_7 = arith.constant 0 : index
    %8 = vector.load %arg4[%c0_6, %c0_7] : memref<512x128xf32, #tpu.memory_space<vmem>>, vector<512x128xf32>
    tpu.vector_store %arg4[%c0_6, %c0_7], %7 {strides = array<i32>} : memref<512x128xf32, #tpu.memory_space<vmem>>, vector<512x128xf32>,
    return
  }
  func.func @transform_0(%arg0: i32) -> (i32, i32) {
    %c0_i32 = arith.constant 0 : i32
    %c0_i32_0 = arith.constant 0 : i32
    return %arg0, %c0_i32 : i32, i32
  }
  func.func @transform_1(%arg0: i32) -> (i32, i32) {
    %c0_i32 = arith.constant 0 : i32
    %c0_i32_0 = arith.constant 0 : i32
    %c0_i32_1 = arith.constant 0 : i32
    return %c0_i32, %c0_i32_0 : i32, i32
  }
  func.func @transform_2(%arg0: i32) -> (i32, i32) {
    %c0_i32 = arith.constant 0 : i32
    %c0_i32_0 = arith.constant 0 : i32
    %c0_i32_1 = arith.constant 0 : i32
    return %c0_i32, %c0_i32_0 : i32, i32
  }
  func.func @transform_3(%arg0: i32) -> (i32, i32) {
    %c0_i32 = arith.constant 0 : i32
    %c0_i32_0 = arith.constant 0 : i32
    return %arg0, %c0_i32 : i32, i32
  }
}

module attributes {stable_mosaic.version = 11 : i64} {
  func.func @_matmul_bias_kernel(%arg0: i32, %arg1: memref<512x144xbf16, #tpu.memory_space<vmem>>, %arg2: memref<144x128xbf16, #tpu.memory_space<vmem>>, %arg3: memref<1x128xf32, #tpu.memory_space<vmem>>, %arg4: memref<512x128xf32, #tpu.memory_space<vmem>>) attributes {dimension_semantics = [#tpu.dimension_semantics<parallel>], iteration_bounds = array<i64: 1>, scalar_prefetch = 0 : i64, scratch_operands = 0 : i64, tpu.core_type = #tpu.core_type<tc>, window_params = [{transform_indices = @transform_0, window_bounds = array<i64: 512, 144>}, {pipeline_mode = #tpu.pipeline_mode<synchronous>, transform_indices = @transform_1, window_bounds = array<i64: 144, 128>}, {pipeline_mode = #tpu.pipeline_mode<synchronous>, transform_indices = @transform_2, window_bounds = array<i64: 1, 128>}, {transform_indices = @transform_3, window_bounds = array<i64: 512, 128>}]} {
    %c0 = arith.constant 0 : index
    %c0_0 = arith.constant 0 : index
    %0 = vector.load %arg1[%c0, %c0_0] : memref<512x144xbf16, #tpu.memory_space<vmem>>, vector<512x144xbf16>
    %c0_1 = arith.constant 0 : index
    %c0_2 = arith.constant 0 : index
    %1 = vector.load %arg2[%c0_1, %c0_2] : memref<144x128xbf16, #tpu.memory_space<vmem>>, vector<144x128xbf16>
    %cst = arith.constant dense<0.000000e+00> : vector<512x128xf32>
    %2 = tpu.matmul %0, %1, %cst {dimension_numbers = #tpu.dot_dimension_numbers<[1], [0], [0], [1], [0, 0, 1, 1], [], []>} : vector<512x144xbf16>, vector<144x128xbf16>, vector<512x128xf32> -> vector<512x128xf32>
    %c0_3 = arith.constant 0 : index
    %c0_4 = arith.constant 0 : index
    %3 = vector.load %arg3[%c0_3, %c0_4] : memref<1x128xf32, #tpu.memory_space<vmem>>, vector<1x128xf32>
    %4 = vector.broadcast %3 : vector<1x128xf32> to vector<512x128xf32>
    %5 = arith.addf %2, %4 : vector<512x128xf32>
    %cst_5 = arith.constant 0.000000e+00 : f32
    %6 = vector.broadcast %cst_5 : f32 to vector<512x128xf32>
    %7 = arith.maximumf %5, %6 : vector<512x128xf32>
    %c0_6 = arith.constant 0 : index
    %c0_7 = arith.constant 0 : index
    %8 = vector.load %arg4[%c0_6, %c0_7] : memref<512x128xf32, #tpu.memory_space<vmem>>, vector<512x128xf32>
    tpu.vector_store %arg4[%c0_6, %c0_7], %7 {strides = array<i32>} : memref<512x128xf32, #tpu.memory_space<vmem>>, vector<512x128xf32>,
    return
  }
  func.func @transform_0(%arg0: i32) -> (i32, i32) {
    %c0_i32 = arith.constant 0 : i32
    %c0_i32_0 = arith.constant 0 : i32
    return %arg0, %c0_i32 : i32, i32
  }
  func.func @transform_1(%arg0: i32) -> (i32, i32) {
    %c0_i32 = arith.constant 0 : i32
    %c0_i32_0 = arith.constant 0 : i32
    %c0_i32_1 = arith.constant 0 : i32
    return %c0_i32, %c0_i32_0 : i32, i32
  }
  func.func @transform_2(%arg0: i32) -> (i32, i32) {
    %c0_i32 = arith.constant 0 : i32
    %c0_i32_0 = arith.constant 0 : i32
    %c0_i32_1 = arith.constant 0 : i32
    return %c0_i32, %c0_i32_0 : i32, i32
  }
  func.func @transform_3(%arg0: i32) -> (i32, i32) {
    %c0_i32 = arith.constant 0 : i32
    %c0_i32_0 = arith.constant 0 : i32
    return %arg0, %c0_i32 : i32, i32
  }
}

module attributes {stable_mosaic.version = 11 : i64} {
  func.func @_matmul_bias_kernel(%arg0: i32, %arg1: memref<128x288xbf16, #tpu.memory_space<vmem>>, %arg2: memref<288x128xbf16, #tpu.memory_space<vmem>>, %arg3: memref<1x128xf32, #tpu.memory_space<vmem>>, %arg4: memref<128x128xf32, #tpu.memory_space<vmem>>) attributes {dimension_semantics = [#tpu.dimension_semantics<parallel>], iteration_bounds = array<i64: 1>, scalar_prefetch = 0 : i64, scratch_operands = 0 : i64, tpu.core_type = #tpu.core_type<tc>, window_params = [{transform_indices = @transform_0, window_bounds = array<i64: 128, 288>}, {pipeline_mode = #tpu.pipeline_mode<synchronous>, transform_indices = @transform_1, window_bounds = array<i64: 288, 128>}, {pipeline_mode = #tpu.pipeline_mode<synchronous>, transform_indices = @transform_2, window_bounds = array<i64: 1, 128>}, {transform_indices = @transform_3, window_bounds = array<i64: 128, 128>}]} {
    %c0 = arith.constant 0 : index
    %c0_0 = arith.constant 0 : index
    %0 = vector.load %arg1[%c0, %c0_0] : memref<128x288xbf16, #tpu.memory_space<vmem>>, vector<128x288xbf16>
    %c0_1 = arith.constant 0 : index
    %c0_2 = arith.constant 0 : index
    %1 = vector.load %arg2[%c0_1, %c0_2] : memref<288x128xbf16, #tpu.memory_space<vmem>>, vector<288x128xbf16>
    %cst = arith.constant dense<0.000000e+00> : vector<128x128xf32>
    %2 = tpu.matmul %0, %1, %cst {dimension_numbers = #tpu.dot_dimension_numbers<[1], [0], [0], [1], [0, 0, 1, 1], [], []>} : vector<128x288xbf16>, vector<288x128xbf16>, vector<128x128xf32> -> vector<128x128xf32>
    %c0_3 = arith.constant 0 : index
    %c0_4 = arith.constant 0 : index
    %3 = vector.load %arg3[%c0_3, %c0_4] : memref<1x128xf32, #tpu.memory_space<vmem>>, vector<1x128xf32>
    %4 = vector.broadcast %3 : vector<1x128xf32> to vector<128x128xf32>
    %5 = arith.addf %2, %4 : vector<128x128xf32>
    %cst_5 = arith.constant 0.000000e+00 : f32
    %6 = vector.broadcast %cst_5 : f32 to vector<128x128xf32>
    %7 = arith.maximumf %5, %6 : vector<128x128xf32>
    %c0_6 = arith.constant 0 : index
    %c0_7 = arith.constant 0 : index
    %8 = vector.load %arg4[%c0_6, %c0_7] : memref<128x128xf32, #tpu.memory_space<vmem>>, vector<128x128xf32>
    tpu.vector_store %arg4[%c0_6, %c0_7], %7 {strides = array<i32>} : memref<128x128xf32, #tpu.memory_space<vmem>>, vector<128x128xf32>,
    return
  }
  func.func @transform_0(%arg0: i32) -> (i32, i32) {
    %c0_i32 = arith.constant 0 : i32
    %c0_i32_0 = arith.constant 0 : i32
    return %arg0, %c0_i32 : i32, i32
  }
  func.func @transform_1(%arg0: i32) -> (i32, i32) {
    %c0_i32 = arith.constant 0 : i32
    %c0_i32_0 = arith.constant 0 : i32
    %c0_i32_1 = arith.constant 0 : i32
    return %c0_i32, %c0_i32_0 : i32, i32
  }
  func.func @transform_2(%arg0: i32) -> (i32, i32) {
    %c0_i32 = arith.constant 0 : i32
    %c0_i32_0 = arith.constant 0 : i32
    %c0_i32_1 = arith.constant 0 : i32
    return %c0_i32, %c0_i32_0 : i32, i32
  }
  func.func @transform_3(%arg0: i32) -> (i32, i32) {
    %c0_i32 = arith.constant 0 : i32
    %c0_i32_0 = arith.constant 0 : i32
    return %arg0, %c0_i32 : i32, i32
  }
}

module attributes {stable_mosaic.version = 11 : i64} {
  func.func @_convlstm_step_kernel(%arg0: memref<32x1152xbf16, #tpu.memory_space<vmem>>, %arg1: memref<1152x256xbf16, #tpu.memory_space<vmem>>, %arg2: memref<1x256xf32, #tpu.memory_space<vmem>>, %arg3: memref<32x128xf32, #tpu.memory_space<vmem>>, %arg4: memref<32x128xf32, #tpu.memory_space<vmem>>) attributes {dimension_semantics = [], scalar_prefetch = 0 : i64, scratch_operands = 0 : i64, tpu.core_type = #tpu.core_type<tc>} {
    %c0 = arith.constant 0 : index
    %c0_0 = arith.constant 0 : index
    %0 = vector.load %arg0[%c0, %c0_0] : memref<32x1152xbf16, #tpu.memory_space<vmem>>, vector<32x1152xbf16>
    %c0_1 = arith.constant 0 : index
    %c0_2 = arith.constant 0 : index
    %1 = vector.load %arg1[%c0_1, %c0_2] : memref<1152x256xbf16, #tpu.memory_space<vmem>>, vector<1152x256xbf16>
    %cst = arith.constant dense<0.000000e+00> : vector<32x256xf32>
    %2 = tpu.matmul %0, %1, %cst {dimension_numbers = #tpu.dot_dimension_numbers<[1], [0], [0], [1], [0, 0, 1, 1], [], []>} : vector<32x1152xbf16>, vector<1152x256xbf16>, vector<32x256xf32> -> vector<32x256xf32>
    %c0_3 = arith.constant 0 : index
    %c0_4 = arith.constant 0 : index
    %3 = vector.load %arg2[%c0_3, %c0_4] : memref<1x256xf32, #tpu.memory_space<vmem>>, vector<1x256xf32>
    %4 = vector.broadcast %3 : vector<1x256xf32> to vector<32x256xf32>
    %5 = arith.addf %2, %4 : vector<32x256xf32>
    %6 = vector.extract_strided_slice %5 {offsets = [0, 0], sizes = [32, 64], strides = [1, 1]} : vector<32x256xf32> to vector<32x64xf32>
    %7 = arith.negf %6 : vector<32x64xf32>
    %8 = math.exp %7 : vector<32x64xf32>
    %cst_5 = arith.constant 1.000000e+00 : f32
    %9 = vector.broadcast %cst_5 : f32 to vector<32x64xf32>
    %10 = arith.addf %9, %8 : vector<32x64xf32>
    %11 = arith.divf %9, %10 : vector<32x64xf32>
    %12 = vector.extract_strided_slice %5 {offsets = [0, 64], sizes = [32, 64], strides = [1, 1]} : vector<32x256xf32> to vector<32x64xf32>
    %13 = arith.negf %12 : vector<32x64xf32>
    %14 = math.exp %13 : vector<32x64xf32>
    %cst_6 = arith.constant 1.000000e+00 : f32
    %15 = vector.broadcast %cst_6 : f32 to vector<32x64xf32>
    %16 = arith.addf %15, %14 : vector<32x64xf32>
    %17 = arith.divf %15, %16 : vector<32x64xf32>
    %18 = vector.extract_strided_slice %5 {offsets = [0, 128], sizes = [32, 64], strides = [1, 1]} : vector<32x256xf32> to vector<32x64xf32>
    %19 = math.tanh %18 : vector<32x64xf32>
    %20 = vector.extract_strided_slice %5 {offsets = [0, 192], sizes = [32, 64], strides = [1, 1]} : vector<32x256xf32> to vector<32x64xf32>
    %21 = arith.negf %20 : vector<32x64xf32>
    %22 = math.exp %21 : vector<32x64xf32>
    %cst_7 = arith.constant 1.000000e+00 : f32
    %23 = vector.broadcast %cst_7 : f32 to vector<32x64xf32>
    %24 = arith.addf %23, %22 : vector<32x64xf32>
    %25 = arith.divf %23, %24 : vector<32x64xf32>
    %c0_8 = arith.constant 0 : index
    %c64 = arith.constant 64 : index
    %26 = vector.load %arg3[%c0_8, %c64] : memref<32x128xf32, #tpu.memory_space<vmem>>, vector<32x64xf32>
    %27 = arith.mulf %17, %26 : vector<32x64xf32>
    %28 = arith.mulf %11, %19 : vector<32x64xf32>
    %29 = arith.addf %27, %28 : vector<32x64xf32>
    %30 = math.tanh %29 : vector<32x64xf32>
    %31 = arith.mulf %25, %30 : vector<32x64xf32>
    %32 = tpu.concatenate %31, %29 in 1 : vector<32x64xf32>, vector<32x64xf32> -> vector<32x128xf32>
    %c0_9 = arith.constant 0 : index
    %c0_10 = arith.constant 0 : index
    %33 = vector.load %arg4[%c0_9, %c0_10] : memref<32x128xf32, #tpu.memory_space<vmem>>, vector<32x128xf32>
    tpu.vector_store %arg4[%c0_9, %c0_10], %32 {strides = array<i32>} : memref<32x128xf32, #tpu.memory_space<vmem>>, vector<32x128xf32>,
    return
  }
}

module attributes {stable_mosaic.version = 11 : i64} {
  func.func @_matmul_bias_kernel(%arg0: i32, %arg1: memref<32x64xbf16, #tpu.memory_space<vmem>>, %arg2: memref<64x128xbf16, #tpu.memory_space<vmem>>, %arg3: memref<1x128xf32, #tpu.memory_space<vmem>>, %arg4: memref<32x128xf32, #tpu.memory_space<vmem>>) attributes {dimension_semantics = [#tpu.dimension_semantics<parallel>], iteration_bounds = array<i64: 1>, scalar_prefetch = 0 : i64, scratch_operands = 0 : i64, tpu.core_type = #tpu.core_type<tc>, window_params = [{transform_indices = @transform_0, window_bounds = array<i64: 32, 64>}, {pipeline_mode = #tpu.pipeline_mode<synchronous>, transform_indices = @transform_1, window_bounds = array<i64: 64, 128>}, {pipeline_mode = #tpu.pipeline_mode<synchronous>, transform_indices = @transform_2, window_bounds = array<i64: 1, 128>}, {transform_indices = @transform_3, window_bounds = array<i64: 32, 128>}]} {
    %c0 = arith.constant 0 : index
    %c0_0 = arith.constant 0 : index
    %0 = vector.load %arg1[%c0, %c0_0] : memref<32x64xbf16, #tpu.memory_space<vmem>>, vector<32x64xbf16>
    %c0_1 = arith.constant 0 : index
    %c0_2 = arith.constant 0 : index
    %1 = vector.load %arg2[%c0_1, %c0_2] : memref<64x128xbf16, #tpu.memory_space<vmem>>, vector<64x128xbf16>
    %cst = arith.constant dense<0.000000e+00> : vector<32x128xf32>
    %2 = tpu.matmul %0, %1, %cst {dimension_numbers = #tpu.dot_dimension_numbers<[1], [0], [0], [1], [0, 0, 1, 1], [], []>} : vector<32x64xbf16>, vector<64x128xbf16>, vector<32x128xf32> -> vector<32x128xf32>
    %c0_3 = arith.constant 0 : index
    %c0_4 = arith.constant 0 : index
    %3 = vector.load %arg3[%c0_3, %c0_4] : memref<1x128xf32, #tpu.memory_space<vmem>>, vector<1x128xf32>
    %4 = vector.broadcast %3 : vector<1x128xf32> to vector<32x128xf32>
    %5 = arith.addf %2, %4 : vector<32x128xf32>
    %cst_5 = arith.constant 0.000000e+00 : f32
    %6 = vector.broadcast %cst_5 : f32 to vector<32x128xf32>
    %7 = arith.maximumf %5, %6 : vector<32x128xf32>
    %c0_6 = arith.constant 0 : index
    %c0_7 = arith.constant 0 : index
    %8 = vector.load %arg4[%c0_6, %c0_7] : memref<32x128xf32, #tpu.memory_space<vmem>>, vector<32x128xf32>
    tpu.vector_store %arg4[%c0_6, %c0_7], %7 {strides = array<i32>} : memref<32x128xf32, #tpu.memory_space<vmem>>, vector<32x128xf32>,
    return
  }
  func.func @transform_0(%arg0: i32) -> (i32, i32) {
    %c0_i32 = arith.constant 0 : i32
    %c0_i32_0 = arith.constant 0 : i32
    return %arg0, %c0_i32 : i32, i32
  }
  func.func @transform_1(%arg0: i32) -> (i32, i32) {
    %c0_i32 = arith.constant 0 : i32
    %c0_i32_0 = arith.constant 0 : i32
    %c0_i32_1 = arith.constant 0 : i32
    return %c0_i32, %c0_i32_0 : i32, i32
  }
  func.func @transform_2(%arg0: i32) -> (i32, i32) {
    %c0_i32 = arith.constant 0 : i32
    %c0_i32_0 = arith.constant 0 : i32
    %c0_i32_1 = arith.constant 0 : i32
    return %c0_i32, %c0_i32_0 : i32, i32
  }
  func.func @transform_3(%arg0: i32) -> (i32, i32) {
    %c0_i32 = arith.constant 0 : i32
    %c0_i32_0 = arith.constant 0 : i32
    return %arg0, %c0_i32 : i32, i32
  }
}

module attributes {stable_mosaic.version = 11 : i64} {
  func.func @_matmul_add_relu_kernel(%arg0: memref<128x32xbf16, #tpu.memory_space<vmem>>, %arg1: memref<32x128xbf16, #tpu.memory_space<vmem>>, %arg2: memref<1x128xf32, #tpu.memory_space<vmem>>, %arg3: memref<128x128xf32, #tpu.memory_space<vmem>>, %arg4: memref<128x128xf32, #tpu.memory_space<vmem>>) attributes {dimension_semantics = [], scalar_prefetch = 0 : i64, scratch_operands = 0 : i64, tpu.core_type = #tpu.core_type<tc>} {
    %c0 = arith.constant 0 : index
    %c0_0 = arith.constant 0 : index
    %0 = vector.load %arg0[%c0, %c0_0] : memref<128x32xbf16, #tpu.memory_space<vmem>>, vector<128x32xbf16>
    %c0_1 = arith.constant 0 : index
    %c0_2 = arith.constant 0 : index
    %1 = vector.load %arg1[%c0_1, %c0_2] : memref<32x128xbf16, #tpu.memory_space<vmem>>, vector<32x128xbf16>
    %cst = arith.constant dense<0.000000e+00> : vector<128x128xf32>
    %2 = tpu.matmul %0, %1, %cst {dimension_numbers = #tpu.dot_dimension_numbers<[1], [0], [0], [1], [0, 0, 1, 1], [], []>} : vector<128x32xbf16>, vector<32x128xbf16>, vector<128x128xf32> -> vector<128x128xf32>
    %c0_3 = arith.constant 0 : index
    %c0_4 = arith.constant 0 : index
    %3 = vector.load %arg2[%c0_3, %c0_4] : memref<1x128xf32, #tpu.memory_space<vmem>>, vector<1x128xf32>
    %4 = vector.broadcast %3 : vector<1x128xf32> to vector<128x128xf32>
    %5 = arith.addf %2, %4 : vector<128x128xf32>
    %c0_5 = arith.constant 0 : index
    %c0_6 = arith.constant 0 : index
    %6 = vector.load %arg3[%c0_5, %c0_6] : memref<128x128xf32, #tpu.memory_space<vmem>>, vector<128x128xf32>
    %7 = arith.addf %5, %6 : vector<128x128xf32>
    %cst_7 = arith.constant 0.000000e+00 : f32
    %8 = vector.broadcast %cst_7 : f32 to vector<128x128xf32>
    %9 = arith.maximumf %7, %8 : vector<128x128xf32>
    %c0_8 = arith.constant 0 : index
    %c0_9 = arith.constant 0 : index
    %10 = vector.load %arg4[%c0_8, %c0_9] : memref<128x128xf32, #tpu.memory_space<vmem>>, vector<128x128xf32>
    tpu.vector_store %arg4[%c0_8, %c0_9], %9 {strides = array<i32>} : memref<128x128xf32, #tpu.memory_space<vmem>>, vector<128x128xf32>,
    return
  }
}

module attributes {stable_mosaic.version = 11 : i64} {
  func.func @_matmul_add_relu_kernel(%arg0: memref<512x16xbf16, #tpu.memory_space<vmem>>, %arg1: memref<16x128xbf16, #tpu.memory_space<vmem>>, %arg2: memref<1x128xf32, #tpu.memory_space<vmem>>, %arg3: memref<512x128xf32, #tpu.memory_space<vmem>>, %arg4: memref<512x128xf32, #tpu.memory_space<vmem>>) attributes {dimension_semantics = [], scalar_prefetch = 0 : i64, scratch_operands = 0 : i64, tpu.core_type = #tpu.core_type<tc>} {
    %c0 = arith.constant 0 : index
    %c0_0 = arith.constant 0 : index
    %0 = vector.load %arg0[%c0, %c0_0] : memref<512x16xbf16, #tpu.memory_space<vmem>>, vector<512x16xbf16>
    %c0_1 = arith.constant 0 : index
    %c0_2 = arith.constant 0 : index
    %1 = vector.load %arg1[%c0_1, %c0_2] : memref<16x128xbf16, #tpu.memory_space<vmem>>, vector<16x128xbf16>
    %cst = arith.constant dense<0.000000e+00> : vector<512x128xf32>
    %2 = tpu.matmul %0, %1, %cst {dimension_numbers = #tpu.dot_dimension_numbers<[1], [0], [0], [1], [0, 0, 1, 1], [], []>} : vector<512x16xbf16>, vector<16x128xbf16>, vector<512x128xf32> -> vector<512x128xf32>
    %c0_3 = arith.constant 0 : index
    %c0_4 = arith.constant 0 : index
    %3 = vector.load %arg2[%c0_3, %c0_4] : memref<1x128xf32, #tpu.memory_space<vmem>>, vector<1x128xf32>
    %4 = vector.broadcast %3 : vector<1x128xf32> to vector<512x128xf32>
    %5 = arith.addf %2, %4 : vector<512x128xf32>
    %c0_5 = arith.constant 0 : index
    %c0_6 = arith.constant 0 : index
    %6 = vector.load %arg3[%c0_5, %c0_6] : memref<512x128xf32, #tpu.memory_space<vmem>>, vector<512x128xf32>
    %7 = arith.addf %5, %6 : vector<512x128xf32>
    %cst_7 = arith.constant 0.000000e+00 : f32
    %8 = vector.broadcast %cst_7 : f32 to vector<512x128xf32>
    %9 = arith.maximumf %7, %8 : vector<512x128xf32>
    %c0_8 = arith.constant 0 : index
    %c0_9 = arith.constant 0 : index
    %10 = vector.load %arg4[%c0_8, %c0_9] : memref<512x128xf32, #tpu.memory_space<vmem>>, vector<512x128xf32>
    tpu.vector_store %arg4[%c0_8, %c0_9], %9 {strides = array<i32>} : memref<512x128xf32, #tpu.memory_space<vmem>>, vector<512x128xf32>,
    return
  }
}

module attributes {stable_mosaic.version = 11 : i64} {
  func.func @_matmul_bias_kernel(%arg0: i32, %arg1: memref<512x1152xbf16, #tpu.memory_space<vmem>>, %arg2: memref<1152x128xbf16, #tpu.memory_space<vmem>>, %arg3: memref<1x128xf32, #tpu.memory_space<vmem>>, %arg4: memref<512x128xf32, #tpu.memory_space<vmem>>) attributes {dimension_semantics = [#tpu.dimension_semantics<parallel>], iteration_bounds = array<i64: 1>, scalar_prefetch = 0 : i64, scratch_operands = 0 : i64, tpu.core_type = #tpu.core_type<tc>, window_params = [{transform_indices = @transform_0, window_bounds = array<i64: 512, 1152>}, {pipeline_mode = #tpu.pipeline_mode<synchronous>, transform_indices = @transform_1, window_bounds = array<i64: 1152, 128>}, {pipeline_mode = #tpu.pipeline_mode<synchronous>, transform_indices = @transform_2, window_bounds = array<i64: 1, 128>}, {transform_indices = @transform_3, window_bounds = array<i64: 512, 128>}]} {
    %c0 = arith.constant 0 : index
    %c0_0 = arith.constant 0 : index
    %0 = vector.load %arg1[%c0, %c0_0] : memref<512x1152xbf16, #tpu.memory_space<vmem>>, vector<512x1152xbf16>
    %c0_1 = arith.constant 0 : index
    %c0_2 = arith.constant 0 : index
    %1 = vector.load %arg2[%c0_1, %c0_2] : memref<1152x128xbf16, #tpu.memory_space<vmem>>, vector<1152x128xbf16>
    %cst = arith.constant dense<0.000000e+00> : vector<512x128xf32>
    %2 = tpu.matmul %0, %1, %cst {dimension_numbers = #tpu.dot_dimension_numbers<[1], [0], [0], [1], [0, 0, 1, 1], [], []>} : vector<512x1152xbf16>, vector<1152x128xbf16>, vector<512x128xf32> -> vector<512x128xf32>
    %c0_3 = arith.constant 0 : index
    %c0_4 = arith.constant 0 : index
    %3 = vector.load %arg3[%c0_3, %c0_4] : memref<1x128xf32, #tpu.memory_space<vmem>>, vector<1x128xf32>
    %4 = vector.broadcast %3 : vector<1x128xf32> to vector<512x128xf32>
    %5 = arith.addf %2, %4 : vector<512x128xf32>
    %c0_5 = arith.constant 0 : index
    %c0_6 = arith.constant 0 : index
    %6 = vector.load %arg4[%c0_5, %c0_6] : memref<512x128xf32, #tpu.memory_space<vmem>>, vector<512x128xf32>
    tpu.vector_store %arg4[%c0_5, %c0_6], %5 {strides = array<i32>} : memref<512x128xf32, #tpu.memory_space<vmem>>, vector<512x128xf32>,
    return
  }
  func.func @transform_0(%arg0: i32) -> (i32, i32) {
    %c0_i32 = arith.constant 0 : i32
    %c0_i32_0 = arith.constant 0 : i32
    return %arg0, %c0_i32 : i32, i32
  }
  func.func @transform_1(%arg0: i32) -> (i32, i32) {
    %c0_i32 = arith.constant 0 : i32
    %c0_i32_0 = arith.constant 0 : i32
    %c0_i32_1 = arith.constant 0 : i32
    return %c0_i32, %c0_i32_0 : i32, i32
  }
  func.func @transform_2(%arg0: i32) -> (i32, i32) {
    %c0_i32 = arith.constant 0 : i32
    %c0_i32_0 = arith.constant 0 : i32
    %c0_i32_1 = arith.constant 0 : i32
    return %c0_i32, %c0_i32_0 : i32, i32
  }
  func.func @transform_3(%arg0: i32) -> (i32, i32) {
    %c0_i32 = arith.constant 0 : i32
    %c0_i32_0 = arith.constant 0 : i32
    return %arg0, %c0_i32 : i32, i32
  }
}

</mosaic_0001>

<bundles_post_ra>
// kernel: temporal_net_forward.7
= control target key start
LH: loop header
LB: loop body
LE: loop exit
PB: predicated region body
PF: predicated region fallthrough
CT: control target
= control target key end

     0   :  { %s1254_s12 = smov 0   ;;  %s1482_s0 = inlined_call_operand.vmem [shape: bf16[2048,27], index: 0, kind: input, shape index: {}]   ;;  %s1483_s1 = inlined_call_operand.vmem [shape: bf16[27,128], index: 1, kind: input, shape index: {}]   ;;  %s1484_s2 = inlined_call_operand.vmem [shape: f32[1,128], index: 2, kind: input, shape index: {}]   ;;  %s1485_s3 = inlined_call_operand.vmem [shape: f32[2048,128], index: 3, kind: output, shape index: {}]  }
   0x1 LB: > { %s998_s13 = sadd.s32 4294967295, %s1231_s12   ;;  %p1002_p0 = scmp.ge.s32.totalorder %s1231_s12, 1  ;;  %s1231_s12 = sphi %s1254_s12, %s13_s12  }
   0x2   : > { %p138_p1 = scmp.lt.s32.totalorder %s1231_s12, 5 }
   0x4   : > { %p139_p2 = pnand %p1002_p0, %p138_p1 }
   0x5   : > { %v1191_v0 = vld [vmem:[%s1483_s1] sm:$0xff] (!%p139_p2)   ;;  %vm518_vm0 = vcmask (!%p139_p2), 1044480   ;;  %v1192_v1 = vld [vmem:[%s1483_s1 + $0x8] sm:$0x3f] (!%p139_p2)   ;;  %vm519_vm1 = vcmask (!%p139_p2), 1045504   ;;  %s1003_s18 = sshll.u32 (!%p139_p2), %s998_s13, 6 }
   0x6   : > { %142 = sbr.rel (%p139_p2) target bundleno = 295 (0x127), region = 32  ;;  %1110 = vmatprep.subr.bf16.mxu0 (!%p139_p2), %v1191_v0  ;;  %1178 = vmatprep.subr.bf16.mxu1 (!%p139_p2), %v1191_v0  ;;  %v1233_v2 = vmov (!%p139_p2), 65535   ;;  %p163_p3 = scmp.lt.s32.totalorder (!%p139_p2), %s1003_s18, 255  ;;  %vm421_vm2 = vcmask (!%p139_p2), 220160   ;;  %v1343_v38 = vld [vmem:[%s1484_s2] ss:$0 sm:$0xff] (!%p139_p2) }
   0x7   : > { %1111 = vmatpush3.bf16.msra.mxu0 (!%p139_p2), %v1191_v0  ;;  %1180 = vmatpush3.bf16.msra.mxu1 (!%p139_p2), %v1191_v0  ;;  %v520_v3 = vsel (!%p139_p2), %vm518_vm0, 4294967295, %v1233_v2 }
   0x8   : > { %v521_v4 = vsel (!%p139_p2), %vm519_vm1, %v520_v3, 0 }
   0x9   : > { %v523_v5 = vand.u32 (!%p139_p2), %v1192_v1, %v521_v4 }
   0xb   : > { %1112 = vmatprep.subr.bf16.mxu0 (!%p139_p2), %v523_v5  ;;  %1179 = vmatprep.subr.bf16.mxu1 (!%p139_p2), %v523_v5 }
   0xc   : > { %1113 = vmatpush3.bf16.msra.mxu0 (!%p139_p2), %v523_v5  ;;  %1181 = vmatpush3.bf16.msra.mxu1 (!%p139_p2), %v523_v5 }
   0xd   : > { %s1487_s18 = smov (!%p163_p3, %s1003_s18), 255 }
   0xe   : > { %s1004_s19 = sshll.u32 %s1487_s18, 2  ;;  %s1006_s25 = sshll.u32 %s1487_s18, 3 }
   0xf   : > { %s1274_s22 = scalar_lea.vmem %s1482_s0, %s1004_s19  ;;  %s1350_s28 = scalar_lea.vmem %s1485_s3, %s1006_s25 }
  0x10   : > { %v1193_v6 = vld [vmem:[%s1274_s22] sm:$0xff]   ;;  %v1195_v8 = vld [vmem:[%s1274_s22 + $0x8] sm:$0xff]   ;;  %v1197_v10 = vld [vmem:[%s1274_s22 + $0x10] sm:$0xff]  }
  0x11   : > { %v1194_v7 = vld [vmem:[%s1274_s22 + $0x80] sm:$0xff]   ;;  %1114 = vmatprep.mubr.msk.bf16.mxu0 %vm421_vm2, %v1193_v6  ;;  %v1196_v9 = vld [vmem:[%s1274_s22 + $0x88] sm:$0xff]   ;;  %v1198_v11 = vld [vmem:[%s1274_s22 + $0x90] sm:$0xff]  }
  0x12   : > { %1146 = vmatprep.mubr.msk.bf16.mxu1 %vm421_vm2, %v1194_v7  ;;  %1115 = vmatmul.mubr.msk.bf16.vlgmr.msra.gmra.mrb[0].mxu0 %vm421_vm2, %v1195_v8  ;;  %v1199_v12 = vld [vmem:[%s1274_s22 + $0x18] sm:$0xff]   ;;  %v1201_v14 = vld [vmem:[%s1274_s22 + $0x20] sm:$0xff]   ;;  %v1203_v16 = vld [vmem:[%s1274_s22 + $0x28] sm:$0xff]  }
  0x13   : > { %1147 = vmatmul.mubr.msk.bf16.vlgmr.msra.gmra.mrb[0].mxu1 %vm421_vm2, %v1196_v9  ;;  %1118 = vmatprep.mubr.msk.bf16.mxu0 %vm421_vm2, %v1197_v10  ;;  %v1200_v13 = vld [vmem:[%s1274_s22 + $0x98] sm:$0xff]   ;;  %v1202_v15 = vld [vmem:[%s1274_s22 + $0xa0] sm:$0xff]   ;;  %v1204_v17 = vld [vmem:[%s1274_s22 + $0xa8] sm:$0xff]  }
  0x14   : > { %1150 = vmatprep.mubr.msk.bf16.mxu1 %vm421_vm2, %v1198_v11  ;;  %v1205_v18 = vld [vmem:[%s1274_s22 + $0x30] sm:$0xff]   ;;  %v1207_v20 = vld [vmem:[%s1274_s22 + $0x38] sm:$0xff]   ;;  %v1209_v22 = vld [vmem:[%s1274_s22 + $0x40] sm:$0xff]  }
  0x15   : > { %v1206_v19 = vld [vmem:[%s1274_s22 + $0xb0] sm:$0xff]   ;;  %v1208_v21 = vld [vmem:[%s1274_s22 + $0xb8] sm:$0xff]   ;;  %v1210_v23 = vld [vmem:[%s1274_s22 + $0xc0] sm:$0xff]  }
  0x16   : > { %v1211_v24 = vld [vmem:[%s1274_s22 + $0x48] sm:$0xff]   ;;  %v1213_v26 = vld [vmem:[%s1274_s22 + $0x50] sm:$0xff]   ;;  %v1215_v28 = vld [vmem:[%s1274_s22 + $0x58] sm:$0xff]  }
  0x17   : > { %v1212_v25 = vld [vmem:[%s1274_s22 + $0xc8] sm:$0xff]   ;;  %v1214_v27 = vld [vmem:[%s1274_s22 + $0xd0] sm:$0xff]   ;;  %v1216_v29 = vld [vmem:[%s1274_s22 + $0xd8] sm:$0xff]  }
  0x18   : > { %v1217_v30 = vld [vmem:[%s1274_s22 + $0x60] sm:$0xff]   ;;  %v1219_v32 = vld [vmem:[%s1274_s22 + $0x68] sm:$0xff]   ;;  %v1221_v34 = vld [vmem:[%s1274_s22 + $0x70] sm:$0xff]  }
  0x19   : > { %v1218_v31 = vld [vmem:[%s1274_s22 + $0xe0] sm:$0xff]   ;;  %v1220_v33 = vld [vmem:[%s1274_s22 + $0xe8] sm:$0xff]   ;;  %v1222_v35 = vld [vmem:[%s1274_s22 + $0xf0] sm:$0xff]  }
  0x1a   : > { %1119 = vmatmul.mubr.msk.bf16.gmra.mrb[4].mxu0 %vm421_vm2, %v1199_v12  ;;  %v1223_v36 = vld [vmem:[%s1274_s22 + $0x78] sm:$0xff]  }
  0x1b   : > { %1151 = vmatmul.mubr.msk.bf16.gmra.mrb[4].mxu1 %vm421_vm2, %v1200_v13  ;;  %1122 = vmatprep.mubr.msk.bf16.mxu0 %vm421_vm2, %v1201_v14  ;;  %v1224_v37 = vld [vmem:[%s1274_s22 + $0xf8] sm:$0xff]  }
  0x1c   : > { %1154 = vmatprep.mubr.msk.bf16.mxu1 %vm421_vm2, %v1202_v15 }
  0x22   : > { %1123 = vmatmul.mubr.msk.bf16.gmra.mrb[8].mxu0 %vm421_vm2, %v1203_v16 }
  0x23   : > { %1155 = vmatmul.mubr.msk.bf16.gmra.mrb[8].mxu1 %vm421_vm2, %v1204_v17  ;;  %1126 = vmatprep.mubr.msk.bf16.mxu0 %vm421_vm2, %v1205_v18 }
  0x24   : > { %1158 = vmatprep.mubr.msk.bf16.mxu1 %vm421_vm2, %v1206_v19 }
  0x2a   : > { %1127 = vmatmul.mubr.msk.bf16.gmra.mrb[12].mxu0 %vm421_vm2, %v1207_v20 }
  0x2b   : > { %1159 = vmatmul.mubr.msk.bf16.gmra.mrb[12].mxu1 %vm421_vm2, %v1208_v21  ;;  %1130 = vmatprep.mubr.msk.bf16.mxu0 %vm421_vm2, %v1209_v22 }
  0x2c   : > { %1162 = vmatprep.mubr.msk.bf16.mxu1 %vm421_vm2, %v1210_v23 }
  0x32   : > { %1131 = vmatmul.mubr.msk.bf16.gmra.mrb[16].mxu0 %vm421_vm2, %v1211_v24 }
  0x33   : > { %1163 = vmatmul.mubr.msk.bf16.gmra.mrb[16].mxu1 %vm421_vm2, %v1212_v25  ;;  %1134 = vmatprep.mubr.msk.bf16.mxu0 %vm421_vm2, %v1213_v26 }
  0x34   : > { %1166 = vmatprep.mubr.msk.bf16.mxu1 %vm421_vm2, %v1214_v27 }
  0x3a   : > { %1135 = vmatmul.mubr.msk.bf16.gmra.mrb[20].mxu0 %vm421_vm2, %v1215_v28 }
  0x3b   : > { %1167 = vmatmul.mubr.msk.bf16.gmra.mrb[20].mxu1 %vm421_vm2, %v1216_v29  ;;  %1138 = vmatprep.mubr.msk.bf16.mxu0 %vm421_vm2, %v1217_v30 }
  0x3c   : > { %1170 = vmatprep.mubr.msk.bf16.mxu1 %vm421_vm2, %v1218_v31 }
  0x42   : > { %1139 = vmatmul.mubr.msk.bf16.gmra.mrb[24].mxu0 %vm421_vm2, %v1219_v32 }
  0x43   : > { %1171 = vmatmul.mubr.msk.bf16.gmra.mrb[24].mxu1 %vm421_vm2, %v1220_v33  ;;  %1142 = vmatprep.mubr.msk.bf16.mxu0 %vm421_vm2, %v1221_v34 }
  0x44   : > { %1174 = vmatprep.mubr.msk.bf16.mxu1 %vm421_vm2, %v1222_v35 }
  0x4a   : > { %1143 = vmatmul.mubr.msk.bf16.gmra.mrb[28].mxu0 %vm421_vm2, %v1223_v36 }
  0x4b   : > { %1175 = vmatmul.mubr.msk.bf16.gmra.mrb[28].mxu1 %vm421_vm2, %v1224_v37 }
  0xe5   : > { %v1116_v39 = vpop.f32.mrb[0].mxu0 }
  0xe6   : > { %v568_v40 = vadd.f32 %v1116_v39, %v1343_v38  ;;  %v1148_v41 = vpop.f32.mrb[0].mxu1  ;;  %v559_v42 = vpop.f32.mrb[1].mxu0 }
  0xe7   : > { %v696_v43 = vadd.f32 %v1148_v41, %v1343_v38  ;;  %v560_v44 = vadd.f32 %v1343_v38, %v559_v42  ;;  %v687_v45 = vpop.f32.mrb[1].mxu1  ;;  %v1117_v46 = vpop.f32.mrb[2].mxu0 }
  0xe8   : > { %v816_v47 = vmax.f32 %v568_v40, 0.0  ;;  %v688_v48 = vadd.f32 %v1343_v38, %v687_v45  ;;  %v571_v49 = vadd.f32 %v1117_v46, %v1343_v38  ;;  %v1149_v50 = vpop.f32.mrb[2].mxu1  ;;  %v562_v51 = vpop.f32.mrb[3].mxu0 }
  0xe9   : > { %v848_v52 = vmax.f32 %v696_v43, 0.0  ;;  %v814_v53 = vmax.f32 %v560_v44, 0.0  ;;  %v699_v54 = vadd.f32 %v1149_v50, %v1343_v38  ;;  %v563_v55 = vadd.f32 %v1343_v38, %v562_v51  ;;  %v690_v56 = vpop.f32.mrb[3].mxu1 }
  0xea   : > { %880 = vst [vmem:[%s1350_s28 + $0x10] sm:$0xff] %v816_v47  ;;  %v846_v57 = vmax.f32 %v688_v48, 0.0  ;;  %v817_v58 = vmax.f32 %v571_v49, 0.0  ;;  %v691_v59 = vadd.f32 %v1343_v38, %v690_v56 }
  0xeb   : > { %912 = vst [vmem:[%s1350_s28 + $0x110] sm:$0xff] %v848_v52  ;;  %878 = vst [vmem:[%s1350_s28] sm:$0xff] %v814_v53  ;;  %v849_v60 = vmax.f32 %v699_v54, 0.0  ;;  %v815_v61 = vmax.f32 %v563_v55, 0.0 }
  0xec   : > { %910 = vst [vmem:[%s1350_s28 + $0x100] sm:$0xff] %v846_v57  ;;  %881 = vst [vmem:[%s1350_s28 + $0x18] sm:$0xff] %v817_v58  ;;  %v847_v62 = vmax.f32 %v691_v59, 0.0 }
  0xed   : > { %913 = vst [vmem:[%s1350_s28 + $0x118] sm:$0xff] %v849_v60  ;;  %879 = vst [vmem:[%s1350_s28 + $0x8] sm:$0xff] %v815_v61  ;;  %v1120_v63 = vpop.f32.mrb[4].mxu0 }
  0xee   : > { %911 = vst [vmem:[%s1350_s28 + $0x108] sm:$0xff] %v847_v62  ;;  %v584_v0 = vadd.f32 %v1120_v63, %v1343_v38  ;;  %v1152_v1 = vpop.f32.mrb[4].mxu1  ;;  %v575_v2 = vpop.f32.mrb[5].mxu0 }
  0xef   : > { %v712_v3 = vadd.f32 %v1152_v1, %v1343_v38  ;;  %v576_v4 = vadd.f32 %v1343_v38, %v575_v2  ;;  %v703_v5 = vpop.f32.mrb[5].mxu1  ;;  %v1121_v6 = vpop.f32.mrb[6].mxu0 }
  0xf0   : > { %v820_v7 = vmax.f32 %v584_v0, 0.0  ;;  %v704_v8 = vadd.f32 %v1343_v38, %v703_v5  ;;  %v587_v9 = vadd.f32 %v1121_v6, %v1343_v38  ;;  %v1153_v10 = vpop.f32.mrb[6].mxu1  ;;  %v578_v11 = vpop.f32.mrb[7].mxu0 }
  0xf1   : > { %v852_v12 = vmax.f32 %v712_v3, 0.0  ;;  %v818_v13 = vmax.f32 %v576_v4, 0.0  ;;  %v715_v14 = vadd.f32 %v1153_v10, %v1343_v38  ;;  %v579_v15 = vadd.f32 %v1343_v38, %v578_v11  ;;  %v706_v16 = vpop.f32.mrb[7].mxu1 }
  0xf2   : > { %884 = vst [vmem:[%s1350_s28 + $0x30] sm:$0xff] %v820_v7  ;;  %v850_v17 = vmax.f32 %v704_v8, 0.0  ;;  %v821_v18 = vmax.f32 %v587_v9, 0.0  ;;  %v707_v19 = vadd.f32 %v1343_v38, %v706_v16 }
  0xf3   : > { %916 = vst [vmem:[%s1350_s28 + $0x130] sm:$0xff] %v852_v12  ;;  %882 = vst [vmem:[%s1350_s28 + $0x20] sm:$0xff] %v818_v13  ;;  %v853_v20 = vmax.f32 %v715_v14, 0.0  ;;  %v819_v21 = vmax.f32 %v579_v15, 0.0 }
  0xf4   : > { %914 = vst [vmem:[%s1350_s28 + $0x120] sm:$0xff] %v850_v17  ;;  %885 = vst [vmem:[%s1350_s28 + $0x38] sm:$0xff] %v821_v18  ;;  %v851_v22 = vmax.f32 %v707_v19, 0.0 }
  0xf5   : > { %917 = vst [vmem:[%s1350_s28 + $0x138] sm:$0xff] %v853_v20  ;;  %883 = vst [vmem:[%s1350_s28 + $0x28] sm:$0xff] %v819_v21  ;;  %v1124_v23 = vpop.f32.mrb[8].mxu0 }
  0xf6   : > { %915 = vst [vmem:[%s1350_s28 + $0x128] sm:$0xff] %v851_v22  ;;  %v600_v24 = vadd.f32 %v1124_v23, %v1343_v38  ;;  %v1156_v25 = vpop.f32.mrb[8].mxu1  ;;  %v591_v26 = vpop.f32.mrb[9].mxu0 }
  0xf7   : > { %v728_v27 = vadd.f32 %v1156_v25, %v1343_v38  ;;  %v592_v28 = vadd.f32 %v1343_v38, %v591_v26  ;;  %v719_v29 = vpop.f32.mrb[9].mxu1  ;;  %v1125_v30 = vpop.f32.mrb[10].mxu0 }
  0xf8   : > { %v824_v31 = vmax.f32 %v600_v24, 0.0  ;;  %v720_v32 = vadd.f32 %v1343_v38, %v719_v29  ;;  %v603_v33 = vadd.f32 %v1125_v30, %v1343_v38  ;;  %v1157_v34 = vpop.f32.mrb[10].mxu1  ;;  %v594_v35 = vpop.f32.mrb[11].mxu0 }
  0xf9   : > { %v856_v36 = vmax.f32 %v728_v27, 0.0  ;;  %v822_v37 = vmax.f32 %v592_v28, 0.0  ;;  %v731_v39 = vadd.f32 %v1157_v34, %v1343_v38  ;;  %v595_v40 = vadd.f32 %v1343_v38, %v594_v35  ;;  %v722_v41 = vpop.f32.mrb[11].mxu1 }
  0xfa   : > { %888 = vst [vmem:[%s1350_s28 + $0x50] sm:$0xff] %v824_v31  ;;  %v854_v42 = vmax.f32 %v720_v32, 0.0  ;;  %v825_v43 = vmax.f32 %v603_v33, 0.0  ;;  %v723_v44 = vadd.f32 %v1343_v38, %v722_v41 }
  0xfb   : > { %920 = vst [vmem:[%s1350_s28 + $0x150] sm:$0xff] %v856_v36  ;;  %886 = vst [vmem:[%s1350_s28 + $0x40] sm:$0xff] %v822_v37  ;;  %v857_v45 = vmax.f32 %v731_v39, 0.0  ;;  %v823_v46 = vmax.f32 %v595_v40, 0.0 }
  0xfc   : > { %918 = vst [vmem:[%s1350_s28 + $0x140] sm:$0xff] %v854_v42  ;;  %889 = vst [vmem:[%s1350_s28 + $0x58] sm:$0xff] %v825_v43  ;;  %v855_v47 = vmax.f32 %v723_v44, 0.0 }
  0xfd   : > { %921 = vst [vmem:[%s1350_s28 + $0x158] sm:$0xff] %v857_v45  ;;  %887 = vst [vmem:[%s1350_s28 + $0x48] sm:$0xff] %v823_v46  ;;  %v1128_v48 = vpop.f32.mrb[12].mxu0 }
  0xfe   : > { %919 = vst [vmem:[%s1350_s28 + $0x148] sm:$0xff] %v855_v47  ;;  %v616_v49 = vadd.f32 %v1128_v48, %v1343_v38  ;;  %v1160_v50 = vpop.f32.mrb[12].mxu1  ;;  %v607_v51 = vpop.f32.mrb[13].mxu0 }
  0xff   : > { %v744_v52 = vadd.f32 %v1160_v50, %v1343_v38  ;;  %v608_v53 = vadd.f32 %v1343_v38, %v607_v51  ;;  %v735_v54 = vpop.f32.mrb[13].mxu1  ;;  %v1129_v55 = vpop.f32.mrb[14].mxu0 }
 0x100   : > { %v828_v56 = vmax.f32 %v616_v49, 0.0  ;;  %v736_v57 = vadd.f32 %v1343_v38, %v735_v54  ;;  %v619_v58 = vadd.f32 %v1129_v55, %v1343_v38  ;;  %v1161_v59 = vpop.f32.mrb[14].mxu1  ;;  %v610_v60 = vpop.f32.mrb[15].mxu0 }
 0x101   : > { %v860_v61 = vmax.f32 %v744_v52, 0.0  ;;  %v826_v62 = vmax.f32 %v608_v53, 0.0  ;;  %v747_v63 = vadd.f32 %v1161_v59, %v1343_v38  ;;  %v611_v0 = vadd.f32 %v1343_v38, %v610_v60  ;;  %v738_v1 = vpop.f32.mrb[15].mxu1 }
 0x102   : > { %892 = vst [vmem:[%s1350_s28 + $0x70] sm:$0xff] %v828_v56  ;;  %v858_v2 = vmax.f32 %v736_v57, 0.0  ;;  %v829_v3 = vmax.f32 %v619_v58, 0.0  ;;  %v739_v4 = vadd.f32 %v1343_v38, %v738_v1 }
 0x103   : > { %924 = vst [vmem:[%s1350_s28 + $0x170] sm:$0xff] %v860_v61  ;;  %890 = vst [vmem:[%s1350_s28 + $0x60] sm:$0xff] %v826_v62  ;;  %v861_v5 = vmax.f32 %v747_v63, 0.0  ;;  %v827_v6 = vmax.f32 %v611_v0, 0.0 }
 0x104   : > { %922 = vst [vmem:[%s1350_s28 + $0x160] sm:$0xff] %v858_v2  ;;  %893 = vst [vmem:[%s1350_s28 + $0x78] sm:$0xff] %v829_v3  ;;  %v859_v7 = vmax.f32 %v739_v4, 0.0 }
 0x105   : > { %925 = vst [vmem:[%s1350_s28 + $0x178] sm:$0xff] %v861_v5  ;;  %891 = vst [vmem:[%s1350_s28 + $0x68] sm:$0xff] %v827_v6  ;;  %v1132_v8 = vpop.f32.mrb[16].mxu0 }
 0x106   : > { %923 = vst [vmem:[%s1350_s28 + $0x168] sm:$0xff] %v859_v7  ;;  %v632_v9 = vadd.f32 %v1132_v8, %v1343_v38  ;;  %v1164_v10 = vpop.f32.mrb[16].mxu1  ;;  %v623_v11 = vpop.f32.mrb[17].mxu0 }
 0x107   : > { %v760_v12 = vadd.f32 %v1164_v10, %v1343_v38  ;;  %v624_v13 = vadd.f32 %v1343_v38, %v623_v11  ;;  %v751_v14 = vpop.f32.mrb[17].mxu1  ;;  %v1133_v15 = vpop.f32.mrb[18].mxu0 }
 0x108   : > { %v832_v16 = vmax.f32 %v632_v9, 0.0  ;;  %v752_v17 = vadd.f32 %v1343_v38, %v751_v14  ;;  %v635_v18 = vadd.f32 %v1133_v15, %v1343_v38  ;;  %v1165_v19 = vpop.f32.mrb[18].mxu1  ;;  %v626_v20 = vpop.f32.mrb[19].mxu0 }
 0x109   : > { %v864_v21 = vmax.f32 %v760_v12, 0.0  ;;  %v830_v22 = vmax.f32 %v624_v13, 0.0  ;;  %v763_v23 = vadd.f32 %v1165_v19, %v1343_v38  ;;  %v627_v24 = vadd.f32 %v1343_v38, %v626_v20  ;;  %v754_v25 = vpop.f32.mrb[19].mxu1 }
 0x10a   : > { %896 = vst [vmem:[%s1350_s28 + $0x90] sm:$0xff] %v832_v16  ;;  %v862_v26 = vmax.f32 %v752_v17, 0.0  ;;  %v833_v27 = vmax.f32 %v635_v18, 0.0  ;;  %v755_v28 = vadd.f32 %v1343_v38, %v754_v25 }
 0x10b   : > { %928 = vst [vmem:[%s1350_s28 + $0x190] sm:$0xff] %v864_v21  ;;  %894 = vst [vmem:[%s1350_s28 + $0x80] sm:$0xff] %v830_v22  ;;  %v865_v29 = vmax.f32 %v763_v23, 0.0  ;;  %v831_v30 = vmax.f32 %v627_v24, 0.0 }
 0x10c   : > { %926 = vst [vmem:[%s1350_s28 + $0x180] sm:$0xff] %v862_v26  ;;  %897 = vst [vmem:[%s1350_s28 + $0x98] sm:$0xff] %v833_v27  ;;  %v863_v31 = vmax.f32 %v755_v28, 0.0 }
 0x10d   : > { %929 = vst [vmem:[%s1350_s28 + $0x198] sm:$0xff] %v865_v29  ;;  %895 = vst [vmem:[%s1350_s28 + $0x88] sm:$0xff] %v831_v30  ;;  %v1136_v32 = vpop.f32.mrb[20].mxu0 }
 0x10e   : > { %927 = vst [vmem:[%s1350_s28 + $0x188] sm:$0xff] %v863_v31  ;;  %v648_v33 = vadd.f32 %v1136_v32, %v1343_v38  ;;  %v1168_v34 = vpop.f32.mrb[20].mxu1  ;;  %v639_v35 = vpop.f32.mrb[21].mxu0 }
 0x10f   : > { %v776_v36 = vadd.f32 %v1168_v34, %v1343_v38  ;;  %v640_v37 = vadd.f32 %v1343_v38, %v639_v35  ;;  %v767_v39 = vpop.f32.mrb[21].mxu1  ;;  %v1137_v40 = vpop.f32.mrb[22].mxu0 }
 0x110   : > { %v836_v41 = vmax.f32 %v648_v33, 0.0  ;;  %v768_v42 = vadd.f32 %v1343_v38, %v767_v39  ;;  %v651_v43 = vadd.f32 %v1137_v40, %v1343_v38  ;;  %v1169_v44 = vpop.f32.mrb[22].mxu1  ;;  %v642_v45 = vpop.f32.mrb[23].mxu0 }
 0x111   : > { %v868_v46 = vmax.f32 %v776_v36, 0.0  ;;  %v834_v47 = vmax.f32 %v640_v37, 0.0  ;;  %v779_v48 = vadd.f32 %v1169_v44, %v1343_v38  ;;  %v643_v49 = vadd.f32 %v1343_v38, %v642_v45  ;;  %v770_v50 = vpop.f32.mrb[23].mxu1 }
 0x112   : > { %900 = vst [vmem:[%s1350_s28 + $0xb0] sm:$0xff] %v836_v41  ;;  %v866_v51 = vmax.f32 %v768_v42, 0.0  ;;  %v837_v52 = vmax.f32 %v651_v43, 0.0  ;;  %v771_v53 = vadd.f32 %v1343_v38, %v770_v50 }
 0x113   : > { %932 = vst [vmem:[%s1350_s28 + $0x1b0] sm:$0xff] %v868_v46  ;;  %898 = vst [vmem:[%s1350_s28 + $0xa0] sm:$0xff] %v834_v47  ;;  %v869_v54 = vmax.f32 %v779_v48, 0.0  ;;  %v835_v55 = vmax.f32 %v643_v49, 0.0 }
 0x114   : > { %930 = vst [vmem:[%s1350_s28 + $0x1a0] sm:$0xff] %v866_v51  ;;  %901 = vst [vmem:[%s1350_s28 + $0xb8] sm:$0xff] %v837_v52  ;;  %v867_v56 = vmax.f32 %v771_v53, 0.0 }
 0x115   : > { %933 = vst [vmem:[%s1350_s28 + $0x1b8] sm:$0xff] %v869_v54  ;;  %899 = vst [vmem:[%s1350_s28 + $0xa8] sm:$0xff] %v835_v55  ;;  %v1140_v57 = vpop.f32.mrb[24].mxu0 }
 0x116   : > { %931 = vst [vmem:[%s1350_s28 + $0x1a8] sm:$0xff] %v867_v56  ;;  %v664_v58 = vadd.f32 %v1140_v57, %v1343_v38  ;;  %v1172_v59 = vpop.f32.mrb[24].mxu1  ;;  %v655_v60 = vpop.f32.mrb[25].mxu0 }
 0x117   : > { %v792_v61 = vadd.f32 %v1172_v59, %v1343_v38  ;;  %v656_v62 = vadd.f32 %v1343_v38, %v655_v60  ;;  %v783_v63 = vpop.f32.mrb[25].mxu1  ;;  %v1141_v0 = vpop.f32.mrb[26].mxu0 }
 0x118   : > { %v840_v1 = vmax.f32 %v664_v58, 0.0  ;;  %v784_v2 = vadd.f32 %v1343_v38, %v783_v63  ;;  %v667_v3 = vadd.f32 %v1141_v0, %v1343_v38  ;;  %v1173_v4 = vpop.f32.mrb[26].mxu1  ;;  %v658_v5 = vpop.f32.mrb[27].mxu0 }
 0x119   : > { %v872_v6 = vmax.f32 %v792_v61, 0.0  ;;  %v838_v7 = vmax.f32 %v656_v62, 0.0  ;;  %v795_v8 = vadd.f32 %v1173_v4, %v1343_v38  ;;  %v659_v9 = vadd.f32 %v1343_v38, %v658_v5  ;;  %v786_v10 = vpop.f32.mrb[27].mxu1 }
 0x11a   : > { %904 = vst [vmem:[%s1350_s28 + $0xd0] sm:$0xff] %v840_v1  ;;  %v870_v11 = vmax.f32 %v784_v2, 0.0  ;;  %v841_v12 = vmax.f32 %v667_v3, 0.0  ;;  %v787_v13 = vadd.f32 %v1343_v38, %v786_v10 }
 0x11b   : > { %936 = vst [vmem:[%s1350_s28 + $0x1d0] sm:$0xff] %v872_v6  ;;  %902 = vst [vmem:[%s1350_s28 + $0xc0] sm:$0xff] %v838_v7  ;;  %v873_v14 = vmax.f32 %v795_v8, 0.0  ;;  %v839_v15 = vmax.f32 %v659_v9, 0.0 }
 0x11c   : > { %934 = vst [vmem:[%s1350_s28 + $0x1c0] sm:$0xff] %v870_v11  ;;  %905 = vst [vmem:[%s1350_s28 + $0xd8] sm:$0xff] %v841_v12  ;;  %v871_v16 = vmax.f32 %v787_v13, 0.0 }
 0x11d   : > { %937 = vst [vmem:[%s1350_s28 + $0x1d8] sm:$0xff] %v873_v14  ;;  %903 = vst [vmem:[%s1350_s28 + $0xc8] sm:$0xff] %v839_v15  ;;  %v1144_v17 = vpop.f32.mrb[28].mxu0 }
 0x11e   : > { %935 = vst [vmem:[%s1350_s28 + $0x1c8] sm:$0xff] %v871_v16  ;;  %v680_v18 = vadd.f32 %v1144_v17, %v1343_v38  ;;  %v1176_v19 = vpop.f32.mrb[28].mxu1  ;;  %v671_v20 = vpop.f32.mrb[29].mxu0 }
 0x11f   : > { %v808_v21 = vadd.f32 %v1176_v19, %v1343_v38  ;;  %v672_v22 = vadd.f32 %v1343_v38, %v671_v20  ;;  %v799_v23 = vpop.f32.mrb[29].mxu1  ;;  %v1145_v24 = vpop.f32.mrb[30].mxu0 }
 0x120   : > { %v844_v25 = vmax.f32 %v680_v18, 0.0  ;;  %v800_v26 = vadd.f32 %v1343_v38, %v799_v23  ;;  %v683_v27 = vadd.f32 %v1145_v24, %v1343_v38  ;;  %v1177_v28 = vpop.f32.mrb[30].mxu1  ;;  %v674_v29 = vpop.f32.mrb[31].mxu0 }
 0x121   : > { %v876_v30 = vmax.f32 %v808_v21, 0.0  ;;  %v842_v31 = vmax.f32 %v672_v22, 0.0  ;;  %v811_v32 = vadd.f32 %v1177_v28, %v1343_v38  ;;  %v675_v33 = vadd.f32 %v1343_v38, %v674_v29  ;;  %v802_v34 = vpop.f32.mrb[31].mxu1 }
 0x122   : > { %908 = vst [vmem:[%s1350_s28 + $0xf0] sm:$0xff] %v844_v25  ;;  %v874_v35 = vmax.f32 %v800_v26, 0.0  ;;  %v845_v36 = vmax.f32 %v683_v27, 0.0  ;;  %v803_v37 = vadd.f32 %v1343_v38, %v802_v34 }
 0x123   : > { %940 = vst [vmem:[%s1350_s28 + $0x1f0] sm:$0xff] %v876_v30  ;;  %906 = vst [vmem:[%s1350_s28 + $0xe0] sm:$0xff] %v842_v31  ;;  %v877_v39 = vmax.f32 %v811_v32, 0.0  ;;  %v843_v40 = vmax.f32 %v675_v33, 0.0 }
 0x124   : > { %938 = vst [vmem:[%s1350_s28 + $0x1e0] sm:$0xff] %v874_v35  ;;  %909 = vst [vmem:[%s1350_s28 + $0xf8] sm:$0xff] %v845_v36  ;;  %v875_v41 = vmax.f32 %v803_v37, 0.0 }
 0x125   : > { %941 = vst [vmem:[%s1350_s28 + $0x1f8] sm:$0xff] %v877_v39  ;;  %907 = vst [vmem:[%s1350_s28 + $0xe8] sm:$0xff] %v843_v40 }
 0x126   : > { %939 = vst [vmem:[%s1350_s28 + $0x1e8] sm:$0xff] %v875_v41 }
 0x127 PF: > { %s13_s12 = sadd.s32 1, %s1231_s12  }
 0x128   : > { %p10_p4 = scmp.ge.s32.totalorder %s13_s12, 6  }
 0x12a   :  { %12 = sbr.rel (!%p10_p4) target bundleno = 1 (0x1), region = 62 }

// kernel: temporal_net_forward.8
= control target key start
LH: loop header
LB: loop body
LE: loop exit
PB: predicated region body
PF: predicated region fallthrough
CT: control target
= control target key end

     0   :  { %v1194_v0 = vmov 0   ;;  %vm446_vm0 = vcmask 130048   ;;  %s1727_s1 = inlined_call_operand.vmem [shape: bf16[144,128], index: 1, kind: input, shape index: {}]   ;;  %s1728_s0 = inlined_call_operand.vmem [shape: bf16[512,144], index: 0, kind: input, shape index: {}]   ;;  %s1729_s2 = inlined_call_operand.vmem [shape: f32[1,128], index: 2, kind: input, shape index: {}]   ;;  %s1730_s3 = inlined_call_operand.vmem [shape: f32[512,128], index: 3, kind: output, shape index: {}]  }
   0x1   :  { %543 = vmatprep.subr.bf16.mxu0 %v1194_v0  ;;  %1070 = vmatprep.subr.bf16.mxu1 %v1194_v0  ;;  %v1089_v1 = vld [vmem:[%s1727_s1] sm:$0xff]   ;;  %v1090_v2 = vld [vmem:[%s1727_s1 + $0x8] sm:$0xff]   ;;  %v1091_v3 = vld [vmem:[%s1727_s1 + $0x10] sm:$0xff]  }
   0x2   :  { %544 = vmatpush1.bf16.msra.mxu0 %v1089_v1  ;;  %1079 = vmatpush1.bf16.msra.mxu1 %v1089_v1  ;;  %v1092_v4 = vld [vmem:[%s1727_s1 + $0x18] sm:$0xff]   ;;  %v1100_v5 = vld [vmem:[%s1728_s0 + $0x4] ss:$8 sps:$4 sm:$0xff]   ;;  %v1095_v9 = vld [vmem:[%s1727_s1 + $0x30] sm:$0xff]  }
   0x3   :  { %545 = vmatprep.subr.bf16.mxu0 %v1194_v0  ;;  %1071 = vmatprep.subr.bf16.mxu1 %v1194_v0  ;;  %v1103_v6 = vld [vmem:[%s1728_s0 + $0x104] ss:$8 sps:$4 sm:$0xff]   ;;  %v1096_v10 = vld [vmem:[%s1727_s1 + $0x38] sm:$0xff]   ;;  %v1098_v12 = vld [vmem:[%s1728_s0] ss:$8 sps:$4 sm:$0xff]  }
   0x4   :  { %1038 = vmatprep.mubr.msk.bf16.mxu0 %vm446_vm0, %v1100_v5  ;;  %1054 = vmatprep.mubr.msk.bf16.mxu1 %vm446_vm0, %v1103_v6  ;;  %v1093_v7 = vld [vmem:[%s1727_s1 + $0x20] sm:$0xff]   ;;  %v1094_v8 = vld [vmem:[%s1727_s1 + $0x28] sm:$0xff]   ;;  %v1104_v14 = vld [vmem:[%s1728_s0 + $0x14] ss:$8 sps:$4 sm:$0xff]  }
   0x5   :  { %v1097_v11 = vld [vmem:[%s1727_s1 + $0x40] sm:$0xff]   ;;  %v1106_v15 = vld [vmem:[%s1728_s0 + $0x114] ss:$8 sps:$4 sm:$0xff]   ;;  %v1108_v16 = vld [vmem:[%s1728_s0 + $0x10] ss:$8 sps:$4 sm:$0xff]  }
   0x6   :  { %546 = vmatpush1.bf16.msra.mxu0 %v1090_v2  ;;  %1080 = vmatpush1.bf16.msra.mxu1 %v1090_v2  ;;  %v1101_v13 = vld [vmem:[%s1728_s0 + $0x100] ss:$8 sps:$4 sm:$0xff]   ;;  %v1109_v17 = vld [vmem:[%s1728_s0 + $0x110] ss:$8 sps:$4 sm:$0xff]   ;;  %v1110_v18 = vld [vmem:[%s1728_s0 + $0x24] ss:$8 sps:$4 sm:$0xff]  }
   0x7   :  { %547 = vmatprep.subr.bf16.mxu0 %v1194_v0  ;;  %1072 = vmatprep.subr.bf16.mxu1 %v1194_v0  ;;  %v1112_v19 = vld [vmem:[%s1728_s0 + $0x124] ss:$8 sps:$4 sm:$0xff]   ;;  %v1114_v20 = vld [vmem:[%s1728_s0 + $0x20] ss:$8 sps:$4 sm:$0xff]   ;;  %v1116_v22 = vld [vmem:[%s1728_s0 + $0x34] ss:$8 sps:$4 sm:$0xff]  }
   0x8   :  { %v1115_v21 = vld [vmem:[%s1728_s0 + $0x120] ss:$8 sps:$4 sm:$0xff]   ;;  %v1118_v23 = vld [vmem:[%s1728_s0 + $0x134] ss:$8 sps:$4 sm:$0xff]   ;;  %v1120_v24 = vld [vmem:[%s1728_s0 + $0x30] ss:$8 sps:$4 sm:$0xff]  }
   0x9   :  { %v1121_v25 = vld [vmem:[%s1728_s0 + $0x130] ss:$8 sps:$4 sm:$0xff]   ;;  %v1122_v26 = vld [vmem:[%s1728_s0 + $0x44] ss:$8 sps:$4 sm:$0xff]   ;;  %v1126_v28 = vld [vmem:[%s1728_s0 + $0x40] ss:$8 sps:$4 sm:$0xff]  }
   0xa   :  { %548 = vmatpush1.bf16.msra.mxu0 %v1091_v3  ;;  %1081 = vmatpush1.bf16.msra.mxu1 %v1091_v3  ;;  %v1124_v27 = vld [vmem:[%s1728_s0 + $0x144] ss:$8 sps:$4 sm:$0xff]   ;;  %v1127_v29 = vld [vmem:[%s1728_s0 + $0x140] ss:$8 sps:$4 sm:$0xff]   ;;  %v1128_v30 = vld [vmem:[%s1728_s0 + $0x54] ss:$8 sps:$4 sm:$0xff]  }
   0xb   :  { %549 = vmatprep.subr.bf16.mxu0 %v1194_v0  ;;  %1073 = vmatprep.subr.bf16.mxu1 %v1194_v0  ;;  %v1130_v31 = vld [vmem:[%s1728_s0 + $0x154] ss:$8 sps:$4 sm:$0xff]   ;;  %v1132_v32 = vld [vmem:[%s1728_s0 + $0x50] ss:$8 sps:$4 sm:$0xff]   ;;  %v1134_v34 = vld [vmem:[%s1728_s0 + $0x64] ss:$8 sps:$4 sm:$0xff]  }
   0xc   :  { %v1133_v33 = vld [vmem:[%s1728_s0 + $0x150] ss:$8 sps:$4 sm:$0xff]   ;;  %v1136_v35 = vld [vmem:[%s1728_s0 + $0x164] ss:$8 sps:$4 sm:$0xff]   ;;  %v1138_v36 = vld [vmem:[%s1728_s0 + $0x60] ss:$8 sps:$4 sm:$0xff]  }
   0xd   :  { %v1139_v37 = vld [vmem:[%s1728_s0 + $0x160] ss:$8 sps:$4 sm:$0xff]   ;;  %v1140_v38 = vld [vmem:[%s1728_s0 + $0x74] ss:$8 sps:$4 sm:$0xff]   ;;  %v1144_v40 = vld [vmem:[%s1728_s0 + $0x70] ss:$8 sps:$4 sm:$0xff]  }
   0xe   :  { %550 = vmatpush1.bf16.msra.mxu0 %v1092_v4  ;;  %1082 = vmatpush1.bf16.msra.mxu1 %v1092_v4  ;;  %v1142_v39 = vld [vmem:[%s1728_s0 + $0x174] ss:$8 sps:$4 sm:$0xff]   ;;  %v1145_v41 = vld [vmem:[%s1728_s0 + $0x170] ss:$8 sps:$4 sm:$0xff]   ;;  %v1146_v42 = vld [vmem:[%s1728_s0 + $0x84] ss:$8 sps:$4 sm:$0xff]  }
   0xf   :  { %551 = vmatprep.subr.bf16.mxu0 %v1194_v0  ;;  %1074 = vmatprep.subr.bf16.mxu1 %v1194_v0  ;;  %v1148_v43 = vld [vmem:[%s1728_s0 + $0x184] ss:$8 sps:$4 sm:$0xff]   ;;  %v1150_v44 = vld [vmem:[%s1728_s0 + $0x80] ss:$8 sps:$4 sm:$0xff]   ;;  %v1152_v46 = vld [vmem:[%s1728_s0 + $0x94] ss:$8 sps:$4 sm:$0xff]  }
  0x10   :  { %v1151_v45 = vld [vmem:[%s1728_s0 + $0x180] ss:$8 sps:$4 sm:$0xff]   ;;  %v1154_v47 = vld [vmem:[%s1728_s0 + $0x194] ss:$8 sps:$4 sm:$0xff]   ;;  %v1156_v48 = vld [vmem:[%s1728_s0 + $0x90] ss:$8 sps:$4 sm:$0xff]  }
  0x11   :  { %v1157_v49 = vld [vmem:[%s1728_s0 + $0x190] ss:$8 sps:$4 sm:$0xff]   ;;  %v1158_v50 = vld [vmem:[%s1728_s0 + $0xa4] ss:$8 sps:$4 sm:$0xff]   ;;  %v1162_v52 = vld [vmem:[%s1728_s0 + $0xa0] ss:$8 sps:$4 sm:$0xff]  }
  0x12   :  { %552 = vmatpush1.bf16.msra.mxu0 %v1093_v7  ;;  %1083 = vmatpush1.bf16.msra.mxu1 %v1093_v7  ;;  %v1160_v51 = vld [vmem:[%s1728_s0 + $0x1a4] ss:$8 sps:$4 sm:$0xff]   ;;  %v1163_v53 = vld [vmem:[%s1728_s0 + $0x1a0] ss:$8 sps:$4 sm:$0xff]   ;;  %v1164_v54 = vld [vmem:[%s1728_s0 + $0xb4] ss:$8 sps:$4 sm:$0xff]  }
  0x13   :  { %553 = vmatprep.subr.bf16.mxu0 %v1194_v0  ;;  %1075 = vmatprep.subr.bf16.mxu1 %v1194_v0  ;;  %v1166_v55 = vld [vmem:[%s1728_s0 + $0x1b4] ss:$8 sps:$4 sm:$0xff]   ;;  %v1168_v56 = vld [vmem:[%s1728_s0 + $0xb0] ss:$8 sps:$4 sm:$0xff]   ;;  %v1170_v58 = vld [vmem:[%s1728_s0 + $0xc4] ss:$8 sps:$4 sm:$0xff]  }
  0x14   :  { %v1169_v57 = vld [vmem:[%s1728_s0 + $0x1b0] ss:$8 sps:$4 sm:$0xff]   ;;  %v1172_v59 = vld [vmem:[%s1728_s0 + $0x1c4] ss:$8 sps:$4 sm:$0xff]   ;;  %v1174_v60 = vld [vmem:[%s1728_s0 + $0xc0] ss:$8 sps:$4 sm:$0xff]  }
  0x15   :  { %v1175_v61 = vld [vmem:[%s1728_s0 + $0x1c0] ss:$8 sps:$4 sm:$0xff]   ;;  %v1176_v62 = vld [vmem:[%s1728_s0 + $0xd4] ss:$8 sps:$4 sm:$0xff]   ;;  %v1181_v1 = vld [vmem:[%s1728_s0 + $0x1d0] ss:$8 sps:$4 sm:$0xff]  }
  0x16   :  { %554 = vmatpush1.bf16.msra.mxu0 %v1094_v8  ;;  %1084 = vmatpush1.bf16.msra.mxu1 %v1094_v8  ;;  %v1178_v63 = vld [vmem:[%s1728_s0 + $0x1d4] ss:$8 sps:$4 sm:$0xff]   ;;  %v1182_v2 = vld [vmem:[%s1728_s0 + $0xe4] ss:$8 sps:$4 sm:$0xff]   ;;  %v1186_v4 = vld [vmem:[%s1728_s0 + $0xe0] ss:$8 sps:$4 sm:$0xff]  }
  0x17   :  { %555 = vmatprep.subr.bf16.mxu0 %v1194_v0  ;;  %1076 = vmatprep.subr.bf16.mxu1 %v1194_v0  ;;  %v1184_v3 = vld [vmem:[%s1728_s0 + $0x1e4] ss:$8 sps:$4 sm:$0xff]   ;;  %v1187_v5 = vld [vmem:[%s1728_s0 + $0x1e0] ss:$8 sps:$4 sm:$0xff]   ;;  %v1188_v6 = vld [vmem:[%s1728_s0 + $0xf4] ss:$8 sps:$4 sm:$0xff]  }
  0x18   :  { %v1190_v7 = vld [vmem:[%s1728_s0 + $0x1f4] ss:$8 sps:$4 sm:$0xff]   ;;  %v1192_v8 = vld [vmem:[%s1728_s0 + $0xf0] ss:$8 sps:$4 sm:$0xff]  }
  0x1a   :  { %556 = vmatpush1.bf16.msra.mxu0 %v1095_v9  ;;  %1085 = vmatpush1.bf16.msra.mxu1 %v1095_v9  ;;  %v1193_v9 = vld [vmem:[%s1728_s0 + $0x1f0] ss:$8 sps:$4 sm:$0xff]  }
  0x1b   :  { %557 = vmatprep.subr.bf16.mxu0 %v1194_v0  ;;  %1077 = vmatprep.subr.bf16.mxu1 %v1194_v0 }
  0x1e   :  { %558 = vmatpush1.bf16.msra.mxu0 %v1096_v10  ;;  %1086 = vmatpush1.bf16.msra.mxu1 %v1096_v10  ;;  %v1469_v10 = vld [vmem:[%s1729_s2] ss:$0 sm:$0xff] }
  0x1f   :  { %559 = vmatprep.subr.bf16.mxu0 %v1194_v0  ;;  %1078 = vmatprep.subr.bf16.mxu1 %v1194_v0  ;;  %v1180_v0 = vld [vmem:[%s1728_s0 + $0xd0] ss:$8 sps:$4 sm:$0xff]  }
  0x22   :  { %560 = vmatpush1.bf16.msra.mxu0 %v1097_v11  ;;  %1087 = vmatpush1.bf16.msra.mxu1 %v1097_v11 }
  0x25   :  { %576 = vmatmul.mubr.bf16.vlgmr.msra.gmra.mrb[0].mxu0 %v1098_v12  ;;  %704 = vmatmul.mubr.bf16.vlgmr.msra.gmra.mrb[0].mxu1 %v1101_v13 }
  0x26   :  { %1039 = vmatprep.mubr.msk.bf16.mxu0 %vm446_vm0, %v1104_v14  ;;  %1055 = vmatprep.mubr.msk.bf16.mxu1 %vm446_vm0, %v1106_v15 }
  0x2d   :  { %584 = vmatmul.mubr.bf16.gmra.mrb[4].mxu0 %v1108_v16  ;;  %712 = vmatmul.mubr.bf16.gmra.mrb[4].mxu1 %v1109_v17 }
  0x2e   :  { %1040 = vmatprep.mubr.msk.bf16.mxu0 %vm446_vm0, %v1110_v18  ;;  %1056 = vmatprep.mubr.msk.bf16.mxu1 %vm446_vm0, %v1112_v19 }
  0x35   :  { %592 = vmatmul.mubr.bf16.gmra.mrb[8].mxu0 %v1114_v20  ;;  %720 = vmatmul.mubr.bf16.gmra.mrb[8].mxu1 %v1115_v21 }
  0x36   :  { %1041 = vmatprep.mubr.msk.bf16.mxu0 %vm446_vm0, %v1116_v22  ;;  %1057 = vmatprep.mubr.msk.bf16.mxu1 %vm446_vm0, %v1118_v23 }
  0x3d   :  { %600 = vmatmul.mubr.bf16.gmra.mrb[12].mxu0 %v1120_v24  ;;  %728 = vmatmul.mubr.bf16.gmra.mrb[12].mxu1 %v1121_v25 }
  0x3e   :  { %1042 = vmatprep.mubr.msk.bf16.mxu0 %vm446_vm0, %v1122_v26  ;;  %1058 = vmatprep.mubr.msk.bf16.mxu1 %vm446_vm0, %v1124_v27 }
  0x45   :  { %608 = vmatmul.mubr.bf16.gmra.mrb[16].mxu0 %v1126_v28  ;;  %736 = vmatmul.mubr.bf16.gmra.mrb[16].mxu1 %v1127_v29 }
  0x46   :  { %1043 = vmatprep.mubr.msk.bf16.mxu0 %vm446_vm0, %v1128_v30  ;;  %1059 = vmatprep.mubr.msk.bf16.mxu1 %vm446_vm0, %v1130_v31 }
  0x4d   :  { %616 = vmatmul.mubr.bf16.gmra.mrb[20].mxu0 %v1132_v32  ;;  %744 = vmatmul.mubr.bf16.gmra.mrb[20].mxu1 %v1133_v33 }
  0x4e   :  { %1044 = vmatprep.mubr.msk.bf16.mxu0 %vm446_vm0, %v1134_v34  ;;  %1060 = vmatprep.mubr.msk.bf16.mxu1 %vm446_vm0, %v1136_v35 }
  0x55   :  { %624 = vmatmul.mubr.bf16.gmra.mrb[24].mxu0 %v1138_v36  ;;  %752 = vmatmul.mubr.bf16.gmra.mrb[24].mxu1 %v1139_v37 }
  0x56   :  { %1045 = vmatprep.mubr.msk.bf16.mxu0 %vm446_vm0, %v1140_v38  ;;  %1061 = vmatprep.mubr.msk.bf16.mxu1 %vm446_vm0, %v1142_v39 }
  0x5d   :  { %632 = vmatmul.mubr.bf16.gmra.mrb[28].mxu0 %v1144_v40  ;;  %760 = vmatmul.mubr.bf16.gmra.mrb[28].mxu1 %v1145_v41 }
  0x5e   :  { %1046 = vmatprep.mubr.msk.bf16.mxu0 %vm446_vm0, %v1146_v42  ;;  %1062 = vmatprep.mubr.msk.bf16.mxu1 %vm446_vm0, %v1148_v43 }
  0x65   :  { %640 = vmatmul.mubr.bf16.gmra.mrb[32].mxu0 %v1150_v44  ;;  %768 = vmatmul.mubr.bf16.gmra.mrb[32].mxu1 %v1151_v45 }
  0x66   :  { %1047 = vmatprep.mubr.msk.bf16.mxu0 %vm446_vm0, %v1152_v46  ;;  %1063 = vmatprep.mubr.msk.bf16.mxu1 %vm446_vm0, %v1154_v47 }
  0x6d   :  { %648 = vmatmul.mubr.bf16.gmra.mrb[36].mxu0 %v1156_v48  ;;  %776 = vmatmul.mubr.bf16.gmra.mrb[36].mxu1 %v1157_v49 }
  0x6e   :  { %1048 = vmatprep.mubr.msk.bf16.mxu0 %vm446_vm0, %v1158_v50  ;;  %1064 = vmatprep.mubr.msk.bf16.mxu1 %vm446_vm0, %v1160_v51 }
  0x75   :  { %656 = vmatmul.mubr.bf16.gmra.mrb[40].mxu0 %v1162_v52  ;;  %784 = vmatmul.mubr.bf16.gmra.mrb[40].mxu1 %v1163_v53 }
  0x76   :  { %1049 = vmatprep.mubr.msk.bf16.mxu0 %vm446_vm0, %v1164_v54  ;;  %1065 = vmatprep.mubr.msk.bf16.mxu1 %vm446_vm0, %v1166_v55 }
  0x7d   :  { %664 = vmatmul.mubr.bf16.gmra.mrb[44].mxu0 %v1168_v56  ;;  %792 = vmatmul.mubr.bf16.gmra.mrb[44].mxu1 %v1169_v57 }
  0x7e   :  { %1050 = vmatprep.mubr.msk.bf16.mxu0 %vm446_vm0, %v1170_v58  ;;  %1066 = vmatprep.mubr.msk.bf16.mxu1 %vm446_vm0, %v1172_v59 }
  0x85   :  { %672 = vmatmul.mubr.bf16.gmra.mrb[48].mxu0 %v1174_v60  ;;  %800 = vmatmul.mubr.bf16.gmra.mrb[48].mxu1 %v1175_v61 }
  0x86   :  { %1051 = vmatprep.mubr.msk.bf16.mxu0 %vm446_vm0, %v1176_v62  ;;  %1067 = vmatprep.mubr.msk.bf16.mxu1 %vm446_vm0, %v1178_v63 }
  0x8d   :  { %680 = vmatmul.mubr.bf16.gmra.mrb[52].mxu0 %v1180_v0  ;;  %808 = vmatmul.mubr.bf16.gmra.mrb[52].mxu1 %v1181_v1 }
  0x8e   :  { %1052 = vmatprep.mubr.msk.bf16.mxu0 %vm446_vm0, %v1182_v2  ;;  %1068 = vmatprep.mubr.msk.bf16.mxu1 %vm446_vm0, %v1184_v3 }
  0x95   :  { %688 = vmatmul.mubr.bf16.gmra.mrb[56].mxu0 %v1186_v4  ;;  %816 = vmatmul.mubr.bf16.gmra.mrb[56].mxu1 %v1187_v5 }
  0x96   :  { %1053 = vmatprep.mubr.msk.bf16.mxu0 %vm446_vm0, %v1188_v6  ;;  %1069 = vmatprep.mubr.msk.bf16.mxu1 %vm446_vm0, %v1190_v7 }
  0x9d   :  { %696 = vmatmul.mubr.bf16.gmra.mrb[60].mxu0 %v1192_v8  ;;  %824 = vmatmul.mubr.bf16.gmra.mrb[60].mxu1 %v1193_v9 }
  0xf8   :  { %v577_v11 = vpop.f32.mrb[0].mxu0  ;;  %v705_v12 = vpop.f32.mrb[0].mxu1 }
  0xf9   :  { %v578_v13 = vadd.f32 %v1469_v10, %v577_v11  ;;  %v706_v14 = vadd.f32 %v1469_v10, %v705_v12  ;;  %v579_v15 = vpop.f32.mrb[1].mxu0  ;;  %v707_v16 = vpop.f32.mrb[1].mxu1 }
  0xfa   :  { %v580_v17 = vpop.f32.mrb[2].mxu0  ;;  %v708_v18 = vpop.f32.mrb[2].mxu1 }
  0xfb   :  { %v832_v19 = vmax.f32 %v578_v13, 0.0  ;;  %v864_v20 = vmax.f32 %v706_v14, 0.0  ;;  %v581_v21 = vadd.f32 %v1469_v10, %v580_v17  ;;  %v709_v22 = vadd.f32 %v1469_v10, %v708_v18  ;;  %v582_v23 = vpop.f32.mrb[3].mxu0  ;;  %v710_v24 = vpop.f32.mrb[3].mxu1 }
  0xfd   :  { %896 = vst [vmem:[%s1730_s3] sm:$0xff] %v832_v19  ;;  %928 = vst [vmem:[%s1730_s3 + $0x100] sm:$0xff] %v864_v20  ;;  %v833_v25 = vmax.f32 %v581_v21, 0.0  ;;  %v865_v26 = vmax.f32 %v709_v22, 0.0 }
  0xff   :  { %897 = vst [vmem:[%s1730_s3 + $0x8] sm:$0xff] %v833_v25  ;;  %929 = vst [vmem:[%s1730_s3 + $0x108] sm:$0xff] %v865_v26 }
 0x100   :  { %v585_v27 = vpop.f32.mrb[4].mxu0  ;;  %v713_v28 = vpop.f32.mrb[4].mxu1 }
 0x101   :  { %v586_v29 = vadd.f32 %v1469_v10, %v585_v27  ;;  %v714_v30 = vadd.f32 %v1469_v10, %v713_v28  ;;  %v587_v31 = vpop.f32.mrb[5].mxu0  ;;  %v715_v32 = vpop.f32.mrb[5].mxu1 }
 0x102   :  { %v588_v33 = vpop.f32.mrb[6].mxu0  ;;  %v716_v34 = vpop.f32.mrb[6].mxu1 }
 0x103   :  { %v834_v35 = vmax.f32 %v586_v29, 0.0  ;;  %v866_v36 = vmax.f32 %v714_v30, 0.0  ;;  %v589_v37 = vadd.f32 %v1469_v10, %v588_v33  ;;  %v717_v38 = vadd.f32 %v1469_v10, %v716_v34  ;;  %v590_v39 = vpop.f32.mrb[7].mxu0  ;;  %v718_v40 = vpop.f32.mrb[7].mxu1 }
 0x105   :  { %898 = vst [vmem:[%s1730_s3 + $0x10] sm:$0xff] %v834_v35  ;;  %930 = vst [vmem:[%s1730_s3 + $0x110] sm:$0xff] %v866_v36  ;;  %v835_v41 = vmax.f32 %v589_v37, 0.0  ;;  %v867_v42 = vmax.f32 %v717_v38, 0.0 }
 0x107   :  { %899 = vst [vmem:[%s1730_s3 + $0x18] sm:$0xff] %v835_v41  ;;  %931 = vst [vmem:[%s1730_s3 + $0x118] sm:$0xff] %v867_v42 }
 0x108   :  { %v593_v43 = vpop.f32.mrb[8].mxu0  ;;  %v721_v44 = vpop.f32.mrb[8].mxu1 }
 0x109   :  { %v594_v45 = vadd.f32 %v1469_v10, %v593_v43  ;;  %v722_v46 = vadd.f32 %v1469_v10, %v721_v44  ;;  %v595_v47 = vpop.f32.mrb[9].mxu0  ;;  %v723_v48 = vpop.f32.mrb[9].mxu1 }
 0x10a   :  { %v596_v49 = vpop.f32.mrb[10].mxu0  ;;  %v724_v50 = vpop.f32.mrb[10].mxu1 }
 0x10b   :  { %v836_v51 = vmax.f32 %v594_v45, 0.0  ;;  %v868_v52 = vmax.f32 %v722_v46, 0.0  ;;  %v597_v53 = vadd.f32 %v1469_v10, %v596_v49  ;;  %v725_v54 = vadd.f32 %v1469_v10, %v724_v50  ;;  %v598_v55 = vpop.f32.mrb[11].mxu0  ;;  %v726_v56 = vpop.f32.mrb[11].mxu1 }
 0x10d   :  { %900 = vst [vmem:[%s1730_s3 + $0x20] sm:$0xff] %v836_v51  ;;  %932 = vst [vmem:[%s1730_s3 + $0x120] sm:$0xff] %v868_v52  ;;  %v837_v57 = vmax.f32 %v597_v53, 0.0  ;;  %v869_v58 = vmax.f32 %v725_v54, 0.0 }
 0x10f   :  { %901 = vst [vmem:[%s1730_s3 + $0x28] sm:$0xff] %v837_v57  ;;  %933 = vst [vmem:[%s1730_s3 + $0x128] sm:$0xff] %v869_v58 }
 0x110   :  { %v601_v59 = vpop.f32.mrb[12].mxu0  ;;  %v729_v60 = vpop.f32.mrb[12].mxu1 }
 0x111   :  { %v602_v61 = vadd.f32 %v1469_v10, %v601_v59  ;;  %v730_v62 = vadd.f32 %v1469_v10, %v729_v60  ;;  %v603_v63 = vpop.f32.mrb[13].mxu0  ;;  %v731_v0 = vpop.f32.mrb[13].mxu1 }
 0x112   :  { %v604_v1 = vpop.f32.mrb[14].mxu0  ;;  %v732_v2 = vpop.f32.mrb[14].mxu1 }
 0x113   :  { %v838_v3 = vmax.f32 %v602_v61, 0.0  ;;  %v870_v4 = vmax.f32 %v730_v62, 0.0  ;;  %v605_v5 = vadd.f32 %v1469_v10, %v604_v1  ;;  %v733_v6 = vadd.f32 %v1469_v10, %v732_v2  ;;  %v606_v7 = vpop.f32.mrb[15].mxu0  ;;  %v734_v8 = vpop.f32.mrb[15].mxu1 }
 0x115   :  { %902 = vst [vmem:[%s1730_s3 + $0x30] sm:$0xff] %v838_v3  ;;  %934 = vst [vmem:[%s1730_s3 + $0x130] sm:$0xff] %v870_v4  ;;  %v839_v9 = vmax.f32 %v605_v5, 0.0  ;;  %v871_v11 = vmax.f32 %v733_v6, 0.0 }
 0x117   :  { %903 = vst [vmem:[%s1730_s3 + $0x38] sm:$0xff] %v839_v9  ;;  %935 = vst [vmem:[%s1730_s3 + $0x138] sm:$0xff] %v871_v11 }
 0x118   :  { %v609_v12 = vpop.f32.mrb[16].mxu0  ;;  %v737_v13 = vpop.f32.mrb[16].mxu1 }
 0x119   :  { %v610_v14 = vadd.f32 %v1469_v10, %v609_v12  ;;  %v738_v15 = vadd.f32 %v1469_v10, %v737_v13  ;;  %v611_v16 = vpop.f32.mrb[17].mxu0  ;;  %v739_v17 = vpop.f32.mrb[17].mxu1 }
 0x11a   :  { %v612_v18 = vpop.f32.mrb[18].mxu0  ;;  %v740_v19 = vpop.f32.mrb[18].mxu1 }
 0x11b   :  { %v840_v20 = vmax.f32 %v610_v14, 0.0  ;;  %v872_v21 = vmax.f32 %v738_v15, 0.0  ;;  %v613_v22 = vadd.f32 %v1469_v10, %v612_v18  ;;  %v741_v23 = vadd.f32 %v1469_v10, %v740_v19  ;;  %v614_v24 = vpop.f32.mrb[19].mxu0  ;;  %v742_v25 = vpop.f32.mrb[19].mxu1 }
 0x11d   :  { %904 = vst [vmem:[%s1730_s3 + $0x40] sm:$0xff] %v840_v20  ;;  %936 = vst [vmem:[%s1730_s3 + $0x140] sm:$0xff] %v872_v21  ;;  %v841_v26 = vmax.f32 %v613_v22, 0.0  ;;  %v873_v27 = vmax.f32 %v741_v23, 0.0 }
 0x11f   :  { %905 = vst [vmem:[%s1730_s3 + $0x48] sm:$0xff] %v841_v26  ;;  %937 = vst [vmem:[%s1730_s3 + $0x148] sm:$0xff] %v873_v27 }
 0x120   :  { %v617_v28 = vpop.f32.mrb[20].mxu0  ;;  %v745_v29 = vpop.f32.mrb[20].mxu1 }
 0x121   :  { %v618_v30 = vadd.f32 %v1469_v10, %v617_v28  ;;  %v746_v31 = vadd.f32 %v1469_v10, %v745_v29  ;;  %v619_v32 = vpop.f32.mrb[21].mxu0  ;;  %v747_v33 = vpop.f32.mrb[21].mxu1 }
 0x122   :  { %v620_v34 = vpop.f32.mrb[22].mxu0  ;;  %v748_v35 = vpop.f32.mrb[22].mxu1 }
 0x123   :  { %v842_v36 = vmax.f32 %v618_v30, 0.0  ;;  %v874_v37 = vmax.f32 %v746_v31, 0.0  ;;  %v621_v38 = vadd.f32 %v1469_v10, %v620_v34  ;;  %v749_v39 = vadd.f32 %v1469_v10, %v748_v35  ;;  %v622_v40 = vpop.f32.mrb[23].mxu0  ;;  %v750_v41 = vpop.f32.mrb[23].mxu1 }
 0x125   :  { %906 = vst [vmem:[%s1730_s3 + $0x50] sm:$0xff] %v842_v36  ;;  %938 = vst [vmem:[%s1730_s3 + $0x150] sm:$0xff] %v874_v37  ;;  %v843_v42 = vmax.f32 %v621_v38, 0.0  ;;  %v875_v43 = vmax.f32 %v749_v39, 0.0 }
 0x127   :  { %907 = vst [vmem:[%s1730_s3 + $0x58] sm:$0xff] %v843_v42  ;;  %939 = vst [vmem:[%s1730_s3 + $0x158] sm:$0xff] %v875_v43 }
 0x128   :  { %v625_v44 = vpop.f32.mrb[24].mxu0  ;;  %v753_v45 = vpop.f32.mrb[24].mxu1 }
 0x129   :  { %v626_v46 = vadd.f32 %v1469_v10, %v625_v44  ;;  %v754_v47 = vadd.f32 %v1469_v10, %v753_v45  ;;  %v627_v48 = vpop.f32.mrb[25].mxu0  ;;  %v755_v49 = vpop.f32.mrb[25].mxu1 }
 0x12a   :  { %v628_v50 = vpop.f32.mrb[26].mxu0  ;;  %v756_v51 = vpop.f32.mrb[26].mxu1 }
 0x12b   :  { %v844_v52 = vmax.f32 %v626_v46, 0.0  ;;  %v876_v53 = vmax.f32 %v754_v47, 0.0  ;;  %v629_v54 = vadd.f32 %v1469_v10, %v628_v50  ;;  %v757_v55 = vadd.f32 %v1469_v10, %v756_v51  ;;  %v630_v56 = vpop.f32.mrb[27].mxu0  ;;  %v758_v57 = vpop.f32.mrb[27].mxu1 }
 0x12d   :  { %908 = vst [vmem:[%s1730_s3 + $0x60] sm:$0xff] %v844_v52  ;;  %940 = vst [vmem:[%s1730_s3 + $0x160] sm:$0xff] %v876_v53  ;;  %v845_v58 = vmax.f32 %v629_v54, 0.0  ;;  %v877_v59 = vmax.f32 %v757_v55, 0.0 }
 0x12f   :  { %909 = vst [vmem:[%s1730_s3 + $0x68] sm:$0xff] %v845_v58  ;;  %941 = vst [vmem:[%s1730_s3 + $0x168] sm:$0xff] %v877_v59 }
 0x130   :  { %v633_v60 = vpop.f32.mrb[28].mxu0  ;;  %v761_v61 = vpop.f32.mrb[28].mxu1 }
 0x131   :  { %v634_v62 = vadd.f32 %v1469_v10, %v633_v60  ;;  %v762_v63 = vadd.f32 %v1469_v10, %v761_v61  ;;  %v635_v0 = vpop.f32.mrb[29].mxu0  ;;  %v763_v1 = vpop.f32.mrb[29].mxu1 }
 0x132   :  { %v636_v2 = vpop.f32.mrb[30].mxu0  ;;  %v764_v3 = vpop.f32.mrb[30].mxu1 }
 0x133   :  { %v846_v4 = vmax.f32 %v634_v62, 0.0  ;;  %v878_v5 = vmax.f32 %v762_v63, 0.0  ;;  %v637_v6 = vadd.f32 %v1469_v10, %v636_v2  ;;  %v765_v7 = vadd.f32 %v1469_v10, %v764_v3  ;;  %v638_v8 = vpop.f32.mrb[31].mxu0  ;;  %v766_v9 = vpop.f32.mrb[31].mxu1 }
 0x135   :  { %910 = vst [vmem:[%s1730_s3 + $0x70] sm:$0xff] %v846_v4  ;;  %942 = vst [vmem:[%s1730_s3 + $0x170] sm:$0xff] %v878_v5  ;;  %v847_v11 = vmax.f32 %v637_v6, 0.0  ;;  %v879_v12 = vmax.f32 %v765_v7, 0.0 }
 0x137   :  { %911 = vst [vmem:[%s1730_s3 + $0x78] sm:$0xff] %v847_v11  ;;  %943 = vst [vmem:[%s1730_s3 + $0x178] sm:$0xff] %v879_v12 }
 0x138   :  { %v641_v13 = vpop.f32.mrb[32].mxu0  ;;  %v769_v14 = vpop.f32.mrb[32].mxu1 }
 0x139   :  { %v642_v15 = vadd.f32 %v1469_v10, %v641_v13  ;;  %v770_v16 = vadd.f32 %v1469_v10, %v769_v14  ;;  %v643_v17 = vpop.f32.mrb[33].mxu0  ;;  %v771_v18 = vpop.f32.mrb[33].mxu1 }
 0x13a   :  { %v644_v19 = vpop.f32.mrb[34].mxu0  ;;  %v772_v20 = vpop.f32.mrb[34].mxu1 }
 0x13b   :  { %v848_v21 = vmax.f32 %v642_v15, 0.0  ;;  %v880_v22 = vmax.f32 %v770_v16, 0.0  ;;  %v645_v23 = vadd.f32 %v1469_v10, %v644_v19  ;;  %v773_v24 = vadd.f32 %v1469_v10, %v772_v20  ;;  %v646_v25 = vpop.f32.mrb[35].mxu0  ;;  %v774_v26 = vpop.f32.mrb[35].mxu1 }
 0x13d   :  { %912 = vst [vmem:[%s1730_s3 + $0x80] sm:$0xff] %v848_v21  ;;  %944 = vst [vmem:[%s1730_s3 + $0x180] sm:$0xff] %v880_v22  ;;  %v849_v27 = vmax.f32 %v645_v23, 0.0  ;;  %v881_v28 = vmax.f32 %v773_v24, 0.0 }
 0x13f   :  { %913 = vst [vmem:[%s1730_s3 + $0x88] sm:$0xff] %v849_v27  ;;  %945 = vst [vmem:[%s1730_s3 + $0x188] sm:$0xff] %v881_v28 }
 0x140   :  { %v649_v29 = vpop.f32.mrb[36].mxu0  ;;  %v777_v30 = vpop.f32.mrb[36].mxu1 }
 0x141   :  { %v650_v31 = vadd.f32 %v1469_v10, %v649_v29  ;;  %v778_v32 = vadd.f32 %v1469_v10, %v777_v30  ;;  %v651_v33 = vpop.f32.mrb[37].mxu0  ;;  %v779_v34 = vpop.f32.mrb[37].mxu1 }
 0x142   :  { %v652_v35 = vpop.f32.mrb[38].mxu0  ;;  %v780_v36 = vpop.f32.mrb[38].mxu1 }
 0x143   :  { %v850_v37 = vmax.f32 %v650_v31, 0.0  ;;  %v882_v38 = vmax.f32 %v778_v32, 0.0  ;;  %v653_v39 = vadd.f32 %v1469_v10, %v652_v35  ;;  %v781_v40 = vadd.f32 %v1469_v10, %v780_v36  ;;  %v654_v41 = vpop.f32.mrb[39].mxu0  ;;  %v782_v42 = vpop.f32.mrb[39].mxu1 }
 0x145   :  { %914 = vst [vmem:[%s1730_s3 + $0x90] sm:$0xff] %v850_v37  ;;  %946 = vst [vmem:[%s1730_s3 + $0x190] sm:$0xff] %v882_v38  ;;  %v851_v43 = vmax.f32 %v653_v39, 0.0  ;;  %v883_v44 = vmax.f32 %v781_v40, 0.0 }
 0x147   :  { %915 = vst [vmem:[%s1730_s3 + $0x98] sm:$0xff] %v851_v43  ;;  %947 = vst [vmem:[%s1730_s3 + $0x198] sm:$0xff] %v883_v44 }
 0x148   :  { %v657_v45 = vpop.f32.mrb[40].mxu0  ;;  %v785_v46 = vpop.f32.mrb[40].mxu1 }
 0x149   :  { %v658_v47 = vadd.f32 %v1469_v10, %v657_v45  ;;  %v786_v48 = vadd.f32 %v1469_v10, %v785_v46  ;;  %v659_v49 = vpop.f32.mrb[41].mxu0  ;;  %v787_v50 = vpop.f32.mrb[41].mxu1 }
 0x14a   :  { %v660_v51 = vpop.f32.mrb[42].mxu0  ;;  %v788_v52 = vpop.f32.mrb[42].mxu1 }
 0x14b   :  { %v852_v53 = vmax.f32 %v658_v47, 0.0  ;;  %v884_v54 = vmax.f32 %v786_v48, 0.0  ;;  %v661_v55 = vadd.f32 %v1469_v10, %v660_v51  ;;  %v789_v56 = vadd.f32 %v1469_v10, %v788_v52  ;;  %v662_v57 = vpop.f32.mrb[43].mxu0  ;;  %v790_v58 = vpop.f32.mrb[43].mxu1 }
 0x14d   :  { %916 = vst [vmem:[%s1730_s3 + $0xa0] sm:$0xff] %v852_v53  ;;  %948 = vst [vmem:[%s1730_s3 + $0x1a0] sm:$0xff] %v884_v54  ;;  %v853_v59 = vmax.f32 %v661_v55, 0.0  ;;  %v885_v60 = vmax.f32 %v789_v56, 0.0 }
 0x14f   :  { %917 = vst [vmem:[%s1730_s3 + $0xa8] sm:$0xff] %v853_v59  ;;  %949 = vst [vmem:[%s1730_s3 + $0x1a8] sm:$0xff] %v885_v60 }
 0x150   :  { %v665_v61 = vpop.f32.mrb[44].mxu0  ;;  %v793_v62 = vpop.f32.mrb[44].mxu1 }
 0x151   :  { %v666_v63 = vadd.f32 %v1469_v10, %v665_v61  ;;  %v794_v0 = vadd.f32 %v1469_v10, %v793_v62  ;;  %v667_v1 = vpop.f32.mrb[45].mxu0  ;;  %v795_v2 = vpop.f32.mrb[45].mxu1 }
 0x152   :  { %v668_v3 = vpop.f32.mrb[46].mxu0  ;;  %v796_v4 = vpop.f32.mrb[46].mxu1 }
 0x153   :  { %v854_v5 = vmax.f32 %v666_v63, 0.0  ;;  %v886_v6 = vmax.f32 %v794_v0, 0.0  ;;  %v669_v7 = vadd.f32 %v1469_v10, %v668_v3  ;;  %v797_v8 = vadd.f32 %v1469_v10, %v796_v4  ;;  %v670_v9 = vpop.f32.mrb[47].mxu0  ;;  %v798_v11 = vpop.f32.mrb[47].mxu1 }
 0x155   :  { %918 = vst [vmem:[%s1730_s3 + $0xb0] sm:$0xff] %v854_v5  ;;  %950 = vst [vmem:[%s1730_s3 + $0x1b0] sm:$0xff] %v886_v6  ;;  %v855_v12 = vmax.f32 %v669_v7, 0.0  ;;  %v887_v13 = vmax.f32 %v797_v8, 0.0 }
 0x157   :  { %919 = vst [vmem:[%s1730_s3 + $0xb8] sm:$0xff] %v855_v12  ;;  %951 = vst [vmem:[%s1730_s3 + $0x1b8] sm:$0xff] %v887_v13 }
 0x158   :  { %v673_v14 = vpop.f32.mrb[48].mxu0  ;;  %v801_v15 = vpop.f32.mrb[48].mxu1 }
 0x159   :  { %v674_v16 = vadd.f32 %v1469_v10, %v673_v14  ;;  %v802_v17 = vadd.f32 %v1469_v10, %v801_v15  ;;  %v675_v18 = vpop.f32.mrb[49].mxu0  ;;  %v803_v19 = vpop.f32.mrb[49].mxu1 }
 0x15a   :  { %v676_v20 = vpop.f32.mrb[50].mxu0  ;;  %v804_v21 = vpop.f32.mrb[50].mxu1 }
 0x15b   :  { %v856_v22 = vmax.f32 %v674_v16, 0.0  ;;  %v888_v23 = vmax.f32 %v802_v17, 0.0  ;;  %v677_v24 = vadd.f32 %v1469_v10, %v676_v20  ;;  %v805_v25 = vadd.f32 %v1469_v10, %v804_v21  ;;  %v678_v26 = vpop.f32.mrb[51].mxu0  ;;  %v806_v27 = vpop.f32.mrb[51].mxu1 }
 0x15d   :  { %920 = vst [vmem:[%s1730_s3 + $0xc0] sm:$0xff] %v856_v22  ;;  %952 = vst [vmem:[%s1730_s3 + $0x1c0] sm:$0xff] %v888_v23  ;;  %v857_v28 = vmax.f32 %v677_v24, 0.0  ;;  %v889_v29 = vmax.f32 %v805_v25, 0.0 }
 0x15f   :  { %921 = vst [vmem:[%s1730_s3 + $0xc8] sm:$0xff] %v857_v28  ;;  %953 = vst [vmem:[%s1730_s3 + $0x1c8] sm:$0xff] %v889_v29 }
 0x160   :  { %v681_v30 = vpop.f32.mrb[52].mxu0  ;;  %v809_v31 = vpop.f32.mrb[52].mxu1 }
 0x161   :  { %v682_v32 = vadd.f32 %v1469_v10, %v681_v30  ;;  %v810_v33 = vadd.f32 %v1469_v10, %v809_v31  ;;  %v683_v34 = vpop.f32.mrb[53].mxu0  ;;  %v811_v35 = vpop.f32.mrb[53].mxu1 }
 0x162   :  { %v684_v36 = vpop.f32.mrb[54].mxu0  ;;  %v812_v37 = vpop.f32.mrb[54].mxu1 }
 0x163   :  { %v858_v38 = vmax.f32 %v682_v32, 0.0  ;;  %v890_v39 = vmax.f32 %v810_v33, 0.0  ;;  %v685_v40 = vadd.f32 %v1469_v10, %v684_v36  ;;  %v813_v41 = vadd.f32 %v1469_v10, %v812_v37  ;;  %v686_v42 = vpop.f32.mrb[55].mxu0  ;;  %v814_v43 = vpop.f32.mrb[55].mxu1 }
 0x165   :  { %922 = vst [vmem:[%s1730_s3 + $0xd0] sm:$0xff] %v858_v38  ;;  %954 = vst [vmem:[%s1730_s3 + $0x1d0] sm:$0xff] %v890_v39  ;;  %v859_v44 = vmax.f32 %v685_v40, 0.0  ;;  %v891_v45 = vmax.f32 %v813_v41, 0.0 }
 0x167   :  { %923 = vst [vmem:[%s1730_s3 + $0xd8] sm:$0xff] %v859_v44  ;;  %955 = vst [vmem:[%s1730_s3 + $0x1d8] sm:$0xff] %v891_v45 }
 0x168   :  { %v689_v46 = vpop.f32.mrb[56].mxu0  ;;  %v817_v47 = vpop.f32.mrb[56].mxu1 }
 0x169   :  { %v690_v48 = vadd.f32 %v1469_v10, %v689_v46  ;;  %v818_v49 = vadd.f32 %v1469_v10, %v817_v47  ;;  %v691_v50 = vpop.f32.mrb[57].mxu0  ;;  %v819_v51 = vpop.f32.mrb[57].mxu1 }
 0x16a   :  { %v692_v52 = vpop.f32.mrb[58].mxu0  ;;  %v820_v53 = vpop.f32.mrb[58].mxu1 }
 0x16b   :  { %v860_v54 = vmax.f32 %v690_v48, 0.0  ;;  %v892_v55 = vmax.f32 %v818_v49, 0.0  ;;  %v693_v56 = vadd.f32 %v1469_v10, %v692_v52  ;;  %v821_v57 = vadd.f32 %v1469_v10, %v820_v53  ;;  %v694_v58 = vpop.f32.mrb[59].mxu0  ;;  %v822_v59 = vpop.f32.mrb[59].mxu1 }
 0x16d   :  { %924 = vst [vmem:[%s1730_s3 + $0xe0] sm:$0xff] %v860_v54  ;;  %956 = vst [vmem:[%s1730_s3 + $0x1e0] sm:$0xff] %v892_v55  ;;  %v861_v60 = vmax.f32 %v693_v56, 0.0  ;;  %v893_v61 = vmax.f32 %v821_v57, 0.0 }
 0x16f   :  { %925 = vst [vmem:[%s1730_s3 + $0xe8] sm:$0xff] %v861_v60  ;;  %957 = vst [vmem:[%s1730_s3 + $0x1e8] sm:$0xff] %v893_v61 }
 0x170   :  { %v697_v62 = vpop.f32.mrb[60].mxu0  ;;  %v825_v63 = vpop.f32.mrb[60].mxu1 }
 0x171   :  { %v698_v0 = vadd.f32 %v1469_v10, %v697_v62  ;;  %v826_v1 = vadd.f32 %v1469_v10, %v825_v63  ;;  %v699_v2 = vpop.f32.mrb[61].mxu0  ;;  %v827_v3 = vpop.f32.mrb[61].mxu1 }
 0x172   :  { %v700_v4 = vpop.f32.mrb[62].mxu0  ;;  %v828_v5 = vpop.f32.mrb[62].mxu1 }
 0x173   :  { %v862_v6 = vmax.f32 %v698_v0, 0.0  ;;  %v894_v7 = vmax.f32 %v826_v1, 0.0  ;;  %v701_v8 = vadd.f32 %v1469_v10, %v700_v4  ;;  %v829_v9 = vadd.f32 %v1469_v10, %v828_v5  ;;  %v702_v11 = vpop.f32.mrb[63].mxu0  ;;  %v830_v12 = vpop.f32.mrb[63].mxu1 }
 0x175   :  { %926 = vst [vmem:[%s1730_s3 + $0xf0] sm:$0xff] %v862_v6  ;;  %958 = vst [vmem:[%s1730_s3 + $0x1f0] sm:$0xff] %v894_v7  ;;  %v863_v13 = vmax.f32 %v701_v8, 0.0  ;;  %v895_v14 = vmax.f32 %v829_v9, 0.0 }
 0x177   :  { %927 = vst [vmem:[%s1730_s3 + $0xf8] sm:$0xff] %v863_v13  ;;  %959 = vst [vmem:[%s1730_s3 + $0x1f8] sm:$0xff] %v895_v14 }

// kernel: temporal_net_forward.9
= control target key start
LH: loop header
LB: loop body
LE: loop exit
PB: predicated region body
PF: predicated region fallthrough
CT: control target
= control target key end

     0   :  { %vm318_vm0 = vcmask 261120   ;;  %s1019_s1 = inlined_call_operand.vmem [shape: bf16[288,128], index: 1, kind: input, shape index: {}]   ;;  %s1020_s0 = inlined_call_operand.vmem [shape: bf16[128,288], index: 0, kind: input, shape index: {}]   ;;  %s1021_s2 = inlined_call_operand.vmem [shape: f32[1,128], index: 2, kind: input, shape index: {}]   ;;  %s1022_s3 = inlined_call_operand.vmem [shape: f32[128,128], index: 3, kind: output, shape index: {}]  }
   0x1   :  { %v734_v0 = vld [vmem:[%s1019_s1 + $0x40] sm:$0xff]   ;;  %v736_v2 = vld [vmem:[%s1019_s1 + $0x48] sm:$0xff]   ;;  %v738_v4 = vld [vmem:[%s1019_s1 + $0x50] sm:$0xff]  }
   0x2   :  { %v735_v1 = vld [vmem:[%s1019_s1] sm:$0xff]   ;;  %624 = vmatprep.subr.bf16.mxu0 %v734_v0  ;;  %718 = vmatprep.subr.bf16.mxu1 %v734_v0  ;;  %v737_v3 = vld [vmem:[%s1019_s1 + $0x8] sm:$0xff]   ;;  %v739_v5 = vld [vmem:[%s1019_s1 + $0x10] sm:$0xff]  }
   0x3   :  { %625 = vmatpush3.bf16.msra.mxu0 %v735_v1  ;;  %726 = vmatpush3.bf16.msra.mxu1 %v735_v1  ;;  %v740_v6 = vld [vmem:[%s1019_s1 + $0x58] sm:$0xff]   ;;  %v742_v8 = vld [vmem:[%s1019_s1 + $0x60] sm:$0xff]   ;;  %v744_v10 = vld [vmem:[%s1019_s1 + $0x68] sm:$0xff]  }
   0x4   :  { %626 = vmatprep.subr.bf16.mxu0 %v736_v2  ;;  %719 = vmatprep.subr.bf16.mxu1 %v736_v2  ;;  %v741_v7 = vld [vmem:[%s1019_s1 + $0x18] sm:$0xff]   ;;  %v743_v9 = vld [vmem:[%s1019_s1 + $0x20] sm:$0xff]   ;;  %v745_v13 = vld [vmem:[%s1019_s1 + $0x28] sm:$0xff]  }
   0x5   :  { %v752_v11 = vld [vmem:[%s1020_s0 + $0x4] ss:$12 sps:$4 sm:$0xff]   ;;  %v755_v12 = vld [vmem:[%s1020_s0 + $0x94] ss:$12 sps:$4 sm:$0xff]   ;;  %v748_v16 = vld [vmem:[%s1019_s1 + $0x78] sm:$0xff]  }
   0x6   :  { %v746_v14 = vld [vmem:[%s1019_s1 + $0x70] sm:$0xff]   ;;  %375 = vmatprep.mubr.bf16.mxu0 %v752_v11  ;;  %423 = vmatprep.mubr.bf16.mxu1 %v755_v12  ;;  %v749_v17 = vld [vmem:[%s1019_s1 + $0x38] sm:$0xff]   ;;  %v750_v18 = vld [vmem:[%s1020_s0] ss:$12 sps:$4 sm:$0xff]  }
   0x7   :  { %627 = vmatpush3.bf16.msra.mxu0 %v737_v3  ;;  %727 = vmatpush3.bf16.msra.mxu1 %v737_v3  ;;  %v747_v15 = vld [vmem:[%s1019_s1 + $0x30] sm:$0xff]   ;;  %v756_v19 = vld [vmem:[%s1019_s1 + $0x80] sm:$0xff]   ;;  %v757_v21 = vld [vmem:[%s1020_s0 + $0x1c] ss:$12 sps:$4 sm:$0xff]  }
   0x8   :  { %628 = vmatprep.subr.bf16.mxu0 %v738_v4  ;;  %720 = vmatprep.subr.bf16.mxu1 %v738_v4  ;;  %v753_v20 = vld [vmem:[%s1020_s0 + $0x90] ss:$12 sps:$4 sm:$0xff]   ;;  %v759_v22 = vld [vmem:[%s1020_s0 + $0xac] ss:$12 sps:$4 sm:$0xff]   ;;  %v762_v25 = vld [vmem:[%s1020_s0 + $0xa8] ss:$12 sps:$4 sm:$0xff]  }
   0x9   :  { %v763_v23 = vld [vmem:[%s1019_s1 + $0x88] sm:$0xff]   ;;  %v761_v24 = vld [vmem:[%s1020_s0 + $0x18] ss:$12 sps:$4 sm:$0xff]   ;;  %v764_v26 = vld [vmem:[%s1020_s0 + $0x34] ss:$12 sps:$4 sm:$0xff]  }
   0xa   :  { %v766_v27 = vld [vmem:[%s1020_s0 + $0x8] ss:$12 sps:$4 sm:$0xff]   ;;  %v767_v28 = vld [vmem:[%s1020_s0 + $0x30] ss:$12 sps:$4 sm:$0xff]   ;;  %v768_v29 = vld [vmem:[%s1020_s0 + $0x20] ss:$12 sps:$4 sm:$0xff]  }
   0xb   :  { %629 = vmatpush3.bf16.msra.mxu0 %v739_v5  ;;  %728 = vmatpush3.bf16.msra.mxu1 %v739_v5  ;;  %v769_v30 = vld [vmem:[%s1020_s0 + $0x4c] ss:$12 sps:$4 sm:$0xff]   ;;  %v772_v32 = vld [vmem:[%s1020_s0 + $0x48] ss:$12 sps:$4 sm:$0xff]   ;;  %v773_v33 = vld [vmem:[%s1020_s0 + $0x50] ss:$12 sps:$4 sm:$0xff]  }
   0xc   :  { %630 = vmatprep.subr.bf16.mxu0 %v740_v6  ;;  %721 = vmatprep.subr.bf16.mxu1 %v740_v6  ;;  %v771_v31 = vld [vmem:[%s1020_s0 + $0x38] ss:$12 sps:$4 sm:$0xff]   ;;  %v776_v35 = vld [vmem:[%s1020_s0 + $0x68] ss:$12 sps:$4 sm:$0xff]   ;;  %v777_v36 = vld [vmem:[%s1020_s0 + $0x60] ss:$12 sps:$4 sm:$0xff]  }
   0xd   :  { %v774_v34 = vld [vmem:[%s1020_s0 + $0x64] ss:$12 sps:$4 sm:$0xff]   ;;  %v778_v37 = vld [vmem:[%s1020_s0 + $0x80] ss:$12 sps:$4 sm:$0xff]   ;;  %v779_v38 = vld [vmem:[%s1020_s0 + $0x7c] ss:$12 sps:$4 sm:$0xff]  }
   0xe   :  { %v781_v39 = vld [vmem:[%s1020_s0 + $0x98] ss:$12 sps:$4 sm:$0xff]   ;;  %v783_v41 = vld [vmem:[%s1020_s0 + $0xb0] ss:$12 sps:$4 sm:$0xff]   ;;  %v949_v2 = vld [vmem:[%s1021_s2] ss:$0 sm:$0xff] }
   0xf   :  { %631 = vmatpush3.bf16.msra.mxu0 %v741_v7  ;;  %729 = vmatpush3.bf16.msra.mxu1 %v741_v7  ;;  %v782_v40 = vld [vmem:[%s1020_s0 + $0x78] ss:$12 sps:$4 sm:$0xff]  }
  0x10   :  { %632 = vmatprep.subr.bf16.mxu0 %v742_v8  ;;  %722 = vmatprep.subr.bf16.mxu1 %v742_v8 }
  0x13   :  { %633 = vmatpush3.bf16.msra.mxu0 %v743_v9  ;;  %730 = vmatpush3.bf16.msra.mxu1 %v743_v9 }
  0x14   :  { %634 = vmatprep.subr.bf16.mxu0 %v744_v10  ;;  %723 = vmatprep.subr.bf16.mxu1 %v744_v10 }
  0x17   :  { %635 = vmatpush3.bf16.msra.mxu0 %v745_v13  ;;  %731 = vmatpush3.bf16.msra.mxu1 %v745_v13 }
  0x18   :  { %636 = vmatprep.subr.bf16.mxu0 %v746_v14  ;;  %724 = vmatprep.subr.bf16.mxu1 %v746_v14 }
  0x1b   :  { %637 = vmatpush3.bf16.msra.mxu0 %v747_v15  ;;  %732 = vmatpush3.bf16.msra.mxu1 %v747_v15 }
  0x1c   :  { %638 = vmatprep.subr.bf16.mxu0 %v748_v16  ;;  %725 = vmatprep.subr.bf16.mxu1 %v748_v16 }
  0x1f   :  { %639 = vmatpush3.bf16.msra.mxu0 %v749_v17  ;;  %733 = vmatpush3.bf16.msra.mxu1 %v749_v17 }
  0x20   :  { %698 = vmatprep.subr.bf16.mxu1 %v756_v19 }
  0x22   :  { %376 = vmatmul.mubr.bf16.vlgmr.msra.gmra.mrb[0].mxu0 %v750_v18  ;;  %424 = vmatmul.mubr.bf16.vlgmr.msra.gmra.mrb[0].mxu1 %v753_v20 }
  0x23   :  { %699 = vmatpush3.bf16.msra.mxu1 %v756_v19  ;;  %383 = vmatprep.mubr.bf16.mxu0 %v757_v21 }
  0x24   :  { %431 = vmatprep.mubr.bf16.mxu1 %v759_v22  ;;  %700 = vmatprep.subr.bf16.mxu1 %v763_v23 }
  0x27   :  { %701 = vmatpush3.bf16.msra.mxu1 %v763_v23 }
  0x2a   :  { %384 = vmatmul.mubr.bf16.gmra.mrb[4].mxu0 %v761_v24  ;;  %432 = vmatmul.mubr.bf16.gmra.mrb[4].mxu1 %v762_v25 }
  0x2b   :  { %391 = vmatprep.mubr.bf16.mxu0 %v764_v26  ;;  %702 = vmatprep.mubr.msk.bf16.mxu1 %vm318_vm0, %v766_v27 }
  0x32   :  { %392 = vmatmul.mubr.bf16.gmra.mrb[8].mxu0 %v767_v28  ;;  %703 = vmatmul.mubr.msk.bf16.vlgmr.msra.gmra.mrb[8].mxu1 %vm318_vm0, %v768_v29 }
  0x33   :  { %399 = vmatprep.mubr.bf16.mxu0 %v769_v30  ;;  %706 = vmatprep.mubr.msk.bf16.mxu1 %vm318_vm0, %v771_v31 }
  0x3a   :  { %400 = vmatmul.mubr.bf16.gmra.mrb[12].mxu0 %v772_v32  ;;  %707 = vmatmul.mubr.msk.bf16.gmra.mrb[12].mxu1 %vm318_vm0, %v773_v33 }
  0x3b   :  { %407 = vmatprep.mubr.bf16.mxu0 %v774_v34  ;;  %710 = vmatprep.mubr.msk.bf16.mxu1 %vm318_vm0, %v776_v35 }
  0x42   :  { %408 = vmatmul.mubr.bf16.gmra.mrb[16].mxu0 %v777_v36  ;;  %711 = vmatmul.mubr.msk.bf16.gmra.mrb[16].mxu1 %vm318_vm0, %v778_v37 }
  0x43   :  { %415 = vmatprep.mubr.bf16.mxu0 %v779_v38  ;;  %714 = vmatprep.mubr.msk.bf16.mxu1 %vm318_vm0, %v781_v39 }
  0x4a   :  { %416 = vmatmul.mubr.bf16.gmra.mrb[20].mxu0 %v782_v40  ;;  %715 = vmatmul.mubr.msk.bf16.gmra.mrb[20].mxu1 %vm318_vm0, %v783_v41 }
  0xf5   :  { %v640_v42 = vpop.f32.mrb[0].mxu0  ;;  %v676_v43 = vpop.f32.mrb[0].mxu1 }
  0xf6   :  { %v641_v44 = vpop.f32.mrb[1].mxu0  ;;  %v677_v45 = vpop.f32.mrb[1].mxu1 }
  0xf7   :  { %v642_v46 = vadd.f32 %v641_v44, %v640_v42  ;;  %v643_v47 = vpop.f32.mrb[2].mxu0  ;;  %v938_v48 = vadd.f32 %v677_v45, %v676_v43  ;;  %v679_v49 = vpop.f32.mrb[2].mxu1 }
  0xf8   :  { %v644_v50 = vpop.f32.mrb[3].mxu0  ;;  %v680_v51 = vpop.f32.mrb[3].mxu1 }
  0xf9   :  { %v645_v52 = vadd.f32 %v644_v50, %v643_v47  ;;  %v940_v53 = vadd.f32 %v680_v51, %v679_v49  ;;  %v378_v6 = vadd.f32 %v642_v46, %v949_v2 }
  0xfb   :  { %v381_v15 = vadd.f32 %v645_v52, %v949_v2 }
  0xfd   :  { %v646_v54 = vpop.f32.mrb[4].mxu0  ;;  %v682_v55 = vpop.f32.mrb[4].mxu1 }
  0xfe   :  { %v647_v56 = vpop.f32.mrb[5].mxu0  ;;  %v683_v57 = vpop.f32.mrb[5].mxu1 }
  0xff   :  { %v648_v58 = vadd.f32 %v647_v56, %v646_v54  ;;  %v649_v59 = vpop.f32.mrb[6].mxu0  ;;  %v942_v60 = vadd.f32 %v683_v57, %v682_v55  ;;  %v685_v61 = vpop.f32.mrb[6].mxu1 }
 0x100   :  { %v650_v62 = vpop.f32.mrb[7].mxu0  ;;  %v686_v63 = vpop.f32.mrb[7].mxu1 }
 0x101   :  { %v651_v0 = vadd.f32 %v650_v62, %v649_v59  ;;  %v944_v1 = vadd.f32 %v686_v63, %v685_v61  ;;  %v386_v3 = vadd.f32 %v648_v58, %v949_v2  ;;  %v434_v63 = vadd.f32 %v942_v60, %v949_v2 }
 0x103   :  { %v389_v10 = vadd.f32 %v651_v0, %v949_v2 }
 0x105   :  { %v652_v4 = vpop.f32.mrb[8].mxu0  ;;  %v704_v5 = vpop.f32.mrb[8].mxu1 }
 0x106   :  { %v483_v7 = vadd.f32 %v704_v5, %v386_v3  ;;  %v653_v8 = vpop.f32.mrb[9].mxu0  ;;  %v474_v9 = vpop.f32.mrb[9].mxu1 }
 0x107   :  { %v654_v11 = vadd.f32 %v653_v8, %v652_v4  ;;  %v475_v12 = vadd.f32 %v474_v9, %v378_v6  ;;  %v655_v13 = vpop.f32.mrb[10].mxu0  ;;  %v705_v14 = vpop.f32.mrb[10].mxu1  ;;  %v426_v6 = vadd.f32 %v938_v48, %v949_v2 }
 0x108   :  { %v539_v16 = vmax.f32 %v483_v7, 0.0  ;;  %v486_v17 = vadd.f32 %v705_v14, %v389_v10  ;;  %v656_v18 = vpop.f32.mrb[11].mxu0  ;;  %v477_v19 = vpop.f32.mrb[11].mxu1  ;;  %v437_v10 = vadd.f32 %v944_v1, %v949_v2 }
 0x109   :  { %v537_v20 = vmax.f32 %v475_v12, 0.0  ;;  %v657_v21 = vadd.f32 %v656_v18, %v655_v13  ;;  %v478_v22 = vadd.f32 %v477_v19, %v381_v15  ;;  %v394_v27 = vadd.f32 %v654_v11, %v949_v2 }
 0x10a   :  { %555 = vst [vmem:[%s1022_s3 + $0x10] sm:$0xff] %v539_v16  ;;  %v540_v23 = vmax.f32 %v486_v17, 0.0  ;;  %v429_v15 = vadd.f32 %v940_v53, %v949_v2 }
 0x10b   :  { %553 = vst [vmem:[%s1022_s3] sm:$0xff] %v537_v20  ;;  %v538_v24 = vmax.f32 %v478_v22, 0.0  ;;  %v397_v34 = vadd.f32 %v657_v21, %v949_v2 }
 0x10c   :  { %556 = vst [vmem:[%s1022_s3 + $0x18] sm:$0xff] %v540_v23 }
 0x10d   :  { %554 = vst [vmem:[%s1022_s3 + $0x8] sm:$0xff] %v538_v24  ;;  %v658_v25 = vpop.f32.mrb[12].mxu0  ;;  %v708_v26 = vpop.f32.mrb[12].mxu1 }
 0x10e   :  { %v659_v28 = vpop.f32.mrb[13].mxu0  ;;  %v490_v29 = vpop.f32.mrb[13].mxu1 }
 0x10f   :  { %v660_v30 = vadd.f32 %v659_v28, %v658_v25  ;;  %v491_v31 = vadd.f32 %v490_v29, %v394_v27  ;;  %v661_v32 = vpop.f32.mrb[14].mxu0  ;;  %v709_v33 = vpop.f32.mrb[14].mxu1 }
 0x110   :  { %v662_v35 = vpop.f32.mrb[15].mxu0  ;;  %v493_v36 = vpop.f32.mrb[15].mxu1 }
 0x111   :  { %v402_v37 = vadd.f32 %v660_v30, %v949_v2  ;;  %v541_v38 = vmax.f32 %v491_v31, 0.0  ;;  %v663_v39 = vadd.f32 %v662_v35, %v661_v32  ;;  %v494_v40 = vadd.f32 %v493_v36, %v397_v34 }
 0x113   :  { %v499_v41 = vadd.f32 %v708_v26, %v402_v37  ;;  %557 = vst [vmem:[%s1022_s3 + $0x20] sm:$0xff] %v541_v38  ;;  %v405_v42 = vadd.f32 %v663_v39, %v949_v2  ;;  %v542_v43 = vmax.f32 %v494_v40, 0.0 }
 0x115   :  { %v543_v44 = vmax.f32 %v499_v41, 0.0  ;;  %v502_v45 = vadd.f32 %v709_v33, %v405_v42  ;;  %558 = vst [vmem:[%s1022_s3 + $0x28] sm:$0xff] %v542_v43  ;;  %v664_v46 = vpop.f32.mrb[16].mxu0  ;;  %v712_v47 = vpop.f32.mrb[16].mxu1 }
 0x116   :  { %v665_v49 = vpop.f32.mrb[17].mxu0  ;;  %v506_v50 = vpop.f32.mrb[17].mxu1 }
 0x117   :  { %559 = vst [vmem:[%s1022_s3 + $0x30] sm:$0xff] %v543_v44  ;;  %v544_v51 = vmax.f32 %v502_v45, 0.0  ;;  %v666_v52 = vadd.f32 %v665_v49, %v664_v46  ;;  %v667_v54 = vpop.f32.mrb[18].mxu0  ;;  %v713_v55 = vpop.f32.mrb[18].mxu1 }
 0x118   :  { %v668_v56 = vpop.f32.mrb[19].mxu0  ;;  %v509_v57 = vpop.f32.mrb[19].mxu1 }
 0x119   :  { %560 = vst [vmem:[%s1022_s3 + $0x38] sm:$0xff] %v544_v51  ;;  %v410_v58 = vadd.f32 %v666_v52, %v949_v2  ;;  %v669_v59 = vadd.f32 %v668_v56, %v667_v54 }
 0x11b   :  { %v507_v61 = vadd.f32 %v506_v50, %v410_v58  ;;  %v413_v62 = vadd.f32 %v669_v59, %v949_v2 }
 0x11d   :  { %v545_v0 = vmax.f32 %v507_v61, 0.0  ;;  %v510_v3 = vadd.f32 %v509_v57, %v413_v62  ;;  %v670_v4 = vpop.f32.mrb[20].mxu0  ;;  %v716_v5 = vpop.f32.mrb[20].mxu1 }
 0x11e   :  { %v531_v7 = vadd.f32 %v716_v5, %v434_v63  ;;  %v671_v8 = vpop.f32.mrb[21].mxu0  ;;  %v522_v9 = vpop.f32.mrb[21].mxu1 }
 0x11f   :  { %561 = vst [vmem:[%s1022_s3 + $0x40] sm:$0xff] %v545_v0  ;;  %v546_v11 = vmax.f32 %v510_v3, 0.0  ;;  %v672_v12 = vadd.f32 %v671_v8, %v670_v4  ;;  %v523_v60 = vadd.f32 %v522_v9, %v426_v6  ;;  %v673_v13 = vpop.f32.mrb[22].mxu0  ;;  %v717_v14 = vpop.f32.mrb[22].mxu1 }
 0x120   :  { %v551_v16 = vmax.f32 %v531_v7, 0.0  ;;  %v534_v48 = vadd.f32 %v717_v14, %v437_v10  ;;  %v674_v17 = vpop.f32.mrb[23].mxu0  ;;  %v525_v18 = vpop.f32.mrb[23].mxu1 }
 0x121   :  { %562 = vst [vmem:[%s1022_s3 + $0x48] sm:$0xff] %v546_v11  ;;  %v418_v1 = vadd.f32 %v672_v12, %v949_v2  ;;  %v549_v19 = vmax.f32 %v523_v60, 0.0  ;;  %v675_v20 = vadd.f32 %v674_v17, %v673_v13  ;;  %v526_v21 = vadd.f32 %v525_v18, %v429_v15 }
 0x122   :  { %567 = vst [vmem:[%s1022_s3 + $0x70] sm:$0xff] %v551_v16  ;;  %v552_v22 = vmax.f32 %v534_v48, 0.0 }
 0x123   :  { %v515_v23 = vadd.f32 %v712_v47, %v418_v1  ;;  %565 = vst [vmem:[%s1022_s3 + $0x60] sm:$0xff] %v549_v19  ;;  %v421_v53 = vadd.f32 %v675_v20, %v949_v2  ;;  %v550_v24 = vmax.f32 %v526_v21, 0.0 }
 0x124   :  { %568 = vst [vmem:[%s1022_s3 + $0x78] sm:$0xff] %v552_v22 }
 0x125   :  { %v547_v25 = vmax.f32 %v515_v23, 0.0  ;;  %v518_v26 = vadd.f32 %v713_v55, %v421_v53  ;;  %566 = vst [vmem:[%s1022_s3 + $0x68] sm:$0xff] %v550_v24 }
 0x127   :  { %563 = vst [vmem:[%s1022_s3 + $0x50] sm:$0xff] %v547_v25  ;;  %v548_v27 = vmax.f32 %v518_v26, 0.0 }
 0x129   :  { %564 = vst [vmem:[%s1022_s3 + $0x58] sm:$0xff] %v548_v27 }

// kernel: temporal_net_forward.10
= control target key start
LH: loop header
LB: loop body
LE: loop exit
PB: predicated region body
PF: predicated region fallthrough
CT: control target
= control target key end

     0   :  { %vm68_vm0 = vcmask 523264   ;;  %s222_s1 = inlined_call_operand.vmem [shape: bf16[64,128], index: 1, kind: input, shape index: {}]   ;;  %s223_s0 = inlined_call_operand.vmem [shape: bf16[32,64], index: 0, kind: input, shape index: {}]   ;;  %s224_s2 = inlined_call_operand.vmem [shape: f32[1,128], index: 2, kind: input, shape index: {}]   ;;  %s225_s3 = inlined_call_operand.vmem [shape: f32[32,128], index: 3, kind: output, shape index: {}]  }
   0x1   :  { %v163_v0 = vld [vmem:[%s222_s1] sm:$0xff]   ;;  %v164_v1 = vld [vmem:[%s222_s1 + $0x8] sm:$0xff]   ;;  %v165_v2 = vld [vmem:[%s222_s1 + $0x10] sm:$0xff]  }
   0x2   :  { %151 = vmatprep.subr.bf16.mxu0 %v163_v0  ;;  %v167_v3 = vld [vmem:[%s223_s0] sm:$0xff]   ;;  %v166_v4 = vld [vmem:[%s222_s1 + $0x18] sm:$0xff]   ;;  %v168_v5 = vld [vmem:[%s223_s0 + $0x8] sm:$0xff]  }
   0x3   :  { %152 = vmatpush3.bf16.msra.mxu0 %v163_v0  ;;  %159 = vmatprep.mubr.msk.bf16.mxu0 %vm68_vm0, %v167_v3  ;;  %v136_v6 = vld [vmem:[%s224_s2] ss:$0 sm:$0xff] }
   0x4   :  { %153 = vmatprep.subr.bf16.mxu0 %v164_v1 }
   0x7   :  { %154 = vmatpush3.bf16.msra.mxu0 %v164_v1 }
   0x8   :  { %155 = vmatprep.subr.bf16.mxu0 %v165_v2 }
   0xb   :  { %156 = vmatpush3.bf16.msra.mxu0 %v165_v2 }
   0xc   :  { %157 = vmatprep.subr.bf16.mxu0 %v166_v4 }
   0xf   :  { %158 = vmatpush3.bf16.msra.mxu0 %v166_v4 }
  0x12   :  { %160 = vmatmul.mubr.msk.bf16.vlgmr.msra.gmra.mrb[0].mxu0 %vm68_vm0, %v168_v5 }
  0xe5   :  { %v161_v7 = vpop.f32.mrb[0].mxu0 }
  0xe6   :  { %v118_v8 = vadd.f32 %v161_v7, %v136_v6  ;;  %v109_v9 = vpop.f32.mrb[1].mxu0 }
  0xe7   :  { %v110_v10 = vadd.f32 %v136_v6, %v109_v9  ;;  %v162_v11 = vpop.f32.mrb[2].mxu0 }
  0xe8   :  { %v126_v12 = vmax.f32 %v118_v8, 0.0  ;;  %v121_v13 = vadd.f32 %v162_v11, %v136_v6  ;;  %v112_v14 = vpop.f32.mrb[3].mxu0 }
  0xe9   :  { %v124_v15 = vmax.f32 %v110_v10, 0.0  ;;  %v113_v16 = vadd.f32 %v136_v6, %v112_v14 }
  0xea   :  { %130 = vst [vmem:[%s225_s3 + $0x10] sm:$0xff] %v126_v12  ;;  %v127_v17 = vmax.f32 %v121_v13, 0.0 }
  0xeb   :  { %128 = vst [vmem:[%s225_s3] sm:$0xff] %v124_v15  ;;  %v125_v18 = vmax.f32 %v113_v16, 0.0 }
  0xec   :  { %131 = vst [vmem:[%s225_s3 + $0x18] sm:$0xff] %v127_v17 }
  0xed   :  { %129 = vst [vmem:[%s225_s3 + $0x8] sm:$0xff] %v125_v18 }

// kernel: closed_call.7
= control target key start
LH: loop header
LB: loop body
LE: loop exit
PB: predicated region body
PF: predicated region fallthrough
CT: control target
= control target key end

     0   :  { %vm1379_vm0 = vcmask 523264   ;;  %s2458_s1 = inlined_call_operand.vmem [shape: bf16[1152,256], index: 1, kind: input, shape index: {}]   ;;  %s2459_s0 = inlined_call_operand.vmem [shape: bf16[32,1152], index: 0, kind: input, shape index: {}]   ;;  %s2460_s2 = inlined_call_operand.vmem [shape: f32[1,256], index: 2, kind: input, shape index: {}]   ;;  %s2461_s3 = inlined_call_operand.vmem [shape: f32[32,128], index: 3, kind: input, shape index: {}]   ;;  %s2462_s4 = inlined_call_operand.vmem [shape: f32[32,128], index: 4, kind: output, shape index: {}]  }
   0x1   :  { %v1620_v0 = vld [vmem:[%s2458_s1 + $0x4] ss:$8 sps:$4 sm:$0xff]   ;;  %v1624_v2 = vld [vmem:[%s2458_s1] ss:$8 sps:$4 sm:$0xff]   ;;  %v1626_v4 = vld [vmem:[%s2458_s1 + $0x14] ss:$8 sps:$4 sm:$0xff]  }
   0x2   :  { %v1622_v1 = vld [vmem:[%s2458_s1 + $0x204] ss:$8 sps:$4 sm:$0xff]   ;;  %1006 = vmatprep.subr.bf16.mxu1 %v1620_v0  ;;  %v1625_v3 = vld [vmem:[%s2458_s1 + $0x200] ss:$8 sps:$4 sm:$0xff]   ;;  %v1628_v5 = vld [vmem:[%s2458_s1 + $0x214] ss:$8 sps:$4 sm:$0xff]  }
   0x3   :  { %1112 = vmatprep.subr.bf16.mxu0 %v1622_v1  ;;  %1007 = vmatpush1.bf16.msra.mxu1 %v1624_v2  ;;  %v1630_v6 = vld [vmem:[%s2458_s1 + $0x10] ss:$8 sps:$4 sm:$0xff]   ;;  %v1632_v8 = vld [vmem:[%s2458_s1 + $0x24] ss:$8 sps:$4 sm:$0xff]   ;;  %v1636_v10 = vld [vmem:[%s2458_s1 + $0x20] ss:$8 sps:$4 sm:$0xff]  }
   0x4   :  { %1113 = vmatpush1.bf16.msra.mxu0 %v1625_v3  ;;  %1008 = vmatprep.subr.bf16.mxu1 %v1626_v4  ;;  %v1631_v7 = vld [vmem:[%s2458_s1 + $0x210] ss:$8 sps:$4 sm:$0xff]   ;;  %v1634_v9 = vld [vmem:[%s2458_s1 + $0x224] ss:$8 sps:$4 sm:$0xff]   ;;  %v1637_v11 = vld [vmem:[%s2458_s1 + $0x220] ss:$8 sps:$4 sm:$0xff]  }
   0x5   :  { %1114 = vmatprep.subr.bf16.mxu0 %v1628_v5  ;;  %v1638_v12 = vld [vmem:[%s2458_s1 + $0x34] ss:$8 sps:$4 sm:$0xff]   ;;  %v1642_v14 = vld [vmem:[%s2458_s1 + $0x30] ss:$8 sps:$4 sm:$0xff]   ;;  %v1644_v16 = vld [vmem:[%s2458_s1 + $0x44] ss:$8 sps:$4 sm:$0xff]  }
   0x6   :  { %v1640_v13 = vld [vmem:[%s2458_s1 + $0x234] ss:$8 sps:$4 sm:$0xff]   ;;  %v1643_v15 = vld [vmem:[%s2458_s1 + $0x230] ss:$8 sps:$4 sm:$0xff]   ;;  %v1646_v17 = vld [vmem:[%s2458_s1 + $0x244] ss:$8 sps:$4 sm:$0xff]  }
   0x7   :  { %1009 = vmatpush1.bf16.msra.mxu1 %v1630_v6  ;;  %v1648_v18 = vld [vmem:[%s2458_s1 + $0x40] ss:$8 sps:$4 sm:$0xff]   ;;  %v1650_v20 = vld [vmem:[%s2458_s1 + $0x54] ss:$8 sps:$4 sm:$0xff]   ;;  %v1654_v22 = vld [vmem:[%s2458_s1 + $0x50] ss:$8 sps:$4 sm:$0xff]  }
   0x8   :  { %1115 = vmatpush1.bf16.msra.mxu0 %v1631_v7  ;;  %1010 = vmatprep.subr.bf16.mxu1 %v1632_v8  ;;  %v1649_v19 = vld [vmem:[%s2458_s1 + $0x240] ss:$8 sps:$4 sm:$0xff]   ;;  %v1652_v21 = vld [vmem:[%s2458_s1 + $0x254] ss:$8 sps:$4 sm:$0xff]   ;;  %v1655_v23 = vld [vmem:[%s2458_s1 + $0x250] ss:$8 sps:$4 sm:$0xff]  }
   0x9   :  { %1116 = vmatprep.subr.bf16.mxu0 %v1634_v9  ;;  %v1656_v24 = vld [vmem:[%s2458_s1 + $0x64] ss:$8 sps:$4 sm:$0xff]   ;;  %v1660_v26 = vld [vmem:[%s2458_s1 + $0x60] ss:$8 sps:$4 sm:$0xff]   ;;  %v1662_v28 = vld [vmem:[%s2458_s1 + $0x74] ss:$8 sps:$4 sm:$0xff]  }
   0xa   :  { %v1658_v25 = vld [vmem:[%s2458_s1 + $0x264] ss:$8 sps:$4 sm:$0xff]   ;;  %v1661_v27 = vld [vmem:[%s2458_s1 + $0x260] ss:$8 sps:$4 sm:$0xff]   ;;  %v1664_v29 = vld [vmem:[%s2458_s1 + $0x274] ss:$8 sps:$4 sm:$0xff]  }
   0xb   :  { %1011 = vmatpush1.bf16.msra.mxu1 %v1636_v10  ;;  %v1666_v30 = vld [vmem:[%s2458_s1 + $0x70] ss:$8 sps:$4 sm:$0xff]   ;;  %v1668_v32 = vld [vmem:[%s2458_s1 + $0x84] ss:$8 sps:$4 sm:$0xff]   ;;  %v1672_v34 = vld [vmem:[%s2458_s1 + $0x80] ss:$8 sps:$4 sm:$0xff]  }
   0xc   :  { %1117 = vmatpush1.bf16.msra.mxu0 %v1637_v11  ;;  %1012 = vmatprep.subr.bf16.mxu1 %v1638_v12  ;;  %v1667_v31 = vld [vmem:[%s2458_s1 + $0x270] ss:$8 sps:$4 sm:$0xff]   ;;  %v1670_v33 = vld [vmem:[%s2458_s1 + $0x284] ss:$8 sps:$4 sm:$0xff]   ;;  %v1673_v35 = vld [vmem:[%s2458_s1 + $0x280] ss:$8 sps:$4 sm:$0xff]  }
   0xd   :  { %1118 = vmatprep.subr.bf16.mxu0 %v1640_v13  ;;  %v1674_v36 = vld [vmem:[%s2458_s1 + $0x94] ss:$8 sps:$4 sm:$0xff]   ;;  %v1678_v38 = vld [vmem:[%s2458_s1 + $0x90] ss:$8 sps:$4 sm:$0xff]   ;;  %v1680_v40 = vld [vmem:[%s2458_s1 + $0xa4] ss:$8 sps:$4 sm:$0xff]  }
   0xe   :  { %v1676_v37 = vld [vmem:[%s2458_s1 + $0x294] ss:$8 sps:$4 sm:$0xff]   ;;  %v1679_v39 = vld [vmem:[%s2458_s1 + $0x290] ss:$8 sps:$4 sm:$0xff]   ;;  %v1682_v41 = vld [vmem:[%s2458_s1 + $0x2a4] ss:$8 sps:$4 sm:$0xff]  }
   0xf   :  { %1013 = vmatpush1.bf16.msra.mxu1 %v1642_v14  ;;  %v1684_v42 = vld [vmem:[%s2458_s1 + $0xa0] ss:$8 sps:$4 sm:$0xff]   ;;  %v1686_v44 = vld [vmem:[%s2458_s1 + $0xb4] ss:$8 sps:$4 sm:$0xff]   ;;  %v1690_v46 = vld [vmem:[%s2458_s1 + $0xb0] ss:$8 sps:$4 sm:$0xff]  }
  0x10   :  { %1119 = vmatpush1.bf16.msra.mxu0 %v1643_v15  ;;  %1014 = vmatprep.subr.bf16.mxu1 %v1644_v16  ;;  %v1685_v43 = vld [vmem:[%s2458_s1 + $0x2a0] ss:$8 sps:$4 sm:$0xff]   ;;  %v1688_v45 = vld [vmem:[%s2458_s1 + $0x2b4] ss:$8 sps:$4 sm:$0xff]   ;;  %v1691_v47 = vld [vmem:[%s2458_s1 + $0x2b0] ss:$8 sps:$4 sm:$0xff]  }
  0x11   :  { %1120 = vmatprep.subr.bf16.mxu0 %v1646_v17  ;;  %v1718_v48 = vld [vmem:[%s2459_s0 + $0x4] ss:$36 sps:$4 sm:$0xff]   ;;  %v1724_v51 = vld [vmem:[%s2459_s0 + $0x14] ss:$36 sps:$4 sm:$0xff]  }
  0x12   :  { %v1692_v49 = vld [vmem:[%s2458_s1 + $0xc4] ss:$8 sps:$4 sm:$0xff]   ;;  %1038 = vmatprep.mubr.bf16.mxu1 %v1718_v48  ;;  %v1696_v52 = vld [vmem:[%s2458_s1 + $0xc0] ss:$8 sps:$4 sm:$0xff]   ;;  %v1698_v54 = vld [vmem:[%s2458_s1 + $0xd4] ss:$8 sps:$4 sm:$0xff]   ;;  %1144 = vmatprep.mubr.bf16.mxu0 %v1724_v51 }
  0x13   :  { %1015 = vmatpush1.bf16.msra.mxu1 %v1648_v18  ;;  %v1694_v50 = vld [vmem:[%s2458_s1 + $0x2c4] ss:$8 sps:$4 sm:$0xff]   ;;  %v1697_v53 = vld [vmem:[%s2458_s1 + $0x2c0] ss:$8 sps:$4 sm:$0xff]   ;;  %v1700_v55 = vld [vmem:[%s2458_s1 + $0x2d4] ss:$8 sps:$4 sm:$0xff]  }
  0x14   :  { %1121 = vmatpush1.bf16.msra.mxu0 %v1649_v19  ;;  %1016 = vmatprep.subr.bf16.mxu1 %v1650_v20  ;;  %v1702_v56 = vld [vmem:[%s2458_s1 + $0xd0] ss:$8 sps:$4 sm:$0xff]   ;;  %v1704_v58 = vld [vmem:[%s2458_s1 + $0xe4] ss:$8 sps:$4 sm:$0xff]   ;;  %v1708_v60 = vld [vmem:[%s2458_s1 + $0xe0] ss:$8 sps:$4 sm:$0xff]  }
  0x15   :  { %1122 = vmatprep.subr.bf16.mxu0 %v1652_v21  ;;  %v1703_v57 = vld [vmem:[%s2458_s1 + $0x2d0] ss:$8 sps:$4 sm:$0xff]   ;;  %v1706_v59 = vld [vmem:[%s2458_s1 + $0x2e4] ss:$8 sps:$4 sm:$0xff]   ;;  %v1709_v61 = vld [vmem:[%s2458_s1 + $0x2e0] ss:$8 sps:$4 sm:$0xff]  }
  0x16   :  { %v1710_v62 = vld [vmem:[%s2458_s1 + $0xf4] ss:$8 sps:$4 sm:$0xff]   ;;  %v1714_v0 = vld [vmem:[%s2458_s1 + $0xf0] ss:$8 sps:$4 sm:$0xff]   ;;  %v1721_v2 = vld [vmem:[%s2458_s1 + $0x104] ss:$8 sps:$4 sm:$0xff]  }
  0x17   :  { %1017 = vmatpush1.bf16.msra.mxu1 %v1654_v22  ;;  %v1712_v63 = vld [vmem:[%s2458_s1 + $0x2f4] ss:$8 sps:$4 sm:$0xff]   ;;  %v1715_v1 = vld [vmem:[%s2458_s1 + $0x2f0] ss:$8 sps:$4 sm:$0xff]   ;;  %v1727_v3 = vld [vmem:[%s2458_s1 + $0x304] ss:$8 sps:$4 sm:$0xff]  }
  0x18   :  { %1123 = vmatpush1.bf16.msra.mxu0 %v1655_v23  ;;  %1018 = vmatprep.subr.bf16.mxu1 %v1656_v24  ;;  %v1716_v4 = vld [vmem:[%s2459_s0] ss:$36 sps:$4 sm:$0xff]   ;;  %v1722_v6 = vld [vmem:[%s2459_s0 + $0x10] ss:$36 sps:$4 sm:$0xff]  }
  0x19   :  { %1124 = vmatprep.subr.bf16.mxu0 %v1658_v25  ;;  %v1719_v5 = vld [vmem:[%s2458_s1 + $0x100] ss:$8 sps:$4 sm:$0xff]   ;;  %v1730_v8 = vld [vmem:[%s2458_s1 + $0x114] ss:$8 sps:$4 sm:$0xff]   ;;  %v1728_v10 = vld [vmem:[%s2458_s1 + $0x110] ss:$8 sps:$4 sm:$0xff]  }
  0x1a   :  { %v1725_v7 = vld [vmem:[%s2458_s1 + $0x300] ss:$8 sps:$4 sm:$0xff]   ;;  %v1733_v9 = vld [vmem:[%s2458_s1 + $0x314] ss:$8 sps:$4 sm:$0xff]   ;;  %v1731_v11 = vld [vmem:[%s2458_s1 + $0x310] ss:$8 sps:$4 sm:$0xff]  }
  0x1b   :  { %1019 = vmatpush1.bf16.msra.mxu1 %v1660_v26  ;;  %v1736_v12 = vld [vmem:[%s2458_s1 + $0x124] ss:$8 sps:$4 sm:$0xff]   ;;  %v1734_v14 = vld [vmem:[%s2458_s1 + $0x120] ss:$8 sps:$4 sm:$0xff]   ;;  %v1742_v16 = vld [vmem:[%s2458_s1 + $0x134] ss:$8 sps:$4 sm:$0xff]  }
  0x1c   :  { %1125 = vmatpush1.bf16.msra.mxu0 %v1661_v27  ;;  %1020 = vmatprep.subr.bf16.mxu1 %v1662_v28  ;;  %v1739_v13 = vld [vmem:[%s2458_s1 + $0x324] ss:$8 sps:$4 sm:$0xff]   ;;  %v1737_v15 = vld [vmem:[%s2458_s1 + $0x320] ss:$8 sps:$4 sm:$0xff]   ;;  %v1745_v17 = vld [vmem:[%s2458_s1 + $0x334] ss:$8 sps:$4 sm:$0xff]  }
  0x1d   :  { %1126 = vmatprep.subr.bf16.mxu0 %v1664_v29  ;;  %v1740_v18 = vld [vmem:[%s2458_s1 + $0x130] ss:$8 sps:$4 sm:$0xff]   ;;  %v1748_v20 = vld [vmem:[%s2458_s1 + $0x144] ss:$8 sps:$4 sm:$0xff]   ;;  %v1746_v22 = vld [vmem:[%s2458_s1 + $0x140] ss:$8 sps:$4 sm:$0xff]  }
  0x1e   :  { %v1743_v19 = vld [vmem:[%s2458_s1 + $0x330] ss:$8 sps:$4 sm:$0xff]   ;;  %v1751_v21 = vld [vmem:[%s2458_s1 + $0x344] ss:$8 sps:$4 sm:$0xff]   ;;  %v1749_v23 = vld [vmem:[%s2458_s1 + $0x340] ss:$8 sps:$4 sm:$0xff]  }
  0x1f   :  { %1021 = vmatpush1.bf16.msra.mxu1 %v1666_v30  ;;  %v1754_v24 = vld [vmem:[%s2458_s1 + $0x154] ss:$8 sps:$4 sm:$0xff]   ;;  %v1752_v26 = vld [vmem:[%s2458_s1 + $0x150] ss:$8 sps:$4 sm:$0xff]   ;;  %v1760_v28 = vld [vmem:[%s2458_s1 + $0x164] ss:$8 sps:$4 sm:$0xff]  }
  0x20   :  { %1127 = vmatpush1.bf16.msra.mxu0 %v1667_v31  ;;  %1022 = vmatprep.subr.bf16.mxu1 %v1668_v32  ;;  %v1757_v25 = vld [vmem:[%s2458_s1 + $0x354] ss:$8 sps:$4 sm:$0xff]   ;;  %v1755_v27 = vld [vmem:[%s2458_s1 + $0x350] ss:$8 sps:$4 sm:$0xff]   ;;  %v1810_v31 = vld [vmem:[%s2459_s0 + $0x48] ss:$36 sps:$4 sm:$0xff]  }
  0x21   :  { %1128 = vmatprep.subr.bf16.mxu0 %v1670_v33  ;;  %v1806_v29 = vld [vmem:[%s2459_s0 + $0x4c] ss:$36 sps:$4 sm:$0xff]   ;;  %v1808_v30 = vld [vmem:[%s2459_s0 + $0x5c] ss:$36 sps:$4 sm:$0xff]  }
  0x22   :  { %v1763_v32 = vld [vmem:[%s2458_s1 + $0x364] ss:$8 sps:$4 sm:$0xff]   ;;  %v1814_v33 = vld [vmem:[%s2459_s0 + $0x58] ss:$36 sps:$4 sm:$0xff]  }
  0x23   :  { %1023 = vmatpush1.bf16.msra.mxu1 %v1672_v34  ;;  %v1758_v34 = vld [vmem:[%s2458_s1 + $0x160] ss:$8 sps:$4 sm:$0xff]   ;;  %v1776_v48 = vld [vmem:[%s2458_s1 + $0x190] ss:$8 sps:$4 sm:$0xff]   ;;  %v1787_v51 = vld [vmem:[%s2458_s1 + $0x3a4] ss:$8 sps:$4 sm:$0xff]  }
  0x24   :  { %1129 = vmatpush1.bf16.msra.mxu0 %v1673_v35  ;;  %1024 = vmatprep.subr.bf16.mxu1 %v1674_v36  ;;  %v1761_v35 = vld [vmem:[%s2458_s1 + $0x360] ss:$8 sps:$4 sm:$0xff]   ;;  %v1766_v36 = vld [vmem:[%s2458_s1 + $0x174] ss:$8 sps:$4 sm:$0xff]  }
  0x25   :  { %1130 = vmatprep.subr.bf16.mxu0 %v1676_v37  ;;  %v1769_v37 = vld [vmem:[%s2458_s1 + $0x374] ss:$8 sps:$4 sm:$0xff]  }
  0x27   :  { %1025 = vmatpush1.bf16.msra.mxu1 %v1678_v38  ;;  %v1764_v38 = vld [vmem:[%s2458_s1 + $0x170] ss:$8 sps:$4 sm:$0xff]  }
  0x28   :  { %1131 = vmatpush1.bf16.msra.mxu0 %v1679_v39  ;;  %1026 = vmatprep.subr.bf16.mxu1 %v1680_v40  ;;  %v1767_v39 = vld [vmem:[%s2458_s1 + $0x370] ss:$8 sps:$4 sm:$0xff]   ;;  %v1772_v40 = vld [vmem:[%s2458_s1 + $0x184] ss:$8 sps:$4 sm:$0xff]  }
  0x29   :  { %1132 = vmatprep.subr.bf16.mxu0 %v1682_v41  ;;  %v1826_v41 = vld [vmem:[%s2459_s0 + $0xc] ss:$36 sps:$4 sm:$0xff]  }
  0x2b   :  { %1027 = vmatpush1.bf16.msra.mxu1 %v1684_v42  ;;  %v1775_v42 = vld [vmem:[%s2458_s1 + $0x384] ss:$8 sps:$4 sm:$0xff]  }
  0x2c   :  { %1133 = vmatpush1.bf16.msra.mxu0 %v1685_v43  ;;  %1028 = vmatprep.subr.bf16.mxu1 %v1686_v44  ;;  %v1829_v43 = vld [vmem:[%s2459_s0 + $0x1c] ss:$36 sps:$4 sm:$0xff]  }
  0x2d   :  { %1134 = vmatprep.subr.bf16.mxu0 %v1688_v45  ;;  %v1770_v44 = vld [vmem:[%s2458_s1 + $0x180] ss:$8 sps:$4 sm:$0xff]  }
  0x2e   :  { %v1773_v45 = vld [vmem:[%s2458_s1 + $0x380] ss:$8 sps:$4 sm:$0xff]  }
  0x2f   :  { %1029 = vmatpush1.bf16.msra.mxu1 %v1690_v46  ;;  %v1778_v46 = vld [vmem:[%s2458_s1 + $0x194] ss:$8 sps:$4 sm:$0xff]  }
  0x30   :  { %1135 = vmatpush1.bf16.msra.mxu0 %v1691_v47  ;;  %1030 = vmatprep.subr.bf16.mxu1 %v1692_v49  ;;  %v1781_v47 = vld [vmem:[%s2458_s1 + $0x394] ss:$8 sps:$4 sm:$0xff]   ;;  %v1779_v49 = vld [vmem:[%s2458_s1 + $0x390] ss:$8 sps:$4 sm:$0xff]  }
  0x31   :  { %1136 = vmatprep.subr.bf16.mxu0 %v1694_v50  ;;  %v1784_v50 = vld [vmem:[%s2458_s1 + $0x1a4] ss:$8 sps:$4 sm:$0xff]  }
  0x33   :  { %1031 = vmatpush1.bf16.msra.mxu1 %v1696_v52  ;;  %v1782_v52 = vld [vmem:[%s2458_s1 + $0x1a0] ss:$8 sps:$4 sm:$0xff]  }
  0x34   :  { %1137 = vmatpush1.bf16.msra.mxu0 %v1697_v53  ;;  %1032 = vmatprep.subr.bf16.mxu1 %v1698_v54  ;;  %v1785_v53 = vld [vmem:[%s2458_s1 + $0x3a0] ss:$8 sps:$4 sm:$0xff]   ;;  %v1790_v54 = vld [vmem:[%s2458_s1 + $0x1b4] ss:$8 sps:$4 sm:$0xff]  }
  0x35   :  { %1138 = vmatprep.subr.bf16.mxu0 %v1700_v55  ;;  %v1793_v55 = vld [vmem:[%s2458_s1 + $0x3b4] ss:$8 sps:$4 sm:$0xff]  }
  0x37   :  { %1033 = vmatpush1.bf16.msra.mxu1 %v1702_v56  ;;  %v1788_v56 = vld [vmem:[%s2458_s1 + $0x1b0] ss:$8 sps:$4 sm:$0xff]  }
  0x38   :  { %1139 = vmatpush1.bf16.msra.mxu0 %v1703_v57  ;;  %1034 = vmatprep.subr.bf16.mxu1 %v1704_v58  ;;  %v1791_v57 = vld [vmem:[%s2458_s1 + $0x3b0] ss:$8 sps:$4 sm:$0xff]   ;;  %v1796_v58 = vld [vmem:[%s2458_s1 + $0x1c4] ss:$8 sps:$4 sm:$0xff]  }
  0x39   :  { %1140 = vmatprep.subr.bf16.mxu0 %v1706_v59  ;;  %v1799_v59 = vld [vmem:[%s2458_s1 + $0x3c4] ss:$8 sps:$4 sm:$0xff]  }
  0x3b   :  { %1035 = vmatpush1.bf16.msra.mxu1 %v1708_v60  ;;  %v1794_v60 = vld [vmem:[%s2458_s1 + $0x1c0] ss:$8 sps:$4 sm:$0xff]  }
  0x3c   :  { %1141 = vmatpush1.bf16.msra.mxu0 %v1709_v61  ;;  %1036 = vmatprep.subr.bf16.mxu1 %v1710_v62  ;;  %v1797_v61 = vld [vmem:[%s2458_s1 + $0x3c0] ss:$8 sps:$4 sm:$0xff]   ;;  %v1802_v62 = vld [vmem:[%s2458_s1 + $0x1d4] ss:$8 sps:$4 sm:$0xff]  }
  0x3d   :  { %1142 = vmatprep.subr.bf16.mxu0 %v1712_v63  ;;  %v1805_v63 = vld [vmem:[%s2458_s1 + $0x3d4] ss:$8 sps:$4 sm:$0xff]  }
  0x3f   :  { %1037 = vmatpush1.bf16.msra.mxu1 %v1714_v0  ;;  %v1800_v0 = vld [vmem:[%s2458_s1 + $0x1d0] ss:$8 sps:$4 sm:$0xff]  }
  0x40   :  { %1143 = vmatpush1.bf16.msra.mxu0 %v1715_v1  ;;  %1059 = vmatprep.subr.bf16.mxu1 %v1721_v2  ;;  %v1803_v1 = vld [vmem:[%s2458_s1 + $0x3d0] ss:$8 sps:$4 sm:$0xff]   ;;  %v1813_v2 = vld [vmem:[%s2458_s1 + $0x1e4] ss:$8 sps:$4 sm:$0xff]  }
  0x41   :  { %1165 = vmatprep.subr.bf16.mxu0 %v1727_v3  ;;  %v1817_v3 = vld [vmem:[%s2458_s1 + $0x3e4] ss:$8 sps:$4 sm:$0xff]  }
  0x42   :  { %1039 = vmatmul.mubr.bf16.vlgmr.msra.gmra.mrb[0].mxu1 %v1716_v4  ;;  %v1811_v4 = vld [vmem:[%s2458_s1 + $0x1e0] ss:$8 sps:$4 sm:$0xff]  }
  0x43   :  { %1145 = vmatmul.mubr.bf16.vlgmr.msra.gmra.mrb[0].mxu0 %v1722_v6  ;;  %1060 = vmatpush1.bf16.msra.mxu1 %v1719_v5  ;;  %v1815_v5 = vld [vmem:[%s2458_s1 + $0x3e0] ss:$8 sps:$4 sm:$0xff]   ;;  %v1820_v6 = vld [vmem:[%s2458_s1 + $0x1f4] ss:$8 sps:$4 sm:$0xff]  }
  0x44   :  { %1166 = vmatpush1.bf16.msra.mxu0 %v1725_v7  ;;  %1061 = vmatprep.subr.bf16.mxu1 %v1730_v8  ;;  %v1823_v7 = vld [vmem:[%s2458_s1 + $0x3f4] ss:$8 sps:$4 sm:$0xff]   ;;  %v1818_v8 = vld [vmem:[%s2458_s1 + $0x1f0] ss:$8 sps:$4 sm:$0xff]  }
  0x45   :  { %1167 = vmatprep.subr.bf16.mxu0 %v1733_v9  ;;  %1048 = vmatprep.mubr.bf16.mxu1 %v1806_v29  ;;  %v1821_v9 = vld [vmem:[%s2458_s1 + $0x3f0] ss:$8 sps:$4 sm:$0xff]   ;;  %v1856_v29 = vld [vmem:[%s2458_s1 + $0x464] ss:$8 sps:$4 sm:$0xff]  }
  0x46   :  { %1154 = vmatprep.mubr.bf16.mxu0 %v1808_v30  ;;  %v1854_v30 = vld [vmem:[%s2458_s1 + $0x460] ss:$8 sps:$4 sm:$0xff]  }
  0x47   :  { %1062 = vmatpush1.bf16.msra.mxu1 %v1728_v10  ;;  %v1832_v10 = vld [vmem:[%s2458_s1 + $0x404] ss:$8 sps:$4 sm:$0xff]  }
  0x48   :  { %1168 = vmatpush1.bf16.msra.mxu0 %v1731_v11  ;;  %1063 = vmatprep.subr.bf16.mxu1 %v1736_v12  ;;  %v1824_v11 = vld [vmem:[%s2459_s0 + $0x8] ss:$36 sps:$4 sm:$0xff]   ;;  %v1827_v12 = vld [vmem:[%s2459_s0 + $0x18] ss:$36 sps:$4 sm:$0xff]  }
  0x49   :  { %1169 = vmatprep.subr.bf16.mxu0 %v1739_v13  ;;  %v1830_v13 = vld [vmem:[%s2458_s1 + $0x400] ss:$8 sps:$4 sm:$0xff]  }
  0x4a   :  { %1049 = vmatmul.mubr.bf16.gmra.mrb[4].mxu1 %v1810_v31  ;;  %v1859_v31 = vld [vmem:[%s2458_s1 + $0x474] ss:$8 sps:$4 sm:$0xff]  }
  0x4b   :  { %1064 = vmatpush1.bf16.msra.mxu1 %v1734_v14  ;;  %1155 = vmatmul.mubr.bf16.gmra.mrb[4].mxu0 %v1814_v33  ;;  %v1835_v14 = vld [vmem:[%s2458_s1 + $0x414] ss:$8 sps:$4 sm:$0xff]   ;;  %v1860_v33 = vld [vmem:[%s2459_s0 + $0x20] ss:$36 sps:$4 sm:$0xff]  }
  0x4c   :  { %1170 = vmatpush1.bf16.msra.mxu0 %v1737_v15  ;;  %1065 = vmatprep.subr.bf16.mxu1 %v1742_v16  ;;  %v1836_v15 = vld [vmem:[%s2459_s0 + $0x54] ss:$36 sps:$4 sm:$0xff]   ;;  %v1838_v16 = vld [vmem:[%s2459_s0 + $0x64] ss:$36 sps:$4 sm:$0xff]  }
  0x4d   :  { %1171 = vmatprep.subr.bf16.mxu0 %v1745_v17  ;;  %1091 = vmatprep.mubr.bf16.mxu1 %v1826_v41  ;;  %v1833_v17 = vld [vmem:[%s2458_s1 + $0x410] ss:$8 sps:$4 sm:$0xff]  }
  0x4e   :  { %1197 = vmatprep.mubr.bf16.mxu0 %v1829_v43 }
  0x4f   :  { %1066 = vmatpush1.bf16.msra.mxu1 %v1740_v18  ;;  %v1844_v18 = vld [vmem:[%s2458_s1 + $0x424] ss:$8 sps:$4 sm:$0xff]  }
  0x50   :  { %1172 = vmatpush1.bf16.msra.mxu0 %v1743_v19  ;;  %1067 = vmatprep.subr.bf16.mxu1 %v1748_v20  ;;  %v1840_v19 = vld [vmem:[%s2459_s0 + $0x50] ss:$36 sps:$4 sm:$0xff]   ;;  %v1841_v20 = vld [vmem:[%s2459_s0 + $0x60] ss:$36 sps:$4 sm:$0xff]  }
  0x51   :  { %1173 = vmatprep.subr.bf16.mxu0 %v1751_v21  ;;  %v1842_v21 = vld [vmem:[%s2458_s1 + $0x420] ss:$8 sps:$4 sm:$0xff]  }
  0x53   :  { %1068 = vmatpush1.bf16.msra.mxu1 %v1746_v22  ;;  %v1847_v22 = vld [vmem:[%s2458_s1 + $0x434] ss:$8 sps:$4 sm:$0xff]  }
  0x54   :  { %1174 = vmatpush1.bf16.msra.mxu0 %v1749_v23  ;;  %1069 = vmatprep.subr.bf16.mxu1 %v1754_v24  ;;  %v1845_v23 = vld [vmem:[%s2458_s1 + $0x430] ss:$8 sps:$4 sm:$0xff]   ;;  %v1850_v24 = vld [vmem:[%s2458_s1 + $0x444] ss:$8 sps:$4 sm:$0xff]  }
  0x55   :  { %1175 = vmatprep.subr.bf16.mxu0 %v1757_v25  ;;  %v1910_v25 = vmov 0  }
  0x57   :  { %1070 = vmatpush1.bf16.msra.mxu1 %v1752_v26  ;;  %v1848_v26 = vld [vmem:[%s2458_s1 + $0x440] ss:$8 sps:$4 sm:$0xff]  }
  0x58   :  { %1176 = vmatpush1.bf16.msra.mxu0 %v1755_v27  ;;  %1071 = vmatprep.subr.bf16.mxu1 %v1760_v28  ;;  %v1853_v27 = vld [vmem:[%s2458_s1 + $0x454] ss:$8 sps:$4 sm:$0xff]   ;;  %v1851_v28 = vld [vmem:[%s2458_s1 + $0x450] ss:$8 sps:$4 sm:$0xff]  }
  0x59   :  { %1177 = vmatprep.subr.bf16.mxu0 %v1763_v32  ;;  %v1857_v32 = vld [vmem:[%s2458_s1 + $0x470] ss:$8 sps:$4 sm:$0xff]  }
  0x5b   :  { %1072 = vmatpush1.bf16.msra.mxu1 %v1758_v34  ;;  %v1861_v34 = vld [vmem:[%s2459_s0 + $0x68] ss:$36 sps:$4 sm:$0xff]   ;;  %s1911_s0 = smov 64  }
  0x5c   :  { %1178 = vmatpush1.bf16.msra.mxu0 %v1761_v35  ;;  %1073 = vmatprep.subr.bf16.mxu1 %v1766_v36  ;;  %v184_v35 = vlaneseq }
  0x5d   :  { %1179 = vmatprep.subr.bf16.mxu0 %v1769_v37 }
  0x5e   :  { %v185_v36 = vshrl.u32 %v184_v35, 7 }
  0x5f   :  { %1074 = vmatpush1.bf16.msra.mxu1 %v1764_v38 }
  0x60   :  { %1180 = vmatpush1.bf16.msra.mxu0 %v1767_v39  ;;  %1075 = vmatprep.subr.bf16.mxu1 %v1772_v40  ;;  %v186_v40 = vsub.s32 0, %v185_v36  ;;  %v190_v43 = vsub.s32 1, %v185_v36 }
  0x61   :  { %1181 = vmatprep.subr.bf16.mxu0 %v1775_v42  ;;  %v182_v42 = vld [vmem:[%s2460_s2] sm:$0x3] }
  0x63   :  { %1076 = vmatpush1.bf16.msra.mxu1 %v1770_v44  ;;  %v187_v44 = vrot.slane %v182_v42, %v186_v40 }
  0x64   :  { %1182 = vmatpush1.bf16.msra.mxu0 %v1773_v45  ;;  %1077 = vmatprep.subr.bf16.mxu1 %v1778_v46  ;;  %v191_v45 = vrot.slane %v182_v42, %v190_v43 }
  0x65   :  { %1183 = vmatprep.subr.bf16.mxu0 %v1781_v47 }
  0x67   :  { %1078 = vmatpush1.bf16.msra.mxu1 %v1776_v48 }
  0x68   :  { %1184 = vmatpush1.bf16.msra.mxu0 %v1779_v49  ;;  %1079 = vmatprep.subr.bf16.mxu1 %v1784_v50 }
  0x69   :  { %1185 = vmatprep.subr.bf16.mxu0 %v1787_v51 }
  0x6b   :  { %1080 = vmatpush1.bf16.msra.mxu1 %v1782_v52 }
  0x6c   :  { %1186 = vmatpush1.bf16.msra.mxu0 %v1785_v53  ;;  %1081 = vmatprep.subr.bf16.mxu1 %v1790_v54 }
  0x6d   :  { %1187 = vmatprep.subr.bf16.mxu0 %v1793_v55 }
  0x6f   :  { %1082 = vmatpush1.bf16.msra.mxu1 %v1788_v56 }
  0x70   :  { %1188 = vmatpush1.bf16.msra.mxu0 %v1791_v57  ;;  %1083 = vmatprep.subr.bf16.mxu1 %v1796_v58 }
  0x71   :  { %1189 = vmatprep.subr.bf16.mxu0 %v1799_v59 }
  0x73   :  { %1084 = vmatpush1.bf16.msra.mxu1 %v1794_v60 }
  0x74   :  { %1190 = vmatpush1.bf16.msra.mxu0 %v1797_v61  ;;  %1085 = vmatprep.subr.bf16.mxu1 %v1802_v62 }
  0x75   :  { %1191 = vmatprep.subr.bf16.mxu0 %v1805_v63 }
  0x77   :  { %1086 = vmatpush1.bf16.msra.mxu1 %v1800_v0 }
  0x78   :  { %1192 = vmatpush1.bf16.msra.mxu0 %v1803_v1  ;;  %1087 = vmatprep.subr.bf16.mxu1 %v1813_v2 }
  0x79   :  { %1193 = vmatprep.subr.bf16.mxu0 %v1817_v3 }
  0x7b   :  { %1088 = vmatpush1.bf16.msra.mxu1 %v1811_v4 }
  0x7c   :  { %1194 = vmatpush1.bf16.msra.mxu0 %v1815_v5  ;;  %1089 = vmatprep.subr.bf16.mxu1 %v1820_v6 }
  0x7d   :  { %1195 = vmatprep.subr.bf16.mxu0 %v1823_v7 }
  0x7f   :  { %1090 = vmatpush1.bf16.msra.mxu1 %v1818_v8 }
  0x80   :  { %1196 = vmatpush1.bf16.msra.mxu0 %v1821_v9  ;;  %1562 = vmatprep.subr.bf16.mxu1 %v1832_v10 }
  0x81   :  { %1218 = vmatprep.subr.bf16.mxu0 %v1832_v10 }
  0x82   :  { %1092 = vmatmul.mubr.bf16.vlgmr.msra.gmra.mrb[0].mxu1 %v1824_v11 }
  0x83   :  { %1198 = vmatmul.mubr.bf16.vlgmr.msra.gmra.mrb[0].mxu0 %v1827_v12  ;;  %1570 = vmatpush1.bf16.msra.mxu1 %v1830_v13 }
  0x84   :  { %1219 = vmatpush1.bf16.msra.mxu0 %v1830_v13  ;;  %1563 = vmatprep.subr.bf16.mxu1 %v1835_v14 }
  0x85   :  { %1220 = vmatprep.subr.bf16.mxu0 %v1835_v14  ;;  %1101 = vmatprep.mubr.bf16.mxu1 %v1836_v15 }
  0x86   :  { %1207 = vmatprep.mubr.bf16.mxu0 %v1838_v16 }
  0x87   :  { %1571 = vmatpush1.bf16.msra.mxu1 %v1833_v17 }
  0x88   :  { %1221 = vmatpush1.bf16.msra.mxu0 %v1833_v17  ;;  %1564 = vmatprep.subr.bf16.mxu1 %v1844_v18 }
  0x89   :  { %1222 = vmatprep.subr.bf16.mxu0 %v1844_v18 }
  0x8a   :  { %1102 = vmatmul.mubr.bf16.gmra.mrb[4].mxu1 %v1840_v19 }
  0x8b   :  { %1208 = vmatmul.mubr.bf16.gmra.mrb[4].mxu0 %v1841_v20  ;;  %1572 = vmatpush1.bf16.msra.mxu1 %v1842_v21 }
  0x8c   :  { %1223 = vmatpush1.bf16.msra.mxu0 %v1842_v21  ;;  %1565 = vmatprep.subr.bf16.mxu1 %v1847_v22 }
  0x8d   :  { %1224 = vmatprep.subr.bf16.mxu0 %v1847_v22  ;;  %1250 = vmatprep.mubr.bf16.mxu0 %v1910_v25 }
  0x8e   :  { %1260 = vmatprep.mubr.bf16.mxu1 %v1910_v25 }
  0x8f   :  { %1573 = vmatpush1.bf16.msra.mxu1 %v1845_v23 }
  0x90   :  { %1225 = vmatpush1.bf16.msra.mxu0 %v1845_v23  ;;  %1566 = vmatprep.subr.bf16.mxu1 %v1850_v24 }
  0x91   :  { %1226 = vmatprep.subr.bf16.mxu0 %v1850_v24 }
  0x93   :  { %1574 = vmatpush1.bf16.msra.mxu1 %v1848_v26 }
  0x94   :  { %1227 = vmatpush1.bf16.msra.mxu0 %v1848_v26  ;;  %1567 = vmatprep.subr.bf16.mxu1 %v1853_v27 }
  0x95   :  { %1228 = vmatprep.subr.bf16.mxu0 %v1853_v27 }
  0x97   :  { %1575 = vmatpush1.bf16.msra.mxu1 %v1851_v28 }
  0x98   :  { %1229 = vmatpush1.bf16.msra.mxu0 %v1851_v28  ;;  %1568 = vmatprep.subr.bf16.mxu1 %v1856_v29 }
  0x99   :  { %1230 = vmatprep.subr.bf16.mxu0 %v1856_v29 }
  0x9b   :  { %1576 = vmatpush1.bf16.msra.mxu1 %v1854_v30 }
  0x9c   :  { %1231 = vmatpush1.bf16.msra.mxu0 %v1854_v30  ;;  %1569 = vmatprep.subr.bf16.mxu1 %v1859_v31 }
  0x9d   :  { %1232 = vmatprep.subr.bf16.mxu0 %v1859_v31 }
  0x9f   :  { %1577 = vmatpush1.bf16.msra.mxu1 %v1857_v32 }
  0xa0   :  { %1233 = vmatpush1.bf16.msra.mxu0 %v1857_v32 }
  0xa2   :  { %1261 = vmatmul.mubr.bf16.vlgmr.msra.gmra.mrb[8].mxu1 %v1861_v34 }
  0xa3   :  { %1251 = vmatmul.mubr.bf16.vlgmr.msra.gmra.mrb[0].mxu0 %v1860_v33 }
 0x155   :  { %v1093_v37 = vpop.f32.mrb[0].mxu1 }
 0x156   :  { %v1095_v38 = vpop.f32.mrb[1].mxu1  ;;  %v1578_v62 = vadd.f32 %v1093_v37, %v187_v44 }
 0x157   :  { %v1097_v39 = vpop.f32.mrb[2].mxu1  ;;  %v1580_v63 = vadd.f32 %v1095_v38, %v191_v45 }
 0x158   :  { %v1099_v41 = vpop.f32.mrb[3].mxu1  ;;  %v1582_v2 = vadd.f32 %v1097_v39, %v187_v44 }
 0x159   :  { %v1584_v7 = vadd.f32 %v1099_v41, %v191_v45 }
 0x15d   :  { %v1103_v46 = vpop.f32.mrb[4].mxu1 }
 0x15e   :  { %v1209_v47 = vpop.f32.mrb[4].mxu0  ;;  %v1586_v48 = vadd.f32 %v1103_v46, %v187_v44  ;;  %v1105_v49 = vpop.f32.mrb[5].mxu1 }
 0x15f   :  { %v1211_v50 = vpop.f32.mrb[5].mxu0  ;;  %v1589_v51 = vadd.f32 %v1105_v49, %v191_v45  ;;  %v1107_v52 = vpop.f32.mrb[6].mxu1 }
 0x160   :  { %v1213_v53 = vpop.f32.mrb[6].mxu0  ;;  %v1587_v54 = vadd.f32 %v1586_v48, %v1209_v47  ;;  %v1592_v55 = vadd.f32 %v1107_v52, %v187_v44  ;;  %v1109_v56 = vpop.f32.mrb[7].mxu1  ;;  %v1323_v47 = vld [vmem:[%s2461_s3] sm:$0xff]  ;;  %v1325_v48 = vld [vmem:[%s2461_s3 + $0x10] sm:$0xff] }
 0x161   :  { %v1215_v57 = vpop.f32.mrb[7].mxu0  ;;  %v1590_v58 = vadd.f32 %v1589_v51, %v1211_v50  ;;  %v1595_v59 = vadd.f32 %v1109_v56, %v191_v45 }
 0x162   :  { %v1593_v60 = vadd.f32 %v1592_v55, %v1213_v53 }
 0x163   :  { %v1596_v61 = vadd.f32 %v1595_v59, %v1215_v57  ;;  %v1324_v57 = vld [vmem:[%s2461_s3 + $0x8] sm:$0xff] }
 0x175   :  { %v1262_v1 = vpop.f32.mrb[8].mxu1 }
 0x176   :  { %v1252_v0 = vpop.f32.mrb[0].mxu0  ;;  %v1588_v4 = vadd.f32 %v1587_v54, %v1262_v1  ;;  %v1264_v6 = vpop.f32.mrb[9].mxu1 }
 0x177   :  { %v1579_v3 = vadd.f32 %v1578_v62, %v1252_v0  ;;  %v1254_v5 = vpop.f32.mrb[1].mxu0  ;;  %v1591_v9 = vadd.f32 %v1590_v58, %v1264_v6  ;;  %v1266_v11 = vpop.f32.mrb[10].mxu1 }
 0x178   :  { %v1581_v8 = vadd.f32 %v1580_v63, %v1254_v5  ;;  %v1256_v10 = vpop.f32.mrb[2].mxu0  ;;  %v1556_v13 = vmul.f32 -1.442695, %v1588_v4  ;;  %v1594_v15 = vadd.f32 %v1593_v60, %v1266_v11  ;;  %v1268_v17 = vpop.f32.mrb[11].mxu1  ;;  %v1326_v60 = vld [vmem:[%s2461_s3 + $0x18] sm:$0xff] }
 0x179   :  { %v1554_v12 = vmul.f32 -1.442695, %v1579_v3  ;;  %v1583_v14 = vadd.f32 %v1582_v2, %v1256_v10  ;;  %v1258_v16 = vpop.f32.mrb[3].mxu0  ;;  %v1597_v19 = vadd.f32 %v1596_v61, %v1268_v17  ;;  %v1560_v43 = vmul.f32 -1.442695, %v1591_v9 }
 0x17a   :  { %v1585_v18 = vadd.f32 %v1584_v7, %v1258_v16  ;;  %v1557_v21 = vmul.f32 -1.442695, %v1594_v15  ;;  %v1558_v42 = vmul.f32 -1.442695, %v1581_v8 }
 0x17b   :  { %1862 = vpow2.f32 %v1554_v12  ;;  %v1555_v20 = vmul.f32 -1.442695, %v1583_v14  ;;  %v1561_v45 = vmul.f32 -1.442695, %v1597_v19 }
 0x17c   :  { %1864 = vpow2.f32 %v1556_v13  ;;  %v1559_v44 = vmul.f32 -1.442695, %v1585_v18 }
 0x17d   :  { %1866 = vpow2.f32 %v1555_v20 }
 0x17e   :  { %1868 = vpow2.f32 %v1557_v21 }
 0x17f   :  { %1870 = vtanh.f32 %v1581_v8 }
 0x180   :  { %1872 = vtanh.f32 %v1591_v9 }
 0x185   :  { %v1863_v22 = vpop.eup %1862 }
 0x186   :  { %v1865_v23 = vpop.eup %1864  ;;  %v1283_v24 = vadd.f32 1.0, %v1863_v22 }
 0x187   :  { %v1285_v25 = vadd.f32 1.0, %v1865_v23  ;;  %v1867_v26 = vpop.eup %1866 }
 0x188   :  { %1874 = vrcp.f32 %v1283_v24  ;;  %v1869_v27 = vpop.eup %1868  ;;  %v1284_v28 = vadd.f32 1.0, %v1867_v26 }
 0x189   :  { %1876 = vrcp.f32 %v1285_v25  ;;  %v1286_v29 = vadd.f32 1.0, %v1869_v27  ;;  %v1871_v30 = vpop.eup %1870 }
 0x18a   :  { %1878 = vtanh.f32 %v1585_v18  ;;  %v1873_v31 = vpop.eup %1872 }
 0x18b   :  { %1880 = vtanh.f32 %v1597_v19 }
 0x18c   :  { %1882 = vrcp.f32 %v1284_v28 }
 0x18d   :  { %1884 = vrcp.f32 %v1286_v29 }
 0x18e   :  { %1886 = vpow2.f32 %v1558_v42 }
 0x18f   :  { %1888 = vpow2.f32 %v1560_v43 }
 0x190   :  { %1890 = vpow2.f32 %v1559_v44 }
 0x191   :  { %1892 = vpow2.f32 %v1561_v45 }
 0x192   :  { %v1875_v32 = vpop.eup %1874 }
 0x193   :  { %v1877_v33 = vpop.eup %1876  ;;  %v1331_v34 = vmul.f32 %v1875_v32, %v1871_v30  ;;  %v1327_v51 = vmul.f32 %v1875_v32, %v1323_v47 }
 0x194   :  { %v1333_v35 = vmul.f32 %v1877_v33, %v1873_v31  ;;  %v1879_v36 = vpop.eup %1878  ;;  %v1329_v54 = vmul.f32 %v1877_v33, %v1325_v48 }
 0x195   :  { %1339 = vrot.lane.b32.xlu0 %v1331_v34, %s1911_s0  ;;  %v1881_v37 = vpop.eup %1880 }
 0x196   :  { %1343 = vrot.lane.b32.xlu1 %v1333_v35, %s1911_s0  ;;  %v1883_v38 = vpop.eup %1882 }
 0x197   :  { %v1885_v39 = vpop.eup %1884  ;;  %v1332_v40 = vmul.f32 %v1883_v38, %v1879_v36  ;;  %v1328_v62 = vmul.f32 %v1883_v38, %v1324_v57 }
 0x198   :  { %v1334_v41 = vmul.f32 %v1885_v39, %v1881_v37  ;;  %v1887_v46 = vpop.eup %1886  ;;  %v1330_v1 = vmul.f32 %v1885_v39, %v1326_v60 }
 0x199   :  { %1341 = vrot.lane.b32.xlu0 %v1332_v40, %s1911_s0  ;;  %v1311_v49 = vadd.f32 1.0, %v1887_v46  ;;  %v1889_v50 = vpop.eup %1888 }
 0x19a   :  { %1345 = vrot.lane.b32.xlu1 %v1334_v41, %s1911_s0  ;;  %v1891_v52 = vpop.eup %1890  ;;  %v1313_v58 = vadd.f32 1.0, %v1889_v50 }
 0x19b   :  { %1894 = vrcp.f32 %v1311_v49  ;;  %v1312_v61 = vadd.f32 1.0, %v1891_v52  ;;  %v1893_v63 = vpop.eup %1892 }
 0x19c   :  { %v1314_v5 = vadd.f32 1.0, %v1893_v63 }
 0x1a5   :  { %v1895_v6 = vpop.eup %1894 }
 0x207   :  { %v1340_v53 = vpop.permute.xlu0 %1339 }
 0x208   :  { %v1351_v55 = vadd.f32 %v1340_v53, %v1327_v51  ;;  %v1344_v56 = vpop.permute.xlu1 %1343 }
 0x209   :  { %v1353_v59 = vadd.f32 %v1344_v56, %v1329_v54 }
 0x20a   :  { %1896 = vtanh.f32 %v1351_v55 }
 0x20b   :  { %1898 = vtanh.f32 %v1353_v59  ;;  %v1342_v0 = vpop.permute.xlu0 %1341 }
 0x20c   :  { %1900 = vrcp.f32 %v1313_v58  ;;  %v1352_v2 = vadd.f32 %v1342_v0, %v1328_v62  ;;  %v1346_v3 = vpop.permute.xlu1 %1345 }
 0x20d   :  { %1902 = vrcp.f32 %v1312_v61  ;;  %v1354_v4 = vadd.f32 %v1346_v3, %v1330_v1 }
 0x20e   :  { %1904 = vtanh.f32 %v1352_v2 }
 0x20f   :  { %1906 = vtanh.f32 %v1354_v4 }
 0x210   :  { %1908 = vrcp.f32 %v1314_v5 }
 0x214   :  { %v1897_v7 = vpop.eup %1896 }
 0x215   :  { %v1359_v8 = vmul.f32 %v1897_v7, %v1895_v6  ;;  %v1899_v9 = vpop.eup %1898 }
 0x216   :  { %v1901_v10 = vpop.eup %1900 }
 0x217   :  { %1367 = vrot.lane.b32.xlu0 %v1359_v8, %s1911_s0  ;;  %v1903_v11 = vpop.eup %1902  ;;  %v1361_v13 = vmul.f32 %v1901_v10, %v1899_v9 }
 0x218   :  { %v1905_v12 = vpop.eup %1904 }
 0x219   :  { %v1360_v14 = vmul.f32 %v1905_v12, %v1903_v11  ;;  %v1907_v15 = vpop.eup %1906 }
 0x21a   :  { %v1909_v16 = vpop.eup %1908 }
 0x21b   :  { %1371 = vrot.lane.b32.xlu0 %v1361_v13, %s1911_s0  ;;  %1369 = vrot.lane.b32.xlu1 %v1360_v14, %s1911_s0  ;;  %v1362_v17 = vmul.f32 %v1909_v16, %v1907_v15 }
 0x21f   :  { %1373 = vrot.lane.b32.xlu1 %v1362_v17, %s1911_s0 }
 0x289   :  { %v1368_v18 = vpop.permute.xlu0 %1367 }
 0x28a   :  { %v1380_v19 = vsel %vm1379_vm0, %v1368_v18, %v1351_v55 }
 0x28b   :  { %1384 = vst [vmem:[%s2462_s4] sm:$0xff] %v1380_v19 }
 0x28d   :  { %v1372_v20 = vpop.permute.xlu0 %1371  ;;  %v1370_v21 = vpop.permute.xlu1 %1369 }
 0x28e   :  { %v1382_v22 = vsel %vm1379_vm0, %v1372_v20, %v1353_v59  ;;  %v1381_v23 = vsel %vm1379_vm0, %v1370_v21, %v1352_v2 }
 0x28f   :  { %1386 = vst [vmem:[%s2462_s4 + $0x10] sm:$0xff] %v1382_v22  ;;  %1385 = vst [vmem:[%s2462_s4 + $0x8] sm:$0xff] %v1381_v23 }
 0x291   :  { %v1374_v24 = vpop.permute.xlu1 %1373 }
 0x292   :  { %v1383_v25 = vsel %vm1379_vm0, %v1374_v24, %v1354_v4 }
 0x293   :  { %1387 = vst [vmem:[%s2462_s4 + $0x18] sm:$0xff] %v1383_v25 }

// kernel: temporal_net_forward.11
= control target key start
LH: loop header
LB: loop body
LE: loop exit
PB: predicated region body
PF: predicated region fallthrough
CT: control target
= control target key end

     0   :  { %vm97_vm0 = vcmask 261120   ;;  %s530_s1 = inlined_call_operand.vmem [shape: bf16[32,128], index: 1, kind: input, shape index: {}]   ;;  %s531_s0 = inlined_call_operand.vmem [shape: bf16[128,32], index: 0, kind: input, shape index: {}]   ;;  %s532_s2 = inlined_call_operand.vmem [shape: f32[1,128], index: 2, kind: input, shape index: {}]   ;;  %s533_s3 = inlined_call_operand.vmem [shape: f32[128,128], index: 3, kind: input, shape index: {}]   ;;  %s534_s4 = inlined_call_operand.vmem [shape: f32[128,128], index: 4, kind: output, shape index: {}]  }
   0x1   :  { %v340_v0 = vld [vmem:[%s530_s1] sm:$0xff]   ;;  %v341_v1 = vld [vmem:[%s530_s1 + $0x8] sm:$0xff]   ;;  %v346_v6 = vld [vmem:[%s531_s0 + $0x10] sm:$0xff]  }
   0x2   :  { %316 = vmatprep.subr.bf16.mxu0 %v340_v0  ;;  %336 = vmatprep.subr.bf16.mxu1 %v340_v0  ;;  %v342_v2 = vld [vmem:[%s531_s0] sm:$0xff]   ;;  %v344_v4 = vld [vmem:[%s531_s0 + $0x8] sm:$0xff]   ;;  %v347_v7 = vld [vmem:[%s531_s0 + $0x30] sm:$0xff]  }
   0x3   :  { %317 = vmatpush3.bf16.msra.mxu0 %v340_v0  ;;  %338 = vmatpush3.bf16.msra.mxu1 %v340_v0  ;;  %v343_v3 = vld [vmem:[%s531_s0 + $0x20] sm:$0xff]   ;;  %v345_v5 = vld [vmem:[%s531_s0 + $0x28] sm:$0xff]   ;;  %v348_v8 = vld [vmem:[%s531_s0 + $0x18] sm:$0xff]  }
   0x4   :  { %318 = vmatprep.subr.bf16.mxu0 %v341_v1  ;;  %337 = vmatprep.subr.bf16.mxu1 %v341_v1  ;;  %v349_v9 = vld [vmem:[%s531_s0 + $0x38] sm:$0xff]   ;;  %v416_v10 = vld [vmem:[%s532_s2] ss:$0 sm:$0xff]  ;;  %v221_v12 = vld [vmem:[%s533_s3 + $0x10] sm:$0xff] }
   0x5   :  { %320 = vmatprep.mubr.msk.bf16.mxu0 %vm97_vm0, %v342_v2  ;;  %328 = vmatprep.mubr.msk.bf16.mxu1 %vm97_vm0, %v343_v3  ;;  %v229_v14 = vld [vmem:[%s533_s3 + $0x50] sm:$0xff]  ;;  %v219_v18 = vld [vmem:[%s533_s3] sm:$0xff]  ;;  %v222_v24 = vld [vmem:[%s533_s3 + $0x18] sm:$0xff] }
   0x6   :  { %v227_v20 = vld [vmem:[%s533_s3 + $0x40] sm:$0xff]  ;;  %v230_v26 = vld [vmem:[%s533_s3 + $0x58] sm:$0xff]  ;;  %v220_v32 = vld [vmem:[%s533_s3 + $0x8] sm:$0xff] }
   0x7   :  { %319 = vmatpush3.bf16.msra.mxu0 %v341_v1  ;;  %339 = vmatpush3.bf16.msra.mxu1 %v341_v1  ;;  %v228_v34 = vld [vmem:[%s533_s3 + $0x48] sm:$0xff]  ;;  %v225_v52 = vld [vmem:[%s533_s3 + $0x30] sm:$0xff]  ;;  %v223_v58 = vld [vmem:[%s533_s3 + $0x20] sm:$0xff] }
   0x8   :  { %v233_v54 = vld [vmem:[%s533_s3 + $0x70] sm:$0xff]  ;;  %v231_v60 = vld [vmem:[%s533_s3 + $0x60] sm:$0xff]  ;;  %v226_v0 = vld [vmem:[%s533_s3 + $0x38] sm:$0xff] }
   0x9   :  { %v234_v2 = vld [vmem:[%s533_s3 + $0x78] sm:$0xff] }
   0xa   :  { %321 = vmatmul.mubr.msk.bf16.vlgmr.msra.gmra.mrb[0].mxu0 %vm97_vm0, %v344_v4  ;;  %329 = vmatmul.mubr.msk.bf16.vlgmr.msra.gmra.mrb[0].mxu1 %vm97_vm0, %v345_v5 }
   0xb   :  { %324 = vmatprep.mubr.msk.bf16.mxu0 %vm97_vm0, %v346_v6  ;;  %332 = vmatprep.mubr.msk.bf16.mxu1 %vm97_vm0, %v347_v7 }
  0x12   :  { %325 = vmatmul.mubr.msk.bf16.gmra.mrb[4].mxu0 %vm97_vm0, %v348_v8  ;;  %333 = vmatmul.mubr.msk.bf16.gmra.mrb[4].mxu1 %vm97_vm0, %v349_v9  ;;  %v224_v8 = vld [vmem:[%s533_s3 + $0x28] sm:$0xff] }
  0xdd   :  { %v322_v11 = vpop.f32.mrb[0].mxu0  ;;  %v330_v13 = vpop.f32.mrb[0].mxu1 }
  0xde   :  { %v165_v15 = vadd.f32 %v322_v11, %v416_v10  ;;  %v197_v16 = vadd.f32 %v330_v13, %v416_v10  ;;  %v156_v17 = vpop.f32.mrb[1].mxu0  ;;  %v188_v19 = vpop.f32.mrb[1].mxu1  ;;  %v232_v11 = vld [vmem:[%s533_s3 + $0x68] sm:$0xff] }
  0xdf   :  { %v157_v21 = vadd.f32 %v416_v10, %v156_v17  ;;  %v189_v22 = vadd.f32 %v416_v10, %v188_v19  ;;  %v323_v23 = vpop.f32.mrb[2].mxu0  ;;  %v331_v25 = vpop.f32.mrb[2].mxu1 }
  0xe0   :  { %v237_v27 = vadd.f32 %v221_v12, %v165_v15  ;;  %v245_v28 = vadd.f32 %v229_v14, %v197_v16  ;;  %v168_v29 = vadd.f32 %v323_v23, %v416_v10  ;;  %v200_v30 = vadd.f32 %v331_v25, %v416_v10  ;;  %v159_v31 = vpop.f32.mrb[3].mxu0  ;;  %v191_v33 = vpop.f32.mrb[3].mxu1 }
  0xe1   :  { %v235_v35 = vadd.f32 %v219_v18, %v157_v21  ;;  %v243_v36 = vadd.f32 %v227_v20, %v189_v22  ;;  %v160_v37 = vadd.f32 %v416_v10, %v159_v31  ;;  %v192_v38 = vadd.f32 %v416_v10, %v191_v33 }
  0xe2   :  { %v253_v39 = vmax.f32 %v237_v27, 0.0  ;;  %v261_v40 = vmax.f32 %v245_v28, 0.0  ;;  %v238_v41 = vadd.f32 %v222_v24, %v168_v29  ;;  %v246_v42 = vadd.f32 %v230_v26, %v200_v30 }
  0xe3   :  { %v251_v43 = vmax.f32 %v235_v35, 0.0  ;;  %v259_v44 = vmax.f32 %v243_v36, 0.0  ;;  %v236_v45 = vadd.f32 %v220_v32, %v160_v37  ;;  %v244_v46 = vadd.f32 %v228_v34, %v192_v38 }
  0xe4   :  { %269 = vst [vmem:[%s534_s4 + $0x10] sm:$0xff] %v253_v39  ;;  %277 = vst [vmem:[%s534_s4 + $0x50] sm:$0xff] %v261_v40  ;;  %v254_v47 = vmax.f32 %v238_v41, 0.0  ;;  %v262_v48 = vmax.f32 %v246_v42, 0.0 }
  0xe5   :  { %267 = vst [vmem:[%s534_s4] sm:$0xff] %v251_v43  ;;  %275 = vst [vmem:[%s534_s4 + $0x40] sm:$0xff] %v259_v44  ;;  %v252_v49 = vmax.f32 %v236_v45, 0.0  ;;  %v260_v50 = vmax.f32 %v244_v46, 0.0  ;;  %v326_v51 = vpop.f32.mrb[4].mxu0  ;;  %v334_v53 = vpop.f32.mrb[4].mxu1 }
  0xe6   :  { %270 = vst [vmem:[%s534_s4 + $0x18] sm:$0xff] %v254_v47  ;;  %278 = vst [vmem:[%s534_s4 + $0x58] sm:$0xff] %v262_v48  ;;  %v181_v55 = vadd.f32 %v326_v51, %v416_v10  ;;  %v213_v56 = vadd.f32 %v334_v53, %v416_v10  ;;  %v172_v57 = vpop.f32.mrb[5].mxu0  ;;  %v204_v59 = vpop.f32.mrb[5].mxu1 }
  0xe7   :  { %268 = vst [vmem:[%s534_s4 + $0x8] sm:$0xff] %v252_v49  ;;  %276 = vst [vmem:[%s534_s4 + $0x48] sm:$0xff] %v260_v50  ;;  %v173_v61 = vadd.f32 %v416_v10, %v172_v57  ;;  %v205_v62 = vadd.f32 %v416_v10, %v204_v59  ;;  %v327_v63 = vpop.f32.mrb[6].mxu0  ;;  %v335_v1 = vpop.f32.mrb[6].mxu1 }
  0xe8   :  { %v241_v3 = vadd.f32 %v225_v52, %v181_v55  ;;  %v249_v4 = vadd.f32 %v233_v54, %v213_v56  ;;  %v184_v5 = vadd.f32 %v327_v63, %v416_v10  ;;  %v216_v6 = vadd.f32 %v335_v1, %v416_v10  ;;  %v175_v7 = vpop.f32.mrb[7].mxu0  ;;  %v207_v9 = vpop.f32.mrb[7].mxu1 }
  0xe9   :  { %v239_v12 = vadd.f32 %v223_v58, %v173_v61  ;;  %v247_v13 = vadd.f32 %v231_v60, %v205_v62  ;;  %v176_v14 = vadd.f32 %v416_v10, %v175_v7  ;;  %v208_v15 = vadd.f32 %v416_v10, %v207_v9 }
  0xea   :  { %v257_v16 = vmax.f32 %v241_v3, 0.0  ;;  %v265_v17 = vmax.f32 %v249_v4, 0.0  ;;  %v242_v18 = vadd.f32 %v226_v0, %v184_v5  ;;  %v250_v19 = vadd.f32 %v234_v2, %v216_v6 }
  0xeb   :  { %v255_v20 = vmax.f32 %v239_v12, 0.0  ;;  %v263_v21 = vmax.f32 %v247_v13, 0.0  ;;  %v240_v22 = vadd.f32 %v224_v8, %v176_v14  ;;  %v248_v23 = vadd.f32 %v232_v11, %v208_v15 }
  0xec   :  { %273 = vst [vmem:[%s534_s4 + $0x30] sm:$0xff] %v257_v16  ;;  %281 = vst [vmem:[%s534_s4 + $0x70] sm:$0xff] %v265_v17  ;;  %v258_v24 = vmax.f32 %v242_v18, 0.0  ;;  %v266_v25 = vmax.f32 %v250_v19, 0.0 }
  0xed   :  { %271 = vst [vmem:[%s534_s4 + $0x20] sm:$0xff] %v255_v20  ;;  %279 = vst [vmem:[%s534_s4 + $0x60] sm:$0xff] %v263_v21  ;;  %v256_v10 = vmax.f32 %v240_v22, 0.0  ;;  %v264_v26 = vmax.f32 %v248_v23, 0.0 }
  0xee   :  { %274 = vst [vmem:[%s534_s4 + $0x38] sm:$0xff] %v258_v24  ;;  %282 = vst [vmem:[%s534_s4 + $0x78] sm:$0xff] %v266_v25 }
  0xef   :  { %272 = vst [vmem:[%s534_s4 + $0x28] sm:$0xff] %v256_v10  ;;  %280 = vst [vmem:[%s534_s4 + $0x68] sm:$0xff] %v264_v26 }

// kernel: temporal_net_forward.12
= control target key start
LH: loop header
LB: loop body
LE: loop exit
PB: predicated region body
PF: predicated region fallthrough
CT: control target
= control target key end

     0   :  { %vm257_vm0 = vcmask 130048   ;;  %s1712_s1 = inlined_call_operand.vmem [shape: bf16[16,128], index: 1, kind: input, shape index: {}]   ;;  %s1713_s0 = inlined_call_operand.vmem [shape: bf16[512,16], index: 0, kind: input, shape index: {}]   ;;  %s1714_s2 = inlined_call_operand.vmem [shape: f32[1,128], index: 2, kind: input, shape index: {}]   ;;  %s1715_s3 = inlined_call_operand.vmem [shape: f32[512,128], index: 3, kind: input, shape index: {}]   ;;  %s1716_s4 = inlined_call_operand.vmem [shape: f32[512,128], index: 4, kind: output, shape index: {}]  }
   0x1   :  { %v1070_v0 = vld [vmem:[%s1712_s1] sm:$0xff]   ;;  %v1073_v3 = vld [vmem:[%s1713_s0 + $0x8] sm:$0xff]   ;;  %v1075_v5 = vld [vmem:[%s1713_s0 + $0x10] sm:$0xff]  }
   0x2   :  { %v1071_v1 = vld [vmem:[%s1713_s0] sm:$0xff]   ;;  %1002 = vmatprep.subr.bf16.mxu0 %v1070_v0  ;;  %1068 = vmatprep.subr.bf16.mxu1 %v1070_v0  ;;  %v1074_v4 = vld [vmem:[%s1713_s0 + $0x88] sm:$0xff]   ;;  %v1076_v6 = vld [vmem:[%s1713_s0 + $0x90] sm:$0xff]  }
   0x3   :  { %v1072_v2 = vld [vmem:[%s1713_s0 + $0x80] sm:$0xff]   ;;  %1003 = vmatpush3.bf16.msra.mxu0 %v1070_v0  ;;  %1069 = vmatpush3.bf16.msra.mxu1 %v1070_v0  ;;  %v1077_v7 = vld [vmem:[%s1713_s0 + $0x18] sm:$0xff]   ;;  %v1081_v11 = vld [vmem:[%s1713_s0 + $0x28] sm:$0xff]  }
   0x4   :  { %1004 = vmatprep.mubr.msk.bf16.mxu0 %vm257_vm0, %v1071_v1  ;;  %1036 = vmatprep.mubr.msk.bf16.mxu1 %vm257_vm0, %v1072_v2  ;;  %v1078_v8 = vld [vmem:[%s1713_s0 + $0x98] sm:$0xff]   ;;  %v1079_v9 = vld [vmem:[%s1713_s0 + $0x20] sm:$0xff]   ;;  %v1082_v12 = vld [vmem:[%s1713_s0 + $0xa8] sm:$0xff]  }
   0x5   :  { %v1080_v10 = vld [vmem:[%s1713_s0 + $0xa0] sm:$0xff]   ;;  %v1083_v13 = vld [vmem:[%s1713_s0 + $0x30] sm:$0xff]   ;;  %v1085_v15 = vld [vmem:[%s1713_s0 + $0x38] sm:$0xff]  }
   0x6   :  { %1005 = vmatmul.mubr.msk.bf16.vlgmr.msra.gmra.mrb[0].mxu0 %vm257_vm0, %v1073_v3  ;;  %1037 = vmatmul.mubr.msk.bf16.vlgmr.msra.gmra.mrb[0].mxu1 %vm257_vm0, %v1074_v4  ;;  %v1084_v14 = vld [vmem:[%s1713_s0 + $0xb0] sm:$0xff]   ;;  %v1086_v16 = vld [vmem:[%s1713_s0 + $0xb8] sm:$0xff]   ;;  %v1087_v17 = vld [vmem:[%s1713_s0 + $0x40] sm:$0xff]  }
   0x7   :  { %1008 = vmatprep.mubr.msk.bf16.mxu0 %vm257_vm0, %v1075_v5  ;;  %1040 = vmatprep.mubr.msk.bf16.mxu1 %vm257_vm0, %v1076_v6  ;;  %v1088_v18 = vld [vmem:[%s1713_s0 + $0xc0] sm:$0xff]   ;;  %v1089_v19 = vld [vmem:[%s1713_s0 + $0x48] sm:$0xff]   ;;  %v1091_v21 = vld [vmem:[%s1713_s0 + $0x50] sm:$0xff]  }
   0x8   :  { %v1090_v20 = vld [vmem:[%s1713_s0 + $0xc8] sm:$0xff]   ;;  %v1092_v22 = vld [vmem:[%s1713_s0 + $0xd0] sm:$0xff]   ;;  %v1093_v23 = vld [vmem:[%s1713_s0 + $0x58] sm:$0xff]  }
   0x9   :  { %v1094_v24 = vld [vmem:[%s1713_s0 + $0xd8] sm:$0xff]   ;;  %v1095_v25 = vld [vmem:[%s1713_s0 + $0x60] sm:$0xff]   ;;  %v1097_v27 = vld [vmem:[%s1713_s0 + $0x68] sm:$0xff]  }
   0xa   :  { %v1096_v26 = vld [vmem:[%s1713_s0 + $0xe0] sm:$0xff]   ;;  %v1098_v28 = vld [vmem:[%s1713_s0 + $0xe8] sm:$0xff]   ;;  %v1099_v29 = vld [vmem:[%s1713_s0 + $0x70] sm:$0xff]  }
   0xb   :  { %v1100_v30 = vld [vmem:[%s1713_s0 + $0xf0] sm:$0xff]   ;;  %v1101_v31 = vld [vmem:[%s1713_s0 + $0x78] sm:$0xff]   ;;  %v1262_v33 = vld [vmem:[%s1714_s2] ss:$0 sm:$0xff] }
   0xc   :  { %v1102_v32 = vld [vmem:[%s1713_s0 + $0xf8] sm:$0xff]   ;;  %v645_v35 = vld [vmem:[%s1715_s3 + $0x10] sm:$0xff]  ;;  %v643_v41 = vld [vmem:[%s1715_s3] sm:$0xff] }
   0xd   :  { %v677_v37 = vld [vmem:[%s1715_s3 + $0x110] sm:$0xff]  ;;  %v675_v43 = vld [vmem:[%s1715_s3 + $0x100] sm:$0xff]  ;;  %v646_v47 = vld [vmem:[%s1715_s3 + $0x18] sm:$0xff] }
   0xe   :  { %1009 = vmatmul.mubr.msk.bf16.gmra.mrb[4].mxu0 %vm257_vm0, %v1077_v7  ;;  %1041 = vmatmul.mubr.msk.bf16.gmra.mrb[4].mxu1 %vm257_vm0, %v1078_v8  ;;  %v678_v49 = vld [vmem:[%s1715_s3 + $0x118] sm:$0xff]  ;;  %v644_v55 = vld [vmem:[%s1715_s3 + $0x8] sm:$0xff] }
   0xf   :  { %1012 = vmatprep.mubr.msk.bf16.mxu0 %vm257_vm0, %v1079_v9  ;;  %1044 = vmatprep.mubr.msk.bf16.mxu1 %vm257_vm0, %v1080_v10  ;;  %v676_v57 = vld [vmem:[%s1715_s3 + $0x108] sm:$0xff] }
  0x16   :  { %1013 = vmatmul.mubr.msk.bf16.gmra.mrb[8].mxu0 %vm257_vm0, %v1081_v11  ;;  %1045 = vmatmul.mubr.msk.bf16.gmra.mrb[8].mxu1 %vm257_vm0, %v1082_v12  ;;  %v649_v11 = vld [vmem:[%s1715_s3 + $0x30] sm:$0xff] }
  0x17   :  { %1016 = vmatprep.mubr.msk.bf16.mxu0 %vm257_vm0, %v1083_v13  ;;  %1048 = vmatprep.mubr.msk.bf16.mxu1 %vm257_vm0, %v1084_v14  ;;  %v681_v13 = vld [vmem:[%s1715_s3 + $0x130] sm:$0xff] }
  0x1e   :  { %1017 = vmatmul.mubr.msk.bf16.gmra.mrb[12].mxu0 %vm257_vm0, %v1085_v15  ;;  %1049 = vmatmul.mubr.msk.bf16.gmra.mrb[12].mxu1 %vm257_vm0, %v1086_v16 }
  0x1f   :  { %1020 = vmatprep.mubr.msk.bf16.mxu0 %vm257_vm0, %v1087_v17  ;;  %1052 = vmatprep.mubr.msk.bf16.mxu1 %vm257_vm0, %v1088_v18  ;;  %v647_v17 = vld [vmem:[%s1715_s3 + $0x20] sm:$0xff] }
  0x26   :  { %1021 = vmatmul.mubr.msk.bf16.gmra.mrb[16].mxu0 %vm257_vm0, %v1089_v19  ;;  %1053 = vmatmul.mubr.msk.bf16.gmra.mrb[16].mxu1 %vm257_vm0, %v1090_v20  ;;  %v679_v19 = vld [vmem:[%s1715_s3 + $0x120] sm:$0xff] }
  0x27   :  { %1024 = vmatprep.mubr.msk.bf16.mxu0 %vm257_vm0, %v1091_v21  ;;  %1056 = vmatprep.mubr.msk.bf16.mxu1 %vm257_vm0, %v1092_v22 }
  0x2e   :  { %1025 = vmatmul.mubr.msk.bf16.gmra.mrb[20].mxu0 %vm257_vm0, %v1093_v23  ;;  %1057 = vmatmul.mubr.msk.bf16.gmra.mrb[20].mxu1 %vm257_vm0, %v1094_v24  ;;  %v650_v23 = vld [vmem:[%s1715_s3 + $0x38] sm:$0xff] }
  0x2f   :  { %1028 = vmatprep.mubr.msk.bf16.mxu0 %vm257_vm0, %v1095_v25  ;;  %1060 = vmatprep.mubr.msk.bf16.mxu1 %vm257_vm0, %v1096_v26  ;;  %v682_v25 = vld [vmem:[%s1715_s3 + $0x138] sm:$0xff] }
  0x36   :  { %1029 = vmatmul.mubr.msk.bf16.gmra.mrb[24].mxu0 %vm257_vm0, %v1097_v27  ;;  %1061 = vmatmul.mubr.msk.bf16.gmra.mrb[24].mxu1 %vm257_vm0, %v1098_v28 }
  0x37   :  { %1032 = vmatprep.mubr.msk.bf16.mxu0 %vm257_vm0, %v1099_v29  ;;  %1064 = vmatprep.mubr.msk.bf16.mxu1 %vm257_vm0, %v1100_v30 }
  0x3e   :  { %1033 = vmatmul.mubr.msk.bf16.gmra.mrb[28].mxu0 %vm257_vm0, %v1101_v31  ;;  %1065 = vmatmul.mubr.msk.bf16.gmra.mrb[28].mxu1 %vm257_vm0, %v1102_v32  ;;  %v648_v31 = vld [vmem:[%s1715_s3 + $0x28] sm:$0xff] }
  0xd9   :  { %v1006_v34 = vpop.f32.mrb[0].mxu0  ;;  %v1038_v36 = vpop.f32.mrb[0].mxu1 }
  0xda   :  { %v397_v38 = vadd.f32 %v1006_v34, %v1262_v33  ;;  %v525_v39 = vadd.f32 %v1038_v36, %v1262_v33  ;;  %v388_v40 = vpop.f32.mrb[1].mxu0  ;;  %v516_v42 = vpop.f32.mrb[1].mxu1  ;;  %v680_v34 = vld [vmem:[%s1715_s3 + $0x128] sm:$0xff] }
  0xdb   :  { %v389_v44 = vadd.f32 %v1262_v33, %v388_v40  ;;  %v517_v45 = vadd.f32 %v1262_v33, %v516_v42  ;;  %v1007_v46 = vpop.f32.mrb[2].mxu0  ;;  %v1039_v48 = vpop.f32.mrb[2].mxu1 }
  0xdc   :  { %v709_v50 = vadd.f32 %v645_v35, %v397_v38  ;;  %v741_v51 = vadd.f32 %v677_v37, %v525_v39  ;;  %v400_v52 = vadd.f32 %v1007_v46, %v1262_v33  ;;  %v528_v53 = vadd.f32 %v1039_v48, %v1262_v33  ;;  %v391_v54 = vpop.f32.mrb[3].mxu0  ;;  %v519_v56 = vpop.f32.mrb[3].mxu1 }
  0xdd   :  { %v707_v58 = vadd.f32 %v643_v41, %v389_v44  ;;  %v739_v59 = vadd.f32 %v675_v43, %v517_v45  ;;  %v392_v60 = vadd.f32 %v1262_v33, %v391_v54  ;;  %v520_v61 = vadd.f32 %v1262_v33, %v519_v56  ;;  %v685_v54 = vld [vmem:[%s1715_s3 + $0x150] sm:$0xff] }
  0xde   :  { %v773_v62 = vmax.f32 %v709_v50, 0.0  ;;  %v805_v63 = vmax.f32 %v741_v51, 0.0  ;;  %v710_v0 = vadd.f32 %v646_v47, %v400_v52  ;;  %v742_v1 = vadd.f32 %v678_v49, %v528_v53  ;;  %v653_v52 = vld [vmem:[%s1715_s3 + $0x50] sm:$0xff] }
  0xdf   :  { %v771_v2 = vmax.f32 %v707_v58, 0.0  ;;  %v803_v3 = vmax.f32 %v739_v59, 0.0  ;;  %v708_v4 = vadd.f32 %v644_v55, %v392_v60  ;;  %v740_v5 = vadd.f32 %v676_v57, %v520_v61  ;;  %v651_v58 = vld [vmem:[%s1715_s3 + $0x40] sm:$0xff] }
  0xe0   :  { %837 = vst [vmem:[%s1716_s4 + $0x10] sm:$0xff] %v773_v62  ;;  %869 = vst [vmem:[%s1716_s4 + $0x110] sm:$0xff] %v805_v63  ;;  %v774_v6 = vmax.f32 %v710_v0, 0.0  ;;  %v806_v7 = vmax.f32 %v742_v1, 0.0  ;;  %v683_v60 = vld [vmem:[%s1715_s3 + $0x140] sm:$0xff]  ;;  %v654_v0 = vld [vmem:[%s1715_s3 + $0x58] sm:$0xff] }
  0xe1   :  { %835 = vst [vmem:[%s1716_s4] sm:$0xff] %v771_v2  ;;  %867 = vst [vmem:[%s1716_s4 + $0x100] sm:$0xff] %v803_v3  ;;  %v772_v8 = vmax.f32 %v708_v4, 0.0  ;;  %v804_v9 = vmax.f32 %v740_v5, 0.0  ;;  %v1010_v10 = vpop.f32.mrb[4].mxu0  ;;  %v1042_v12 = vpop.f32.mrb[4].mxu1  ;;  %v686_v2 = vld [vmem:[%s1715_s3 + $0x158] sm:$0xff] }
  0xe2   :  { %838 = vst [vmem:[%s1716_s4 + $0x18] sm:$0xff] %v774_v6  ;;  %870 = vst [vmem:[%s1716_s4 + $0x118] sm:$0xff] %v806_v7  ;;  %v413_v14 = vadd.f32 %v1010_v10, %v1262_v33  ;;  %v541_v15 = vadd.f32 %v1042_v12, %v1262_v33  ;;  %v404_v16 = vpop.f32.mrb[5].mxu0  ;;  %v532_v18 = vpop.f32.mrb[5].mxu1  ;;  %v684_v10 = vld [vmem:[%s1715_s3 + $0x148] sm:$0xff] }
  0xe3   :  { %836 = vst [vmem:[%s1716_s4 + $0x8] sm:$0xff] %v772_v8  ;;  %868 = vst [vmem:[%s1716_s4 + $0x108] sm:$0xff] %v804_v9  ;;  %v405_v20 = vadd.f32 %v1262_v33, %v404_v16  ;;  %v533_v21 = vadd.f32 %v1262_v33, %v532_v18  ;;  %v1011_v22 = vpop.f32.mrb[6].mxu0  ;;  %v1043_v24 = vpop.f32.mrb[6].mxu1  ;;  %v652_v8 = vld [vmem:[%s1715_s3 + $0x48] sm:$0xff] }
  0xe4   :  { %v713_v26 = vadd.f32 %v649_v11, %v413_v14  ;;  %v745_v27 = vadd.f32 %v681_v13, %v541_v15  ;;  %v416_v28 = vadd.f32 %v1011_v22, %v1262_v33  ;;  %v544_v29 = vadd.f32 %v1043_v24, %v1262_v33  ;;  %v407_v30 = vpop.f32.mrb[7].mxu0  ;;  %v535_v32 = vpop.f32.mrb[7].mxu1 }
  0xe5   :  { %v711_v35 = vadd.f32 %v647_v17, %v405_v20  ;;  %v743_v36 = vadd.f32 %v679_v19, %v533_v21  ;;  %v408_v37 = vadd.f32 %v1262_v33, %v407_v30  ;;  %v536_v38 = vadd.f32 %v1262_v33, %v535_v32  ;;  %v689_v30 = vld [vmem:[%s1715_s3 + $0x170] sm:$0xff] }
  0xe6   :  { %v777_v39 = vmax.f32 %v713_v26, 0.0  ;;  %v809_v40 = vmax.f32 %v745_v27, 0.0  ;;  %v714_v41 = vadd.f32 %v650_v23, %v416_v28  ;;  %v746_v42 = vadd.f32 %v682_v25, %v544_v29  ;;  %v657_v28 = vld [vmem:[%s1715_s3 + $0x70] sm:$0xff] }
  0xe7   :  { %v775_v43 = vmax.f32 %v711_v35, 0.0  ;;  %v807_v44 = vmax.f32 %v743_v36, 0.0  ;;  %v712_v45 = vadd.f32 %v648_v31, %v408_v37  ;;  %v744_v46 = vadd.f32 %v680_v34, %v536_v38  ;;  %v655_v35 = vld [vmem:[%s1715_s3 + $0x60] sm:$0xff] }
  0xe8   :  { %841 = vst [vmem:[%s1716_s4 + $0x30] sm:$0xff] %v777_v39  ;;  %873 = vst [vmem:[%s1716_s4 + $0x130] sm:$0xff] %v809_v40  ;;  %v778_v47 = vmax.f32 %v714_v41, 0.0  ;;  %v810_v48 = vmax.f32 %v746_v42, 0.0  ;;  %v687_v37 = vld [vmem:[%s1715_s3 + $0x160] sm:$0xff]  ;;  %v658_v41 = vld [vmem:[%s1715_s3 + $0x78] sm:$0xff] }
  0xe9   :  { %839 = vst [vmem:[%s1716_s4 + $0x20] sm:$0xff] %v775_v43  ;;  %871 = vst [vmem:[%s1716_s4 + $0x120] sm:$0xff] %v807_v44  ;;  %v776_v49 = vmax.f32 %v712_v45, 0.0  ;;  %v808_v50 = vmax.f32 %v744_v46, 0.0  ;;  %v1014_v51 = vpop.f32.mrb[8].mxu0  ;;  %v1046_v53 = vpop.f32.mrb[8].mxu1 }
  0xea   :  { %842 = vst [vmem:[%s1716_s4 + $0x38] sm:$0xff] %v778_v47  ;;  %874 = vst [vmem:[%s1716_s4 + $0x138] sm:$0xff] %v810_v48  ;;  %v429_v55 = vadd.f32 %v1014_v51, %v1262_v33  ;;  %v557_v56 = vadd.f32 %v1046_v53, %v1262_v33  ;;  %v420_v57 = vpop.f32.mrb[9].mxu0  ;;  %v548_v59 = vpop.f32.mrb[9].mxu1  ;;  %v690_v43 = vld [vmem:[%s1715_s3 + $0x178] sm:$0xff]  ;;  %v688_v51 = vld [vmem:[%s1715_s3 + $0x168] sm:$0xff] }
  0xeb   :  { %840 = vst [vmem:[%s1716_s4 + $0x28] sm:$0xff] %v776_v49  ;;  %872 = vst [vmem:[%s1716_s4 + $0x128] sm:$0xff] %v808_v50  ;;  %v421_v61 = vadd.f32 %v1262_v33, %v420_v57  ;;  %v549_v62 = vadd.f32 %v1262_v33, %v548_v59  ;;  %v1015_v63 = vpop.f32.mrb[10].mxu0  ;;  %v1047_v1 = vpop.f32.mrb[10].mxu1  ;;  %v656_v49 = vld [vmem:[%s1715_s3 + $0x68] sm:$0xff] }
  0xec   :  { %v717_v3 = vadd.f32 %v653_v52, %v429_v55  ;;  %v749_v4 = vadd.f32 %v685_v54, %v557_v56  ;;  %v432_v5 = vadd.f32 %v1015_v63, %v1262_v33  ;;  %v560_v6 = vadd.f32 %v1047_v1, %v1262_v33  ;;  %v423_v7 = vpop.f32.mrb[11].mxu0  ;;  %v551_v9 = vpop.f32.mrb[11].mxu1 }
  0xed   :  { %v715_v11 = vadd.f32 %v651_v58, %v421_v61  ;;  %v747_v12 = vadd.f32 %v683_v60, %v549_v62  ;;  %v424_v13 = vadd.f32 %v1262_v33, %v423_v7  ;;  %v552_v14 = vadd.f32 %v1262_v33, %v551_v9  ;;  %v693_v7 = vld [vmem:[%s1715_s3 + $0x190] sm:$0xff] }
  0xee   :  { %v781_v15 = vmax.f32 %v717_v3, 0.0  ;;  %v813_v16 = vmax.f32 %v749_v4, 0.0  ;;  %v718_v17 = vadd.f32 %v654_v0, %v432_v5  ;;  %v750_v18 = vadd.f32 %v686_v2, %v560_v6  ;;  %v661_v5 = vld [vmem:[%s1715_s3 + $0x90] sm:$0xff] }
  0xef   :  { %v779_v19 = vmax.f32 %v715_v11, 0.0  ;;  %v811_v20 = vmax.f32 %v747_v12, 0.0  ;;  %v716_v21 = vadd.f32 %v652_v8, %v424_v13  ;;  %v748_v22 = vadd.f32 %v684_v10, %v552_v14  ;;  %v659_v11 = vld [vmem:[%s1715_s3 + $0x80] sm:$0xff] }
  0xf0   :  { %845 = vst [vmem:[%s1716_s4 + $0x50] sm:$0xff] %v781_v15  ;;  %877 = vst [vmem:[%s1716_s4 + $0x150] sm:$0xff] %v813_v16  ;;  %v782_v23 = vmax.f32 %v718_v17, 0.0  ;;  %v814_v24 = vmax.f32 %v750_v18, 0.0  ;;  %v691_v13 = vld [vmem:[%s1715_s3 + $0x180] sm:$0xff]  ;;  %v662_v17 = vld [vmem:[%s1715_s3 + $0x98] sm:$0xff] }
  0xf1   :  { %843 = vst [vmem:[%s1716_s4 + $0x40] sm:$0xff] %v779_v19  ;;  %875 = vst [vmem:[%s1716_s4 + $0x140] sm:$0xff] %v811_v20  ;;  %v780_v25 = vmax.f32 %v716_v21, 0.0  ;;  %v812_v26 = vmax.f32 %v748_v22, 0.0  ;;  %v1018_v27 = vpop.f32.mrb[12].mxu0  ;;  %v1050_v29 = vpop.f32.mrb[12].mxu1 }
  0xf2   :  { %846 = vst [vmem:[%s1716_s4 + $0x58] sm:$0xff] %v782_v23  ;;  %878 = vst [vmem:[%s1716_s4 + $0x158] sm:$0xff] %v814_v24  ;;  %v445_v31 = vadd.f32 %v1018_v27, %v1262_v33  ;;  %v573_v32 = vadd.f32 %v1050_v29, %v1262_v33  ;;  %v436_v34 = vpop.f32.mrb[13].mxu0  ;;  %v564_v36 = vpop.f32.mrb[13].mxu1  ;;  %v694_v19 = vld [vmem:[%s1715_s3 + $0x198] sm:$0xff]  ;;  %v692_v27 = vld [vmem:[%s1715_s3 + $0x188] sm:$0xff] }
  0xf3   :  { %844 = vst [vmem:[%s1716_s4 + $0x48] sm:$0xff] %v780_v25  ;;  %876 = vst [vmem:[%s1716_s4 + $0x148] sm:$0xff] %v812_v26  ;;  %v437_v38 = vadd.f32 %v1262_v33, %v436_v34  ;;  %v565_v39 = vadd.f32 %v1262_v33, %v564_v36  ;;  %v1019_v40 = vpop.f32.mrb[14].mxu0  ;;  %v1051_v42 = vpop.f32.mrb[14].mxu1  ;;  %v660_v25 = vld [vmem:[%s1715_s3 + $0x88] sm:$0xff] }
  0xf4   :  { %v721_v44 = vadd.f32 %v657_v28, %v445_v31  ;;  %v753_v45 = vadd.f32 %v689_v30, %v573_v32  ;;  %v448_v46 = vadd.f32 %v1019_v40, %v1262_v33  ;;  %v576_v47 = vadd.f32 %v1051_v42, %v1262_v33  ;;  %v439_v48 = vpop.f32.mrb[15].mxu0  ;;  %v567_v50 = vpop.f32.mrb[15].mxu1 }
  0xf5   :  { %v719_v52 = vadd.f32 %v655_v35, %v437_v38  ;;  %v751_v53 = vadd.f32 %v687_v37, %v565_v39  ;;  %v440_v54 = vadd.f32 %v1262_v33, %v439_v48  ;;  %v568_v55 = vadd.f32 %v1262_v33, %v567_v50  ;;  %v697_v48 = vld [vmem:[%s1715_s3 + $0x1b0] sm:$0xff] }
  0xf6   :  { %v785_v56 = vmax.f32 %v721_v44, 0.0  ;;  %v817_v57 = vmax.f32 %v753_v45, 0.0  ;;  %v722_v58 = vadd.f32 %v658_v41, %v448_v46  ;;  %v754_v59 = vadd.f32 %v690_v43, %v576_v47  ;;  %v665_v46 = vld [vmem:[%s1715_s3 + $0xb0] sm:$0xff] }
  0xf7   :  { %v783_v60 = vmax.f32 %v719_v52, 0.0  ;;  %v815_v61 = vmax.f32 %v751_v53, 0.0  ;;  %v720_v62 = vadd.f32 %v656_v49, %v440_v54  ;;  %v752_v63 = vadd.f32 %v688_v51, %v568_v55  ;;  %v663_v52 = vld [vmem:[%s1715_s3 + $0xa0] sm:$0xff] }
  0xf8   :  { %849 = vst [vmem:[%s1716_s4 + $0x70] sm:$0xff] %v785_v56  ;;  %881 = vst [vmem:[%s1716_s4 + $0x170] sm:$0xff] %v817_v57  ;;  %v786_v0 = vmax.f32 %v722_v58, 0.0  ;;  %v818_v1 = vmax.f32 %v754_v59, 0.0  ;;  %v695_v54 = vld [vmem:[%s1715_s3 + $0x1a0] sm:$0xff]  ;;  %v666_v58 = vld [vmem:[%s1715_s3 + $0xb8] sm:$0xff] }
  0xf9   :  { %847 = vst [vmem:[%s1716_s4 + $0x60] sm:$0xff] %v783_v60  ;;  %879 = vst [vmem:[%s1716_s4 + $0x160] sm:$0xff] %v815_v61  ;;  %v784_v2 = vmax.f32 %v720_v62, 0.0  ;;  %v816_v3 = vmax.f32 %v752_v63, 0.0  ;;  %v1022_v4 = vpop.f32.mrb[16].mxu0  ;;  %v1054_v6 = vpop.f32.mrb[16].mxu1 }
  0xfa   :  { %850 = vst [vmem:[%s1716_s4 + $0x78] sm:$0xff] %v786_v0  ;;  %882 = vst [vmem:[%s1716_s4 + $0x178] sm:$0xff] %v818_v1  ;;  %v461_v8 = vadd.f32 %v1022_v4, %v1262_v33  ;;  %v589_v9 = vadd.f32 %v1054_v6, %v1262_v33  ;;  %v452_v10 = vpop.f32.mrb[17].mxu0  ;;  %v580_v12 = vpop.f32.mrb[17].mxu1  ;;  %v698_v60 = vld [vmem:[%s1715_s3 + $0x1b8] sm:$0xff]  ;;  %v696_v4 = vld [vmem:[%s1715_s3 + $0x1a8] sm:$0xff] }
  0xfb   :  { %848 = vst [vmem:[%s1716_s4 + $0x68] sm:$0xff] %v784_v2  ;;  %880 = vst [vmem:[%s1716_s4 + $0x168] sm:$0xff] %v816_v3  ;;  %v453_v14 = vadd.f32 %v1262_v33, %v452_v10  ;;  %v581_v15 = vadd.f32 %v1262_v33, %v580_v12  ;;  %v1023_v16 = vpop.f32.mrb[18].mxu0  ;;  %v1055_v18 = vpop.f32.mrb[18].mxu1  ;;  %v664_v2 = vld [vmem:[%s1715_s3 + $0xa8] sm:$0xff] }
  0xfc   :  { %v725_v20 = vadd.f32 %v661_v5, %v461_v8  ;;  %v757_v21 = vadd.f32 %v693_v7, %v589_v9  ;;  %v464_v22 = vadd.f32 %v1023_v16, %v1262_v33  ;;  %v592_v23 = vadd.f32 %v1055_v18, %v1262_v33  ;;  %v455_v24 = vpop.f32.mrb[19].mxu0  ;;  %v583_v26 = vpop.f32.mrb[19].mxu1 }
  0xfd   :  { %v723_v28 = vadd.f32 %v659_v11, %v453_v14  ;;  %v755_v29 = vadd.f32 %v691_v13, %v581_v15  ;;  %v456_v30 = vadd.f32 %v1262_v33, %v455_v24  ;;  %v584_v31 = vadd.f32 %v1262_v33, %v583_v26  ;;  %v701_v24 = vld [vmem:[%s1715_s3 + $0x1d0] sm:$0xff] }
  0xfe   :  { %v789_v32 = vmax.f32 %v725_v20, 0.0  ;;  %v821_v34 = vmax.f32 %v757_v21, 0.0  ;;  %v726_v35 = vadd.f32 %v662_v17, %v464_v22  ;;  %v758_v36 = vadd.f32 %v694_v19, %v592_v23  ;;  %v669_v22 = vld [vmem:[%s1715_s3 + $0xd0] sm:$0xff] }
  0xff   :  { %v787_v37 = vmax.f32 %v723_v28, 0.0  ;;  %v819_v38 = vmax.f32 %v755_v29, 0.0  ;;  %v724_v39 = vadd.f32 %v660_v25, %v456_v30  ;;  %v756_v40 = vadd.f32 %v692_v27, %v584_v31  ;;  %v667_v28 = vld [vmem:[%s1715_s3 + $0xc0] sm:$0xff] }
 0x100   :  { %853 = vst [vmem:[%s1716_s4 + $0x90] sm:$0xff] %v789_v32  ;;  %885 = vst [vmem:[%s1716_s4 + $0x190] sm:$0xff] %v821_v34  ;;  %v790_v41 = vmax.f32 %v726_v35, 0.0  ;;  %v822_v42 = vmax.f32 %v758_v36, 0.0  ;;  %v699_v30 = vld [vmem:[%s1715_s3 + $0x1c0] sm:$0xff]  ;;  %v670_v35 = vld [vmem:[%s1715_s3 + $0xd8] sm:$0xff] }
 0x101   :  { %851 = vst [vmem:[%s1716_s4 + $0x80] sm:$0xff] %v787_v37  ;;  %883 = vst [vmem:[%s1716_s4 + $0x180] sm:$0xff] %v819_v38  ;;  %v788_v43 = vmax.f32 %v724_v39, 0.0  ;;  %v820_v44 = vmax.f32 %v756_v40, 0.0  ;;  %v1026_v45 = vpop.f32.mrb[20].mxu0  ;;  %v1058_v47 = vpop.f32.mrb[20].mxu1 }
 0x102   :  { %854 = vst [vmem:[%s1716_s4 + $0x98] sm:$0xff] %v790_v41  ;;  %886 = vst [vmem:[%s1716_s4 + $0x198] sm:$0xff] %v822_v42  ;;  %v477_v49 = vadd.f32 %v1026_v45, %v1262_v33  ;;  %v605_v50 = vadd.f32 %v1058_v47, %v1262_v33  ;;  %v468_v51 = vpop.f32.mrb[21].mxu0  ;;  %v596_v53 = vpop.f32.mrb[21].mxu1  ;;  %v702_v37 = vld [vmem:[%s1715_s3 + $0x1d8] sm:$0xff]  ;;  %v700_v45 = vld [vmem:[%s1715_s3 + $0x1c8] sm:$0xff] }
 0x103   :  { %852 = vst [vmem:[%s1716_s4 + $0x88] sm:$0xff] %v788_v43  ;;  %884 = vst [vmem:[%s1716_s4 + $0x188] sm:$0xff] %v820_v44  ;;  %v469_v55 = vadd.f32 %v1262_v33, %v468_v51  ;;  %v597_v56 = vadd.f32 %v1262_v33, %v596_v53  ;;  %v1027_v57 = vpop.f32.mrb[22].mxu0  ;;  %v1059_v59 = vpop.f32.mrb[22].mxu1  ;;  %v668_v43 = vld [vmem:[%s1715_s3 + $0xc8] sm:$0xff] }
 0x104   :  { %v729_v61 = vadd.f32 %v665_v46, %v477_v49  ;;  %v761_v62 = vadd.f32 %v697_v48, %v605_v50  ;;  %v480_v63 = vadd.f32 %v1027_v57, %v1262_v33  ;;  %v608_v0 = vadd.f32 %v1059_v59, %v1262_v33  ;;  %v471_v1 = vpop.f32.mrb[23].mxu0  ;;  %v599_v3 = vpop.f32.mrb[23].mxu1 }
 0x105   :  { %v727_v5 = vadd.f32 %v663_v52, %v469_v55  ;;  %v759_v6 = vadd.f32 %v695_v54, %v597_v56  ;;  %v472_v7 = vadd.f32 %v1262_v33, %v471_v1  ;;  %v600_v8 = vadd.f32 %v1262_v33, %v599_v3  ;;  %v705_v1 = vld [vmem:[%s1715_s3 + $0x1f0] sm:$0xff] }
 0x106   :  { %v793_v9 = vmax.f32 %v729_v61, 0.0  ;;  %v825_v10 = vmax.f32 %v761_v62, 0.0  ;;  %v730_v11 = vadd.f32 %v666_v58, %v480_v63  ;;  %v762_v12 = vadd.f32 %v698_v60, %v608_v0  ;;  %v673_v63 = vld [vmem:[%s1715_s3 + $0xf0] sm:$0xff] }
 0x107   :  { %v791_v13 = vmax.f32 %v727_v5, 0.0  ;;  %v823_v14 = vmax.f32 %v759_v6, 0.0  ;;  %v728_v15 = vadd.f32 %v664_v2, %v472_v7  ;;  %v760_v16 = vadd.f32 %v696_v4, %v600_v8  ;;  %v671_v5 = vld [vmem:[%s1715_s3 + $0xe0] sm:$0xff] }
 0x108   :  { %857 = vst [vmem:[%s1716_s4 + $0xb0] sm:$0xff] %v793_v9  ;;  %889 = vst [vmem:[%s1716_s4 + $0x1b0] sm:$0xff] %v825_v10  ;;  %v794_v17 = vmax.f32 %v730_v11, 0.0  ;;  %v826_v18 = vmax.f32 %v762_v12, 0.0  ;;  %v703_v7 = vld [vmem:[%s1715_s3 + $0x1e0] sm:$0xff]  ;;  %v674_v11 = vld [vmem:[%s1715_s3 + $0xf8] sm:$0xff] }
 0x109   :  { %855 = vst [vmem:[%s1716_s4 + $0xa0] sm:$0xff] %v791_v13  ;;  %887 = vst [vmem:[%s1716_s4 + $0x1a0] sm:$0xff] %v823_v14  ;;  %v792_v19 = vmax.f32 %v728_v15, 0.0  ;;  %v824_v20 = vmax.f32 %v760_v16, 0.0  ;;  %v1030_v21 = vpop.f32.mrb[24].mxu0  ;;  %v1062_v23 = vpop.f32.mrb[24].mxu1 }
 0x10a   :  { %858 = vst [vmem:[%s1716_s4 + $0xb8] sm:$0xff] %v794_v17  ;;  %890 = vst [vmem:[%s1716_s4 + $0x1b8] sm:$0xff] %v826_v18  ;;  %v493_v25 = vadd.f32 %v1030_v21, %v1262_v33  ;;  %v621_v26 = vadd.f32 %v1062_v23, %v1262_v33  ;;  %v484_v27 = vpop.f32.mrb[25].mxu0  ;;  %v612_v29 = vpop.f32.mrb[25].mxu1  ;;  %v706_v13 = vld [vmem:[%s1715_s3 + $0x1f8] sm:$0xff]  ;;  %v704_v21 = vld [vmem:[%s1715_s3 + $0x1e8] sm:$0xff] }
 0x10b   :  { %856 = vst [vmem:[%s1716_s4 + $0xa8] sm:$0xff] %v792_v19  ;;  %888 = vst [vmem:[%s1716_s4 + $0x1a8] sm:$0xff] %v824_v20  ;;  %v485_v31 = vadd.f32 %v1262_v33, %v484_v27  ;;  %v613_v32 = vadd.f32 %v1262_v33, %v612_v29  ;;  %v1031_v34 = vpop.f32.mrb[26].mxu0  ;;  %v1063_v36 = vpop.f32.mrb[26].mxu1  ;;  %v672_v19 = vld [vmem:[%s1715_s3 + $0xe8] sm:$0xff] }
 0x10c   :  { %v733_v38 = vadd.f32 %v669_v22, %v493_v25  ;;  %v765_v39 = vadd.f32 %v701_v24, %v621_v26  ;;  %v496_v40 = vadd.f32 %v1031_v34, %v1262_v33  ;;  %v624_v41 = vadd.f32 %v1063_v36, %v1262_v33  ;;  %v487_v42 = vpop.f32.mrb[27].mxu0  ;;  %v615_v44 = vpop.f32.mrb[27].mxu1 }
 0x10d   :  { %v731_v46 = vadd.f32 %v667_v28, %v485_v31  ;;  %v763_v47 = vadd.f32 %v699_v30, %v613_v32  ;;  %v488_v48 = vadd.f32 %v1262_v33, %v487_v42  ;;  %v616_v49 = vadd.f32 %v1262_v33, %v615_v44 }
 0x10e   :  { %v797_v50 = vmax.f32 %v733_v38, 0.0  ;;  %v829_v51 = vmax.f32 %v765_v39, 0.0  ;;  %v734_v52 = vadd.f32 %v670_v35, %v496_v40  ;;  %v766_v53 = vadd.f32 %v702_v37, %v624_v41 }
 0x10f   :  { %v795_v54 = vmax.f32 %v731_v46, 0.0  ;;  %v827_v55 = vmax.f32 %v763_v47, 0.0  ;;  %v732_v56 = vadd.f32 %v668_v43, %v488_v48  ;;  %v764_v57 = vadd.f32 %v700_v45, %v616_v49 }
 0x110   :  { %861 = vst [vmem:[%s1716_s4 + $0xd0] sm:$0xff] %v797_v50  ;;  %893 = vst [vmem:[%s1716_s4 + $0x1d0] sm:$0xff] %v829_v51  ;;  %v798_v58 = vmax.f32 %v734_v52, 0.0  ;;  %v830_v59 = vmax.f32 %v766_v53, 0.0 }
 0x111   :  { %859 = vst [vmem:[%s1716_s4 + $0xc0] sm:$0xff] %v795_v54  ;;  %891 = vst [vmem:[%s1716_s4 + $0x1c0] sm:$0xff] %v827_v55  ;;  %v796_v60 = vmax.f32 %v732_v56, 0.0  ;;  %v828_v61 = vmax.f32 %v764_v57, 0.0  ;;  %v1034_v62 = vpop.f32.mrb[28].mxu0  ;;  %v1066_v0 = vpop.f32.mrb[28].mxu1 }
 0x112   :  { %862 = vst [vmem:[%s1716_s4 + $0xd8] sm:$0xff] %v798_v58  ;;  %894 = vst [vmem:[%s1716_s4 + $0x1d8] sm:$0xff] %v830_v59  ;;  %v509_v2 = vadd.f32 %v1034_v62, %v1262_v33  ;;  %v637_v3 = vadd.f32 %v1066_v0, %v1262_v33  ;;  %v500_v4 = vpop.f32.mrb[29].mxu0  ;;  %v628_v6 = vpop.f32.mrb[29].mxu1 }
 0x113   :  { %860 = vst [vmem:[%s1716_s4 + $0xc8] sm:$0xff] %v796_v60  ;;  %892 = vst [vmem:[%s1716_s4 + $0x1c8] sm:$0xff] %v828_v61  ;;  %v501_v8 = vadd.f32 %v1262_v33, %v500_v4  ;;  %v629_v9 = vadd.f32 %v1262_v33, %v628_v6  ;;  %v1035_v10 = vpop.f32.mrb[30].mxu0  ;;  %v1067_v12 = vpop.f32.mrb[30].mxu1 }
 0x114   :  { %v737_v14 = vadd.f32 %v673_v63, %v509_v2  ;;  %v769_v15 = vadd.f32 %v705_v1, %v637_v3  ;;  %v512_v16 = vadd.f32 %v1035_v10, %v1262_v33  ;;  %v640_v17 = vadd.f32 %v1067_v12, %v1262_v33  ;;  %v503_v18 = vpop.f32.mrb[31].mxu0  ;;  %v631_v20 = vpop.f32.mrb[31].mxu1 }
 0x115   :  { %v735_v22 = vadd.f32 %v671_v5, %v501_v8  ;;  %v767_v23 = vadd.f32 %v703_v7, %v629_v9  ;;  %v504_v24 = vadd.f32 %v1262_v33, %v503_v18  ;;  %v632_v25 = vadd.f32 %v1262_v33, %v631_v20 }
 0x116   :  { %v801_v26 = vmax.f32 %v737_v14, 0.0  ;;  %v833_v27 = vmax.f32 %v769_v15, 0.0  ;;  %v738_v28 = vadd.f32 %v674_v11, %v512_v16  ;;  %v770_v29 = vadd.f32 %v706_v13, %v640_v17 }
 0x117   :  { %v799_v30 = vmax.f32 %v735_v22, 0.0  ;;  %v831_v31 = vmax.f32 %v767_v23, 0.0  ;;  %v736_v32 = vadd.f32 %v672_v19, %v504_v24  ;;  %v768_v34 = vadd.f32 %v704_v21, %v632_v25 }
 0x118   :  { %865 = vst [vmem:[%s1716_s4 + $0xf0] sm:$0xff] %v801_v26  ;;  %897 = vst [vmem:[%s1716_s4 + $0x1f0] sm:$0xff] %v833_v27  ;;  %v802_v35 = vmax.f32 %v738_v28, 0.0  ;;  %v834_v36 = vmax.f32 %v770_v29, 0.0 }
 0x119   :  { %863 = vst [vmem:[%s1716_s4 + $0xe0] sm:$0xff] %v799_v30  ;;  %895 = vst [vmem:[%s1716_s4 + $0x1e0] sm:$0xff] %v831_v31  ;;  %v800_v33 = vmax.f32 %v736_v32, 0.0  ;;  %v832_v37 = vmax.f32 %v768_v34, 0.0 }
 0x11a   :  { %866 = vst [vmem:[%s1716_s4 + $0xf8] sm:$0xff] %v802_v35  ;;  %898 = vst [vmem:[%s1716_s4 + $0x1f8] sm:$0xff] %v834_v36 }
 0x11b   :  { %864 = vst [vmem:[%s1716_s4 + $0xe8] sm:$0xff] %v800_v33  ;;  %896 = vst [vmem:[%s1716_s4 + $0x1e8] sm:$0xff] %v832_v37 }

// kernel: temporal_net_forward.13
= control target key start
LH: loop header
LB: loop body
LE: loop exit
PB: predicated region body
PF: predicated region fallthrough
CT: control target
= control target key end

     0   :  { %v5290_v0 = vmov 0   ;;  %s7141_s1 = inlined_call_operand.vmem [shape: bf16[1152,128], index: 1, kind: input, shape index: {}]   ;;  %s7142_s0 = inlined_call_operand.vmem [shape: bf16[512,1152], index: 0, kind: input, shape index: {}]   ;;  %s7143_s2 = inlined_call_operand.vmem [shape: f32[1,128], index: 2, kind: input, shape index: {}]   ;;  %s7144_s3 = inlined_call_operand.vmem [shape: f32[512,128], index: 3, kind: output, shape index: {}]  }
   0x1   :  { %2390 = vmatprep.subr.bf16.mxu1 %v5290_v0  ;;  %2679 = vmatprep.subr.bf16.mxu0 %v5290_v0  ;;  %v4801_v1 = vld [vmem:[%s7141_s1] sm:$0xff]   ;;  %v4803_v3 = vld [vmem:[%s7141_s1 + $0x8] sm:$0xff]   ;;  %v4805_v5 = vld [vmem:[%s7141_s1 + $0x10] sm:$0xff]  }
   0x2   :  { %v5319_v2 = vld [vmem:[%s7141_s1 + $0x80] sm:$0xff]   ;;  %2391 = vmatpush1.bf16.msra.mxu1 %v4801_v1  ;;  %v5329_v4 = vld [vmem:[%s7141_s1 + $0x88] sm:$0xff]   ;;  %v5340_v6 = vld [vmem:[%s7141_s1 + $0x90] sm:$0xff]  }
   0x3   :  { %2680 = vmatpush1.bf16.msra.mxu0 %v5319_v2  ;;  %2392 = vmatprep.subr.bf16.mxu1 %v5290_v0  ;;  %v4807_v7 = vld [vmem:[%s7141_s1 + $0x18] sm:$0xff]   ;;  %v4809_v9 = vld [vmem:[%s7141_s1 + $0x20] sm:$0xff]   ;;  %v4811_v11 = vld [vmem:[%s7141_s1 + $0x28] sm:$0xff]  }
   0x4   :  { %2681 = vmatprep.subr.bf16.mxu0 %v5290_v0  ;;  %v5351_v8 = vld [vmem:[%s7141_s1 + $0x98] sm:$0xff]   ;;  %v5362_v10 = vld [vmem:[%s7141_s1 + $0xa0] sm:$0xff]   ;;  %v5373_v12 = vld [vmem:[%s7141_s1 + $0xa8] sm:$0xff]  }
   0x5   :  { %v4813_v13 = vld [vmem:[%s7141_s1 + $0x30] sm:$0xff]   ;;  %v4815_v15 = vld [vmem:[%s7141_s1 + $0x38] sm:$0xff]   ;;  %v4817_v17 = vld [vmem:[%s7141_s1 + $0x40] sm:$0xff]  }
   0x6   :  { %2393 = vmatpush1.bf16.msra.mxu1 %v4803_v3  ;;  %v5384_v14 = vld [vmem:[%s7141_s1 + $0xb0] sm:$0xff]   ;;  %v5395_v16 = vld [vmem:[%s7141_s1 + $0xb8] sm:$0xff]   ;;  %v5406_v18 = vld [vmem:[%s7141_s1 + $0xc0] sm:$0xff]  }
   0x7   :  { %2682 = vmatpush1.bf16.msra.mxu0 %v5329_v4  ;;  %2394 = vmatprep.subr.bf16.mxu1 %v5290_v0  ;;  %v4835_v19 = vld [vmem:[%s7142_s0 + $0x4] ss:$36 sps:$4 sm:$0xff]   ;;  %v4838_v21 = vld [vmem:[%s7142_s0 + $0xc] ss:$36 sps:$4 sm:$0xff]   ;;  %v4823_v25 = vld [vmem:[%s7141_s1 + $0x58] sm:$0xff]  }
   0x8   :  { %2683 = vmatprep.subr.bf16.mxu0 %v5290_v0  ;;  %v4819_v20 = vld [vmem:[%s7141_s1 + $0x48] sm:$0xff]   ;;  %2422 = vmatprep.mubr.bf16.mxu1 %v4835_v19  ;;  %v4821_v23 = vld [vmem:[%s7141_s1 + $0x50] sm:$0xff]   ;;  %v5445_v26 = vld [vmem:[%s7141_s1 + $0xd8] sm:$0xff]  }
   0x9   :  { %v5423_v22 = vld [vmem:[%s7141_s1 + $0xc8] sm:$0xff]   ;;  %2711 = vmatprep.mubr.bf16.mxu0 %v4838_v21  ;;  %v5434_v24 = vld [vmem:[%s7141_s1 + $0xd0] sm:$0xff]   ;;  %v4825_v27 = vld [vmem:[%s7141_s1 + $0x60] sm:$0xff]  }
   0xa   :  { %2395 = vmatpush1.bf16.msra.mxu1 %v4805_v5  ;;  %v5456_v28 = vld [vmem:[%s7141_s1 + $0xe0] sm:$0xff]   ;;  %v4827_v29 = vld [vmem:[%s7141_s1 + $0x68] sm:$0xff]   ;;  %v4829_v31 = vld [vmem:[%s7141_s1 + $0x70] sm:$0xff]  }
   0xb   :  { %2684 = vmatpush1.bf16.msra.mxu0 %v5340_v6  ;;  %2396 = vmatprep.subr.bf16.mxu1 %v5290_v0  ;;  %v5467_v30 = vld [vmem:[%s7141_s1 + $0xe8] sm:$0xff]   ;;  %v5478_v32 = vld [vmem:[%s7141_s1 + $0xf0] sm:$0xff]   ;;  %v4831_v33 = vld [vmem:[%s7141_s1 + $0x78] sm:$0xff]  }
   0xc   :  { %2685 = vmatprep.subr.bf16.mxu0 %v5290_v0  ;;  %v5489_v34 = vld [vmem:[%s7141_s1 + $0xf8] sm:$0xff]   ;;  %v4833_v35 = vld [vmem:[%s7142_s0] ss:$36 sps:$4 sm:$0xff]   ;;  %v4836_v36 = vld [vmem:[%s7142_s0 + $0x8] ss:$36 sps:$4 sm:$0xff]  }
   0xd   :  { %v4839_v37 = vld [vmem:[%s7141_s1 + $0x100] sm:$0xff]   ;;  %v4841_v38 = vld [vmem:[%s7142_s0 + $0x4c] ss:$36 sps:$4 sm:$0xff]   ;;  %v4843_v39 = vld [vmem:[%s7142_s0 + $0x54] ss:$36 sps:$4 sm:$0xff]  }
   0xe   :  { %2397 = vmatpush1.bf16.msra.mxu1 %v4807_v7  ;;  %v4840_v40 = vld [vmem:[%s7141_s1 + $0x108] sm:$0xff]   ;;  %v4846_v42 = vld [vmem:[%s7142_s0 + $0x50] ss:$36 sps:$4 sm:$0xff]   ;;  %v4851_v45 = vld [vmem:[%s7142_s0 + $0x9c] ss:$36 sps:$4 sm:$0xff]  }
   0xf   :  { %2686 = vmatpush1.bf16.msra.mxu0 %v5351_v8  ;;  %2398 = vmatprep.subr.bf16.mxu1 %v5290_v0  ;;  %v4845_v41 = vld [vmem:[%s7142_s0 + $0x48] ss:$36 sps:$4 sm:$0xff]   ;;  %v4849_v43 = vld [vmem:[%s7142_s0 + $0x94] ss:$36 sps:$4 sm:$0xff]   ;;  %v4855_v49 = vld [vmem:[%s7141_s1 + $0x120] sm:$0xff]  }
  0x10   :  { %2687 = vmatprep.subr.bf16.mxu0 %v5290_v0  ;;  %v4847_v44 = vld [vmem:[%s7141_s1 + $0x110] sm:$0xff]   ;;  %v4848_v46 = vld [vmem:[%s7141_s1 + $0x118] sm:$0xff]   ;;  %v4859_v51 = vld [vmem:[%s7142_s0 + $0xe4] ss:$36 sps:$4 sm:$0xff]  }
  0x11   :  { %v4853_v47 = vld [vmem:[%s7142_s0 + $0x90] ss:$36 sps:$4 sm:$0xff]   ;;  %v4854_v48 = vld [vmem:[%s7142_s0 + $0x98] ss:$36 sps:$4 sm:$0xff]   ;;  %v4856_v52 = vld [vmem:[%s7141_s1 + $0x128] sm:$0xff]  }
  0x12   :  { %2399 = vmatpush1.bf16.msra.mxu1 %v4809_v9  ;;  %v4857_v50 = vld [vmem:[%s7142_s0 + $0xdc] ss:$36 sps:$4 sm:$0xff]   ;;  %v4865_v55 = vld [vmem:[%s7142_s0 + $0x124] ss:$36 sps:$4 sm:$0xff]   ;;  %v4863_v56 = vld [vmem:[%s7141_s1 + $0x130] sm:$0xff]  }
  0x13   :  { %2688 = vmatpush1.bf16.msra.mxu0 %v5362_v10  ;;  %2400 = vmatprep.subr.bf16.mxu1 %v5290_v0  ;;  %v4861_v53 = vld [vmem:[%s7142_s0 + $0xd8] ss:$36 sps:$4 sm:$0xff]   ;;  %v4862_v54 = vld [vmem:[%s7142_s0 + $0xe0] ss:$36 sps:$4 sm:$0xff]   ;;  %v4867_v57 = vld [vmem:[%s7142_s0 + $0x12c] ss:$36 sps:$4 sm:$0xff]  }
  0x14   :  { %2689 = vmatprep.subr.bf16.mxu0 %v5290_v0  ;;  %v4864_v58 = vld [vmem:[%s7141_s1 + $0x138] sm:$0xff]   ;;  %v4869_v59 = vld [vmem:[%s7142_s0 + $0x120] ss:$36 sps:$4 sm:$0xff]   ;;  %v4870_v60 = vld [vmem:[%s7142_s0 + $0x128] ss:$36 sps:$4 sm:$0xff]  }
  0x15   :  { %v4871_v61 = vld [vmem:[%s7141_s1 + $0x140] sm:$0xff]   ;;  %v4873_v62 = vld [vmem:[%s7142_s0 + $0x16c] ss:$36 sps:$4 sm:$0xff]   ;;  %v4875_v63 = vld [vmem:[%s7142_s0 + $0x174] ss:$36 sps:$4 sm:$0xff]  }
  0x16   :  { %2401 = vmatpush1.bf16.msra.mxu1 %v4811_v11  ;;  %v4872_v1 = vld [vmem:[%s7141_s1 + $0x148] sm:$0xff]   ;;  %v4878_v3 = vld [vmem:[%s7142_s0 + $0x170] ss:$36 sps:$4 sm:$0xff]   ;;  %v4880_v7 = vld [vmem:[%s7141_s1 + $0x158] sm:$0xff]  }
  0x17   :  { %2690 = vmatpush1.bf16.msra.mxu0 %v5373_v12  ;;  %2402 = vmatprep.subr.bf16.mxu1 %v5290_v0  ;;  %v4879_v5 = vld [vmem:[%s7141_s1 + $0x150] sm:$0xff]   ;;  %v4886_v9 = vld [vmem:[%s7142_s0 + $0x1b8] ss:$36 sps:$4 sm:$0xff]  }
  0x18   :  { %2691 = vmatprep.subr.bf16.mxu0 %v5290_v0  ;;  %v4889_v11 = vld [vmem:[%s7142_s0 + $0x1fc] ss:$36 sps:$4 sm:$0xff]   ;;  %v4899_v21 = vld [vmem:[%s7142_s0 + $0x10] ss:$36 sps:$4 sm:$0xff]  }
  0x19   :  { %v4896_v19 = vld [vmem:[%s7141_s1 + $0x178] sm:$0xff]  }
  0x1a   :  { %2403 = vmatpush1.bf16.msra.mxu1 %v4813_v13  ;;  %v4888_v13 = vld [vmem:[%s7141_s1 + $0x168] sm:$0xff]  }
  0x1b   :  { %2692 = vmatpush1.bf16.msra.mxu0 %v5384_v14  ;;  %2404 = vmatprep.subr.bf16.mxu1 %v5290_v0 }
  0x1c   :  { %2693 = vmatprep.subr.bf16.mxu0 %v5290_v0 }
  0x1e   :  { %2405 = vmatpush1.bf16.msra.mxu1 %v4815_v15  ;;  %v4894_v15 = vld [vmem:[%s7142_s0 + $0x200] ss:$36 sps:$4 sm:$0xff]  }
  0x1f   :  { %2694 = vmatpush1.bf16.msra.mxu0 %v5395_v16  ;;  %2406 = vmatprep.subr.bf16.mxu1 %v5290_v0 }
  0x20   :  { %2695 = vmatprep.subr.bf16.mxu0 %v5290_v0 }
  0x22   :  { %2407 = vmatpush1.bf16.msra.mxu1 %v4817_v17  ;;  %v4895_v17 = vld [vmem:[%s7141_s1 + $0x170] sm:$0xff]  }
  0x23   :  { %2696 = vmatpush1.bf16.msra.mxu0 %v5406_v18  ;;  %2408 = vmatprep.subr.bf16.mxu1 %v5290_v0 }
  0x24   :  { %2697 = vmatprep.subr.bf16.mxu0 %v5290_v0 }
  0x26   :  { %2409 = vmatpush1.bf16.msra.mxu1 %v4819_v20  ;;  %v4902_v20 = vld [vmem:[%s7142_s0 + $0x240] ss:$36 sps:$4 sm:$0xff]  }
  0x27   :  { %2698 = vmatpush1.bf16.msra.mxu0 %v5423_v22  ;;  %2410 = vmatprep.subr.bf16.mxu1 %v5290_v0 }
  0x28   :  { %2699 = vmatprep.subr.bf16.mxu0 %v5290_v0 }
  0x2a   :  { %2411 = vmatpush1.bf16.msra.mxu1 %v4821_v23  ;;  %v4903_v23 = vld [vmem:[%s7141_s1 + $0x180] sm:$0xff]  }
  0x2b   :  { %2700 = vmatpush1.bf16.msra.mxu0 %v5434_v24  ;;  %2412 = vmatprep.subr.bf16.mxu1 %v5290_v0 }
  0x2c   :  { %2701 = vmatprep.subr.bf16.mxu0 %v5290_v0 }
  0x2e   :  { %2413 = vmatpush1.bf16.msra.mxu1 %v4823_v25  ;;  %v4908_v25 = vld [vmem:[%s7142_s0 + $0x288] ss:$36 sps:$4 sm:$0xff]  }
  0x2f   :  { %2702 = vmatpush1.bf16.msra.mxu0 %v5445_v26  ;;  %2414 = vmatprep.subr.bf16.mxu1 %v5290_v0 }
  0x30   :  { %2703 = vmatprep.subr.bf16.mxu0 %v5290_v0 }
  0x32   :  { %2415 = vmatpush1.bf16.msra.mxu1 %v4825_v27  ;;  %v4909_v27 = vld [vmem:[%s7142_s0 + $0x58] ss:$36 sps:$4 sm:$0xff]  }
  0x33   :  { %2704 = vmatpush1.bf16.msra.mxu0 %v5456_v28  ;;  %2416 = vmatprep.subr.bf16.mxu1 %v5290_v0 }
  0x34   :  { %2705 = vmatprep.subr.bf16.mxu0 %v5290_v0 }
  0x36   :  { %2417 = vmatpush1.bf16.msra.mxu1 %v4827_v29  ;;  %v4912_v29 = vld [vmem:[%s7142_s0 + $0xa4] ss:$36 sps:$4 sm:$0xff]  }
  0x37   :  { %2706 = vmatpush1.bf16.msra.mxu0 %v5467_v30  ;;  %2418 = vmatprep.subr.bf16.mxu1 %v5290_v0 }
  0x38   :  { %2707 = vmatprep.subr.bf16.mxu0 %v5290_v0 }
  0x3a   :  { %2419 = vmatpush1.bf16.msra.mxu1 %v4829_v31  ;;  %v4914_v31 = vld [vmem:[%s7142_s0 + $0x2d0] ss:$36 sps:$4 sm:$0xff]  }
  0x3b   :  { %2708 = vmatpush1.bf16.msra.mxu0 %v5478_v32  ;;  %2420 = vmatprep.subr.bf16.mxu1 %v5290_v0 }
  0x3c   :  { %2709 = vmatprep.subr.bf16.mxu0 %v5290_v0 }
  0x3e   :  { %2421 = vmatpush1.bf16.msra.mxu1 %v4831_v33  ;;  %v4915_v33 = vld [vmem:[%s7142_s0 + $0xa0] ss:$36 sps:$4 sm:$0xff]  }
  0x3f   :  { %2710 = vmatpush1.bf16.msra.mxu0 %v5489_v34  ;;  %4384 = vmatprep.subr.bf16.mxu1 %v5290_v0 }
  0x40   :  { %2968 = vmatprep.subr.bf16.mxu0 %v5290_v0 }
  0x41   :  { %2423 = vmatmul.mubr.bf16.vlgmr.msra.gmra.mrb[0].mxu1 %v4833_v35  ;;  %v4919_v35 = vld [vmem:[%s7142_s0 + $0xec] ss:$36 sps:$4 sm:$0xff]  }
  0x42   :  { %2712 = vmatmul.mubr.bf16.vlgmr.msra.gmra.mrb[0].mxu0 %v4836_v36  ;;  %4400 = vmatpush1.bf16.msra.mxu1 %v5319_v2  ;;  %v4877_v2 = vld [vmem:[%s7142_s0 + $0x168] ss:$36 sps:$4 sm:$0xff]   ;;  %v4955_v36 = vld [vmem:[%s7141_s1 + $0x1a0] sm:$0xff]  }
  0x43   :  { %2969 = vmatpush1.bf16.msra.mxu0 %v4839_v37  ;;  %2430 = vmatprep.mubr.bf16.mxu1 %v4841_v38  ;;  %v4921_v37 = vld [vmem:[%s7142_s0 + $0x318] ss:$36 sps:$4 sm:$0xff]   ;;  %v4968_v38 = vld [vmem:[%s7141_s1 + $0x1a8] sm:$0xff]  }
  0x44   :  { %2970 = vmatprep.subr.bf16.mxu0 %v5290_v0  ;;  %2719 = vmatprep.mubr.bf16.mxu0 %v4843_v39  ;;  %v4922_v39 = vld [vmem:[%s7142_s0 + $0xe8] ss:$36 sps:$4 sm:$0xff]  }
  0x45   :  { %4385 = vmatprep.subr.bf16.mxu1 %v5290_v0 }
  0x46   :  { %4401 = vmatpush1.bf16.msra.mxu1 %v5329_v4  ;;  %v4881_v4 = vld [vmem:[%s7142_s0 + $0x1b4] ss:$36 sps:$4 sm:$0xff]  }
  0x47   :  { %2971 = vmatpush1.bf16.msra.mxu0 %v4840_v40  ;;  %4386 = vmatprep.subr.bf16.mxu1 %v5290_v0  ;;  %v4923_v40 = vld [vmem:[%s7142_s0 + $0x364] ss:$36 sps:$4 sm:$0xff]  }
  0x48   :  { %2972 = vmatprep.subr.bf16.mxu0 %v5290_v0 }
  0x49   :  { %2431 = vmatmul.mubr.bf16.gmra.mrb[4].mxu1 %v4845_v41  ;;  %v4925_v41 = vld [vmem:[%s7142_s0 + $0x134] ss:$36 sps:$4 sm:$0xff]  }
  0x4a   :  { %2720 = vmatmul.mubr.bf16.gmra.mrb[4].mxu0 %v4846_v42  ;;  %2438 = vmatprep.mubr.bf16.mxu1 %v4849_v43  ;;  %v4981_v42 = vld [vmem:[%s7141_s1 + $0x1b0] sm:$0xff]   ;;  %v4994_v43 = vld [vmem:[%s7141_s1 + $0x1b8] sm:$0xff]  }
  0x4b   :  { %2973 = vmatpush1.bf16.msra.mxu0 %v4847_v44  ;;  %2727 = vmatprep.mubr.bf16.mxu0 %v4851_v45  ;;  %v4927_v44 = vld [vmem:[%s7142_s0 + $0x360] ss:$36 sps:$4 sm:$0xff]   ;;  %v4928_v45 = vld [vmem:[%s7142_s0 + $0x130] ss:$36 sps:$4 sm:$0xff]  }
  0x4c   :  { %2974 = vmatprep.subr.bf16.mxu0 %v5290_v0  ;;  %4402 = vmatpush1.bf16.msra.mxu1 %v5340_v6  ;;  %v4883_v6 = vld [vmem:[%s7142_s0 + $0x1bc] ss:$36 sps:$4 sm:$0xff]  }
  0x4d   :  { %4387 = vmatprep.subr.bf16.mxu1 %v5290_v0 }
  0x4f   :  { %2975 = vmatpush1.bf16.msra.mxu0 %v4848_v46  ;;  %v4930_v46 = vld [vmem:[%s7142_s0 + $0x3ac] ss:$36 sps:$4 sm:$0xff]  }
  0x50   :  { %2976 = vmatprep.subr.bf16.mxu0 %v5290_v0  ;;  %4403 = vmatpush1.bf16.msra.mxu1 %v5351_v8  ;;  %v4885_v8 = vld [vmem:[%s7142_s0 + $0x1b0] ss:$36 sps:$4 sm:$0xff]  }
  0x51   :  { %2439 = vmatmul.mubr.bf16.gmra.mrb[8].mxu1 %v4853_v47  ;;  %4388 = vmatprep.subr.bf16.mxu1 %v5290_v0  ;;  %v4932_v47 = vld [vmem:[%s7142_s0 + $0x17c] ss:$36 sps:$4 sm:$0xff]  }
  0x52   :  { %2728 = vmatmul.mubr.bf16.gmra.mrb[8].mxu0 %v4854_v48  ;;  %2446 = vmatprep.mubr.bf16.mxu1 %v4857_v50  ;;  %v5007_v48 = vld [vmem:[%s7141_s1 + $0x1c0] sm:$0xff]   ;;  %v4934_v50 = vld [vmem:[%s7142_s0 + $0x3a8] ss:$36 sps:$4 sm:$0xff]  }
  0x53   :  { %2977 = vmatpush1.bf16.msra.mxu0 %v4855_v49  ;;  %2735 = vmatprep.mubr.bf16.mxu0 %v4859_v51  ;;  %v5020_v49 = vld [vmem:[%s7141_s1 + $0x1c8] sm:$0xff]   ;;  %v4935_v51 = vld [vmem:[%s7142_s0 + $0x178] ss:$36 sps:$4 sm:$0xff]  }
  0x54   :  { %2978 = vmatprep.subr.bf16.mxu0 %v5290_v0  ;;  %4404 = vmatpush1.bf16.msra.mxu1 %v5362_v10  ;;  %v4887_v10 = vld [vmem:[%s7141_s1 + $0x160] sm:$0xff]  }
  0x55   :  { %4389 = vmatprep.subr.bf16.mxu1 %v5290_v0 }
  0x57   :  { %2979 = vmatpush1.bf16.msra.mxu0 %v4856_v52  ;;  %v4936_v52 = vld [vmem:[%s7142_s0 + $0x3f4] ss:$36 sps:$4 sm:$0xff]  }
  0x58   :  { %2980 = vmatprep.subr.bf16.mxu0 %v5290_v0  ;;  %4405 = vmatpush1.bf16.msra.mxu1 %v5373_v12  ;;  %v4891_v12 = vld [vmem:[%s7142_s0 + $0x204] ss:$36 sps:$4 sm:$0xff]  }
  0x59   :  { %2447 = vmatmul.mubr.bf16.gmra.mrb[12].mxu1 %v4861_v53  ;;  %4390 = vmatprep.subr.bf16.mxu1 %v5290_v0  ;;  %v4938_v53 = vld [vmem:[%s7142_s0 + $0x1c4] ss:$36 sps:$4 sm:$0xff]  }
  0x5a   :  { %2736 = vmatmul.mubr.bf16.gmra.mrb[12].mxu0 %v4862_v54  ;;  %2454 = vmatprep.mubr.bf16.mxu1 %v4865_v55  ;;  %v5033_v54 = vld [vmem:[%s7141_s1 + $0x1d0] sm:$0xff]  }
  0x5b   :  { %2981 = vmatpush1.bf16.msra.mxu0 %v4863_v56  ;;  %2743 = vmatprep.mubr.bf16.mxu0 %v4867_v57  ;;  %v4940_v55 = vld [vmem:[%s7142_s0 + $0x3f0] ss:$36 sps:$4 sm:$0xff]   ;;  %v4941_v56 = vld [vmem:[%s7142_s0 + $0x1c0] ss:$36 sps:$4 sm:$0xff]  }
  0x5c   :  { %2982 = vmatprep.subr.bf16.mxu0 %v5290_v0  ;;  %4406 = vmatpush1.bf16.msra.mxu1 %v5384_v14  ;;  %v4893_v14 = vld [vmem:[%s7142_s0 + $0x1f8] ss:$36 sps:$4 sm:$0xff]  }
  0x5d   :  { %4391 = vmatprep.subr.bf16.mxu1 %v5290_v0  ;;  %v4943_v57 = vld [vmem:[%s7142_s0 + $0x43c] ss:$36 sps:$4 sm:$0xff]  }
  0x5f   :  { %2983 = vmatpush1.bf16.msra.mxu0 %v4864_v58  ;;  %v4945_v58 = vld [vmem:[%s7142_s0 + $0x20c] ss:$36 sps:$4 sm:$0xff]  }
  0x60   :  { %2984 = vmatprep.subr.bf16.mxu0 %v5290_v0  ;;  %4407 = vmatpush1.bf16.msra.mxu1 %v5395_v16  ;;  %v4897_v16 = vld [vmem:[%s7142_s0 + $0x244] ss:$36 sps:$4 sm:$0xff]  }
  0x61   :  { %2455 = vmatmul.mubr.bf16.gmra.mrb[16].mxu1 %v4869_v59  ;;  %4392 = vmatprep.subr.bf16.mxu1 %v5290_v0  ;;  %v5046_v59 = vld [vmem:[%s7141_s1 + $0x1d8] sm:$0xff]  }
  0x62   :  { %2744 = vmatmul.mubr.bf16.gmra.mrb[16].mxu0 %v4870_v60  ;;  %2462 = vmatprep.mubr.bf16.mxu1 %v4873_v62  ;;  %v4947_v60 = vld [vmem:[%s7142_s0 + $0x438] ss:$36 sps:$4 sm:$0xff]   ;;  %v4949_v62 = vld [vmem:[%s7142_s0 + $0x484] ss:$36 sps:$4 sm:$0xff]  }
  0x63   :  { %2985 = vmatpush1.bf16.msra.mxu0 %v4871_v61  ;;  %2751 = vmatprep.mubr.bf16.mxu0 %v4875_v63  ;;  %v4948_v61 = vld [vmem:[%s7142_s0 + $0x208] ss:$36 sps:$4 sm:$0xff]   ;;  %v4951_v63 = vld [vmem:[%s7142_s0 + $0x254] ss:$36 sps:$4 sm:$0xff]  }
  0x64   :  { %2986 = vmatprep.subr.bf16.mxu0 %v5290_v0  ;;  %4408 = vmatpush1.bf16.msra.mxu1 %v5406_v18  ;;  %v4901_v18 = vld [vmem:[%s7142_s0 + $0x14] ss:$36 sps:$4 sm:$0xff]  }
  0x65   :  { %4393 = vmatprep.subr.bf16.mxu1 %v5290_v0 }
  0x67   :  { %2987 = vmatpush1.bf16.msra.mxu0 %v4872_v1  ;;  %v4953_v1 = vld [vmem:[%s7142_s0 + $0x480] ss:$36 sps:$4 sm:$0xff]  }
  0x68   :  { %2988 = vmatprep.subr.bf16.mxu0 %v5290_v0  ;;  %4409 = vmatpush1.bf16.msra.mxu1 %v5423_v22  ;;  %v4904_v22 = vld [vmem:[%s7142_s0 + $0x28c] ss:$36 sps:$4 sm:$0xff]  }
  0x69   :  { %2463 = vmatmul.mubr.bf16.gmra.mrb[20].mxu1 %v4877_v2  ;;  %4394 = vmatprep.subr.bf16.mxu1 %v5290_v0  ;;  %v4954_v2 = vld [vmem:[%s7142_s0 + $0x250] ss:$36 sps:$4 sm:$0xff]  }
  0x6a   :  { %2752 = vmatmul.mubr.bf16.gmra.mrb[20].mxu0 %v4878_v3  ;;  %2470 = vmatprep.mubr.bf16.mxu1 %v4881_v4  ;;  %v4956_v3 = vld [vmem:[%s7142_s0 + $0x4cc] ss:$36 sps:$4 sm:$0xff]   ;;  %v4958_v4 = vld [vmem:[%s7142_s0 + $0x29c] ss:$36 sps:$4 sm:$0xff]  }
  0x6b   :  { %2989 = vmatpush1.bf16.msra.mxu0 %v4879_v5  ;;  %2759 = vmatprep.mubr.bf16.mxu0 %v4883_v6  ;;  %v5059_v5 = vld [vmem:[%s7141_s1 + $0x1e0] sm:$0xff]  }
  0x6c   :  { %2990 = vmatprep.subr.bf16.mxu0 %v5290_v0  ;;  %4410 = vmatpush1.bf16.msra.mxu1 %v5434_v24  ;;  %v4906_v24 = vld [vmem:[%s7142_s0 + $0x5c] ss:$36 sps:$4 sm:$0xff]  }
  0x6d   :  { %4395 = vmatprep.subr.bf16.mxu1 %v5290_v0  ;;  %v5848_v6 = vld [vmem:[%s7141_s1 + $0x200] sm:$0xff]  }
  0x6f   :  { %2991 = vmatpush1.bf16.msra.mxu0 %v4880_v7  ;;  %v4960_v7 = vld [vmem:[%s7142_s0 + $0x4c8] ss:$36 sps:$4 sm:$0xff]  }
  0x70   :  { %2992 = vmatprep.subr.bf16.mxu0 %v5290_v0  ;;  %4411 = vmatpush1.bf16.msra.mxu1 %v5445_v26  ;;  %v4916_v26 = vld [vmem:[%s7141_s1 + $0x188] sm:$0xff]  }
  0x71   :  { %2471 = vmatmul.mubr.bf16.gmra.mrb[24].mxu1 %v4885_v8  ;;  %4396 = vmatprep.subr.bf16.mxu1 %v5290_v0  ;;  %v4961_v8 = vld [vmem:[%s7142_s0 + $0x298] ss:$36 sps:$4 sm:$0xff]  }
  0x72   :  { %2760 = vmatmul.mubr.bf16.gmra.mrb[24].mxu0 %v4886_v9  ;;  %2478 = vmatprep.mubr.bf16.mxu1 %v4889_v11  ;;  %v4962_v9 = vld [vmem:[%s7142_s0 + $0x514] ss:$36 sps:$4 sm:$0xff]  }
  0x73   :  { %2993 = vmatpush1.bf16.msra.mxu0 %v4887_v10  ;;  %2767 = vmatprep.mubr.bf16.mxu0 %v4891_v12  ;;  %v4964_v10 = vld [vmem:[%s7142_s0 + $0x2e4] ss:$36 sps:$4 sm:$0xff]   ;;  %v4966_v11 = vld [vmem:[%s7142_s0 + $0x510] ss:$36 sps:$4 sm:$0xff]  }
  0x74   :  { %2994 = vmatprep.subr.bf16.mxu0 %v5290_v0  ;;  %4412 = vmatpush1.bf16.msra.mxu1 %v5456_v28  ;;  %v4910_v28 = vld [vmem:[%s7142_s0 + $0x2d4] ss:$36 sps:$4 sm:$0xff]   ;;  %v4967_v12 = vld [vmem:[%s7142_s0 + $0x2e0] ss:$36 sps:$4 sm:$0xff]  }
  0x75   :  { %4397 = vmatprep.subr.bf16.mxu1 %v5290_v0 }
  0x77   :  { %2995 = vmatpush1.bf16.msra.mxu0 %v4888_v13  ;;  %v4969_v13 = vld [vmem:[%s7142_s0 + $0x55c] ss:$36 sps:$4 sm:$0xff]  }
  0x78   :  { %2996 = vmatprep.subr.bf16.mxu0 %v5290_v0  ;;  %4413 = vmatpush1.bf16.msra.mxu1 %v5467_v30  ;;  %v4929_v30 = vld [vmem:[%s7141_s1 + $0x190] sm:$0xff]  }
  0x79   :  { %2479 = vmatmul.mubr.bf16.gmra.mrb[28].mxu1 %v4893_v14  ;;  %4398 = vmatprep.subr.bf16.mxu1 %v5290_v0  ;;  %v4971_v14 = vld [vmem:[%s7142_s0 + $0x32c] ss:$36 sps:$4 sm:$0xff]  }
  0x7a   :  { %2768 = vmatmul.mubr.bf16.gmra.mrb[28].mxu0 %v4894_v15  ;;  %2486 = vmatprep.mubr.bf16.mxu1 %v4897_v16  ;;  %v5073_v15 = vld [vmem:[%s7141_s1 + $0x1e8] sm:$0xff]   ;;  %v4973_v16 = vld [vmem:[%s7142_s0 + $0x558] ss:$36 sps:$4 sm:$0xff]  }
  0x7b   :  { %2997 = vmatpush1.bf16.msra.mxu0 %v4895_v17  ;;  %3000 = vmatprep.mubr.bf16.mxu0 %v4901_v18  ;;  %v4974_v17 = vld [vmem:[%s7142_s0 + $0x328] ss:$36 sps:$4 sm:$0xff]  }
  0x7c   :  { %2998 = vmatprep.subr.bf16.mxu0 %v5290_v0  ;;  %4414 = vmatpush1.bf16.msra.mxu1 %v5478_v32  ;;  %v4942_v32 = vld [vmem:[%s7141_s1 + $0x198] sm:$0xff]   ;;  %v4975_v18 = vld [vmem:[%s7142_s0 + $0x5a4] ss:$36 sps:$4 sm:$0xff]  }
  0x7d   :  { %4399 = vmatprep.subr.bf16.mxu1 %v5290_v0 }
  0x7f   :  { %2999 = vmatpush1.bf16.msra.mxu0 %v4896_v19  ;;  %v4977_v19 = vld [vmem:[%s7142_s0 + $0x374] ss:$36 sps:$4 sm:$0xff]  }
  0x80   :  { %3257 = vmatprep.subr.bf16.mxu0 %v5290_v0  ;;  %4415 = vmatpush1.bf16.msra.mxu1 %v5489_v34  ;;  %v4917_v34 = vld [vmem:[%s7142_s0 + $0x31c] ss:$36 sps:$4 sm:$0xff]  }
  0x81   :  { %2487 = vmatmul.mubr.bf16.gmra.mrb[32].mxu1 %v4902_v20  ;;  %4304 = vmatprep.subr.bf16.mxu1 %v5848_v6  ;;  %v4979_v20 = vld [vmem:[%s7142_s0 + $0x5a0] ss:$36 sps:$4 sm:$0xff]  }
  0x82   :  { %3001 = vmatmul.mubr.bf16.vlgmr.msra.gmra.mrb[0].mxu0 %v4899_v21  ;;  %2494 = vmatprep.mubr.bf16.mxu1 %v4904_v22  ;;  %v4980_v21 = vld [vmem:[%s7142_s0 + $0x370] ss:$36 sps:$4 sm:$0xff]  }
  0x83   :  { %3258 = vmatpush1.bf16.msra.mxu0 %v4903_v23  ;;  %3008 = vmatprep.mubr.bf16.mxu0 %v4906_v24  ;;  %v4982_v22 = vld [vmem:[%s7142_s0 + $0x5ec] ss:$36 sps:$4 sm:$0xff]   ;;  %v4984_v23 = vld [vmem:[%s7142_s0 + $0x3bc] ss:$36 sps:$4 sm:$0xff]  }
  0x84   :  { %3259 = vmatprep.subr.bf16.mxu0 %v5290_v0  ;;  %v5087_v24 = vld [vmem:[%s7141_s1 + $0x1f0] sm:$0xff]  }
  0x87   :  { %3260 = vmatpush1.bf16.msra.mxu0 %v4916_v26  ;;  %v4987_v26 = vld [vmem:[%s7142_s0 + $0x3b8] ss:$36 sps:$4 sm:$0xff]  }
  0x88   :  { %3261 = vmatprep.subr.bf16.mxu0 %v5290_v0 }
  0x89   :  { %2495 = vmatmul.mubr.bf16.gmra.mrb[36].mxu1 %v4908_v25  ;;  %v4986_v25 = vld [vmem:[%s7142_s0 + $0x5e8] ss:$36 sps:$4 sm:$0xff]  }
  0x8a   :  { %3009 = vmatmul.mubr.bf16.gmra.mrb[4].mxu0 %v4909_v27  ;;  %2502 = vmatprep.mubr.bf16.mxu1 %v4910_v28  ;;  %v4988_v27 = vld [vmem:[%s7142_s0 + $0x634] ss:$36 sps:$4 sm:$0xff]   ;;  %v4990_v28 = vld [vmem:[%s7142_s0 + $0x404] ss:$36 sps:$4 sm:$0xff]  }
  0x8b   :  { %3016 = vmatprep.mubr.bf16.mxu0 %v4912_v29  ;;  %3262 = vmatpush1.bf16.msra.mxu0 %v4929_v30  ;;  %v4993_v29 = vld [vmem:[%s7142_s0 + $0x400] ss:$36 sps:$4 sm:$0xff]  }
  0x8c   :  { %3263 = vmatprep.subr.bf16.mxu0 %v5290_v0  ;;  %v4995_v30 = vld [vmem:[%s7142_s0 + $0x67c] ss:$36 sps:$4 sm:$0xff]  }
  0x8f   :  { %3264 = vmatpush1.bf16.msra.mxu0 %v4942_v32  ;;  %v5100_v32 = vld [vmem:[%s7141_s1 + $0x1f8] sm:$0xff]  }
  0x90   :  { %3265 = vmatprep.subr.bf16.mxu0 %v5290_v0 }
  0x91   :  { %2503 = vmatmul.mubr.bf16.gmra.mrb[40].mxu1 %v4914_v31  ;;  %v4997_v31 = vld [vmem:[%s7142_s0 + $0x44c] ss:$36 sps:$4 sm:$0xff]  }
  0x92   :  { %3017 = vmatmul.mubr.bf16.gmra.mrb[8].mxu0 %v4915_v33  ;;  %2510 = vmatprep.mubr.bf16.mxu1 %v4917_v34  ;;  %v4999_v33 = vld [vmem:[%s7142_s0 + $0x678] ss:$36 sps:$4 sm:$0xff]   ;;  %v5000_v34 = vld [vmem:[%s7142_s0 + $0x448] ss:$36 sps:$4 sm:$0xff]  }
  0x93   :  { %3024 = vmatprep.mubr.bf16.mxu0 %v4919_v35  ;;  %3266 = vmatpush1.bf16.msra.mxu0 %v4955_v36  ;;  %v5001_v35 = vld [vmem:[%s7142_s0 + $0x6c4] ss:$36 sps:$4 sm:$0xff]   ;;  %v5003_v36 = vld [vmem:[%s7142_s0 + $0x494] ss:$36 sps:$4 sm:$0xff]  }
  0x94   :  { %3267 = vmatprep.subr.bf16.mxu0 %v5290_v0 }
  0x97   :  { %3268 = vmatpush1.bf16.msra.mxu0 %v4968_v38  ;;  %v5006_v38 = vld [vmem:[%s7142_s0 + $0x490] ss:$36 sps:$4 sm:$0xff]  }
  0x98   :  { %3269 = vmatprep.subr.bf16.mxu0 %v5290_v0 }
  0x99   :  { %2511 = vmatmul.mubr.bf16.gmra.mrb[44].mxu1 %v4921_v37  ;;  %v5005_v37 = vld [vmem:[%s7142_s0 + $0x6c0] ss:$36 sps:$4 sm:$0xff]  }
  0x9a   :  { %3025 = vmatmul.mubr.bf16.gmra.mrb[12].mxu0 %v4922_v39  ;;  %2518 = vmatprep.mubr.bf16.mxu1 %v4923_v40  ;;  %v5008_v39 = vld [vmem:[%s7142_s0 + $0x70c] ss:$36 sps:$4 sm:$0xff]   ;;  %v5010_v40 = vld [vmem:[%s7142_s0 + $0x4dc] ss:$36 sps:$4 sm:$0xff]  }
  0x9b   :  { %3032 = vmatprep.mubr.bf16.mxu0 %v4925_v41  ;;  %3270 = vmatpush1.bf16.msra.mxu0 %v4981_v42  ;;  %v5012_v41 = vld [vmem:[%s7142_s0 + $0x708] ss:$36 sps:$4 sm:$0xff]   ;;  %v5013_v42 = vld [vmem:[%s7142_s0 + $0x4d8] ss:$36 sps:$4 sm:$0xff]  }
  0x9c   :  { %3271 = vmatprep.subr.bf16.mxu0 %v5290_v0 }
  0x9f   :  { %3272 = vmatpush1.bf16.msra.mxu0 %v4994_v43  ;;  %v5014_v43 = vld [vmem:[%s7142_s0 + $0x754] ss:$36 sps:$4 sm:$0xff]  }
  0xa0   :  { %3273 = vmatprep.subr.bf16.mxu0 %v5290_v0 }
  0xa1   :  { %2519 = vmatmul.mubr.bf16.gmra.mrb[48].mxu1 %v4927_v44  ;;  %v5016_v44 = vld [vmem:[%s7142_s0 + $0x524] ss:$36 sps:$4 sm:$0xff]  }
  0xa2   :  { %3033 = vmatmul.mubr.bf16.gmra.mrb[16].mxu0 %v4928_v45  ;;  %2526 = vmatprep.mubr.bf16.mxu1 %v4930_v46  ;;  %v5018_v45 = vld [vmem:[%s7142_s0 + $0x750] ss:$36 sps:$4 sm:$0xff]   ;;  %v5019_v46 = vld [vmem:[%s7142_s0 + $0x520] ss:$36 sps:$4 sm:$0xff]  }
  0xa3   :  { %3040 = vmatprep.mubr.bf16.mxu0 %v4932_v47  ;;  %3274 = vmatpush1.bf16.msra.mxu0 %v5007_v48  ;;  %v5021_v47 = vld [vmem:[%s7142_s0 + $0x79c] ss:$36 sps:$4 sm:$0xff]   ;;  %v5023_v48 = vld [vmem:[%s7142_s0 + $0x56c] ss:$36 sps:$4 sm:$0xff]  }
  0xa4   :  { %3275 = vmatprep.subr.bf16.mxu0 %v5290_v0 }
  0xa7   :  { %3276 = vmatpush1.bf16.msra.mxu0 %v5020_v49 }
  0xa8   :  { %3277 = vmatprep.subr.bf16.mxu0 %v5290_v0 }
  0xa9   :  { %2527 = vmatmul.mubr.bf16.gmra.mrb[52].mxu1 %v4934_v50 }
  0xaa   :  { %3041 = vmatmul.mubr.bf16.gmra.mrb[20].mxu0 %v4935_v51  ;;  %2534 = vmatprep.mubr.bf16.mxu1 %v4936_v52  ;;  %v5025_v51 = vld [vmem:[%s7142_s0 + $0x798] ss:$36 sps:$4 sm:$0xff]  }
  0xab   :  { %3048 = vmatprep.mubr.bf16.mxu0 %v4938_v53  ;;  %3278 = vmatpush1.bf16.msra.mxu0 %v5033_v54  ;;  %v5026_v53 = vld [vmem:[%s7142_s0 + $0x568] ss:$36 sps:$4 sm:$0xff]  }
  0xac   :  { %3279 = vmatprep.subr.bf16.mxu0 %v5290_v0  ;;  %v5027_v54 = vld [vmem:[%s7142_s0 + $0x7e4] ss:$36 sps:$4 sm:$0xff]  }
  0xaf   :  { %3280 = vmatpush1.bf16.msra.mxu0 %v5046_v59  ;;  %v5031_v59 = vld [vmem:[%s7142_s0 + $0x7e0] ss:$36 sps:$4 sm:$0xff]  }
  0xb0   :  { %3281 = vmatprep.subr.bf16.mxu0 %v5290_v0 }
  0xb1   :  { %2535 = vmatmul.mubr.bf16.gmra.mrb[56].mxu1 %v4940_v55 }
  0xb2   :  { %3049 = vmatmul.mubr.bf16.gmra.mrb[24].mxu0 %v4941_v56  ;;  %2542 = vmatprep.mubr.bf16.mxu1 %v4943_v57  ;;  %v5029_v56 = vld [vmem:[%s7142_s0 + $0x5b4] ss:$36 sps:$4 sm:$0xff]  }
  0xb3   :  { %3056 = vmatprep.mubr.bf16.mxu0 %v4945_v58  ;;  %3282 = vmatpush1.bf16.msra.mxu0 %v5059_v5 }
  0xb4   :  { %3283 = vmatprep.subr.bf16.mxu0 %v5290_v0 }
  0xb7   :  { %3284 = vmatpush1.bf16.msra.mxu0 %v5073_v15  ;;  %v5045_v15 = vld [vmem:[%s7142_s0 + $0x640] ss:$36 sps:$4 sm:$0xff]  }
  0xb8   :  { %3285 = vmatprep.subr.bf16.mxu0 %v5290_v0 }
  0xb9   :  { %2543 = vmatmul.mubr.bf16.gmra.mrb[60].mxu1 %v4947_v60 }
  0xba   :  { %3057 = vmatmul.mubr.bf16.gmra.mrb[28].mxu0 %v4948_v61  ;;  %2550 = vmatprep.mubr.bf16.mxu1 %v4949_v62  ;;  %v5032_v61 = vld [vmem:[%s7142_s0 + $0x5b0] ss:$36 sps:$4 sm:$0xff]  }
  0xbb   :  { %3064 = vmatprep.mubr.bf16.mxu0 %v4951_v63  ;;  %3286 = vmatpush1.bf16.msra.mxu0 %v5087_v24  ;;  %v5034_v62 = vld [vmem:[%s7142_s0 + $0x82c] ss:$36 sps:$4 sm:$0xff]  }
  0xbc   :  { %3287 = vmatprep.subr.bf16.mxu0 %v5290_v0  ;;  %v4992_v0 = vld [vmem:[%s7142_s0 + $0x630] ss:$36 sps:$4 sm:$0xff]  }
  0xbd   :  { %v5055_v24 = vld [vmem:[%s7142_s0 + $0x24c] ss:$36 sps:$4 sm:$0xff]  }
  0xbf   :  { %3288 = vmatpush1.bf16.msra.mxu0 %v5100_v32  ;;  %v5061_v32 = vld [vmem:[%s7142_s0 + $0x294] ss:$36 sps:$4 sm:$0xff]  }
  0xc1   :  { %2551 = vmatmul.mubr.bf16.gmra.mrb[64].mxu1 %v4953_v1  ;;  %v5036_v1 = vld [vmem:[%s7142_s0 + $0x5fc] ss:$36 sps:$4 sm:$0xff]  }
  0xc2   :  { %3065 = vmatmul.mubr.bf16.gmra.mrb[32].mxu0 %v4954_v2  ;;  %2558 = vmatprep.mubr.bf16.mxu1 %v4956_v3 }
  0xc3   :  { %3072 = vmatprep.mubr.bf16.mxu0 %v4958_v4  ;;  %v5038_v4 = vld [vmem:[%s7142_s0 + $0x828] ss:$36 sps:$4 sm:$0xff]  }
  0xc9   :  { %2559 = vmatmul.mubr.bf16.gmra.mrb[68].mxu1 %v4960_v7  ;;  %v5039_v7 = vld [vmem:[%s7142_s0 + $0x5f8] ss:$36 sps:$4 sm:$0xff]  }
  0xca   :  { %3073 = vmatmul.mubr.bf16.gmra.mrb[36].mxu0 %v4961_v8  ;;  %2566 = vmatprep.mubr.bf16.mxu1 %v4962_v9  ;;  %v5040_v8 = vld [vmem:[%s7142_s0 + $0x874] ss:$36 sps:$4 sm:$0xff]  }
  0xcb   :  { %3080 = vmatprep.mubr.bf16.mxu0 %v4964_v10  ;;  %v5042_v10 = vld [vmem:[%s7142_s0 + $0x644] ss:$36 sps:$4 sm:$0xff]  }
  0xd1   :  { %2567 = vmatmul.mubr.bf16.gmra.mrb[72].mxu1 %v4966_v11 }
  0xd2   :  { %3081 = vmatmul.mubr.bf16.gmra.mrb[40].mxu0 %v4967_v12  ;;  %2574 = vmatprep.mubr.bf16.mxu1 %v4969_v13  ;;  %v5044_v13 = vld [vmem:[%s7142_s0 + $0x870] ss:$36 sps:$4 sm:$0xff]  }
  0xd3   :  { %3088 = vmatprep.mubr.bf16.mxu0 %v4971_v14 }
  0xd9   :  { %2575 = vmatmul.mubr.bf16.gmra.mrb[76].mxu1 %v4973_v16  ;;  %v5047_v16 = vld [vmem:[%s7142_s0 + $0x8bc] ss:$36 sps:$4 sm:$0xff]  }
  0xda   :  { %3089 = vmatmul.mubr.bf16.gmra.mrb[44].mxu0 %v4974_v17  ;;  %2582 = vmatprep.mubr.bf16.mxu1 %v4975_v18  ;;  %v5049_v18 = vld [vmem:[%s7142_s0 + $0x68c] ss:$36 sps:$4 sm:$0xff]  }
  0xdb   :  { %3096 = vmatprep.mubr.bf16.mxu0 %v4977_v19 }
  0xe1   :  { %2583 = vmatmul.mubr.bf16.gmra.mrb[80].mxu1 %v4979_v20 }
  0xe2   :  { %3097 = vmatmul.mubr.bf16.gmra.mrb[48].mxu0 %v4980_v21  ;;  %2590 = vmatprep.mubr.bf16.mxu1 %v4982_v22  ;;  %v5051_v21 = vld [vmem:[%s7142_s0 + $0x8b8] ss:$36 sps:$4 sm:$0xff]  }
  0xe3   :  { %3104 = vmatprep.mubr.bf16.mxu0 %v4984_v23  ;;  %v5052_v23 = vld [vmem:[%s7142_s0 + $0x688] ss:$36 sps:$4 sm:$0xff]  }
  0xe9   :  { %2591 = vmatmul.mubr.bf16.gmra.mrb[84].mxu1 %v4986_v25 }
  0xea   :  { %3105 = vmatmul.mubr.bf16.gmra.mrb[52].mxu0 %v4987_v26  ;;  %2598 = vmatprep.mubr.bf16.mxu1 %v4988_v27  ;;  %v5056_v26 = vld [vmem:[%s7142_s0 + $0x6d4] ss:$36 sps:$4 sm:$0xff]  }
  0xeb   :  { %3112 = vmatprep.mubr.bf16.mxu0 %v4990_v28 }
  0xf1   :  { %2599 = vmatmul.mubr.bf16.gmra.mrb[88].mxu1 %v4992_v0  ;;  %v5053_v0 = vld [vmem:[%s7142_s0 + $0x248] ss:$36 sps:$4 sm:$0xff]  }
  0xf2   :  { %3113 = vmatmul.mubr.bf16.gmra.mrb[56].mxu0 %v4993_v29  ;;  %2606 = vmatprep.mubr.bf16.mxu1 %v4995_v30  ;;  %v5058_v30 = vld [vmem:[%s7142_s0 + $0x6d0] ss:$36 sps:$4 sm:$0xff]  }
  0xf3   :  { %3120 = vmatprep.mubr.bf16.mxu0 %v4997_v31 }
  0xf9   :  { %2607 = vmatmul.mubr.bf16.gmra.mrb[92].mxu1 %v4999_v33  ;;  %v5063_v33 = vld [vmem:[%s7142_s0 + $0x71c] ss:$36 sps:$4 sm:$0xff]  }
  0xfa   :  { %3121 = vmatmul.mubr.bf16.gmra.mrb[60].mxu0 %v5000_v34  ;;  %2614 = vmatprep.mubr.bf16.mxu1 %v5001_v35  ;;  %v5080_v34 = vld [vmem:[%s7141_s1 + $0x208] sm:$0xff]   ;;  %v5101_v35 = vld [vmem:[%s7141_s1 + $0x210] sm:$0xff]  }
  0xfb   :  { %3128 = vmatprep.mubr.bf16.mxu0 %v5003_v36 }
 0x101   :  { %2615 = vmatmul.mubr.bf16.gmra.mrb[96].mxu1 %v5005_v37 }
 0x102   :  { %3129 = vmatmul.mubr.bf16.gmra.mrb[64].mxu0 %v5006_v38  ;;  %2622 = vmatprep.mubr.bf16.mxu1 %v5008_v39  ;;  %v5065_v38 = vld [vmem:[%s7142_s0 + $0x290] ss:$36 sps:$4 sm:$0xff]  }
 0x103   :  { %3136 = vmatprep.mubr.bf16.mxu0 %v5010_v40  ;;  %v5067_v40 = vld [vmem:[%s7142_s0 + $0x2dc] ss:$36 sps:$4 sm:$0xff]  }
 0x109   :  { %2623 = vmatmul.mubr.bf16.gmra.mrb[100].mxu1 %v5012_v41 }
 0x10a   :  { %3137 = vmatmul.mubr.bf16.gmra.mrb[68].mxu0 %v5013_v42  ;;  %2630 = vmatprep.mubr.bf16.mxu1 %v5014_v43  ;;  %v5069_v42 = vld [vmem:[%s7142_s0 + $0x764] ss:$36 sps:$4 sm:$0xff]   ;;  %v5120_v43 = vld [vmem:[%s7141_s1 + $0x218] sm:$0xff]  }
 0x10b   :  { %3144 = vmatprep.mubr.bf16.mxu0 %v5016_v44 }
 0x111   :  { %2631 = vmatmul.mubr.bf16.gmra.mrb[104].mxu1 %v5018_v45  ;;  %v5139_v45 = vld [vmem:[%s7141_s1 + $0x220] sm:$0xff]  }
 0x112   :  { %3145 = vmatmul.mubr.bf16.gmra.mrb[72].mxu0 %v5019_v46  ;;  %2638 = vmatprep.mubr.bf16.mxu1 %v5021_v47  ;;  %v5071_v47 = vld [vmem:[%s7142_s0 + $0x2d8] ss:$36 sps:$4 sm:$0xff]  }
 0x113   :  { %3152 = vmatprep.mubr.bf16.mxu0 %v5023_v48 }
 0x114   :  { %v5983_v49 = vpop.f32.mrb[0].mxu1 }
 0x115   :  { %v2426_v50 = vpop.f32.mrb[1].mxu1 }
 0x116   :  { %v5988_v52 = vpop.f32.mrb[2].mxu1  ;;  %v5072_v50 = vld [vmem:[%s7142_s0 + $0x760] ss:$36 sps:$4 sm:$0xff]  }
 0x117   :  { %v2429_v55 = vpop.f32.mrb[3].mxu1 }
 0x118   :  { %v5158_v55 = vld [vmem:[%s7141_s1 + $0x228] sm:$0xff]  }
 0x119   :  { %2639 = vmatmul.mubr.bf16.gmra.mrb[108].mxu1 %v5025_v51  ;;  %v5074_v51 = vld [vmem:[%s7142_s0 + $0x324] ss:$36 sps:$4 sm:$0xff]  }
 0x11a   :  { %3153 = vmatmul.mubr.bf16.gmra.mrb[76].mxu0 %v5026_v53  ;;  %2646 = vmatprep.mubr.bf16.mxu1 %v5027_v54  ;;  %v5076_v54 = vld [vmem:[%s7142_s0 + $0x7ac] ss:$36 sps:$4 sm:$0xff]  }
 0x11b   :  { %3160 = vmatprep.mubr.bf16.mxu0 %v5029_v56  ;;  %v5177_v56 = vld [vmem:[%s7141_s1 + $0x230] sm:$0xff]  }
 0x11c   :  { %v5999_v57 = vpop.f32.mrb[4].mxu1 }
 0x11d   :  { %v2434_v58 = vpop.f32.mrb[5].mxu1 }
 0x11e   :  { %v6004_v60 = vpop.f32.mrb[6].mxu1  ;;  %v5078_v58 = vld [vmem:[%s7142_s0 + $0x320] ss:$36 sps:$4 sm:$0xff]  }
 0x11f   :  { %v2437_v63 = vpop.f32.mrb[7].mxu1 }
 0x120   :  { %v5085_v63 = vld [vmem:[%s7142_s0 + $0x368] ss:$36 sps:$4 sm:$0xff]  }
 0x121   :  { %2647 = vmatmul.mubr.bf16.gmra.mrb[112].mxu1 %v5031_v59  ;;  %v5079_v59 = vld [vmem:[%s7142_s0 + $0x7a8] ss:$36 sps:$4 sm:$0xff]  }
 0x122   :  { %3161 = vmatmul.mubr.bf16.gmra.mrb[80].mxu0 %v5032_v61  ;;  %2654 = vmatprep.mubr.bf16.mxu1 %v5034_v62  ;;  %v5081_v61 = vld [vmem:[%s7142_s0 + $0x36c] ss:$36 sps:$4 sm:$0xff]   ;;  %v5083_v62 = vld [vmem:[%s7142_s0 + $0x7f4] ss:$36 sps:$4 sm:$0xff]  }
 0x123   :  { %3168 = vmatprep.mubr.bf16.mxu0 %v5036_v1  ;;  %v5086_v1 = vld [vmem:[%s7142_s0 + $0x7f0] ss:$36 sps:$4 sm:$0xff]  }
 0x124   :  { %v6015_v2 = vpop.f32.mrb[8].mxu1 }
 0x125   :  { %v2442_v3 = vpop.f32.mrb[9].mxu1 }
 0x126   :  { %v6020_v5 = vpop.f32.mrb[10].mxu1  ;;  %v5088_v3 = vld [vmem:[%s7142_s0 + $0x3b4] ss:$36 sps:$4 sm:$0xff]  }
 0x127   :  { %v2445_v9 = vpop.f32.mrb[11].mxu1 }
 0x128   :  { %v5094_v9 = vld [vmem:[%s7142_s0 + $0x3fc] ss:$36 sps:$4 sm:$0xff]  }
 0x129   :  { %2655 = vmatmul.mubr.bf16.gmra.mrb[116].mxu1 %v5038_v4  ;;  %v5090_v4 = vld [vmem:[%s7142_s0 + $0x83c] ss:$36 sps:$4 sm:$0xff]  }
 0x12a   :  { %3169 = vmatmul.mubr.bf16.gmra.mrb[84].mxu0 %v5039_v7  ;;  %2662 = vmatprep.mubr.bf16.mxu1 %v5040_v8  ;;  %v5092_v7 = vld [vmem:[%s7142_s0 + $0x3b0] ss:$36 sps:$4 sm:$0xff]   ;;  %v5093_v8 = vld [vmem:[%s7142_s0 + $0x838] ss:$36 sps:$4 sm:$0xff]  }
 0x12b   :  { %3176 = vmatprep.mubr.bf16.mxu0 %v5042_v10  ;;  %v5096_v10 = vld [vmem:[%s7142_s0 + $0x884] ss:$36 sps:$4 sm:$0xff]  }
 0x12c   :  { %v6031_v11 = vpop.f32.mrb[12].mxu1 }
 0x12d   :  { %v2450_v12 = vpop.f32.mrb[13].mxu1 }
 0x12e   :  { %v6036_v14 = vpop.f32.mrb[14].mxu1  ;;  %v5196_v12 = vld [vmem:[%s7141_s1 + $0x238] sm:$0xff]  }
 0x12f   :  { %v2453_v17 = vpop.f32.mrb[15].mxu1 }
 0x130   :  { %v5104_v17 = vld [vmem:[%s7142_s0 + $0x8cc] ss:$36 sps:$4 sm:$0xff]  }
 0x131   :  { %2663 = vmatmul.mubr.bf16.gmra.mrb[120].mxu1 %v5044_v13  ;;  %v5098_v13 = vld [vmem:[%s7142_s0 + $0x3f8] ss:$36 sps:$4 sm:$0xff]  }
 0x132   :  { %3177 = vmatmul.mubr.bf16.gmra.mrb[88].mxu0 %v5045_v15  ;;  %2670 = vmatprep.mubr.bf16.mxu1 %v5047_v16  ;;  %v5099_v15 = vld [vmem:[%s7142_s0 + $0x880] ss:$36 sps:$4 sm:$0xff]  }
 0x133   :  { %3184 = vmatprep.mubr.bf16.mxu0 %v5049_v18  ;;  %v5102_v16 = vld [vmem:[%s7142_s0 + $0x444] ss:$36 sps:$4 sm:$0xff]  }
 0x134   :  { %v6047_v19 = vpop.f32.mrb[16].mxu1  ;;  %v5106_v18 = vld [vmem:[%s7142_s0 + $0x440] ss:$36 sps:$4 sm:$0xff]  }
 0x135   :  { %v2458_v20 = vpop.f32.mrb[17].mxu1 }
 0x136   :  { %v6052_v22 = vpop.f32.mrb[18].mxu1  ;;  %v5107_v20 = vld [vmem:[%s7142_s0 + $0x8c8] ss:$36 sps:$4 sm:$0xff]  }
 0x137   :  { %v2461_v25 = vpop.f32.mrb[19].mxu1 }
 0x138   :  { %v5110_v25 = vld [vmem:[%s7142_s0 + $0x18] ss:$36 sps:$4 sm:$0xff]  }
 0x139   :  { %2671 = vmatmul.mubr.bf16.gmra.mrb[124].mxu1 %v5051_v21  ;;  %v5108_v21 = vld [vmem:[%s7142_s0 + $0x48c] ss:$36 sps:$4 sm:$0xff]  }
 0x13a   :  { %3185 = vmatmul.mubr.bf16.gmra.mrb[92].mxu0 %v5052_v23  ;;  %2775 = vmatprep.mubr.bf16.mxu1 %v5055_v24  ;;  %v5112_v23 = vld [vmem:[%s7142_s0 + $0x1c] ss:$36 sps:$4 sm:$0xff]   ;;  %v5113_v24 = vld [vmem:[%s7142_s0 + $0x488] ss:$36 sps:$4 sm:$0xff]  }
 0x13b   :  { %3192 = vmatprep.mubr.bf16.mxu0 %v5056_v26  ;;  %v5114_v26 = vld [vmem:[%s7142_s0 + $0x4d4] ss:$36 sps:$4 sm:$0xff]  }
 0x13c   :  { %v6063_v27 = vpop.f32.mrb[20].mxu1 }
 0x13d   :  { %v2466_v28 = vpop.f32.mrb[21].mxu1 }
 0x13e   :  { %v6068_v29 = vpop.f32.mrb[22].mxu1  ;;  %v5116_v28 = vld [vmem:[%s7142_s0 + $0x64] ss:$36 sps:$4 sm:$0xff]  }
 0x13f   :  { %v2469_v31 = vpop.f32.mrb[23].mxu1 }
 0x140   :  { %v5121_v31 = vld [vmem:[%s7142_s0 + $0x51c] ss:$36 sps:$4 sm:$0xff]  }
 0x141   :  { %2776 = vmatmul.mubr.bf16.vlgmr.msra.gmra.mrb[32].mxu1 %v5053_v0  ;;  %v5118_v0 = vld [vmem:[%s7142_s0 + $0x4d0] ss:$36 sps:$4 sm:$0xff]  }
 0x142   :  { %3193 = vmatmul.mubr.bf16.gmra.mrb[96].mxu0 %v5058_v30  ;;  %4305 = vmatpush3.bf16.msra.mxu1 %v5848_v6  ;;  %v5066_v6 = vld [vmem:[%s7142_s0 + $0x718] ss:$36 sps:$4 sm:$0xff]   ;;  %v5119_v30 = vld [vmem:[%s7142_s0 + $0x60] ss:$36 sps:$4 sm:$0xff]  }
 0x143   :  { %2783 = vmatprep.mubr.bf16.mxu1 %v5061_v32  ;;  %3200 = vmatprep.mubr.bf16.mxu0 %v5063_v33  ;;  %v5123_v32 = vld [vmem:[%s7142_s0 + $0xac] ss:$36 sps:$4 sm:$0xff]   ;;  %v5125_v33 = vld [vmem:[%s7142_s0 + $0x518] ss:$36 sps:$4 sm:$0xff]  }
 0x144   :  { %v6086_v36 = vpop.f32.mrb[24].mxu1  ;;  %4306 = vmatprep.subr.bf16.mxu1 %v5080_v34 }
 0x145   :  { %v2474_v37 = vpop.f32.mrb[25].mxu1 }
 0x146   :  { %v6091_v39 = vpop.f32.mrb[26].mxu1  ;;  %4307 = vmatpush3.bf16.msra.mxu1 %v5080_v34  ;;  %v5126_v34 = vld [vmem:[%s7142_s0 + $0xa8] ss:$36 sps:$4 sm:$0xff]   ;;  %v5129_v37 = vld [vmem:[%s7142_s0 + $0xf4] ss:$36 sps:$4 sm:$0xff]  }
 0x147   :  { %v2477_v41 = vpop.f32.mrb[27].mxu1  ;;  %4308 = vmatprep.subr.bf16.mxu1 %v5101_v35 }
 0x148   :  { %v5135_v41 = vld [vmem:[%s7142_s0 + $0x13c] ss:$36 sps:$4 sm:$0xff]  }
 0x149   :  { %2784 = vmatmul.mubr.bf16.gmra.mrb[36].mxu1 %v5065_v38  ;;  %v5131_v38 = vld [vmem:[%s7142_s0 + $0x560] ss:$36 sps:$4 sm:$0xff]  }
 0x14a   :  { %3201 = vmatmul.mubr.bf16.gmra.mrb[100].mxu0 %v5066_v6  ;;  %2791 = vmatprep.mubr.bf16.mxu1 %v5067_v40  ;;  %v5132_v6 = vld [vmem:[%s7142_s0 + $0xf0] ss:$36 sps:$4 sm:$0xff]  }
 0x14b   :  { %3208 = vmatprep.mubr.bf16.mxu0 %v5069_v42  ;;  %4309 = vmatpush3.bf16.msra.mxu1 %v5101_v35  ;;  %v5127_v35 = vld [vmem:[%s7142_s0 + $0x564] ss:$36 sps:$4 sm:$0xff]   ;;  %v5133_v40 = vld [vmem:[%s7142_s0 + $0x5ac] ss:$36 sps:$4 sm:$0xff]  }
 0x14c   :  { %v6105_v44 = vpop.f32.mrb[28].mxu1  ;;  %4310 = vmatprep.subr.bf16.mxu1 %v5120_v43  ;;  %v5137_v42 = vld [vmem:[%s7142_s0 + $0x5a8] ss:$36 sps:$4 sm:$0xff]  }
 0x14d   :  { %v2482_v46 = vpop.f32.mrb[29].mxu1 }
 0x14e   :  { %v6113_v48 = vpop.f32.mrb[30].mxu1  ;;  %v5142_v46 = vld [vmem:[%s7142_s0 + $0x184] ss:$36 sps:$4 sm:$0xff]  }
 0x14f   :  { %v2485_v53 = vpop.f32.mrb[31].mxu1  ;;  %4311 = vmatpush3.bf16.msra.mxu1 %v5120_v43  ;;  %v5138_v43 = vld [vmem:[%s7142_s0 + $0x138] ss:$36 sps:$4 sm:$0xff]  }
 0x150   :  { %4312 = vmatprep.subr.bf16.mxu1 %v5139_v45  ;;  %v5148_v53 = vld [vmem:[%s7142_s0 + $0x1cc] ss:$36 sps:$4 sm:$0xff]  }
 0x151   :  { %2792 = vmatmul.mubr.bf16.gmra.mrb[40].mxu1 %v5071_v47  ;;  %v5144_v47 = vld [vmem:[%s7142_s0 + $0x5f0] ss:$36 sps:$4 sm:$0xff]  }
 0x152   :  { %3209 = vmatmul.mubr.bf16.gmra.mrb[104].mxu0 %v5072_v50  ;;  %2799 = vmatprep.mubr.bf16.mxu1 %v5074_v51  ;;  %v5145_v50 = vld [vmem:[%s7142_s0 + $0x180] ss:$36 sps:$4 sm:$0xff]  }
 0x153   :  { %3216 = vmatprep.mubr.bf16.mxu0 %v5076_v54  ;;  %4313 = vmatpush3.bf16.msra.mxu1 %v5139_v45  ;;  %v5140_v45 = vld [vmem:[%s7142_s0 + $0x5f4] ss:$36 sps:$4 sm:$0xff]   ;;  %v5146_v51 = vld [vmem:[%s7142_s0 + $0x63c] ss:$36 sps:$4 sm:$0xff]  }
 0x154   :  { %4314 = vmatprep.subr.bf16.mxu1 %v5158_v55  ;;  %v5150_v54 = vld [vmem:[%s7142_s0 + $0x638] ss:$36 sps:$4 sm:$0xff]  }
 0x157   :  { %4315 = vmatpush3.bf16.msra.mxu1 %v5158_v55  ;;  %v5151_v55 = vld [vmem:[%s7142_s0 + $0x1c8] ss:$36 sps:$4 sm:$0xff]  }
 0x158   :  { %4316 = vmatprep.subr.bf16.mxu1 %v5177_v56 }
 0x159   :  { %2800 = vmatmul.mubr.bf16.gmra.mrb[44].mxu1 %v5078_v58  ;;  %v5154_v58 = vld [vmem:[%s7142_s0 + $0x214] ss:$36 sps:$4 sm:$0xff]  }
 0x15a   :  { %3217 = vmatmul.mubr.bf16.gmra.mrb[108].mxu0 %v5079_v59  ;;  %2807 = vmatprep.mubr.bf16.mxu1 %v5081_v61  ;;  %v5156_v59 = vld [vmem:[%s7142_s0 + $0x680] ss:$36 sps:$4 sm:$0xff]   ;;  %v5157_v61 = vld [vmem:[%s7142_s0 + $0x210] ss:$36 sps:$4 sm:$0xff]  }
 0x15b   :  { %3224 = vmatprep.mubr.bf16.mxu0 %v5083_v62  ;;  %4317 = vmatpush3.bf16.msra.mxu1 %v5177_v56  ;;  %v5152_v56 = vld [vmem:[%s7142_s0 + $0x684] ss:$36 sps:$4 sm:$0xff]   ;;  %v5159_v62 = vld [vmem:[%s7142_s0 + $0x6cc] ss:$36 sps:$4 sm:$0xff]  }
 0x15c   :  { %4318 = vmatprep.subr.bf16.mxu1 %v5196_v12 }
 0x15f   :  { %4319 = vmatpush3.bf16.msra.mxu1 %v5196_v12  ;;  %v5173_v12 = vld [vmem:[%s7142_s0 + $0x2ec] ss:$36 sps:$4 sm:$0xff]  }
 0x161   :  { %2808 = vmatmul.mubr.bf16.gmra.mrb[48].mxu1 %v5085_v63  ;;  %v5161_v63 = vld [vmem:[%s7142_s0 + $0x25c] ss:$36 sps:$4 sm:$0xff]  }
 0x162   :  { %3225 = vmatmul.mubr.bf16.gmra.mrb[112].mxu0 %v5086_v1  ;;  %2815 = vmatprep.mubr.bf16.mxu1 %v5088_v3  ;;  %v5163_v1 = vld [vmem:[%s7142_s0 + $0x6c8] ss:$36 sps:$4 sm:$0xff]   ;;  %v5164_v3 = vld [vmem:[%s7142_s0 + $0x258] ss:$36 sps:$4 sm:$0xff]  }
 0x163   :  { %3232 = vmatprep.mubr.bf16.mxu0 %v5090_v4  ;;  %v5165_v4 = vld [vmem:[%s7142_s0 + $0x714] ss:$36 sps:$4 sm:$0xff]  }
 0x169   :  { %2816 = vmatmul.mubr.bf16.gmra.mrb[52].mxu1 %v5092_v7  ;;  %v5167_v7 = vld [vmem:[%s7142_s0 + $0x2a4] ss:$36 sps:$4 sm:$0xff]  }
 0x16a   :  { %3233 = vmatmul.mubr.bf16.gmra.mrb[116].mxu0 %v5093_v8  ;;  %2823 = vmatprep.mubr.bf16.mxu1 %v5094_v9  ;;  %v5169_v8 = vld [vmem:[%s7142_s0 + $0x710] ss:$36 sps:$4 sm:$0xff]   ;;  %v5170_v9 = vld [vmem:[%s7142_s0 + $0x2a0] ss:$36 sps:$4 sm:$0xff]  }
 0x16b   :  { %3240 = vmatprep.mubr.bf16.mxu0 %v5096_v10  ;;  %v5171_v10 = vld [vmem:[%s7142_s0 + $0x75c] ss:$36 sps:$4 sm:$0xff]  }
 0x171   :  { %2824 = vmatmul.mubr.bf16.gmra.mrb[56].mxu1 %v5098_v13  ;;  %v5175_v13 = vld [vmem:[%s7142_s0 + $0x758] ss:$36 sps:$4 sm:$0xff]  }
 0x172   :  { %3241 = vmatmul.mubr.bf16.gmra.mrb[120].mxu0 %v5099_v15  ;;  %2831 = vmatprep.mubr.bf16.mxu1 %v5102_v16  ;;  %v5176_v15 = vld [vmem:[%s7142_s0 + $0x2e8] ss:$36 sps:$4 sm:$0xff]  }
 0x173   :  { %3248 = vmatprep.mubr.bf16.mxu0 %v5104_v17  ;;  %v5178_v16 = vld [vmem:[%s7142_s0 + $0x7a4] ss:$36 sps:$4 sm:$0xff]   ;;  %v5180_v17 = vld [vmem:[%s7142_s0 + $0x334] ss:$36 sps:$4 sm:$0xff]  }
 0x179   :  { %2832 = vmatmul.mubr.bf16.gmra.mrb[60].mxu1 %v5106_v18  ;;  %v5182_v18 = vld [vmem:[%s7142_s0 + $0x7a0] ss:$36 sps:$4 sm:$0xff]  }
 0x17a   :  { %3249 = vmatmul.mubr.bf16.gmra.mrb[124].mxu0 %v5107_v20  ;;  %2839 = vmatprep.mubr.bf16.mxu1 %v5108_v21  ;;  %v5183_v20 = vld [vmem:[%s7142_s0 + $0x330] ss:$36 sps:$4 sm:$0xff]  }
 0x17b   :  { %3289 = vmatprep.mubr.bf16.mxu0 %v5112_v23  ;;  %v5184_v21 = vld [vmem:[%s7142_s0 + $0x7ec] ss:$36 sps:$4 sm:$0xff]   ;;  %v5186_v23 = vld [vmem:[%s7142_s0 + $0x37c] ss:$36 sps:$4 sm:$0xff]  }
 0x181   :  { %2840 = vmatmul.mubr.bf16.gmra.mrb[64].mxu1 %v5113_v24  ;;  %v5188_v24 = vld [vmem:[%s7142_s0 + $0x7e8] ss:$36 sps:$4 sm:$0xff]  }
 0x182   :  { %3290 = vmatmul.mubr.bf16.vlgmr.msra.gmra.mrb[0].mxu0 %v5110_v25  ;;  %2847 = vmatprep.mubr.bf16.mxu1 %v5114_v26  ;;  %v5189_v25 = vld [vmem:[%s7142_s0 + $0x378] ss:$36 sps:$4 sm:$0xff]  }
 0x183   :  { %3297 = vmatprep.mubr.bf16.mxu0 %v5116_v28  ;;  %v5190_v26 = vld [vmem:[%s7142_s0 + $0x834] ss:$36 sps:$4 sm:$0xff]   ;;  %v5192_v28 = vld [vmem:[%s7142_s0 + $0x3c4] ss:$36 sps:$4 sm:$0xff]  }
 0x189   :  { %2848 = vmatmul.mubr.bf16.gmra.mrb[68].mxu1 %v5118_v0  ;;  %v5194_v0 = vld [vmem:[%s7142_s0 + $0x830] ss:$36 sps:$4 sm:$0xff]  }
 0x18a   :  { %3298 = vmatmul.mubr.bf16.gmra.mrb[4].mxu0 %v5119_v30  ;;  %2855 = vmatprep.mubr.bf16.mxu1 %v5121_v31  ;;  %v5195_v30 = vld [vmem:[%s7142_s0 + $0x3c0] ss:$36 sps:$4 sm:$0xff]  }
 0x18b   :  { %3305 = vmatprep.mubr.bf16.mxu0 %v5123_v32  ;;  %v5197_v31 = vld [vmem:[%s7142_s0 + $0x87c] ss:$36 sps:$4 sm:$0xff]   ;;  %v5199_v32 = vld [vmem:[%s7142_s0 + $0x40c] ss:$36 sps:$4 sm:$0xff]  }
 0x191   :  { %2856 = vmatmul.mubr.bf16.gmra.mrb[72].mxu1 %v5125_v33  ;;  %v5201_v33 = vld [vmem:[%s7142_s0 + $0x878] ss:$36 sps:$4 sm:$0xff]  }
 0x192   :  { %3306 = vmatmul.mubr.bf16.gmra.mrb[8].mxu0 %v5126_v34  ;;  %2863 = vmatprep.mubr.bf16.mxu1 %v5127_v35  ;;  %v5202_v34 = vld [vmem:[%s7142_s0 + $0x408] ss:$36 sps:$4 sm:$0xff]  }
 0x193   :  { %3313 = vmatprep.mubr.bf16.mxu0 %v5129_v37  ;;  %v5203_v35 = vld [vmem:[%s7142_s0 + $0x8c4] ss:$36 sps:$4 sm:$0xff]   ;;  %v5205_v37 = vld [vmem:[%s7142_s0 + $0x454] ss:$36 sps:$4 sm:$0xff]  }
 0x199   :  { %2864 = vmatmul.mubr.bf16.gmra.mrb[76].mxu1 %v5131_v38  ;;  %v5207_v38 = vld [vmem:[%s7142_s0 + $0x8c0] ss:$36 sps:$4 sm:$0xff]  }
 0x19a   :  { %3314 = vmatmul.mubr.bf16.gmra.mrb[12].mxu0 %v5132_v6  ;;  %2871 = vmatprep.mubr.bf16.mxu1 %v5133_v40  ;;  %v5208_v6 = vld [vmem:[%s7142_s0 + $0x450] ss:$36 sps:$4 sm:$0xff]   ;;  %v5211_v40 = vld [vmem:[%s7142_s0 + $0x20] ss:$36 sps:$4 sm:$0xff]  }
 0x19b   :  { %3321 = vmatprep.mubr.bf16.mxu0 %v5135_v41  ;;  %v5209_v41 = vld [vmem:[%s7142_s0 + $0x49c] ss:$36 sps:$4 sm:$0xff]  }
 0x1a1   :  { %2872 = vmatmul.mubr.bf16.gmra.mrb[80].mxu1 %v5137_v42  ;;  %v5213_v42 = vld [vmem:[%s7142_s0 + $0x68] ss:$36 sps:$4 sm:$0xff]  }
 0x1a2   :  { %3322 = vmatmul.mubr.bf16.gmra.mrb[16].mxu0 %v5138_v43  ;;  %2879 = vmatprep.mubr.bf16.mxu1 %v5140_v45  ;;  %v5212_v43 = vld [vmem:[%s7142_s0 + $0x498] ss:$36 sps:$4 sm:$0xff]   ;;  %v5216_v45 = vld [vmem:[%s7142_s0 + $0xb0] ss:$36 sps:$4 sm:$0xff]  }
 0x1a3   :  { %3329 = vmatprep.mubr.bf16.mxu0 %v5142_v46  ;;  %v5214_v46 = vld [vmem:[%s7142_s0 + $0x4e4] ss:$36 sps:$4 sm:$0xff]  }
 0x1a9   :  { %2880 = vmatmul.mubr.bf16.gmra.mrb[84].mxu1 %v5144_v47  ;;  %v5218_v47 = vld [vmem:[%s7142_s0 + $0xf8] ss:$36 sps:$4 sm:$0xff]  }
 0x1aa   :  { %3330 = vmatmul.mubr.bf16.gmra.mrb[20].mxu0 %v5145_v50  ;;  %2887 = vmatprep.mubr.bf16.mxu1 %v5146_v51  ;;  %v5217_v50 = vld [vmem:[%s7142_s0 + $0x4e0] ss:$36 sps:$4 sm:$0xff]  }
 0x1ab   :  { %3337 = vmatprep.mubr.bf16.mxu0 %v5148_v53  ;;  %v5221_v51 = vld [vmem:[%s7142_s0 + $0x140] ss:$36 sps:$4 sm:$0xff]   ;;  %v5219_v53 = vld [vmem:[%s7142_s0 + $0x52c] ss:$36 sps:$4 sm:$0xff]  }
 0x1b1   :  { %2888 = vmatmul.mubr.bf16.gmra.mrb[88].mxu1 %v5150_v54  ;;  %v5223_v54 = vld [vmem:[%s7142_s0 + $0x188] ss:$36 sps:$4 sm:$0xff]  }
 0x1b2   :  { %3338 = vmatmul.mubr.bf16.gmra.mrb[24].mxu0 %v5151_v55  ;;  %2895 = vmatprep.mubr.bf16.mxu1 %v5152_v56  ;;  %v5222_v55 = vld [vmem:[%s7142_s0 + $0x528] ss:$36 sps:$4 sm:$0xff]   ;;  %v5226_v56 = vld [vmem:[%s7142_s0 + $0x1d0] ss:$36 sps:$4 sm:$0xff]  }
 0x1b3   :  { %3345 = vmatprep.mubr.bf16.mxu0 %v5154_v58  ;;  %v5224_v58 = vld [vmem:[%s7142_s0 + $0x574] ss:$36 sps:$4 sm:$0xff]  }
 0x1b9   :  { %2896 = vmatmul.mubr.bf16.gmra.mrb[92].mxu1 %v5156_v59 }
 0x1ba   :  { %3346 = vmatmul.mubr.bf16.gmra.mrb[28].mxu0 %v5157_v61  ;;  %2903 = vmatprep.mubr.bf16.mxu1 %v5159_v62  ;;  %v5228_v62 = vld [vmem:[%s7142_s0 + $0x218] ss:$36 sps:$4 sm:$0xff]  }
 0x1bb   :  { %3353 = vmatprep.mubr.bf16.mxu0 %v5161_v63 }
 0x1c1   :  { %2904 = vmatmul.mubr.bf16.gmra.mrb[96].mxu1 %v5163_v1  ;;  %v5227_v1 = vld [vmem:[%s7142_s0 + $0x570] ss:$36 sps:$4 sm:$0xff]  }
 0x1c2   :  { %3354 = vmatmul.mubr.bf16.gmra.mrb[32].mxu0 %v5164_v3  ;;  %2911 = vmatprep.mubr.bf16.mxu1 %v5165_v4  ;;  %v5231_v3 = vld [vmem:[%s7142_s0 + $0x260] ss:$36 sps:$4 sm:$0xff]  }
 0x1c3   :  { %3361 = vmatprep.mubr.bf16.mxu0 %v5167_v7  ;;  %v5229_v7 = vld [vmem:[%s7142_s0 + $0x5bc] ss:$36 sps:$4 sm:$0xff]  }
 0x1c9   :  { %2912 = vmatmul.mubr.bf16.gmra.mrb[100].mxu1 %v5169_v8 }
 0x1ca   :  { %3362 = vmatmul.mubr.bf16.gmra.mrb[36].mxu0 %v5170_v9  ;;  %2919 = vmatprep.mubr.bf16.mxu1 %v5171_v10  ;;  %v5233_v10 = vld [vmem:[%s7142_s0 + $0x2a8] ss:$36 sps:$4 sm:$0xff]  }
 0x1cb   :  { %3369 = vmatprep.mubr.bf16.mxu0 %v5173_v12 }
 0x1d1   :  { %2920 = vmatmul.mubr.bf16.gmra.mrb[104].mxu1 %v5175_v13  ;;  %v5232_v13 = vld [vmem:[%s7142_s0 + $0x5b8] ss:$36 sps:$4 sm:$0xff]  }
 0x1d2   :  { %3370 = vmatmul.mubr.bf16.gmra.mrb[40].mxu0 %v5176_v15  ;;  %2927 = vmatprep.mubr.bf16.mxu1 %v5178_v16  ;;  %v5236_v15 = vld [vmem:[%s7142_s0 + $0x2f0] ss:$36 sps:$4 sm:$0xff]  }
 0x1d3   :  { %3377 = vmatprep.mubr.bf16.mxu0 %v5180_v17  ;;  %v5234_v17 = vld [vmem:[%s7142_s0 + $0x604] ss:$36 sps:$4 sm:$0xff]  }
 0x1d9   :  { %2928 = vmatmul.mubr.bf16.gmra.mrb[108].mxu1 %v5182_v18 }
 0x1da   :  { %3378 = vmatmul.mubr.bf16.gmra.mrb[44].mxu0 %v5183_v20  ;;  %2935 = vmatprep.mubr.bf16.mxu1 %v5184_v21  ;;  %v5238_v21 = vld [vmem:[%s7142_s0 + $0x338] ss:$36 sps:$4 sm:$0xff]  }
 0x1db   :  { %3385 = vmatprep.mubr.bf16.mxu0 %v5186_v23 }
 0x1e1   :  { %2936 = vmatmul.mubr.bf16.gmra.mrb[112].mxu1 %v5188_v24  ;;  %v5237_v24 = vld [vmem:[%s7142_s0 + $0x600] ss:$36 sps:$4 sm:$0xff]  }
 0x1e2   :  { %3386 = vmatmul.mubr.bf16.gmra.mrb[48].mxu0 %v5189_v25  ;;  %2943 = vmatprep.mubr.bf16.mxu1 %v5190_v26  ;;  %v5241_v25 = vld [vmem:[%s7142_s0 + $0x380] ss:$36 sps:$4 sm:$0xff]  }
 0x1e3   :  { %3393 = vmatprep.mubr.bf16.mxu0 %v5192_v28  ;;  %v5239_v28 = vld [vmem:[%s7142_s0 + $0x64c] ss:$36 sps:$4 sm:$0xff]  }
 0x1e9   :  { %2944 = vmatmul.mubr.bf16.gmra.mrb[116].mxu1 %v5194_v0 }
 0x1ea   :  { %3394 = vmatmul.mubr.bf16.gmra.mrb[52].mxu0 %v5195_v30  ;;  %2951 = vmatprep.mubr.bf16.mxu1 %v5197_v31  ;;  %v5243_v31 = vld [vmem:[%s7142_s0 + $0x3c8] ss:$36 sps:$4 sm:$0xff]  }
 0x1eb   :  { %3401 = vmatprep.mubr.bf16.mxu0 %v5199_v32 }
 0x1f1   :  { %2952 = vmatmul.mubr.bf16.gmra.mrb[120].mxu1 %v5201_v33  ;;  %v5242_v33 = vld [vmem:[%s7142_s0 + $0x648] ss:$36 sps:$4 sm:$0xff]  }
 0x1f2   :  { %3402 = vmatmul.mubr.bf16.gmra.mrb[56].mxu0 %v5202_v34  ;;  %2959 = vmatprep.mubr.bf16.mxu1 %v5203_v35  ;;  %v5246_v34 = vld [vmem:[%s7142_s0 + $0x410] ss:$36 sps:$4 sm:$0xff]  }
 0x1f3   :  { %3409 = vmatprep.mubr.bf16.mxu0 %v5205_v37  ;;  %v5244_v37 = vld [vmem:[%s7142_s0 + $0x694] ss:$36 sps:$4 sm:$0xff]  }
 0x1f9   :  { %2960 = vmatmul.mubr.bf16.gmra.mrb[124].mxu1 %v5207_v38 }
 0x1fa   :  { %3410 = vmatmul.mubr.bf16.gmra.mrb[60].mxu0 %v5208_v6  ;;  %4320 = vmatprep.mubr.bf16.mxu1 %v5211_v40  ;;  %v5248_v40 = vld [vmem:[%s7142_s0 + $0x458] ss:$36 sps:$4 sm:$0xff]  }
 0x1fb   :  { %3417 = vmatprep.mubr.bf16.mxu0 %v5209_v41 }
 0x201   :  { %4321 = vmatmul.mubr.bf16.vlgmr.msra.gmra.mrb[128].mxu1 %v5213_v42  ;;  %v5247_v42 = vld [vmem:[%s7142_s0 + $0x690] ss:$36 sps:$4 sm:$0xff]  }
 0x202   :  { %3418 = vmatmul.mubr.bf16.gmra.mrb[64].mxu0 %v5212_v43  ;;  %4324 = vmatprep.mubr.bf16.mxu1 %v5216_v45  ;;  %v5251_v43 = vld [vmem:[%s7142_s0 + $0x4a0] ss:$36 sps:$4 sm:$0xff]  }
 0x203   :  { %3425 = vmatprep.mubr.bf16.mxu0 %v5214_v46  ;;  %v5249_v46 = vld [vmem:[%s7142_s0 + $0x6dc] ss:$36 sps:$4 sm:$0xff]  }
 0x209   :  { %4325 = vmatmul.mubr.bf16.gmra.mrb[132].mxu1 %v5218_v47 }
 0x20a   :  { %3426 = vmatmul.mubr.bf16.gmra.mrb[68].mxu0 %v5217_v50  ;;  %4328 = vmatprep.mubr.bf16.mxu1 %v5221_v51  ;;  %v5253_v51 = vld [vmem:[%s7142_s0 + $0x4e8] ss:$36 sps:$4 sm:$0xff]  }
 0x20b   :  { %3433 = vmatprep.mubr.bf16.mxu0 %v5219_v53 }
 0x211   :  { %4329 = vmatmul.mubr.bf16.gmra.mrb[136].mxu1 %v5223_v54  ;;  %v5252_v54 = vld [vmem:[%s7142_s0 + $0x6d8] ss:$36 sps:$4 sm:$0xff]  }
 0x212   :  { %3434 = vmatmul.mubr.bf16.gmra.mrb[72].mxu0 %v5222_v55  ;;  %4332 = vmatprep.mubr.bf16.mxu1 %v5226_v56  ;;  %v5256_v55 = vld [vmem:[%s7142_s0 + $0x530] ss:$36 sps:$4 sm:$0xff]  }
 0x213   :  { %3441 = vmatprep.mubr.bf16.mxu0 %v5224_v58  ;;  %v5254_v58 = vld [vmem:[%s7142_s0 + $0x724] ss:$36 sps:$4 sm:$0xff]  }
 0x214   :  { %v6421_v59 = vpop.f32.mrb[32].mxu1 }
 0x215   :  { %v2779_v61 = vpop.f32.mrb[33].mxu1 }
 0x216   :  { %v6426_v63 = vpop.f32.mrb[34].mxu1 }
 0x217   :  { %v2782_v4 = vpop.f32.mrb[35].mxu1 }
 0x218   :  { %v5257_v4 = vld [vmem:[%s7142_s0 + $0x720] ss:$36 sps:$4 sm:$0xff]  }
 0x219   :  { %4333 = vmatmul.mubr.bf16.gmra.mrb[140].mxu1 %v5228_v62 }
 0x21a   :  { %3442 = vmatmul.mubr.bf16.gmra.mrb[76].mxu0 %v5227_v1  ;;  %4336 = vmatprep.mubr.bf16.mxu1 %v5231_v3  ;;  %v5258_v1 = vld [vmem:[%s7142_s0 + $0x578] ss:$36 sps:$4 sm:$0xff]  }
 0x21b   :  { %3449 = vmatprep.mubr.bf16.mxu0 %v5229_v7  ;;  %v5261_v7 = vld [vmem:[%s7142_s0 + $0x5c0] ss:$36 sps:$4 sm:$0xff]  }
 0x21c   :  { %v6437_v8 = vpop.f32.mrb[36].mxu1 }
 0x21d   :  { %v2787_v9 = vpop.f32.mrb[37].mxu1 }
 0x21e   :  { %v6442_v12 = vpop.f32.mrb[38].mxu1 }
 0x21f   :  { %v2790_v16 = vpop.f32.mrb[39].mxu1 }
 0x220   :  { %v5263_v16 = vld [vmem:[%s7142_s0 + $0x608] ss:$36 sps:$4 sm:$0xff]  }
 0x221   :  { %4337 = vmatmul.mubr.bf16.gmra.mrb[144].mxu1 %v5233_v10  ;;  %v5259_v10 = vld [vmem:[%s7142_s0 + $0x76c] ss:$36 sps:$4 sm:$0xff]  }
 0x222   :  { %3450 = vmatmul.mubr.bf16.gmra.mrb[80].mxu0 %v5232_v13  ;;  %4340 = vmatprep.mubr.bf16.mxu1 %v5236_v15 }
 0x223   :  { %3457 = vmatprep.mubr.bf16.mxu0 %v5234_v17 }
 0x224   :  { %v6453_v18 = vpop.f32.mrb[40].mxu1 }
 0x225   :  { %v2795_v20 = vpop.f32.mrb[41].mxu1 }
 0x226   :  { %v6458_v23 = vpop.f32.mrb[42].mxu1  ;;  %v5262_v20 = vld [vmem:[%s7142_s0 + $0x768] ss:$36 sps:$4 sm:$0xff]  }
 0x227   :  { %v2798_v26 = vpop.f32.mrb[43].mxu1 }
 0x228   :  { %v6552_v26 = vld [vmem:[%s7143_s2] ss:$0 sm:$0xff] }
 0x229   :  { %4341 = vmatmul.mubr.bf16.gmra.mrb[148].mxu1 %v5238_v21  ;;  %v5266_v21 = vld [vmem:[%s7142_s0 + $0x650] ss:$36 sps:$4 sm:$0xff]  }
 0x22a   :  { %3458 = vmatmul.mubr.bf16.gmra.mrb[84].mxu0 %v5237_v24  ;;  %4344 = vmatprep.mubr.bf16.mxu1 %v5241_v25  ;;  %v5264_v25 = vld [vmem:[%s7142_s0 + $0x7b4] ss:$36 sps:$4 sm:$0xff]  }
 0x22b   :  { %3465 = vmatprep.mubr.bf16.mxu0 %v5239_v28  ;;  %v2425_v28 = vadd.f32 %v6552_v26, %v5983_v49  ;;  %v5267_v49 = vld [vmem:[%s7142_s0 + $0x7b0] ss:$36 sps:$4 sm:$0xff]  }
 0x22c   :  { %v6469_v0 = vpop.f32.mrb[44].mxu1 }
 0x22d   :  { %v2803_v30 = vpop.f32.mrb[45].mxu1 }
 0x22e   :  { %v6474_v32 = vpop.f32.mrb[46].mxu1 }
 0x22f   :  { %v2806_v35 = vpop.f32.mrb[47].mxu1 }
 0x230   :  { %v2428_v35 = vadd.f32 %v6552_v26, %v5988_v52 }
 0x231   :  { %4345 = vmatmul.mubr.bf16.gmra.mrb[152].mxu1 %v5243_v31 }
 0x232   :  { %3466 = vmatmul.mubr.bf16.gmra.mrb[88].mxu0 %v5242_v33  ;;  %4348 = vmatprep.mubr.bf16.mxu1 %v5246_v34  ;;  %v5268_v34 = vld [vmem:[%s7142_s0 + $0x698] ss:$36 sps:$4 sm:$0xff]  }
 0x233   :  { %3473 = vmatprep.mubr.bf16.mxu0 %v5244_v37 }
 0x234   :  { %v6485_v38 = vpop.f32.mrb[48].mxu1 }
 0x235   :  { %v2811_v6 = vpop.f32.mrb[49].mxu1 }
 0x236   :  { %v6490_v41 = vpop.f32.mrb[50].mxu1 }
 0x237   :  { %v2814_v45 = vpop.f32.mrb[51].mxu1 }
 0x239   :  { %4349 = vmatmul.mubr.bf16.gmra.mrb[156].mxu1 %v5248_v40 }
 0x23a   :  { %3474 = vmatmul.mubr.bf16.gmra.mrb[92].mxu0 %v5247_v42  ;;  %4352 = vmatprep.mubr.bf16.mxu1 %v5251_v43  ;;  %v5271_v42 = vld [vmem:[%s7142_s0 + $0x6e0] ss:$36 sps:$4 sm:$0xff]  }
 0x23b   :  { %3481 = vmatprep.mubr.bf16.mxu0 %v5249_v46  ;;  %v5269_v46 = vld [vmem:[%s7142_s0 + $0x7fc] ss:$36 sps:$4 sm:$0xff]  }
 0x23c   :  { %v6501_v47 = vpop.f32.mrb[52].mxu1 }
 0x23d   :  { %v2819_v50 = vpop.f32.mrb[53].mxu1 }
 0x23e   :  { %v6506_v53 = vpop.f32.mrb[54].mxu1 }
 0x23f   :  { %v2822_v56 = vpop.f32.mrb[55].mxu1 }
 0x241   :  { %4353 = vmatmul.mubr.bf16.gmra.mrb[160].mxu1 %v5253_v51  ;;  %v2433_v51 = vadd.f32 %v6552_v26, %v5999_v57  ;;  %v5272_v57 = vld [vmem:[%s7142_s0 + $0x7f8] ss:$36 sps:$4 sm:$0xff]  }
 0x242   :  { %3482 = vmatmul.mubr.bf16.gmra.mrb[96].mxu0 %v5252_v54  ;;  %4356 = vmatprep.mubr.bf16.mxu1 %v5256_v55 }
 0x243   :  { %3489 = vmatprep.mubr.bf16.mxu0 %v5254_v58  ;;  %v5273_v58 = vld [vmem:[%s7142_s0 + $0x728] ss:$36 sps:$4 sm:$0xff]  }
 0x244   :  { %v6517_v61 = vpop.f32.mrb[56].mxu1 }
 0x245   :  { %v2827_v62 = vpop.f32.mrb[57].mxu1 }
 0x246   :  { %v6522_v3 = vpop.f32.mrb[58].mxu1  ;;  %v2436_v62 = vadd.f32 %v6552_v26, %v6004_v60 }
 0x247   :  { %v2830_v9 = vpop.f32.mrb[59].mxu1 }
 0x248   :  { %v5276_v9 = vld [vmem:[%s7142_s0 + $0x770] ss:$36 sps:$4 sm:$0xff]  }
 0x249   :  { %4357 = vmatmul.mubr.bf16.gmra.mrb[164].mxu1 %v5258_v1 }
 0x24a   :  { %3490 = vmatmul.mubr.bf16.gmra.mrb[100].mxu0 %v5257_v4  ;;  %4360 = vmatprep.mubr.bf16.mxu1 %v5261_v7 }
 0x24b   :  { %3497 = vmatprep.mubr.bf16.mxu0 %v5259_v10 }
 0x24c   :  { %v6533_v13 = vpop.f32.mrb[60].mxu1 }
 0x24d   :  { %v2835_v15 = vpop.f32.mrb[61].mxu1 }
 0x24e   :  { %v6538_v17 = vpop.f32.mrb[62].mxu1 }
 0x24f   :  { %v2838_v24 = vpop.f32.mrb[63].mxu1 }
 0x251   :  { %4361 = vmatmul.mubr.bf16.gmra.mrb[168].mxu1 %v5263_v16  ;;  %v5274_v16 = vld [vmem:[%s7142_s0 + $0x844] ss:$36 sps:$4 sm:$0xff]  }
 0x252   :  { %3498 = vmatmul.mubr.bf16.gmra.mrb[104].mxu0 %v5262_v20  ;;  %4364 = vmatprep.mubr.bf16.mxu1 %v5266_v21  ;;  %v2441_v21 = vadd.f32 %v6552_v26, %v6015_v2  ;;  %v5277_v2 = vld [vmem:[%s7142_s0 + $0x840] ss:$36 sps:$4 sm:$0xff]  }
 0x253   :  { %3505 = vmatprep.mubr.bf16.mxu0 %v5264_v25 }
 0x254   :  { %v6556_v30 = vpop.f32.mrb[64].mxu1 }
 0x255   :  { %v3291_v31 = vpop.f32.mrb[0].mxu0  ;;  %v2843_v33 = vpop.f32.mrb[65].mxu1 }
 0x256   :  { %v6563_v37 = vadd.f32 %v3291_v31, %v2425_v28  ;;  %v3293_v6 = vpop.f32.mrb[1].mxu0  ;;  %v6565_v40 = vpop.f32.mrb[66].mxu1  ;;  %v5278_v31 = vld [vmem:[%s7142_s0 + $0x7b8] ss:$36 sps:$4 sm:$0xff]   ;;  %v2444_v33 = vadd.f32 %v6552_v26, %v6020_v5 }
 0x257   :  { %v3294_v43 = vpop.f32.mrb[2].mxu0  ;;  %v2846_v45 = vpop.f32.mrb[67].mxu1 }
 0x258   :  { %v6576_v52 = vadd.f32 %v3294_v43, %v2428_v35  ;;  %v3296_v50 = vpop.f32.mrb[3].mxu0  ;;  %v5279_v45 = vld [vmem:[%s7142_s0 + $0x88c] ss:$36 sps:$4 sm:$0xff]  }
 0x259   :  { %4365 = vmatmul.mubr.bf16.gmra.mrb[172].mxu1 %v5268_v34  ;;  %v2449_v50 = vadd.f32 %v6552_v26, %v6031_v11  ;;  %v5282_v11 = vld [vmem:[%s7142_s0 + $0x888] ss:$36 sps:$4 sm:$0xff]  }
 0x25a   :  { %3506 = vmatmul.mubr.bf16.gmra.mrb[108].mxu0 %v5267_v49  ;;  %4368 = vmatprep.mubr.bf16.mxu1 %v5271_v42  ;;  %v5281_v49 = vld [vmem:[%s7142_s0 + $0x800] ss:$36 sps:$4 sm:$0xff]  }
 0x25b   :  { %3513 = vmatprep.mubr.bf16.mxu0 %v5269_v46 }
 0x25c   :  { %v6580_v54 = vpop.f32.mrb[68].mxu1 }
 0x25d   :  { %v3299_v55 = vpop.f32.mrb[4].mxu0  ;;  %v2851_v56 = vpop.f32.mrb[69].mxu1 }
 0x25e   :  { %v6587_v1 = vadd.f32 %v3299_v55, %v2433_v51  ;;  %v3301_v4 = vpop.f32.mrb[5].mxu0  ;;  %v6589_v7 = vpop.f32.mrb[70].mxu1 }
 0x25f   :  { %v3302_v10 = vpop.f32.mrb[6].mxu0  ;;  %v2854_v15 = vpop.f32.mrb[71].mxu1 }
 0x260   :  { %v6600_v60 = vadd.f32 %v3302_v10, %v2436_v62  ;;  %v3304_v20 = vpop.f32.mrb[7].mxu0  ;;  %v2452_v62 = vadd.f32 %v6552_v26, %v6036_v14  ;;  %v5286_v10 = vld [vmem:[%s7142_s0 + $0x890] ss:$36 sps:$4 sm:$0xff]  }
 0x261   :  { %4369 = vmatmul.mubr.bf16.gmra.mrb[176].mxu1 %v5273_v58  ;;  %v5283_v58 = vld [vmem:[%s7142_s0 + $0x848] ss:$36 sps:$4 sm:$0xff]   ;;  %v5284_v20 = vld [vmem:[%s7142_s0 + $0x8d4] ss:$36 sps:$4 sm:$0xff]  }
 0x262   :  { %3514 = vmatmul.mubr.bf16.gmra.mrb[112].mxu0 %v5272_v57  ;;  %4372 = vmatprep.mubr.bf16.mxu1 %v5276_v9 }
 0x263   :  { %3521 = vmatprep.mubr.bf16.mxu0 %v5274_v16 }
 0x264   :  { %v6604_v24 = vpop.f32.mrb[72].mxu1 }
 0x265   :  { %v3307_v25 = vpop.f32.mrb[8].mxu0  ;;  %v2859_v28 = vpop.f32.mrb[73].mxu1 }
 0x266   :  { %v6611_v34 = vadd.f32 %v3307_v25, %v2441_v21  ;;  %v3309_v35 = vpop.f32.mrb[9].mxu0  ;;  %v6613_v6 = vpop.f32.mrb[74].mxu1  ;;  %v2457_v25 = vadd.f32 %v6552_v26, %v6047_v19  ;;  %v5287_v19 = vld [vmem:[%s7142_s0 + $0x8d0] ss:$36 sps:$4 sm:$0xff]  }
 0x267   :  { %v3310_v42 = vpop.f32.mrb[10].mxu0  ;;  %v2862_v43 = vpop.f32.mrb[75].mxu1  ;;  %v5288_v35 = vld [vmem:[%s7142_s0 + $0x8d8] ss:$36 sps:$4 sm:$0xff]  }
 0x268   :  { %v6624_v5 = vadd.f32 %v3310_v42, %v2444_v33  ;;  %v3312_v46 = vpop.f32.mrb[11].mxu0 }
 0x269   :  { %4373 = vmatmul.mubr.bf16.gmra.mrb[180].mxu1 %v5278_v31 }
 0x26a   :  { %3522 = vmatmul.mubr.bf16.gmra.mrb[116].mxu0 %v5277_v2  ;;  %4376 = vmatprep.mubr.bf16.mxu1 %v5281_v49  ;;  %v2460_v2 = vadd.f32 %v6552_v26, %v6052_v22 }
 0x26b   :  { %3529 = vmatprep.mubr.bf16.mxu0 %v5279_v45 }
 0x26c   :  { %v6628_v51 = vpop.f32.mrb[76].mxu1 }
 0x26d   :  { %v3315_v55 = vpop.f32.mrb[12].mxu0  ;;  %v2867_v56 = vpop.f32.mrb[77].mxu1 }
 0x26e   :  { %v6635_v4 = vadd.f32 %v3315_v55, %v2449_v50  ;;  %v3317_v57 = vpop.f32.mrb[13].mxu0  ;;  %v6637_v9 = vpop.f32.mrb[78].mxu1  ;;  %v2465_v56 = vadd.f32 %v6552_v26, %v6063_v27  ;;  %v2473_v27 = vadd.f32 %v6552_v26, %v6086_v36  ;;  %v2481_v36 = vadd.f32 %v6552_v26, %v6105_v44 }
 0x26f   :  { %v3318_v15 = vpop.f32.mrb[14].mxu0  ;;  %v2870_v16 = vpop.f32.mrb[79].mxu1  ;;  %v2468_v57 = vadd.f32 %v6552_v26, %v6068_v29  ;;  %v2476_v29 = vadd.f32 %v6552_v26, %v6091_v39  ;;  %v2484_v39 = vadd.f32 %v6552_v26, %v6113_v48  ;;  %v4448_v44 = vadd.f32 %v6552_v26, %v6421_v59 }
 0x270   :  { %v6648_v14 = vadd.f32 %v3318_v15, %v2452_v62  ;;  %v3320_v21 = vpop.f32.mrb[15].mxu0  ;;  %v4450_v48 = vadd.f32 %v6552_v26, %v6426_v63  ;;  %v4452_v59 = vadd.f32 %v6552_v26, %v6437_v8  ;;  %v4454_v63 = vadd.f32 %v6552_v26, %v6442_v12 }
 0x271   :  { %4377 = vmatmul.mubr.bf16.gmra.mrb[184].mxu1 %v5283_v58  ;;  %v4456_v8 = vadd.f32 %v6552_v26, %v6453_v18  ;;  %v4458_v12 = vadd.f32 %v6552_v26, %v6458_v23  ;;  %v4460_v18 = vadd.f32 %v6552_v26, %v6469_v0  ;;  %v4462_v23 = vadd.f32 %v6552_v26, %v6474_v32 }
 0x272   :  { %3530 = vmatmul.mubr.bf16.gmra.mrb[120].mxu0 %v5282_v11  ;;  %4380 = vmatprep.mubr.bf16.mxu1 %v5286_v10  ;;  %v4464_v0 = vadd.f32 %v6552_v26, %v6485_v38  ;;  %v4466_v32 = vadd.f32 %v6552_v26, %v6490_v41  ;;  %v4468_v38 = vadd.f32 %v6552_v26, %v6501_v47 }
 0x273   :  { %3537 = vmatprep.mubr.bf16.mxu0 %v5284_v20  ;;  %v4470_v41 = vadd.f32 %v6552_v26, %v6506_v53  ;;  %v4472_v47 = vadd.f32 %v6552_v26, %v6517_v61  ;;  %v4474_v53 = vadd.f32 %v6552_v26, %v6522_v3  ;;  %v4476_v61 = vadd.f32 %v6552_v26, %v6533_v13 }
 0x274   :  { %v6652_v28 = vpop.f32.mrb[80].mxu1  ;;  %v4478_v3 = vadd.f32 %v6552_v26, %v6538_v17  ;;  %v4480_v13 = vadd.f32 %v6552_v26, %v6556_v30  ;;  %v4482_v17 = vadd.f32 %v6552_v26, %v6565_v40 }
 0x275   :  { %v3323_v31 = vpop.f32.mrb[16].mxu0  ;;  %v2875_v33 = vpop.f32.mrb[81].mxu1 }
 0x276   :  { %v6659_v49 = vadd.f32 %v3323_v31, %v2457_v25  ;;  %v3325_v42 = vpop.f32.mrb[17].mxu0  ;;  %v6661_v43 = vpop.f32.mrb[82].mxu1 }
 0x277   :  { %v3326_v45 = vpop.f32.mrb[18].mxu0  ;;  %v2878_v46 = vpop.f32.mrb[83].mxu1 }
 0x278   :  { %v6666_v50 = vadd.f32 %v3326_v45, %v2460_v2  ;;  %v3328_v55 = vpop.f32.mrb[19].mxu0 }
 0x279   :  { %4381 = vmatmul.mubr.bf16.gmra.mrb[188].mxu1 %v5288_v35 }
 0x27a   :  { %3538 = vmatmul.mubr.bf16.gmra.mrb[124].mxu0 %v5287_v19 }
 0x27c   :  { %v6670_v22 = vpop.f32.mrb[84].mxu1 }
 0x27d   :  { %v3331_v58 = vpop.f32.mrb[20].mxu0  ;;  %v2883_v62 = vpop.f32.mrb[85].mxu1 }
 0x27e   :  { %v6674_v11 = vadd.f32 %v3331_v58, %v2465_v56  ;;  %v3333_v10 = vpop.f32.mrb[21].mxu0  ;;  %v6676_v15 = vpop.f32.mrb[86].mxu1 }
 0x27f   :  { %v3334_v16 = vpop.f32.mrb[22].mxu0  ;;  %v2886_v20 = vpop.f32.mrb[87].mxu1 }
 0x280   :  { %v6678_v21 = vadd.f32 %v3334_v16, %v2468_v57  ;;  %v3336_v25 = vpop.f32.mrb[23].mxu0 }
 0x284   :  { %v6682_v31 = vpop.f32.mrb[88].mxu1 }
 0x285   :  { %v3339_v33 = vpop.f32.mrb[24].mxu0  ;;  %v2891_v35 = vpop.f32.mrb[89].mxu1 }
 0x286   :  { %v6686_v2 = vadd.f32 %v3339_v33, %v2473_v27  ;;  %v3341_v42 = vpop.f32.mrb[25].mxu0  ;;  %v6688_v19 = vpop.f32.mrb[90].mxu1 }
 0x287   :  { %v3342_v45 = vpop.f32.mrb[26].mxu0  ;;  %v2894_v46 = vpop.f32.mrb[91].mxu1 }
 0x288   :  { %v6690_v55 = vadd.f32 %v3342_v45, %v2476_v29  ;;  %v3344_v56 = vpop.f32.mrb[27].mxu0 }
 0x28c   :  { %v6694_v58 = vpop.f32.mrb[92].mxu1 }
 0x28d   :  { %v3347_v62 = vpop.f32.mrb[28].mxu0  ;;  %v2899_v57 = vpop.f32.mrb[93].mxu1 }
 0x28e   :  { %v6698_v10 = vadd.f32 %v3347_v62, %v2481_v36  ;;  %v3349_v16 = vpop.f32.mrb[29].mxu0  ;;  %v6700_v20 = vpop.f32.mrb[94].mxu1 }
 0x28f   :  { %v3350_v25 = vpop.f32.mrb[30].mxu0  ;;  %v2902_v27 = vpop.f32.mrb[95].mxu1 }
 0x290   :  { %v6702_v33 = vadd.f32 %v3350_v25, %v2484_v39  ;;  %v3352_v35 = vpop.f32.mrb[31].mxu0 }
 0x294   :  { %v6706_v29 = vpop.f32.mrb[96].mxu1 }
 0x295   :  { %v3355_v42 = vpop.f32.mrb[32].mxu0  ;;  %v2907_v45 = vpop.f32.mrb[97].mxu1 }
 0x296   :  { %v6710_v46 = vadd.f32 %v4448_v44, %v3355_v42  ;;  %v3357_v56 = vpop.f32.mrb[33].mxu0  ;;  %v6712_v36 = vpop.f32.mrb[98].mxu1 }
 0x297   :  { %7145 = vst [vmem:[#allocation2_spill] sm:$0xff] %v6712_v36  ;;  %v3358_v62 = vpop.f32.mrb[34].mxu0  ;;  %v2910_v57 = vpop.f32.mrb[99].mxu1 }
 0x298   :  { %v6714_v39 = vadd.f32 %v4450_v48, %v3358_v62  ;;  %v3360_v16 = vpop.f32.mrb[35].mxu0 }
 0x29c   :  { %v6718_v25 = vpop.f32.mrb[100].mxu1 }
 0x29d   :  { %7146 = vst [vmem:[#allocation3_spill] sm:$0xff] %v6718_v25  ;;  %v3363_v27 = vpop.f32.mrb[36].mxu0  ;;  %v2915_v35 = vpop.f32.mrb[101].mxu1 }
 0x29e   :  { %v6722_v44 = vadd.f32 %v4452_v59, %v3363_v27  ;;  %v3365_v42 = vpop.f32.mrb[37].mxu0  ;;  %v6724_v45 = vpop.f32.mrb[102].mxu1 }
 0x29f   :  { %7147 = vst [vmem:[#allocation4_spill] sm:$0xff] %v6724_v45  ;;  %v3366_v56 = vpop.f32.mrb[38].mxu0  ;;  %v2918_v57 = vpop.f32.mrb[103].mxu1 }
 0x2a0   :  { %v6726_v48 = vadd.f32 %v4454_v63, %v3366_v56  ;;  %v3368_v62 = vpop.f32.mrb[39].mxu0 }
 0x2a4   :  { %v6730_v16 = vpop.f32.mrb[104].mxu1 }
 0x2a5   :  { %7148 = vst [vmem:[#allocation5_spill] sm:$0xff] %v6730_v16  ;;  %v3371_v25 = vpop.f32.mrb[40].mxu0  ;;  %v2923_v35 = vpop.f32.mrb[105].mxu1 }
 0x2a6   :  { %v6734_v59 = vadd.f32 %v4456_v8, %v3371_v25  ;;  %v3373_v27 = vpop.f32.mrb[41].mxu0  ;;  %v6736_v42 = vpop.f32.mrb[106].mxu1 }
 0x2a7   :  { %7149 = vst [vmem:[#allocation6_spill] sm:$0xff] %v6736_v42  ;;  %v3374_v45 = vpop.f32.mrb[42].mxu0  ;;  %v2926_v57 = vpop.f32.mrb[107].mxu1 }
 0x2a8   :  { %v6738_v63 = vadd.f32 %v4458_v12, %v3374_v45  ;;  %v3376_v56 = vpop.f32.mrb[43].mxu0 }
 0x2ac   :  { %v6742_v62 = vpop.f32.mrb[108].mxu1 }
 0x2ad   :  { %7150 = vst [vmem:[#allocation7_spill] sm:$0xff] %v6742_v62  ;;  %v3379_v16 = vpop.f32.mrb[44].mxu0  ;;  %v2931_v35 = vpop.f32.mrb[109].mxu1 }
 0x2ae   :  { %v6746_v25 = vadd.f32 %v4460_v18, %v3379_v16  ;;  %v3381_v8 = vpop.f32.mrb[45].mxu0  ;;  %v6748_v27 = vpop.f32.mrb[110].mxu1 }
 0x2af   :  { %7151 = vst [vmem:[#allocation8_spill] sm:$0xff] %v6748_v27  ;;  %v3382_v42 = vpop.f32.mrb[46].mxu0  ;;  %v2934_v57 = vpop.f32.mrb[111].mxu1 }
 0x2b0   :  { %v6750_v45 = vadd.f32 %v4462_v23, %v3382_v42  ;;  %v3384_v12 = vpop.f32.mrb[47].mxu0 }
 0x2b4   :  { %v6754_v56 = vpop.f32.mrb[112].mxu1 }
 0x2b5   :  { %7152 = vst [vmem:[#allocation9_spill] sm:$0xff] %v6754_v56  ;;  %v3387_v62 = vpop.f32.mrb[48].mxu0  ;;  %v2939_v35 = vpop.f32.mrb[113].mxu1 }
 0x2b6   :  { %v6758_v16 = vadd.f32 %v4464_v0, %v3387_v62  ;;  %v3389_v18 = vpop.f32.mrb[49].mxu0  ;;  %v6760_v8 = vpop.f32.mrb[114].mxu1 }
 0x2b7   :  { %7153 = vst [vmem:[#allocation10_spill] sm:$0xff] %v6760_v8  ;;  %v3390_v27 = vpop.f32.mrb[50].mxu0  ;;  %v2942_v57 = vpop.f32.mrb[115].mxu1 }
 0x2b8   :  { %v6762_v42 = vadd.f32 %v4466_v32, %v3390_v27  ;;  %v3392_v23 = vpop.f32.mrb[51].mxu0 }
 0x2bc   :  { %v6766_v12 = vpop.f32.mrb[116].mxu1 }
 0x2bd   :  { %7154 = vst [vmem:[#allocation11_spill] sm:$0xff] %v6766_v12  ;;  %v3395_v56 = vpop.f32.mrb[52].mxu0  ;;  %v2947_v35 = vpop.f32.mrb[117].mxu1 }
 0x2be   :  { %v6770_v62 = vadd.f32 %v4468_v38, %v3395_v56  ;;  %v3397_v0 = vpop.f32.mrb[53].mxu0  ;;  %v6772_v18 = vpop.f32.mrb[118].mxu1 }
 0x2bf   :  { %7155 = vst [vmem:[#allocation12_spill] sm:$0xff] %v6772_v18  ;;  %v3398_v8 = vpop.f32.mrb[54].mxu0  ;;  %v2950_v57 = vpop.f32.mrb[119].mxu1 }
 0x2c0   :  { %v6774_v27 = vadd.f32 %v4470_v41, %v3398_v8  ;;  %v3400_v32 = vpop.f32.mrb[55].mxu0 }
 0x2c4   :  { %v6778_v23 = vpop.f32.mrb[120].mxu1 }
 0x2c5   :  { %7156 = vst [vmem:[#allocation13_spill] sm:$0xff] %v6778_v23  ;;  %v3403_v12 = vpop.f32.mrb[56].mxu0  ;;  %v2955_v35 = vpop.f32.mrb[121].mxu1 }
 0x2c6   :  { %v6782_v56 = vadd.f32 %v4472_v47, %v3403_v12  ;;  %v3405_v38 = vpop.f32.mrb[57].mxu0  ;;  %v6784_v0 = vpop.f32.mrb[122].mxu1 }
 0x2c7   :  { %7157 = vst [vmem:[#allocation14_spill] sm:$0xff] %v6784_v0  ;;  %v3406_v18 = vpop.f32.mrb[58].mxu0  ;;  %v2958_v57 = vpop.f32.mrb[123].mxu1 }
 0x2c8   :  { %v6786_v8 = vadd.f32 %v4474_v53, %v3406_v18  ;;  %v3408_v41 = vpop.f32.mrb[59].mxu0 }
 0x2cc   :  { %v6790_v32 = vpop.f32.mrb[124].mxu1 }
 0x2cd   :  { %7158 = vst [vmem:[#allocation15_spill] sm:$0xff] %v6790_v32  ;;  %v3411_v23 = vpop.f32.mrb[60].mxu0  ;;  %v2963_v35 = vpop.f32.mrb[125].mxu1 }
 0x2ce   :  { %v6794_v12 = vadd.f32 %v4476_v61, %v3411_v23  ;;  %v3413_v47 = vpop.f32.mrb[61].mxu0  ;;  %v6796_v38 = vpop.f32.mrb[126].mxu1 }
 0x2cf   :  { %v3414_v0 = vpop.f32.mrb[62].mxu0  ;;  %v2966_v57 = vpop.f32.mrb[127].mxu1 }
 0x2d0   :  { %v6798_v18 = vadd.f32 %v4478_v3, %v3414_v0  ;;  %v3416_v53 = vpop.f32.mrb[63].mxu0 }
 0x2d4   :  { %v4322_v41 = vpop.f32.mrb[128].mxu1 }
 0x2d5   :  { %v3419_v32 = vpop.f32.mrb[64].mxu0  ;;  %v3589_v35 = vadd.f32 %v6587_v1, %v4322_v41  ;;  %v3580_v36 = vpop.f32.mrb[129].mxu1  ;;  %v4486_v41 = vadd.f32 %v6552_v26, %v6589_v7 }
 0x2d6   :  { %v6805_v23 = vadd.f32 %v4480_v13, %v3419_v32  ;;  %v3421_v61 = vpop.f32.mrb[65].mxu0  ;;  %v3581_v47 = vadd.f32 %v6563_v37, %v3580_v36  ;;  %v4323_v57 = vpop.f32.mrb[130].mxu1  ;;  %v4484_v37 = vadd.f32 %v6552_v26, %v6580_v54 }
 0x2d7   :  { %3837 = vst [vmem:[%s7144_s3 + $0x10] sm:$0xff] %v3589_v35  ;;  %v3422_v0 = vpop.f32.mrb[66].mxu0  ;;  %v3592_v30 = vadd.f32 %v6600_v60, %v4323_v57  ;;  %v3583_v3 = vpop.f32.mrb[131].mxu1 }
 0x2d8   :  { %3835 = vst [vmem:[%s7144_s3] sm:$0xff] %v3581_v47  ;;  %v6815_v1 = vadd.f32 %v4482_v17, %v3422_v0  ;;  %v3424_v40 = vpop.f32.mrb[67].mxu0  ;;  %v3584_v32 = vadd.f32 %v6576_v52, %v3583_v3 }
 0x2d9   :  { %3838 = vst [vmem:[%s7144_s3 + $0x18] sm:$0xff] %v3592_v30 }
 0x2da   :  { %3836 = vst [vmem:[%s7144_s3 + $0x8] sm:$0xff] %v3584_v32  ;;  %v4490_v32 = vadd.f32 %v6552_v26, %v6613_v6 }
 0x2dc   :  { %v4326_v60 = vpop.f32.mrb[132].mxu1 }
 0x2dd   :  { %v3427_v36 = vpop.f32.mrb[68].mxu0  ;;  %v3605_v53 = vadd.f32 %v6635_v4, %v4326_v60  ;;  %v3596_v13 = vpop.f32.mrb[133].mxu1 }
 0x2de   :  { %v6829_v52 = vadd.f32 %v4484_v37, %v3427_v36  ;;  %v3429_v35 = vpop.f32.mrb[69].mxu0  ;;  %v3597_v17 = vadd.f32 %v6611_v34, %v3596_v13  ;;  %v4327_v61 = vpop.f32.mrb[134].mxu1  ;;  %v4488_v34 = vadd.f32 %v6552_v26, %v6604_v24 }
 0x2df   :  { %3841 = vst [vmem:[%s7144_s3 + $0x30] sm:$0xff] %v3605_v53  ;;  %v3430_v47 = vpop.f32.mrb[70].mxu0  ;;  %v3608_v54 = vadd.f32 %v6648_v14, %v4327_v61  ;;  %v3599_v57 = vpop.f32.mrb[135].mxu1 }
 0x2e0   :  { %3839 = vst [vmem:[%s7144_s3 + $0x20] sm:$0xff] %v3597_v17  ;;  %v6839_v4 = vadd.f32 %v4486_v41, %v3430_v47  ;;  %v3432_v7 = vpop.f32.mrb[71].mxu0  ;;  %v3600_v0 = vadd.f32 %v6624_v5, %v3599_v57  ;;  %v4494_v47 = vadd.f32 %v6552_v26, %v6637_v9 }
 0x2e1   :  { %3842 = vst [vmem:[%s7144_s3 + $0x38] sm:$0xff] %v3608_v54 }
 0x2e2   :  { %3840 = vst [vmem:[%s7144_s3 + $0x28] sm:$0xff] %v3600_v0 }
 0x2e4   :  { %v4330_v14 = vpop.f32.mrb[136].mxu1 }
 0x2e5   :  { %v3435_v30 = vpop.f32.mrb[72].mxu0  ;;  %v3621_v3 = vadd.f32 %v6674_v11, %v4330_v14  ;;  %v3612_v40 = vpop.f32.mrb[137].mxu1 }
 0x2e6   :  { %v6853_v5 = vadd.f32 %v4488_v34, %v3435_v30  ;;  %v3437_v37 = vpop.f32.mrb[73].mxu0  ;;  %v3613_v60 = vadd.f32 %v6659_v49, %v3612_v40  ;;  %v4331_v36 = vpop.f32.mrb[138].mxu1  ;;  %v4492_v49 = vadd.f32 %v6552_v26, %v6628_v51 }
 0x2e7   :  { %3845 = vst [vmem:[%s7144_s3 + $0x50] sm:$0xff] %v3621_v3  ;;  %v3438_v53 = vpop.f32.mrb[74].mxu0  ;;  %v3624_v24 = vadd.f32 %v6678_v21, %v4331_v36  ;;  %v3615_v13 = vpop.f32.mrb[139].mxu1 }
 0x2e8   :  { %3843 = vst [vmem:[%s7144_s3 + $0x40] sm:$0xff] %v3613_v60  ;;  %v6863_v11 = vadd.f32 %v4490_v32, %v3438_v53  ;;  %v3440_v6 = vpop.f32.mrb[75].mxu0  ;;  %v3616_v41 = vadd.f32 %v6666_v50, %v3615_v13  ;;  %v4498_v32 = vadd.f32 %v6552_v26, %v6661_v43 }
 0x2e9   :  { %3846 = vst [vmem:[%s7144_s3 + $0x58] sm:$0xff] %v3624_v24 }
 0x2ea   :  { %3844 = vst [vmem:[%s7144_s3 + $0x48] sm:$0xff] %v3616_v41 }
 0x2ec   :  { %v4334_v21 = vpop.f32.mrb[140].mxu1 }
 0x2ed   :  { %v3443_v35 = vpop.f32.mrb[76].mxu0  ;;  %v3637_v17 = vadd.f32 %v6698_v10, %v4334_v21  ;;  %v3628_v61 = vpop.f32.mrb[141].mxu1  ;;  %v4502_v21 = vadd.f32 %v6552_v26, %v6676_v15 }
 0x2ee   :  { %v6877_v50 = vadd.f32 %v4492_v49, %v3443_v35  ;;  %v3445_v54 = vpop.f32.mrb[77].mxu0  ;;  %v3629_v57 = vadd.f32 %v6686_v2, %v3628_v61  ;;  %v4335_v7 = vpop.f32.mrb[142].mxu1  ;;  %v4496_v2 = vadd.f32 %v6552_v26, %v6652_v28 }
 0x2ef   :  { %3849 = vst [vmem:[%s7144_s3 + $0x70] sm:$0xff] %v3637_v17  ;;  %v3446_v0 = vpop.f32.mrb[78].mxu0  ;;  %v3640_v51 = vadd.f32 %v6702_v33, %v4335_v7  ;;  %v3631_v34 = vpop.f32.mrb[143].mxu1 }
 0x2f0   :  { %3847 = vst [vmem:[%s7144_s3 + $0x60] sm:$0xff] %v3629_v57  ;;  %v6887_v10 = vadd.f32 %v4494_v47, %v3446_v0  ;;  %v3448_v9 = vpop.f32.mrb[79].mxu0  ;;  %v3632_v14 = vadd.f32 %v6690_v55, %v3631_v34  ;;  %v4506_v34 = vadd.f32 %v6552_v26, %v6688_v19 }
 0x2f1   :  { %3850 = vst [vmem:[%s7144_s3 + $0x78] sm:$0xff] %v3640_v51 }
 0x2f2   :  { %3848 = vst [vmem:[%s7144_s3 + $0x68] sm:$0xff] %v3632_v14 }
 0x2f4   :  { %v4338_v33 = vpop.f32.mrb[144].mxu1 }
 0x2f5   :  { %v3451_v30 = vpop.f32.mrb[80].mxu0  ;;  %v3653_v3 = vadd.f32 %v6722_v44, %v4338_v33  ;;  %v3644_v40 = vpop.f32.mrb[145].mxu1 }
 0x2f6   :  { %v6901_v55 = vadd.f32 %v4496_v2, %v3451_v30  ;;  %v3453_v37 = vpop.f32.mrb[81].mxu0  ;;  %v3645_v60 = vadd.f32 %v6710_v46, %v3644_v40  ;;  %v4339_v36 = vpop.f32.mrb[146].mxu1  ;;  %v4500_v46 = vadd.f32 %v6552_v26, %v6670_v22 }
 0x2f7   :  { %3853 = vst [vmem:[%s7144_s3 + $0x90] sm:$0xff] %v3653_v3  ;;  %v3454_v53 = vpop.f32.mrb[82].mxu0  ;;  %v3656_v28 = vadd.f32 %v6726_v48, %v4339_v36  ;;  %v3647_v24 = vpop.f32.mrb[147].mxu1 }
 0x2f8   :  { %3851 = vst [vmem:[%s7144_s3 + $0x80] sm:$0xff] %v3645_v60  ;;  %v6911_v44 = vadd.f32 %v4498_v32, %v3454_v53  ;;  %v3456_v43 = vpop.f32.mrb[83].mxu0  ;;  %v3648_v13 = vadd.f32 %v6714_v39, %v3647_v24  ;;  %v4510_v60 = vadd.f32 %v6552_v26, %v6700_v20 }
 0x2f9   :  { %3854 = vst [vmem:[%s7144_s3 + $0x98] sm:$0xff] %v3656_v28 }
 0x2fa   :  { %3852 = vst [vmem:[%s7144_s3 + $0x88] sm:$0xff] %v3648_v13 }
 0x2fc   :  { %v4342_v48 = vpop.f32.mrb[148].mxu1 }
 0x2fd   :  { %v3459_v6 = vpop.f32.mrb[84].mxu0  ;;  %v3669_v41 = vadd.f32 %v6746_v25, %v4342_v48  ;;  %v3660_v49 = vpop.f32.mrb[149].mxu1 }
 0x2fe   :  { %v6925_v39 = vadd.f32 %v4500_v46, %v3459_v6  ;;  %v3461_v35 = vpop.f32.mrb[85].mxu0  ;;  %v3661_v17 = vadd.f32 %v6734_v59, %v3660_v49  ;;  %v4343_v61 = vpop.f32.mrb[150].mxu1  ;;  %v4504_v59 = vadd.f32 %v6552_v26, %v6682_v31 }
 0x2ff   :  { %3857 = vst [vmem:[%s7144_s3 + $0xb0] sm:$0xff] %v3669_v41  ;;  %v3462_v47 = vpop.f32.mrb[86].mxu0  ;;  %v3672_v22 = vadd.f32 %v6750_v45, %v4343_v61  ;;  %v3663_v54 = vpop.f32.mrb[151].mxu1  ;;  %v7159_v41 = vld [vmem:[#allocation2_spill] sm:$0xff] }
 0x300   :  { %3855 = vst [vmem:[%s7144_s3 + $0xa0] sm:$0xff] %v3661_v17  ;;  %v6935_v25 = vadd.f32 %v4502_v21, %v3462_v47  ;;  %v3464_v15 = vpop.f32.mrb[87].mxu0  ;;  %v3664_v57 = vadd.f32 %v6738_v63, %v3663_v54  ;;  %v4514_v49 = vadd.f32 %v6552_v26, %v7159_v41 }
 0x301   :  { %3858 = vst [vmem:[%s7144_s3 + $0xb8] sm:$0xff] %v3672_v22 }
 0x302   :  { %3856 = vst [vmem:[%s7144_s3 + $0xa8] sm:$0xff] %v3664_v57 }
 0x304   :  { %v4346_v45 = vpop.f32.mrb[152].mxu1 }
 0x305   :  { %v3467_v7 = vpop.f32.mrb[88].mxu0  ;;  %v3685_v0 = vadd.f32 %v6770_v62, %v4346_v45  ;;  %v3676_v51 = vpop.f32.mrb[153].mxu1 }
 0x306   :  { %v6949_v63 = vadd.f32 %v4504_v59, %v3467_v7  ;;  %v3469_v9 = vpop.f32.mrb[89].mxu0  ;;  %v3677_v14 = vadd.f32 %v6758_v16, %v3676_v51  ;;  %v4347_v2 = vpop.f32.mrb[154].mxu1  ;;  %v4508_v16 = vadd.f32 %v6552_v26, %v6694_v58  ;;  %v7161_v7 = vld [vmem:[#allocation4_spill] sm:$0xff] }
 0x307   :  { %3861 = vst [vmem:[%s7144_s3 + $0xd0] sm:$0xff] %v3685_v0  ;;  %v3470_v33 = vpop.f32.mrb[90].mxu0  ;;  %v3688_v31 = vadd.f32 %v6774_v27, %v4347_v2  ;;  %v3679_v30 = vpop.f32.mrb[155].mxu1  ;;  %v4518_v0 = vadd.f32 %v6552_v26, %v7161_v7 }
 0x308   :  { %3859 = vst [vmem:[%s7144_s3 + $0xc0] sm:$0xff] %v3677_v14  ;;  %v6959_v62 = vadd.f32 %v4506_v34, %v3470_v33  ;;  %v3472_v19 = vpop.f32.mrb[91].mxu0  ;;  %v3680_v3 = vadd.f32 %v6762_v42, %v3679_v30 }
 0x309   :  { %3862 = vst [vmem:[%s7144_s3 + $0xd8] sm:$0xff] %v3688_v31 }
 0x30a   :  { %3860 = vst [vmem:[%s7144_s3 + $0xc8] sm:$0xff] %v3680_v3 }
 0x30c   :  { %v4350_v27 = vpop.f32.mrb[156].mxu1 }
 0x30d   :  { %v3475_v40 = vpop.f32.mrb[92].mxu0  ;;  %v3701_v32 = vadd.f32 %v6794_v12, %v4350_v27  ;;  %v3692_v37 = vpop.f32.mrb[157].mxu1 }
 0x30e   :  { %v6973_v42 = vadd.f32 %v4508_v16, %v3475_v40  ;;  %v3477_v36 = vpop.f32.mrb[93].mxu0  ;;  %v3693_v53 = vadd.f32 %v6782_v56, %v3692_v37  ;;  %v4351_v28 = vpop.f32.mrb[158].mxu1  ;;  %v4512_v56 = vadd.f32 %v6552_v26, %v6706_v29  ;;  %v7163_v40 = vld [vmem:[#allocation6_spill] sm:$0xff] }
 0x30f   :  { %3865 = vst [vmem:[%s7144_s3 + $0xf0] sm:$0xff] %v3701_v32  ;;  %v3478_v24 = vpop.f32.mrb[94].mxu0  ;;  %v3704_v58 = vadd.f32 %v6798_v18, %v4351_v28  ;;  %v3695_v43 = vpop.f32.mrb[159].mxu1  ;;  %v4522_v32 = vadd.f32 %v6552_v26, %v7163_v40 }
 0x310   :  { %3863 = vst [vmem:[%s7144_s3 + $0xe0] sm:$0xff] %v3693_v53  ;;  %v6983_v12 = vadd.f32 %v4510_v60, %v3478_v24  ;;  %v3480_v20 = vpop.f32.mrb[95].mxu0  ;;  %v3696_v13 = vadd.f32 %v6786_v8, %v3695_v43 }
 0x311   :  { %3866 = vst [vmem:[%s7144_s3 + $0xf8] sm:$0xff] %v3704_v58 }
 0x312   :  { %3864 = vst [vmem:[%s7144_s3 + $0xe8] sm:$0xff] %v3696_v13 }
 0x314   :  { %v4354_v18 = vpop.f32.mrb[160].mxu1 }
 0x315   :  { %v3483_v46 = vpop.f32.mrb[96].mxu0  ;;  %v3717_v48 = vadd.f32 %v6829_v52, %v4354_v18  ;;  %v3708_v6 = vpop.f32.mrb[161].mxu1 }
 0x316   :  { %v6997_v8 = vadd.f32 %v4512_v56, %v3483_v46  ;;  %v3485_v21 = vpop.f32.mrb[97].mxu0  ;;  %v3709_v35 = vadd.f32 %v6805_v23, %v3708_v6  ;;  %v4355_v17 = vpop.f32.mrb[162].mxu1  ;;  %v7160_v23 = vld [vmem:[#allocation3_spill] sm:$0xff]  ;;  %v7165_v46 = vld [vmem:[#allocation8_spill] sm:$0xff] }
 0x317   :  { %3869 = vst [vmem:[%s7144_s3 + $0x110] sm:$0xff] %v3717_v48  ;;  %v3486_v61 = vpop.f32.mrb[98].mxu0  ;;  %v3720_v29 = vadd.f32 %v6839_v4, %v4355_v17  ;;  %v3711_v47 = vpop.f32.mrb[163].mxu1  ;;  %v4516_v4 = vadd.f32 %v6552_v26, %v7160_v23  ;;  %v4526_v48 = vadd.f32 %v6552_v26, %v7165_v46 }
 0x318   :  { %3867 = vst [vmem:[%s7144_s3 + $0x100] sm:$0xff] %v3709_v35  ;;  %v7007_v52 = vadd.f32 %v4514_v49, %v3486_v61  ;;  %v3488_v22 = vpop.f32.mrb[99].mxu0  ;;  %v3712_v54 = vadd.f32 %v6815_v1, %v3711_v47 }
 0x319   :  { %3870 = vst [vmem:[%s7144_s3 + $0x118] sm:$0xff] %v3720_v29 }
 0x31a   :  { %3868 = vst [vmem:[%s7144_s3 + $0x108] sm:$0xff] %v3712_v54 }
 0x31c   :  { %v4358_v15 = vpop.f32.mrb[164].mxu1 }
 0x31d   :  { %v3491_v57 = vpop.f32.mrb[100].mxu0  ;;  %v3733_v59 = vadd.f32 %v6877_v50, %v4358_v15  ;;  %v3724_v45 = vpop.f32.mrb[165].mxu1 }
 0x31e   :  { %v4517_v1 = vadd.f32 %v4516_v4, %v3491_v57  ;;  %v3493_v51 = vpop.f32.mrb[101].mxu0  ;;  %v3725_v34 = vadd.f32 %v6853_v5, %v3724_v45  ;;  %v4359_v9 = vpop.f32.mrb[166].mxu1  ;;  %v7162_v5 = vld [vmem:[#allocation5_spill] sm:$0xff]  ;;  %v7167_v4 = vld [vmem:[#allocation10_spill] sm:$0xff] }
 0x31f   :  { %3873 = vst [vmem:[%s7144_s3 + $0x130] sm:$0xff] %v3733_v59  ;;  %v3494_v14 = vpop.f32.mrb[102].mxu0  ;;  %v3736_v2 = vadd.f32 %v6887_v10, %v4359_v9  ;;  %v3727_v33 = vpop.f32.mrb[167].mxu1  ;;  %v4520_v10 = vadd.f32 %v6552_v26, %v7162_v5  ;;  %v4530_v15 = vadd.f32 %v6552_v26, %v7167_v4 }
 0x320   :  { %3871 = vst [vmem:[%s7144_s3 + $0x120] sm:$0xff] %v3725_v34  ;;  %v4519_v50 = vadd.f32 %v4518_v0, %v3494_v14  ;;  %v3496_v31 = vpop.f32.mrb[103].mxu0  ;;  %v3728_v30 = vadd.f32 %v6863_v11, %v3727_v33 }
 0x321   :  { %3874 = vst [vmem:[%s7144_s3 + $0x138] sm:$0xff] %v3736_v2 }
 0x322   :  { %3872 = vst [vmem:[%s7144_s3 + $0x128] sm:$0xff] %v3728_v30  ;;  %v7169_v30 = vld [vmem:[#allocation12_spill] sm:$0xff] }
 0x323   :  { %v4534_v5 = vadd.f32 %v6552_v26, %v7169_v30 }
 0x324   :  { %v4362_v19 = vpop.f32.mrb[168].mxu1 }
 0x325   :  { %v3499_v3 = vpop.f32.mrb[104].mxu0  ;;  %v3749_v16 = vadd.f32 %v6925_v39, %v4362_v19  ;;  %v3740_v27 = vpop.f32.mrb[169].mxu1 }
 0x326   :  { %v4521_v11 = vadd.f32 %v4520_v10, %v3499_v3  ;;  %v3501_v37 = vpop.f32.mrb[105].mxu0  ;;  %v3741_v60 = vadd.f32 %v6901_v55, %v3740_v27  ;;  %v4363_v36 = vpop.f32.mrb[170].mxu1  ;;  %v7164_v55 = vld [vmem:[#allocation7_spill] sm:$0xff] }
 0x327   :  { %3877 = vst [vmem:[%s7144_s3 + $0x150] sm:$0xff] %v3749_v16  ;;  %v3502_v53 = vpop.f32.mrb[106].mxu0  ;;  %v3752_v28 = vadd.f32 %v6935_v25, %v4363_v36  ;;  %v3743_v24 = vpop.f32.mrb[171].mxu1  ;;  %v4524_v25 = vadd.f32 %v6552_v26, %v7164_v55 }
 0x328   :  { %3875 = vst [vmem:[%s7144_s3 + $0x140] sm:$0xff] %v3741_v60  ;;  %v4523_v39 = vadd.f32 %v4522_v32, %v3502_v53  ;;  %v3504_v58 = vpop.f32.mrb[107].mxu0  ;;  %v3744_v43 = vadd.f32 %v6911_v44, %v3743_v24 }
 0x329   :  { %3878 = vst [vmem:[%s7144_s3 + $0x158] sm:$0xff] %v3752_v28 }
 0x32a   :  { %3876 = vst [vmem:[%s7144_s3 + $0x148] sm:$0xff] %v3744_v43  ;;  %v7171_v43 = vld [vmem:[#allocation14_spill] sm:$0xff] }
 0x32c   :  { %v4366_v20 = vpop.f32.mrb[172].mxu1 }
 0x32d   :  { %v3507_v13 = vpop.f32.mrb[108].mxu0  ;;  %v3765_v56 = vadd.f32 %v6973_v42, %v4366_v20  ;;  %v3756_v18 = vpop.f32.mrb[173].mxu1 }
 0x32e   :  { %v4525_v44 = vadd.f32 %v4524_v25, %v3507_v13  ;;  %v3509_v6 = vpop.f32.mrb[109].mxu0  ;;  %v3757_v41 = vadd.f32 %v6949_v63, %v3756_v18  ;;  %v4367_v49 = vpop.f32.mrb[174].mxu1  ;;  %v7166_v63 = vld [vmem:[#allocation9_spill] sm:$0xff] }
 0x32f   :  { %3881 = vst [vmem:[%s7144_s3 + $0x170] sm:$0xff] %v3765_v56  ;;  %v3510_v21 = vpop.f32.mrb[110].mxu0  ;;  %v3768_v35 = vadd.f32 %v6983_v12, %v4367_v49  ;;  %v3759_v17 = vpop.f32.mrb[175].mxu1  ;;  %v4528_v12 = vadd.f32 %v6552_v26, %v7166_v63 }
 0x330   :  { %3879 = vst [vmem:[%s7144_s3 + $0x160] sm:$0xff] %v3757_v41  ;;  %v4527_v42 = vadd.f32 %v4526_v48, %v3510_v21  ;;  %v3512_v61 = vpop.f32.mrb[111].mxu0  ;;  %v3760_v29 = vadd.f32 %v6959_v62, %v3759_v17  ;;  %v7172_v41 = vld [vmem:[#allocation15_spill] sm:$0xff] }
 0x331   :  { %3882 = vst [vmem:[%s7144_s3 + $0x178] sm:$0xff] %v3768_v35 }
 0x332   :  { %3880 = vst [vmem:[%s7144_s3 + $0x168] sm:$0xff] %v3760_v29 }
 0x334   :  { %v4370_v47 = vpop.f32.mrb[176].mxu1 }
 0x335   :  { %v3515_v22 = vpop.f32.mrb[112].mxu0  ;;  %v3781_v54 = vadd.f32 %v4517_v1, %v4370_v47  ;;  %v3772_v23 = vpop.f32.mrb[177].mxu1 }
 0x336   :  { %v4529_v57 = vadd.f32 %v4528_v12, %v3515_v22  ;;  %v3517_v62 = vpop.f32.mrb[113].mxu0  ;;  %v3773_v59 = vadd.f32 %v6997_v8, %v3772_v23  ;;  %v4371_v45 = vpop.f32.mrb[178].mxu1  ;;  %v7168_v8 = vld [vmem:[#allocation11_spill] sm:$0xff] }
 0x337   :  { %3885 = vst [vmem:[%s7144_s3 + $0x190] sm:$0xff] %v3781_v54  ;;  %v3518_v7 = vpop.f32.mrb[114].mxu0  ;;  %v3784_v0 = vadd.f32 %v4519_v50, %v4371_v45  ;;  %v3775_v51 = vpop.f32.mrb[179].mxu1  ;;  %v4532_v14 = vadd.f32 %v6552_v26, %v7168_v8  ;;  %v5289_v26 = vld [vmem:[%s7143_s2] ss:$0 sm:$0xff] }
 0x338   :  { %3883 = vst [vmem:[%s7144_s3 + $0x180] sm:$0xff] %v3773_v59  ;;  %v4531_v1 = vadd.f32 %v4530_v15, %v3518_v7  ;;  %v3520_v34 = vpop.f32.mrb[115].mxu0  ;;  %v3776_v9 = vadd.f32 %v7007_v52, %v3775_v51  ;;  %v4540_v49 = vadd.f32 %v5289_v26, %v7172_v41 }
 0x339   :  { %3886 = vst [vmem:[%s7144_s3 + $0x198] sm:$0xff] %v3784_v0 }
 0x33a   :  { %3884 = vst [vmem:[%s7144_s3 + $0x188] sm:$0xff] %v3776_v9 }
 0x33c   :  { %v4374_v2 = vpop.f32.mrb[180].mxu1 }
 0x33d   :  { %v3523_v33 = vpop.f32.mrb[116].mxu0  ;;  %v3797_v50 = vadd.f32 %v4525_v44, %v4374_v2  ;;  %v3788_v31 = vpop.f32.mrb[181].mxu1 }
 0x33e   :  { %v4533_v10 = vadd.f32 %v4532_v14, %v3523_v33  ;;  %v3525_v52 = vpop.f32.mrb[117].mxu0  ;;  %v3789_v19 = vadd.f32 %v4521_v11, %v3788_v31  ;;  %v4375_v3 = vpop.f32.mrb[182].mxu1  ;;  %v7170_v11 = vld [vmem:[#allocation13_spill] sm:$0xff] }
 0x33f   :  { %3889 = vst [vmem:[%s7144_s3 + $0x1b0] sm:$0xff] %v3797_v50  ;;  %v3526_v16 = vpop.f32.mrb[118].mxu0  ;;  %v3800_v27 = vadd.f32 %v4527_v42, %v4375_v3  ;;  %v3791_v40 = vpop.f32.mrb[183].mxu1  ;;  %v4536_v36 = vadd.f32 %v5289_v26, %v7170_v11  ;;  %v4542_v42 = vadd.f32 %v5289_v26, %v6796_v38 }
 0x340   :  { %3887 = vst [vmem:[%s7144_s3 + $0x1a0] sm:$0xff] %v3789_v19  ;;  %v4535_v32 = vadd.f32 %v4534_v5, %v3526_v16  ;;  %v3528_v37 = vpop.f32.mrb[119].mxu0  ;;  %v3792_v60 = vadd.f32 %v4523_v39, %v3791_v40  ;;  %v4538_v39 = vadd.f32 %v5289_v26, %v7171_v43 }
 0x341   :  { %3890 = vst [vmem:[%s7144_s3 + $0x1b8] sm:$0xff] %v3800_v27 }
 0x342   :  { %3888 = vst [vmem:[%s7144_s3 + $0x1a8] sm:$0xff] %v3792_v60 }
 0x344   :  { %v4378_v53 = vpop.f32.mrb[184].mxu1 }
 0x345   :  { %v3531_v28 = vpop.f32.mrb[120].mxu0  ;;  %v3813_v24 = vadd.f32 %v4533_v10, %v4378_v53  ;;  %v3804_v58 = vpop.f32.mrb[185].mxu1 }
 0x346   :  { %v4537_v55 = vadd.f32 %v4536_v36, %v3531_v28  ;;  %v3533_v25 = vpop.f32.mrb[121].mxu0  ;;  %v3805_v20 = vadd.f32 %v4529_v57, %v3804_v58  ;;  %v4379_v13 = vpop.f32.mrb[186].mxu1 }
 0x347   :  { %3893 = vst [vmem:[%s7144_s3 + $0x1d0] sm:$0xff] %v3813_v24  ;;  %v3534_v56 = vpop.f32.mrb[122].mxu0  ;;  %v3816_v18 = vadd.f32 %v4535_v32, %v4379_v13  ;;  %v3807_v46 = vpop.f32.mrb[187].mxu1 }
 0x348   :  { %3891 = vst [vmem:[%s7144_s3 + $0x1c0] sm:$0xff] %v3805_v20  ;;  %v4539_v48 = vadd.f32 %v4538_v39, %v3534_v56  ;;  %v3536_v44 = vpop.f32.mrb[123].mxu0  ;;  %v3808_v6 = vadd.f32 %v4531_v1, %v3807_v46 }
 0x349   :  { %3894 = vst [vmem:[%s7144_s3 + $0x1d8] sm:$0xff] %v3816_v18 }
 0x34a   :  { %3892 = vst [vmem:[%s7144_s3 + $0x1c8] sm:$0xff] %v3808_v6 }
 0x34c   :  { %v4382_v21 = vpop.f32.mrb[188].mxu1 }
 0x34d   :  { %v3539_v35 = vpop.f32.mrb[124].mxu0  ;;  %v3820_v17 = vpop.f32.mrb[189].mxu1 }
 0x34e   :  { %v4541_v61 = vadd.f32 %v4540_v49, %v3539_v35  ;;  %v3541_v29 = vpop.f32.mrb[125].mxu0  ;;  %v3821_v63 = vadd.f32 %v4537_v55, %v3820_v17  ;;  %v4383_v12 = vpop.f32.mrb[190].mxu1 }
 0x34f   :  { %v3542_v47 = vpop.f32.mrb[126].mxu0  ;;  %v3823_v22 = vpop.f32.mrb[191].mxu1 }
 0x350   :  { %v3829_v54 = vadd.f32 %v4541_v61, %v4382_v21  ;;  %3895 = vst [vmem:[%s7144_s3 + $0x1e0] sm:$0xff] %v3821_v63  ;;  %v4543_v23 = vadd.f32 %v4542_v42, %v3542_v47  ;;  %v3544_v4 = vpop.f32.mrb[127].mxu0  ;;  %v3824_v15 = vadd.f32 %v4539_v48, %v3823_v22 }
 0x352   :  { %3897 = vst [vmem:[%s7144_s3 + $0x1f0] sm:$0xff] %v3829_v54  ;;  %v3832_v57 = vadd.f32 %v4543_v23, %v4383_v12  ;;  %3896 = vst [vmem:[%s7144_s3 + $0x1e8] sm:$0xff] %v3824_v15 }
 0x354   :  { %3898 = vst [vmem:[%s7144_s3 + $0x1f8] sm:$0xff] %v3832_v57 }

</bundles_post_ra>
